<compile_context>
chip_gen: v7x
topology: tpu7x:2x2x1
jax: 0.10.0
libtpu: 0.0.40
codegen_flags: <defaults>
</compile_context>

<pallas_src>
import math

import jax
import jax.numpy as jnp
from jax.experimental import pallas as pl
from jax.experimental.pallas import tpu as pltpu

EPS = 1e-5
GROUPS = 32
TEMB_DIM = 1280
CHAN_TILE_CAP = 384   # up to 3*128 lanes: lets 320/384-wide channel tiles feed the
                      # 256-wide MXU on v6e/v7x instead of falling back to 128.


def _vmem_budget_bytes():
    # Derive the scoped-VMEM budget from the actual chip (v7x: 64 MiB physical,
    # v5e/v6e: 128 MiB) instead of a fixed constant.
    try:
        cap = int(pltpu.get_tpu_info().vmem_capacity_bytes)
    except Exception:
        cap = 64 << 20                              # conservative (v7x physical)
    return max(32 << 20, min(cap * 3 // 4, 96 << 20))


VMEM_LIMIT = _vmem_budget_bytes()


def _cparams(sem):
    return pltpu.CompilerParams(dimension_semantics=sem, vmem_limit_bytes=VMEM_LIMIT)


def _channel_tile(n, cap=CHAN_TILE_CAP):
    """Channel tile <= cap.  Prefers >=256 multiples of 128 (fills the v6e/v7x
    MXU); otherwise takes the largest divisor <= cap so widths like 320/640/960
    get a 320-wide tile instead of dropping to 128."""
    cands = [t for t in range(1, min(n, cap) + 1) if n % t == 0]
    m128 = [t for t in cands if t % 128 == 0]
    if m128 and max(m128) >= 256:
        return max(m128)
    return max(cands)


def _row_tile(hw, c, target_bytes):
    """Largest divisor of hw (multiple of 8, or full) with ~target_bytes f32 rows."""
    cap = max(8, target_bytes // (4 * c))
    cands = [t for t in range(1, min(hw, cap) + 1)
             if hw % t == 0 and (t % 8 == 0 or t == hw)]
    if not cands:
        cands = [t for t in range(1, hw + 1) if hw % t == 0]
    return max(cands)


# --------------------------- Pallas kernels ---------------------------------

def _gn_stats_kernel(x_ref, s_ref, q_ref):
    # x_ref: (1, hw_t, C).  Accumulate per-channel sum / sum-of-squares over the
    # 'arbitrary' HW-tile axis (pure VPU/XLU reduction).
    @pl.when(pl.program_id(1) == 0)
    def _():
        s_ref[...] = jnp.zeros_like(s_ref)
        q_ref[...] = jnp.zeros_like(q_ref)

    x = x_ref[0].astype(jnp.float32)                 # (hw_t, C)
    s_ref[0] += jnp.sum(x, axis=0, keepdims=True)
    q_ref[0] += jnp.sum(x * x, axis=0, keepdims=True)


def _make_conv3x3_kernel(H, W, n_a, two, has_res):
    """Fused [GroupNorm affine + SiLU] -> 3x3 conv (+bias/temb) (+residual).

    Ref order: xa, sca, sha, [xb, scb, shb,] w, b, [res,] o, xn_scratch, acc_scratch.
    The Cin grid axis walks source A (n_a steps) then source B (concat removal)."""

    def kernel(*refs):
        i = 0
        xa, sca, sha = refs[i:i + 3]; i += 3
        if two:
            xb, scb, shb = refs[i:i + 3]; i += 3
        w_ref, b_ref = refs[i:i + 2]; i += 2
        res_ref = None
        if has_res:
            res_ref = refs[i]; i += 1
        o_ref, xn_ref, acc_ref = refs[i:i + 3]

        ci = pl.program_id(2)
        cin_t = xn_ref.shape[-1]
        cout_t = acc_ref.shape[-1]

        @pl.when(ci == 0)
        def _():
            # Halo-only zeroing: the interior (incl. the zero side columns) is
            # rewritten every ci step, so only the top/bottom halo rows need a
            # one-time zero per output tile (was: full-scratch zero).
            zr = jnp.zeros((1, W + 2, cin_t), jnp.bfloat16)
            xn_ref[0:1, :, :] = zr
            xn_ref[H + 1:H + 2, :, :] = zr
            acc_ref[...] = jnp.zeros_like(acc_ref)

        def write_norm(x_ref, sc_ref, sh_ref):
            # Fused GroupNorm (folded per-channel scale/shift) + SiLU prologue.
            x = x_ref[0].astype(jnp.float32)                       # (H, W, cin_t)
            y = x * sc_ref[...] + sh_ref[...]
            y = y * pl.reciprocal(1.0 + jnp.exp(-y), approx=True)  # SiLU via EUP
            y = y.astype(jnp.bfloat16)                             # single bf16 cast
            zc = jnp.zeros((H, 1, cin_t), jnp.bfloat16)
            # One sublane-aligned interior store, side halo columns included.
            xn_ref[1:H + 1, :, :] = jnp.concatenate([zc, y, zc], axis=1)

        if two:
            @pl.when(ci < n_a)
            def _():
                write_norm(xa, sca, sha)

            @pl.when(ci >= n_a)
            def _():
                write_norm(xb, scb, shb)
        else:
            write_norm(xa, sca, sha)

        # 3x3 conv: merge the 3 kx taps of each ky into ONE K = 3*cin_t matmul
        # (3 MXU calls + 3 accumulator RMWs per ci step instead of 9).
        for ky in range(3):
            slab = xn_ref[ky:ky + H, :, :]                         # (H, W+2, cin_t) bf16
            lhs = jnp.concatenate(
                [slab[:, 0:W, :], slab[:, 1:W + 1, :], slab[:, 2:W + 2, :]], axis=-1)
            lhs = lhs.reshape(H * W, 3 * cin_t)
            wk = w_ref[ky].reshape(3 * cin_t, cout_t)              # (kx, cin_t) -> K
            acc_ref[...] += jnp.dot(lhs, wk, preferred_element_type=jnp.float32)

        @pl.when(ci == pl.num_programs(2) - 1)
        def _():
            out = acc_ref[...] + b_ref[0]                          # bias (+ temb)
            if res_ref is not None:
                out = out + res_ref[0].astype(jnp.float32)         # fused shortcut add
            o_ref[0] = out.astype(o_ref.dtype)

    return kernel


def _make_conv1x1_kernel(n_a, two):
    """1x1 shortcut conv = per-pixel matmul over the (virtual) channel concat."""

    def kernel(*refs):
        i = 0
        xa = refs[i]; i += 1
        xb = None
        if two:
            xb = refs[i]; i += 1
        w_ref, b_ref, o_ref, acc_ref = refs[i], refs[i + 1], refs[i + 2], refs[i + 3]
        ci = pl.program_id(3)

        @pl.when(ci == 0)
        def _():
            acc_ref[...] = jnp.zeros_like(acc_ref)

        def accum(x_ref):
            acc_ref[...] += jnp.dot(x_ref[0].astype(jnp.bfloat16), w_ref[...],
                                    preferred_element_type=jnp.float32)

        if two:
            @pl.when(ci < n_a)
            def _():
                accum(xa)

            @pl.when(ci >= n_a)
            def _():
                accum(xb)
        else:
            accum(xa)

        @pl.when(ci == pl.num_programs(3) - 1)
        def _():
            o_ref[0] = (acc_ref[...] + b_ref[...]).astype(o_ref.dtype)

    return kernel


# --------------------------- Tiling helpers ----------------------------------

def _conv3x3_tiles(H, W, cin_unit, cout, part_bytes, res_bytes, out_bytes):
    """Pick (cin_t, cout_t) that fit the VMEM budget; keep cout_t as large as
    possible so the GN+SiLU prologue is repeated as few times as possible."""

    def est(ci_t, co_t):
        xb = 2 * H * W * ci_t * sum(part_bytes)           # double-buffered x blocks
        wb = 2 * 9 * ci_t * co_t * 2                      # bf16 weight blocks
        ob = 2 * H * W * co_t * out_bytes                 # output blocks
        rb = 2 * H * W * co_t * res_bytes                 # residual blocks
        xn = (H + 2) * (W + 2) * ci_t * 2                 # bf16 normalized scratch
        acc = H * W * co_t * 4                            # f32 accumulator
        return xb + wb + ob + rb + xn + acc + (2 << 20)

    ci_t = _channel_tile(cin_unit)
    co_t = _channel_tile(cout)

    def next_div(n, t):
        d = [v for v in range(1, t) if n % v == 0]
        return max(d) if d else t

    while est(ci_t, co_t) > VMEM_LIMIT and (ci_t > 8 or co_t > 8):
        if ci_t >= co_t and ci_t > 8:
            ci_t = next_div(cin_unit, ci_t)
        elif co_t > 8:
            co_t = next_div(cout, co_t)
        else:
            ci_t = next_div(cin_unit, ci_t)
    return ci_t, co_t


# --------------------------- Pallas wrappers ---------------------------------

def gn_stats(x_flat):
    """Per-(B, C) sum and sum-of-squares, tiled over HW (large ~8 MiB tiles)."""
    B, HW, C = x_flat.shape
    hw_t = _row_tile(HW, C, target_bytes=8 << 20)
    s, q = pl.pallas_call(
        _gn_stats_kernel,
        out_shape=(jax.ShapeDtypeStruct((B, 1, C), jnp.float32),
                   jax.ShapeDtypeStruct((B, 1, C), jnp.float32)),
        grid=(B, HW // hw_t),
        in_specs=[pl.BlockSpec((1, hw_t, C), lambda b, t: (b, t, 0))],
        out_specs=[pl.BlockSpec((1, 1, C), lambda b, t: (b, 0, 0)),
                   pl.BlockSpec((1, 1, C), lambda b, t: (b, 0, 0))],
        compiler_params=_cparams(("parallel", "arbitrary")),
    )(x_flat)
    return s[:, 0, :], q[:, 0, :]


def gn_scale_shift_parts(parts_flat, gamma, beta):
    """GroupNorm(32) over the *virtual* channel-concat of `parts_flat`, folded
    into per-channel scale/shift (tiny math in plain JAX). Returns one
    (scale, shift) pair per part, each (B, 1, Ci)."""
    B, HW, _ = parts_flat[0].shape
    sums, sqs, cs = [], [], []
    for xp in parts_flat:
        s, q = gn_stats(xp)
        sums.append(s)
        sqs.append(q)
        cs.append(int(xp.shape[-1]))
    s = jnp.concatenate(sums, axis=-1) if len(sums) > 1 else sums[0]
    q = jnp.concatenate(sqs, axis=-1) if len(sqs) > 1 else sqs[0]
    C = int(s.shape[-1])
    gs = C // GROUPS
    n = HW * gs
    s_g = s.reshape(B, GROUPS, gs).sum(-1)
    q_g = q.reshape(B, GROUPS, gs).sum(-1)
    mean = s_g / n
    var = jnp.maximum(q_g / n - mean * mean, 0.0)        # clamp: no negative var
    rstd = jax.lax.rsqrt(var + EPS)
    mean_c = jnp.repeat(mean, gs, axis=-1)               # (B, C)
    rstd_c = jnp.repeat(rstd, gs, axis=-1)
    scale = gamma.reshape(1, C) * rstd_c
    shift = beta.reshape(1, C) - mean_c * scale
    out, off = [], 0
    for ci in cs:
        out.append((scale[:, off:off + ci].reshape(B, 1, ci),
                    shift[:, off:off + ci].reshape(B, 1, ci)))
        off += ci
    return out


def conv3x3_gn_silu(parts, scale_shift, w_bf16, bias, residual=None,
                    out_dtype=jnp.bfloat16):
    """Fused [GN affine + SiLU] -> 3x3 conv (+bias/temb) (+residual) over the
    virtual channel concat of `parts` (1 or 2 NHWC arrays, no HBM concat)."""
    B, H, W, _ = parts[0].shape
    HW = H * W
    Cout = w_bf16.shape[-1]
    cins = [int(p.shape[-1]) for p in parts]
    cin_unit = cins[0] if len(cins) == 1 else math.gcd(cins[0], cins[1])
    part_bytes = [p.dtype.itemsize for p in parts]
    res_bytes = residual.dtype.itemsize if residual is not None else 0
    cin_t, cout_t = _conv3x3_tiles(H, W, cin_unit, Cout, part_bytes, res_bytes,
                                   jnp.dtype(out_dtype).itemsize)
    n_blk = [c // cin_t for c in cins]
    n_a = n_blk[0]
    n_ci = sum(n_blk)
    two = len(parts) == 2
    grid = (B, Cout // cout_t, n_ci)                      # Cin (reduction) innermost

    if two:
        # Clamped maps: the inactive source keeps a constant block index, so the
        # pipeline skips its DMA (no extra HBM traffic for the removed concat).
        xa_map = lambda b, co, ci: (b, 0, 0, jnp.minimum(ci, n_a - 1))
        sa_map = lambda b, co, ci: (b, 0, jnp.minimum(ci, n_a - 1))
        xb_map = lambda b, co, ci: (b, 0, 0, jnp.maximum(ci - n_a, 0))
        sb_map = lambda b, co, ci: (b, 0, jnp.maximum(ci - n_a, 0))
    else:
        xa_map = lambda b, co, ci: (b, 0, 0, ci)
        sa_map = lambda b, co, ci: (b, 0, ci)

    in_specs = [pl.BlockSpec((1, H, W, cin_t), xa_map),
                pl.BlockSpec((1, 1, cin_t), sa_map),
                pl.BlockSpec((1, 1, cin_t), sa_map)]
    args = [parts[0], scale_shift[0][0], scale_shift[0][1]]
    if two:
        in_specs += [pl.BlockSpec((1, H, W, cin_t), xb_map),
                     pl.BlockSpec((1, 1, cin_t), sb_map),
                     pl.BlockSpec((1, 1, cin_t), sb_map)]
        args += [parts[1], scale_shift[1][0], scale_shift[1][1]]
    in_specs += [pl.BlockSpec((3, 3, cin_t, cout_t), lambda b, co, ci: (0, 0, ci, co)),
                 pl.BlockSpec((1, 1, cout_t), lambda b, co, ci: (b, 0, co))]
    args += [w_bf16, bias]
    if residual is not None:
        in_specs.append(pl.BlockSpec((1, HW, cout_t), lambda b, co, ci: (b, 0, co)))
        args.append(residual)

    kernel = _make_conv3x3_kernel(H, W, n_a, two, residual is not None)
    return pl.pallas_call(
        kernel,
        out_shape=jax.ShapeDtypeStruct((B, HW, Cout), out_dtype),
        grid=grid,
        in_specs=in_specs,
        out_specs=pl.BlockSpec((1, HW, cout_t), lambda b, co, ci: (b, 0, co)),
        scratch_shapes=[
            pltpu.VMEM((H + 2, W + 2, cin_t), jnp.bfloat16),  # bf16 normalized + halo
            pltpu.VMEM((HW, cout_t), jnp.float32),            # f32 accumulator
        ],
        compiler_params=_cparams(("parallel", "parallel", "arbitrary")),
    )(*args)


def conv1x1(parts_flat, w_bf16, bias, out_dtype=jnp.bfloat16):
    """1x1 shortcut conv over the virtual channel concat of `parts_flat`."""
    B, HW, _ = parts_flat[0].shape
    Cout = w_bf16.shape[-1]
    cins = [int(p.shape[-1]) for p in parts_flat]
    cin_unit = cins[0] if len(cins) == 1 else math.gcd(cins[0], cins[1])
    cin_t = _channel_tile(cin_unit)
    cout_t = _channel_tile(Cout)
    hw_t = _row_tile(HW, max(cin_t, cout_t), target_bytes=4 << 20)
    n_blk = [c // cin_t for c in cins]
    n_a = n_blk[0]
    n_ci = sum(n_blk)
    two = len(parts_flat) == 2
    grid = (B, HW // hw_t, Cout // cout_t, n_ci)

    if two:
        xa_map = lambda b, t, co, ci: (b, t, jnp.minimum(ci, n_a - 1))
        xb_map = lambda b, t, co, ci: (b, t, jnp.maximum(ci - n_a, 0))
    else:
        xa_map = lambda b, t, co, ci: (b, t, ci)

    in_specs = [pl.BlockSpec((1, hw_t, cin_t), xa_map)]
    args = [parts_flat[0]]
    if two:
        in_specs.append(pl.BlockSpec((1, hw_t, cin_t), xb_map))
        args.append(parts_flat[1])
    in_specs += [pl.BlockSpec((cin_t, cout_t), lambda b, t, co, ci: (ci, co)),
                 pl.BlockSpec((1, cout_t), lambda b, t, co, ci: (0, co))]
    args += [w_bf16, bias]

    kernel = _make_conv1x1_kernel(n_a, two)
    return pl.pallas_call(
        kernel,
        out_shape=jax.ShapeDtypeStruct((B, HW, Cout), out_dtype),
        grid=grid,
        in_specs=in_specs,
        out_specs=pl.BlockSpec((1, hw_t, cout_t), lambda b, t, co, ci: (b, t, co)),
        scratch_shapes=[pltpu.VMEM((hw_t, cout_t), jnp.float32)],
        compiler_params=_cparams(("parallel", "parallel", "parallel", "arbitrary")),
    )(*args)


# --------------------------- Model (glue in plain JAX) -----------------------

def resnet_forward(parts_nhwc, temb_act, p, out_dtype):
    # parts_nhwc: list of NHWC activations whose channel-concat is the resnet
    # input (the concat itself is never materialized in HBM).
    B, H, W, _ = parts_nhwc[0].shape
    HW = H * W
    cout = p["conv1_w"].shape[-1]
    parts_flat = [x.reshape(B, HW, x.shape[-1]) for x in parts_nhwc]

    w1 = p["conv1_w"].astype(jnp.bfloat16)
    w2 = p["conv2_w"].astype(jnp.bfloat16)
    wsc = p["sc_w"].astype(jnp.bfloat16)

    # norm1 stats (over the virtual concat) -> folded per-channel scale/shift
    ss1 = gn_scale_shift_parts(parts_flat, p["norm1_g"], p["norm1_b"])

    # time-embedding projection: tiny (M=B) matmul, left in plain JAX
    t = temb_act @ p["temb_w"] + p["temb_b"]                     # (B, cout)
    bias1 = (p["conv1_b"][None, :] + t).reshape(B, 1, cout)

    # conv1: fused GN+SiLU prologue, conv bias + temb in the epilogue; bf16 out
    h1 = conv3x3_gn_silu(parts_nhwc, ss1, w1, bias1, out_dtype=jnp.bfloat16)

    # 1x1 shortcut over the same two sources (residual add fused into conv2)
    sc = conv1x1(parts_flat, wsc, p["sc_b"].reshape(1, cout), out_dtype=jnp.bfloat16)

    # norm2 stats + conv2 with fused prologue and shortcut-add epilogue.
    # TODO(synk): Dropout(p=0.0) between norm2/SiLU and conv2 is the identity; omitted.
    ss2 = gn_scale_shift_parts([h1], p["norm2_g"], p["norm2_b"])
    bias2 = jnp.broadcast_to(p["conv2_b"].reshape(1, 1, cout), (B, 1, cout))
    out = conv3x3_gn_silu([h1.reshape(B, H, W, cout)], ss2, w2, bias2,
                          residual=sc, out_dtype=out_dtype)      # (B, HW, cout)
    return out.reshape(B, H, W, cout)


def upblock_forward(hidden, res_tuple, temb, params_list):
    temb_act = temb * jax.nn.sigmoid(temb)                       # SiLU(temb), shared
    res_list = list(res_tuple)
    h = hidden
    n = len(params_list)
    for i, p in enumerate(params_list):
        res = res_list.pop()                                     # res_hidden_states_tuple[-1]
        out_dtype = jnp.float32 if i == n - 1 else jnp.bfloat16  # bf16 intermediates
        h = resnet_forward([h, res], temb_act, p, out_dtype)     # concat done virtually
    return h


# --------------------------- Reference (pure JAX, f32) ------------------------

def _silu(x):
    return x * jax.nn.sigmoid(x)


def _gn_ref(x, gamma, beta):
    B, H, W, C = x.shape
    xg = x.reshape(B, H * W, GROUPS, C // GROUPS)
    mean = xg.mean(axis=(1, 3), keepdims=True)
    var = xg.var(axis=(1, 3), keepdims=True)
    y = (xg - mean) * jax.lax.rsqrt(var + EPS)
    return y.reshape(B, H, W, C) * gamma.reshape(1, 1, 1, C) + beta.reshape(1, 1, 1, C)


def _conv_ref(x, w, b):
    y = jax.lax.conv_general_dilated(x, w, (1, 1), "SAME",
                                     dimension_numbers=("NHWC", "HWIO", "NHWC"))
    return y + b.reshape(1, 1, 1, -1)


def _resnet_ref(x, temb, p):
    h = _silu(_gn_ref(x, p["norm1_g"], p["norm1_b"]))
    h = _conv_ref(h, p["conv1_w"], p["conv1_b"])
    t = _silu(temb) @ p["temb_w"] + p["temb_b"]
    h = h + t[:, None, None, :]
    h = _silu(_gn_ref(h, p["norm2_g"], p["norm2_b"]))
    h = _conv_ref(h, p["conv2_w"], p["conv2_b"])
    sc = jnp.einsum("bhwc,cd->bhwd", x, p["sc_w"]) + p["sc_b"].reshape(1, 1, 1, -1)
    return sc + h


def _upblock_ref(hidden, res_tuple, temb, params_list):
    res_list = list(res_tuple)
    h = hidden
    for p in params_list:
        res = res_list.pop()
        h = jnp.concatenate([h, res], axis=-1)
        h = _resnet_ref(h, temb, p)
    return h


# --------------------------- Params / main -----------------------------------

def make_resnet_params(key, cin, cout):
    ks = jax.random.split(key, 12)

    def nrm(k, shape, scale=0.05):
        return scale * jax.random.normal(k, shape, dtype=jnp.float32)

    return dict(
        norm1_g=1.0 + nrm(ks[0], (cin,), 0.1),
        norm1_b=nrm(ks[1], (cin,), 0.1),
        conv1_w=nrm(ks[2], (3, 3, cin, cout)),
        conv1_b=nrm(ks[3], (cout,)),
        temb_w=nrm(ks[4], (TEMB_DIM, cout), 0.02),
        temb_b=nrm(ks[5], (cout,)),
        norm2_g=1.0 + nrm(ks[6], (cout,), 0.1),
        norm2_b=nrm(ks[7], (cout,), 0.1),
        conv2_w=nrm(ks[8], (3, 3, cout, cout)),
        conv2_b=nrm(ks[9], (cout,)),
        sc_w=nrm(ks[10], (cin, cout)),
        sc_b=nrm(ks[11], (cout,)),
    )


if __name__ == "__main__":
    key = jax.random.PRNGKey(0)
    B, H, W = 2, 8, 8
    in_c, out_c, prev_c = 32, 32, 32   # GroupNorm(32) needs channel multiples of 32
    # NOTE: tile-choice conclusions should be validated on production UNet shapes
    # (C in {320, 640, 1280}, H/W in {32..128}); this toy shape is for correctness.

    k_in, k_r1, k_r2, k_r3, k_t, k_p = jax.random.split(key, 6)
    hidden = jax.random.normal(k_in, (B, H, W, prev_c), jnp.float32)
    res_tuple = (
        jax.random.normal(k_r1, (B, H, W, in_c), jnp.float32),   # used by resnet[2]
        jax.random.normal(k_r2, (B, H, W, out_c), jnp.float32),  # used by resnet[1]
        jax.random.normal(k_r3, (B, H, W, out_c), jnp.float32),  # used by resnet[0]
    )
    temb = jax.random.normal(k_t, (B, TEMB_DIM), jnp.float32)

    pk = jax.random.split(k_p, 3)
    cins = [out_c + prev_c, out_c * 2, out_c + in_c]
    params = [make_resnet_params(pk[i], cins[i], out_c) for i in range(3)]

    fwd = jax.jit(lambda h, r, t: upblock_forward(h, r, t, params))
    out = jax.block_until_ready(fwd(hidden, res_tuple, temb))

    ref = _upblock_ref(hidden, res_tuple, temb, params)
    max_err = float(jnp.max(jnp.abs(out - ref)))
    rel_err = max_err / (float(jnp.max(jnp.abs(ref))) + 1e-12)
    # bf16 MXU operands + bf16 intermediates (f32 accumulation) across 6 chained
    # convs => relative check against the f32 reference.
    assert rel_err < 5e-2, f"Pallas vs JAX mismatch: max abs {max_err}, rel {rel_err}"
    print("KERNEL_OK")
</pallas_src>

<mosaic_0001>
module attributes {stable_mosaic.version = 11 : i64} {
  func.func @_gn_stats_kernel(%arg0: i32, %arg1: i32, %arg2: memref<1x64x32xf32, #tpu.memory_space<vmem>>, %arg3: memref<1x1x32xf32, #tpu.memory_space<vmem>>, %arg4: memref<1x1x32xf32, #tpu.memory_space<vmem>>) attributes {dimension_semantics = [#tpu.dimension_semantics<parallel>, #tpu.dimension_semantics<arbitrary>], iteration_bounds = array<i64: 2, 1>, scalar_prefetch = 0 : i64, scratch_operands = 0 : i64, tpu.core_type = #tpu.core_type<tc>, window_params = [{transform_indices = @transform_0, window_bounds = array<i64: 1, 64, 32>}, {transform_indices = @transform_1, window_bounds = array<i64: 1, 1, 32>}, {transform_indices = @transform_2, window_bounds = array<i64: 1, 1, 32>}]} {
    %c0_i32 = arith.constant 0 : i32
    %0 = arith.cmpi eq, %arg1, %c0_i32 : i32
    %1 = arith.extui %0 : i1 to i32
    %c0_i32_0 = arith.constant 0 : i32
    %2 = arith.cmpi ne, %1, %c0_i32_0 : i32
    scf.if %2 {
      %cst_16 = arith.constant 0.000000e+00 : f32
      %22 = vector.broadcast %cst_16 : f32 to vector<1x1x32xf32>
      %c0_17 = arith.constant 0 : index
      %c0_18 = arith.constant 0 : index
      %c0_19 = arith.constant 0 : index
      %23 = vector.load %arg3[%c0_17, %c0_18, %c0_19] : memref<1x1x32xf32, #tpu.memory_space<vmem>>, vector<1x1x32xf32>
      tpu.vector_store %arg3[%c0_17, %c0_18, %c0_19], %22 {strides = array<i32>} : memref<1x1x32xf32, #tpu.memory_space<vmem>>, vector<1x1x32xf32>,
      %cst_20 = arith.constant 0.000000e+00 : f32
      %24 = vector.broadcast %cst_20 : f32 to vector<1x1x32xf32>
      %c0_21 = arith.constant 0 : index
      %c0_22 = arith.constant 0 : index
      %c0_23 = arith.constant 0 : index
      %25 = vector.load %arg4[%c0_21, %c0_22, %c0_23] : memref<1x1x32xf32, #tpu.memory_space<vmem>>, vector<1x1x32xf32>
      tpu.vector_store %arg4[%c0_21, %c0_22, %c0_23], %24 {strides = array<i32>} : memref<1x1x32xf32, #tpu.memory_space<vmem>>, vector<1x1x32xf32>,
    } else {
    }
    %c0 = arith.constant 0 : index
    %c0_1 = arith.constant 0 : index
    %c0_2 = arith.constant 0 : index
    %3 = vector.load %arg2[%c0, %c0_1, %c0_2] : memref<1x64x32xf32, #tpu.memory_space<vmem>>, vector<1x64x32xf32>
    %4 = vector.shape_cast %3 : vector<1x64x32xf32> to vector<64x32xf32>
    %c0_3 = arith.constant 0 : index
    %c0_4 = arith.constant 0 : index
    %c0_5 = arith.constant 0 : index
    %5 = vector.load %arg3[%c0_3, %c0_4, %c0_5] : memref<1x1x32xf32, #tpu.memory_space<vmem>>, vector<1x1x32xf32>
    %6 = vector.shape_cast %5 : vector<1x1x32xf32> to vector<1x32xf32>
    %cst = arith.constant dense<0.000000e+00> : vector<32xf32>
    %7 = vector.multi_reduction <add>, %4, %cst [0] : vector<64x32xf32> to vector<32xf32>
    %8 = vector.shape_cast %7 : vector<32xf32> to vector<1x32xf32>
    %9 = arith.addf %6, %8 : vector<1x32xf32>
    %c0_6 = arith.constant 0 : index
    %c0_7 = arith.constant 0 : index
    %c0_8 = arith.constant 0 : index
    %10 = vector.load %arg3[%c0_6, %c0_7, %c0_8] : memref<1x1x32xf32, #tpu.memory_space<vmem>>, vector<1x1x32xf32>
    %11 = vector.shape_cast %10 : vector<1x1x32xf32> to vector<1x32xf32>
    %12 = vector.shape_cast %9 : vector<1x32xf32> to vector<1x1x32xf32>
    tpu.vector_store %arg3[%c0_6, %c0_7, %c0_8], %12 {strides = array<i32>} : memref<1x1x32xf32, #tpu.memory_space<vmem>>, vector<1x1x32xf32>,
    %c0_9 = arith.constant 0 : index
    %c0_10 = arith.constant 0 : index
    %c0_11 = arith.constant 0 : index
    %13 = vector.load %arg4[%c0_9, %c0_10, %c0_11] : memref<1x1x32xf32, #tpu.memory_space<vmem>>, vector<1x1x32xf32>
    %14 = vector.shape_cast %13 : vector<1x1x32xf32> to vector<1x32xf32>
    %15 = arith.mulf %4, %4 : vector<64x32xf32>
    %cst_12 = arith.constant dense<0.000000e+00> : vector<32xf32>
    %16 = vector.multi_reduction <add>, %15, %cst_12 [0] : vector<64x32xf32> to vector<32xf32>
    %17 = vector.shape_cast %16 : vector<32xf32> to vector<1x32xf32>
    %18 = arith.addf %14, %17 : vector<1x32xf32>
    %c0_13 = arith.constant 0 : index
    %c0_14 = arith.constant 0 : index
    %c0_15 = arith.constant 0 : index
    %19 = vector.load %arg4[%c0_13, %c0_14, %c0_15] : memref<1x1x32xf32, #tpu.memory_space<vmem>>, vector<1x1x32xf32>
    %20 = vector.shape_cast %19 : vector<1x1x32xf32> to vector<1x32xf32>
    %21 = vector.shape_cast %18 : vector<1x32xf32> to vector<1x1x32xf32>
    tpu.vector_store %arg4[%c0_13, %c0_14, %c0_15], %21 {strides = array<i32>} : memref<1x1x32xf32, #tpu.memory_space<vmem>>, vector<1x1x32xf32>,
    return
  }
  func.func @transform_0(%arg0: i32, %arg1: i32) -> (i32, i32, i32) {
    %c0_i32 = arith.constant 0 : i32
    %c0_i32_0 = arith.constant 0 : i32
    return %arg0, %arg1, %c0_i32 : i32, i32, i32
  }
  func.func @transform_1(%arg0: i32, %arg1: i32) -> (i32, i32, i32) {
    %c0_i32 = arith.constant 0 : i32
    %c0_i32_0 = arith.constant 0 : i32
    %c0_i32_1 = arith.constant 0 : i32
    return %arg0, %c0_i32, %c0_i32_0 : i32, i32, i32
  }
  func.func @transform_2(%arg0: i32, %arg1: i32) -> (i32, i32, i32) {
    %c0_i32 = arith.constant 0 : i32
    %c0_i32_0 = arith.constant 0 : i32
    %c0_i32_1 = arith.constant 0 : i32
    return %arg0, %c0_i32, %c0_i32_0 : i32, i32, i32
  }
}

module attributes {stable_mosaic.version = 11 : i64} {
  func.func @_gn_stats_kernel(%arg0: i32, %arg1: i32, %arg2: memref<1x64x32xf32, #tpu.memory_space<vmem>>, %arg3: memref<1x1x32xf32, #tpu.memory_space<vmem>>, %arg4: memref<1x1x32xf32, #tpu.memory_space<vmem>>) attributes {dimension_semantics = [#tpu.dimension_semantics<parallel>, #tpu.dimension_semantics<arbitrary>], iteration_bounds = array<i64: 2, 1>, scalar_prefetch = 0 : i64, scratch_operands = 0 : i64, tpu.core_type = #tpu.core_type<tc>, window_params = [{transform_indices = @transform_0, window_bounds = array<i64: 1, 64, 32>}, {transform_indices = @transform_1, window_bounds = array<i64: 1, 1, 32>}, {transform_indices = @transform_2, window_bounds = array<i64: 1, 1, 32>}]} {
    %c0_i32 = arith.constant 0 : i32
    %0 = arith.cmpi eq, %arg1, %c0_i32 : i32
    %1 = arith.extui %0 : i1 to i32
    %c0_i32_0 = arith.constant 0 : i32
    %2 = arith.cmpi ne, %1, %c0_i32_0 : i32
    scf.if %2 {
      %cst_16 = arith.constant 0.000000e+00 : f32
      %22 = vector.broadcast %cst_16 : f32 to vector<1x1x32xf32>
      %c0_17 = arith.constant 0 : index
      %c0_18 = arith.constant 0 : index
      %c0_19 = arith.constant 0 : index
      %23 = vector.load %arg3[%c0_17, %c0_18, %c0_19] : memref<1x1x32xf32, #tpu.memory_space<vmem>>, vector<1x1x32xf32>
      tpu.vector_store %arg3[%c0_17, %c0_18, %c0_19], %22 {strides = array<i32>} : memref<1x1x32xf32, #tpu.memory_space<vmem>>, vector<1x1x32xf32>,
      %cst_20 = arith.constant 0.000000e+00 : f32
      %24 = vector.broadcast %cst_20 : f32 to vector<1x1x32xf32>
      %c0_21 = arith.constant 0 : index
      %c0_22 = arith.constant 0 : index
      %c0_23 = arith.constant 0 : index
      %25 = vector.load %arg4[%c0_21, %c0_22, %c0_23] : memref<1x1x32xf32, #tpu.memory_space<vmem>>, vector<1x1x32xf32>
      tpu.vector_store %arg4[%c0_21, %c0_22, %c0_23], %24 {strides = array<i32>} : memref<1x1x32xf32, #tpu.memory_space<vmem>>, vector<1x1x32xf32>,
    } else {
    }
    %c0 = arith.constant 0 : index
    %c0_1 = arith.constant 0 : index
    %c0_2 = arith.constant 0 : index
    %3 = vector.load %arg2[%c0, %c0_1, %c0_2] : memref<1x64x32xf32, #tpu.memory_space<vmem>>, vector<1x64x32xf32>
    %4 = vector.shape_cast %3 : vector<1x64x32xf32> to vector<64x32xf32>
    %c0_3 = arith.constant 0 : index
    %c0_4 = arith.constant 0 : index
    %c0_5 = arith.constant 0 : index
    %5 = vector.load %arg3[%c0_3, %c0_4, %c0_5] : memref<1x1x32xf32, #tpu.memory_space<vmem>>, vector<1x1x32xf32>
    %6 = vector.shape_cast %5 : vector<1x1x32xf32> to vector<1x32xf32>
    %cst = arith.constant dense<0.000000e+00> : vector<32xf32>
    %7 = vector.multi_reduction <add>, %4, %cst [0] : vector<64x32xf32> to vector<32xf32>
    %8 = vector.shape_cast %7 : vector<32xf32> to vector<1x32xf32>
    %9 = arith.addf %6, %8 : vector<1x32xf32>
    %c0_6 = arith.constant 0 : index
    %c0_7 = arith.constant 0 : index
    %c0_8 = arith.constant 0 : index
    %10 = vector.load %arg3[%c0_6, %c0_7, %c0_8] : memref<1x1x32xf32, #tpu.memory_space<vmem>>, vector<1x1x32xf32>
    %11 = vector.shape_cast %10 : vector<1x1x32xf32> to vector<1x32xf32>
    %12 = vector.shape_cast %9 : vector<1x32xf32> to vector<1x1x32xf32>
    tpu.vector_store %arg3[%c0_6, %c0_7, %c0_8], %12 {strides = array<i32>} : memref<1x1x32xf32, #tpu.memory_space<vmem>>, vector<1x1x32xf32>,
    %c0_9 = arith.constant 0 : index
    %c0_10 = arith.constant 0 : index
    %c0_11 = arith.constant 0 : index
    %13 = vector.load %arg4[%c0_9, %c0_10, %c0_11] : memref<1x1x32xf32, #tpu.memory_space<vmem>>, vector<1x1x32xf32>
    %14 = vector.shape_cast %13 : vector<1x1x32xf32> to vector<1x32xf32>
    %15 = arith.mulf %4, %4 : vector<64x32xf32>
    %cst_12 = arith.constant dense<0.000000e+00> : vector<32xf32>
    %16 = vector.multi_reduction <add>, %15, %cst_12 [0] : vector<64x32xf32> to vector<32xf32>
    %17 = vector.shape_cast %16 : vector<32xf32> to vector<1x32xf32>
    %18 = arith.addf %14, %17 : vector<1x32xf32>
    %c0_13 = arith.constant 0 : index
    %c0_14 = arith.constant 0 : index
    %c0_15 = arith.constant 0 : index
    %19 = vector.load %arg4[%c0_13, %c0_14, %c0_15] : memref<1x1x32xf32, #tpu.memory_space<vmem>>, vector<1x1x32xf32>
    %20 = vector.shape_cast %19 : vector<1x1x32xf32> to vector<1x32xf32>
    %21 = vector.shape_cast %18 : vector<1x32xf32> to vector<1x1x32xf32>
    tpu.vector_store %arg4[%c0_13, %c0_14, %c0_15], %21 {strides = array<i32>} : memref<1x1x32xf32, #tpu.memory_space<vmem>>, vector<1x1x32xf32>,
    return
  }
  func.func @transform_0(%arg0: i32, %arg1: i32) -> (i32, i32, i32) {
    %c0_i32 = arith.constant 0 : i32
    %c0_i32_0 = arith.constant 0 : i32
    return %arg0, %arg1, %c0_i32 : i32, i32, i32
  }
  func.func @transform_1(%arg0: i32, %arg1: i32) -> (i32, i32, i32) {
    %c0_i32 = arith.constant 0 : i32
    %c0_i32_0 = arith.constant 0 : i32
    %c0_i32_1 = arith.constant 0 : i32
    return %arg0, %c0_i32, %c0_i32_0 : i32, i32, i32
  }
  func.func @transform_2(%arg0: i32, %arg1: i32) -> (i32, i32, i32) {
    %c0_i32 = arith.constant 0 : i32
    %c0_i32_0 = arith.constant 0 : i32
    %c0_i32_1 = arith.constant 0 : i32
    return %arg0, %c0_i32, %c0_i32_0 : i32, i32, i32
  }
}

module attributes {stable_mosaic.version = 11 : i64} {
  func.func @kernel(%arg0: i32, %arg1: i32, %arg2: i32, %arg3: memref<1x8x8x32xf32, #tpu.memory_space<vmem>>, %arg4: memref<1x1x32xf32, #tpu.memory_space<vmem>>, %arg5: memref<1x1x32xf32, #tpu.memory_space<vmem>>, %arg6: memref<1x8x8x32xf32, #tpu.memory_space<vmem>>, %arg7: memref<1x1x32xf32, #tpu.memory_space<vmem>>, %arg8: memref<1x1x32xf32, #tpu.memory_space<vmem>>, %arg9: memref<3x3x32x32xbf16, #tpu.memory_space<vmem>>, %arg10: memref<1x1x32xf32, #tpu.memory_space<vmem>>, %arg11: memref<1x64x32xbf16, #tpu.memory_space<vmem>>, %arg12: memref<10x10x32xbf16, #tpu.memory_space<vmem>>, %arg13: memref<64x32xf32, #tpu.memory_space<vmem>>) attributes {dimension_semantics = [#tpu.dimension_semantics<parallel>, #tpu.dimension_semantics<parallel>, #tpu.dimension_semantics<arbitrary>], iteration_bounds = array<i64: 2, 1, 2>, scalar_prefetch = 0 : i64, scratch_operands = 2 : i64, tpu.core_type = #tpu.core_type<tc>, window_params = [{transform_indices = @transform_0, window_bounds = array<i64: 1, 8, 8, 32>}, {transform_indices = @transform_1, window_bounds = array<i64: 1, 1, 32>}, {transform_indices = @transform_2, window_bounds = array<i64: 1, 1, 32>}, {transform_indices = @transform_3, window_bounds = array<i64: 1, 8, 8, 32>}, {transform_indices = @transform_4, window_bounds = array<i64: 1, 1, 32>}, {transform_indices = @transform_5, window_bounds = array<i64: 1, 1, 32>}, {transform_indices = @transform_6, window_bounds = array<i64: 3, 3, 32, 32>}, {transform_indices = @transform_7, window_bounds = array<i64: 1, 1, 32>}, {transform_indices = @transform_8, window_bounds = array<i64: 1, 64, 32>}]} {
    %c0_i32 = arith.constant 0 : i32
    %0 = arith.cmpi eq, %arg2, %c0_i32 : i32
    %1 = arith.extui %0 : i1 to i32
    %c0_i32_0 = arith.constant 0 : i32
    %2 = arith.cmpi ne, %1, %c0_i32_0 : i32
    scf.if %2 {
      %cst_38 = arith.constant 0.000000e+00 : bf16
      %51 = vector.broadcast %cst_38 : bf16 to vector<1x10x32xbf16>
      %c0_39 = arith.constant 0 : index
      %c0_40 = arith.constant 0 : index
      %c0_41 = arith.constant 0 : index
      %52 = vector.load %arg12[%c0_39, %c0_40, %c0_41] : memref<10x10x32xbf16, #tpu.memory_space<vmem>>, vector<1x10x32xbf16>
      tpu.vector_store %arg12[%c0_39, %c0_40, %c0_41], %51 {strides = array<i32>} : memref<10x10x32xbf16, #tpu.memory_space<vmem>>, vector<1x10x32xbf16>,
      %c9 = arith.constant 9 : index
      %c0_42 = arith.constant 0 : index
      %c0_43 = arith.constant 0 : index
      %53 = vector.load %arg12[%c9, %c0_42, %c0_43] : memref<10x10x32xbf16, #tpu.memory_space<vmem>>, vector<1x10x32xbf16>
      tpu.vector_store %arg12[%c9, %c0_42, %c0_43], %51 {strides = array<i32>} : memref<10x10x32xbf16, #tpu.memory_space<vmem>>, vector<1x10x32xbf16>,
      %cst_44 = arith.constant 0.000000e+00 : f32
      %54 = vector.broadcast %cst_44 : f32 to vector<64x32xf32>
      %c0_45 = arith.constant 0 : index
      %c0_46 = arith.constant 0 : index
      %55 = vector.load %arg13[%c0_45, %c0_46] : memref<64x32xf32, #tpu.memory_space<vmem>>, vector<64x32xf32>
      tpu.vector_store %arg13[%c0_45, %c0_46], %54 {strides = array<i32>} : memref<64x32xf32, #tpu.memory_space<vmem>>, vector<64x32xf32>,
    } else {
    }
    %c1_i32 = arith.constant 1 : i32
    %3 = arith.cmpi slt, %arg2, %c1_i32 : i32
    %4 = arith.extui %3 : i1 to i32
    %c0_i32_1 = arith.constant 0 : i32
    %5 = arith.cmpi ne, %4, %c0_i32_1 : i32
    scf.if %5 {
      %c0_38 = arith.constant 0 : index
      %c0_39 = arith.constant 0 : index
      %c0_40 = arith.constant 0 : index
      %c0_41 = arith.constant 0 : index
      %51 = vector.load %arg3[%c0_38, %c0_39, %c0_40, %c0_41] : memref<1x8x8x32xf32, #tpu.memory_space<vmem>>, vector<1x8x8x32xf32>
      %52 = vector.shape_cast %51 : vector<1x8x8x32xf32> to vector<8x8x32xf32>
      %c0_42 = arith.constant 0 : index
      %c0_43 = arith.constant 0 : index
      %c0_44 = arith.constant 0 : index
      %53 = vector.load %arg4[%c0_42, %c0_43, %c0_44] : memref<1x1x32xf32, #tpu.memory_space<vmem>>, vector<1x1x32xf32>
      %54 = vector.broadcast %53 : vector<1x1x32xf32> to vector<8x8x32xf32>
      %55 = arith.mulf %52, %54 : vector<8x8x32xf32>
      %c0_45 = arith.constant 0 : index
      %c0_46 = arith.constant 0 : index
      %c0_47 = arith.constant 0 : index
      %56 = vector.load %arg5[%c0_45, %c0_46, %c0_47] : memref<1x1x32xf32, #tpu.memory_space<vmem>>, vector<1x1x32xf32>
      %57 = vector.broadcast %56 : vector<1x1x32xf32> to vector<8x8x32xf32>
      %58 = arith.addf %55, %57 : vector<8x8x32xf32>
      %cst_48 = arith.constant 0.000000e+00 : f32
      %59 = vector.broadcast %cst_48 : f32 to vector<8x8x32xf32>
      %60 = arith.subf %59, %58 : vector<8x8x32xf32>
      %61 = math.exp %60 : vector<8x8x32xf32>
      %cst_49 = arith.constant 1.000000e+00 : f32
      %62 = vector.broadcast %cst_49 : f32 to vector<8x8x32xf32>
      %63 = arith.addf %62, %61 : vector<8x8x32xf32>
      %64 = tpu.reciprocal %63 {approx = true} : vector<8x8x32xf32> -> vector<8x8x32xf32>
      %65 = arith.mulf %58, %64 : vector<8x8x32xf32>
      %66 = arith.truncf %65 : vector<8x8x32xf32> to vector<8x8x32xbf16>
      %cst_50 = arith.constant 0.000000e+00 : bf16
      %67 = vector.broadcast %cst_50 : bf16 to vector<8x1x32xbf16>
      %68 = tpu.concatenate %67, %66, %67 in 1 : vector<8x1x32xbf16>, vector<8x8x32xbf16>, vector<8x1x32xbf16> -> vector<8x10x32xbf16>
      %c1_51 = arith.constant 1 : index
      %c0_52 = arith.constant 0 : index
      %c0_53 = arith.constant 0 : index
      %69 = vector.load %arg12[%c1_51, %c0_52, %c0_53] : memref<10x10x32xbf16, #tpu.memory_space<vmem>>, vector<8x10x32xbf16>
      tpu.vector_store %arg12[%c1_51, %c0_52, %c0_53], %68 {strides = array<i32>} : memref<10x10x32xbf16, #tpu.memory_space<vmem>>, vector<8x10x32xbf16>,
    } else {
    }
    %c1_i32_2 = arith.constant 1 : i32
    %6 = arith.cmpi sge, %arg2, %c1_i32_2 : i32
    %7 = arith.extui %6 : i1 to i32
    %c0_i32_3 = arith.constant 0 : i32
    %8 = arith.cmpi ne, %7, %c0_i32_3 : i32
    scf.if %8 {
      %c0_38 = arith.constant 0 : index
      %c0_39 = arith.constant 0 : index
      %c0_40 = arith.constant 0 : index
      %c0_41 = arith.constant 0 : index
      %51 = vector.load %arg6[%c0_38, %c0_39, %c0_40, %c0_41] : memref<1x8x8x32xf32, #tpu.memory_space<vmem>>, vector<1x8x8x32xf32>
      %52 = vector.shape_cast %51 : vector<1x8x8x32xf32> to vector<8x8x32xf32>
      %c0_42 = arith.constant 0 : index
      %c0_43 = arith.constant 0 : index
      %c0_44 = arith.constant 0 : index
      %53 = vector.load %arg7[%c0_42, %c0_43, %c0_44] : memref<1x1x32xf32, #tpu.memory_space<vmem>>, vector<1x1x32xf32>
      %54 = vector.broadcast %53 : vector<1x1x32xf32> to vector<8x8x32xf32>
      %55 = arith.mulf %52, %54 : vector<8x8x32xf32>
      %c0_45 = arith.constant 0 : index
      %c0_46 = arith.constant 0 : index
      %c0_47 = arith.constant 0 : index
      %56 = vector.load %arg8[%c0_45, %c0_46, %c0_47] : memref<1x1x32xf32, #tpu.memory_space<vmem>>, vector<1x1x32xf32>
      %57 = vector.broadcast %56 : vector<1x1x32xf32> to vector<8x8x32xf32>
      %58 = arith.addf %55, %57 : vector<8x8x32xf32>
      %cst_48 = arith.constant 0.000000e+00 : f32
      %59 = vector.broadcast %cst_48 : f32 to vector<8x8x32xf32>
      %60 = arith.subf %59, %58 : vector<8x8x32xf32>
      %61 = math.exp %60 : vector<8x8x32xf32>
      %cst_49 = arith.constant 1.000000e+00 : f32
      %62 = vector.broadcast %cst_49 : f32 to vector<8x8x32xf32>
      %63 = arith.addf %62, %61 : vector<8x8x32xf32>
      %64 = tpu.reciprocal %63 {approx = true} : vector<8x8x32xf32> -> vector<8x8x32xf32>
      %65 = arith.mulf %58, %64 : vector<8x8x32xf32>
      %66 = arith.truncf %65 : vector<8x8x32xf32> to vector<8x8x32xbf16>
      %cst_50 = arith.constant 0.000000e+00 : bf16
      %67 = vector.broadcast %cst_50 : bf16 to vector<8x1x32xbf16>
      %68 = tpu.concatenate %67, %66, %67 in 1 : vector<8x1x32xbf16>, vector<8x8x32xbf16>, vector<8x1x32xbf16> -> vector<8x10x32xbf16>
      %c1_51 = arith.constant 1 : index
      %c0_52 = arith.constant 0 : index
      %c0_53 = arith.constant 0 : index
      %69 = vector.load %arg12[%c1_51, %c0_52, %c0_53] : memref<10x10x32xbf16, #tpu.memory_space<vmem>>, vector<8x10x32xbf16>
      tpu.vector_store %arg12[%c1_51, %c0_52, %c0_53], %68 {strides = array<i32>} : memref<10x10x32xbf16, #tpu.memory_space<vmem>>, vector<8x10x32xbf16>,
    } else {
    }
    %c0 = arith.constant 0 : index
    %c0_4 = arith.constant 0 : index
    %c0_5 = arith.constant 0 : index
    %9 = vector.load %arg12[%c0, %c0_4, %c0_5] : memref<10x10x32xbf16, #tpu.memory_space<vmem>>, vector<8x10x32xbf16>
    %10 = vector.extract_strided_slice %9 {offsets = [0, 0, 0], sizes = [8, 8, 32], strides = [1, 1, 1]} : vector<8x10x32xbf16> to vector<8x8x32xbf16>
    %11 = vector.extract_strided_slice %9 {offsets = [0, 1, 0], sizes = [8, 8, 32], strides = [1, 1, 1]} : vector<8x10x32xbf16> to vector<8x8x32xbf16>
    %12 = vector.extract_strided_slice %9 {offsets = [0, 2, 0], sizes = [8, 8, 32], strides = [1, 1, 1]} : vector<8x10x32xbf16> to vector<8x8x32xbf16>
    %13 = tpu.concatenate %10, %11, %12 in 2 : vector<8x8x32xbf16>, vector<8x8x32xbf16>, vector<8x8x32xbf16> -> vector<8x8x96xbf16>
    %14 = vector.shape_cast %13 : vector<8x8x96xbf16> to vector<64x96xbf16>
    %c0_6 = arith.constant 0 : index
    %c0_7 = arith.constant 0 : index
    %c0_8 = arith.constant 0 : index
    %c0_9 = arith.constant 0 : index
    %15 = vector.load %arg9[%c0_6, %c0_7, %c0_8, %c0_9] : memref<3x3x32x32xbf16, #tpu.memory_space<vmem>>, vector<1x3x32x32xbf16>
    %16 = vector.shape_cast %15 : vector<1x3x32x32xbf16> to vector<3x32x32xbf16>
    %17 = vector.shape_cast %16 : vector<3x32x32xbf16> to vector<96x32xbf16>
    %c0_10 = arith.constant 0 : index
    %c0_11 = arith.constant 0 : index
    %18 = vector.load %arg13[%c0_10, %c0_11] : memref<64x32xf32, #tpu.memory_space<vmem>>, vector<64x32xf32>
    %cst = arith.constant dense<0.000000e+00> : vector<64x32xf32>
    %19 = tpu.matmul %14, %17, %cst {dimension_numbers = #tpu.dot_dimension_numbers<[1], [0], [0], [1], [0, 0, 1, 1], [], []>} : vector<64x96xbf16>, vector<96x32xbf16>, vector<64x32xf32> -> vector<64x32xf32>
    %20 = arith.addf %18, %19 : vector<64x32xf32>
    %c0_12 = arith.constant 0 : index
    %c0_13 = arith.constant 0 : index
    %21 = vector.load %arg13[%c0_12, %c0_13] : memref<64x32xf32, #tpu.memory_space<vmem>>, vector<64x32xf32>
    tpu.vector_store %arg13[%c0_12, %c0_13], %20 {strides = array<i32>} : memref<64x32xf32, #tpu.memory_space<vmem>>, vector<64x32xf32>,
    %c1 = arith.constant 1 : index
    %c0_14 = arith.constant 0 : index
    %c0_15 = arith.constant 0 : index
    %22 = vector.load %arg12[%c1, %c0_14, %c0_15] : memref<10x10x32xbf16, #tpu.memory_space<vmem>>, vector<8x10x32xbf16>
    %23 = vector.extract_strided_slice %22 {offsets = [0, 0, 0], sizes = [8, 8, 32], strides = [1, 1, 1]} : vector<8x10x32xbf16> to vector<8x8x32xbf16>
    %24 = vector.extract_strided_slice %22 {offsets = [0, 1, 0], sizes = [8, 8, 32], strides = [1, 1, 1]} : vector<8x10x32xbf16> to vector<8x8x32xbf16>
    %25 = vector.extract_strided_slice %22 {offsets = [0, 2, 0], sizes = [8, 8, 32], strides = [1, 1, 1]} : vector<8x10x32xbf16> to vector<8x8x32xbf16>
    %26 = tpu.concatenate %23, %24, %25 in 2 : vector<8x8x32xbf16>, vector<8x8x32xbf16>, vector<8x8x32xbf16> -> vector<8x8x96xbf16>
    %27 = vector.shape_cast %26 : vector<8x8x96xbf16> to vector<64x96xbf16>
    %c1_16 = arith.constant 1 : index
    %c0_17 = arith.constant 0 : index
    %c0_18 = arith.constant 0 : index
    %c0_19 = arith.constant 0 : index
    %28 = vector.load %arg9[%c1_16, %c0_17, %c0_18, %c0_19] : memref<3x3x32x32xbf16, #tpu.memory_space<vmem>>, vector<1x3x32x32xbf16>
    %29 = vector.shape_cast %28 : vector<1x3x32x32xbf16> to vector<3x32x32xbf16>
    %30 = vector.shape_cast %29 : vector<3x32x32xbf16> to vector<96x32xbf16>
    %c0_20 = arith.constant 0 : index
    %c0_21 = arith.constant 0 : index
    %31 = vector.load %arg13[%c0_20, %c0_21] : memref<64x32xf32, #tpu.memory_space<vmem>>, vector<64x32xf32>
    %cst_22 = arith.constant dense<0.000000e+00> : vector<64x32xf32>
    %32 = tpu.matmul %27, %30, %cst_22 {dimension_numbers = #tpu.dot_dimension_numbers<[1], [0], [0], [1], [0, 0, 1, 1], [], []>} : vector<64x96xbf16>, vector<96x32xbf16>, vector<64x32xf32> -> vector<64x32xf32>
    %33 = arith.addf %31, %32 : vector<64x32xf32>
    %c0_23 = arith.constant 0 : index
    %c0_24 = arith.constant 0 : index
    %34 = vector.load %arg13[%c0_23, %c0_24] : memref<64x32xf32, #tpu.memory_space<vmem>>, vector<64x32xf32>
    tpu.vector_store %arg13[%c0_23, %c0_24], %33 {strides = array<i32>} : memref<64x32xf32, #tpu.memory_space<vmem>>, vector<64x32xf32>,
    %c2 = arith.constant 2 : index
    %c0_25 = arith.constant 0 : index
    %c0_26 = arith.constant 0 : index
    %35 = vector.load %arg12[%c2, %c0_25, %c0_26] : memref<10x10x32xbf16, #tpu.memory_space<vmem>>, vector<8x10x32xbf16>
    %36 = vector.extract_strided_slice %35 {offsets = [0, 0, 0], sizes = [8, 8, 32], strides = [1, 1, 1]} : vector<8x10x32xbf16> to vector<8x8x32xbf16>
    %37 = vector.extract_strided_slice %35 {offsets = [0, 1, 0], sizes = [8, 8, 32], strides = [1, 1, 1]} : vector<8x10x32xbf16> to vector<8x8x32xbf16>
    %38 = vector.extract_strided_slice %35 {offsets = [0, 2, 0], sizes = [8, 8, 32], strides = [1, 1, 1]} : vector<8x10x32xbf16> to vector<8x8x32xbf16>
    %39 = tpu.concatenate %36, %37, %38 in 2 : vector<8x8x32xbf16>, vector<8x8x32xbf16>, vector<8x8x32xbf16> -> vector<8x8x96xbf16>
    %40 = vector.shape_cast %39 : vector<8x8x96xbf16> to vector<64x96xbf16>
    %c2_27 = arith.constant 2 : index
    %c0_28 = arith.constant 0 : index
    %c0_29 = arith.constant 0 : index
    %c0_30 = arith.constant 0 : index
    %41 = vector.load %arg9[%c2_27, %c0_28, %c0_29, %c0_30] : memref<3x3x32x32xbf16, #tpu.memory_space<vmem>>, vector<1x3x32x32xbf16>
    %42 = vector.shape_cast %41 : vector<1x3x32x32xbf16> to vector<3x32x32xbf16>
    %43 = vector.shape_cast %42 : vector<3x32x32xbf16> to vector<96x32xbf16>
    %c0_31 = arith.constant 0 : index
    %c0_32 = arith.constant 0 : index
    %44 = vector.load %arg13[%c0_31, %c0_32] : memref<64x32xf32, #tpu.memory_space<vmem>>, vector<64x32xf32>
    %cst_33 = arith.constant dense<0.000000e+00> : vector<64x32xf32>
    %45 = tpu.matmul %40, %43, %cst_33 {dimension_numbers = #tpu.dot_dimension_numbers<[1], [0], [0], [1], [0, 0, 1, 1], [], []>} : vector<64x96xbf16>, vector<96x32xbf16>, vector<64x32xf32> -> vector<64x32xf32>
    %46 = arith.addf %44, %45 : vector<64x32xf32>
    %c0_34 = arith.constant 0 : index
    %c0_35 = arith.constant 0 : index
    %47 = vector.load %arg13[%c0_34, %c0_35] : memref<64x32xf32, #tpu.memory_space<vmem>>, vector<64x32xf32>
    tpu.vector_store %arg13[%c0_34, %c0_35], %46 {strides = array<i32>} : memref<64x32xf32, #tpu.memory_space<vmem>>, vector<64x32xf32>,
    %c1_i32_36 = arith.constant 1 : i32
    %48 = arith.cmpi eq, %arg2, %c1_i32_36 : i32
    %49 = arith.extui %48 : i1 to i32
    %c0_i32_37 = arith.constant 0 : i32
    %50 = arith.cmpi ne, %49, %c0_i32_37 : i32
    scf.if %50 {
      %c0_38 = arith.constant 0 : index
      %c0_39 = arith.constant 0 : index
      %51 = vector.load %arg13[%c0_38, %c0_39] : memref<64x32xf32, #tpu.memory_space<vmem>>, vector<64x32xf32>
      %c0_40 = arith.constant 0 : index
      %c0_41 = arith.constant 0 : index
      %c0_42 = arith.constant 0 : index
      %52 = vector.load %arg10[%c0_40, %c0_41, %c0_42] : memref<1x1x32xf32, #tpu.memory_space<vmem>>, vector<1x1x32xf32>
      %53 = vector.shape_cast %52 : vector<1x1x32xf32> to vector<1x32xf32>
      %54 = vector.broadcast %53 : vector<1x32xf32> to vector<64x32xf32>
      %55 = arith.addf %51, %54 : vector<64x32xf32>
      %56 = arith.truncf %55 : vector<64x32xf32> to vector<64x32xbf16>
      %c0_43 = arith.constant 0 : index
      %c0_44 = arith.constant 0 : index
      %c0_45 = arith.constant 0 : index
      %57 = vector.load %arg11[%c0_43, %c0_44, %c0_45] : memref<1x64x32xbf16, #tpu.memory_space<vmem>>, vector<1x64x32xbf16>
      %58 = vector.shape_cast %57 : vector<1x64x32xbf16> to vector<64x32xbf16>
      %59 = vector.shape_cast %56 : vector<64x32xbf16> to vector<1x64x32xbf16>
      tpu.vector_store %arg11[%c0_43, %c0_44, %c0_45], %59 {strides = array<i32>} : memref<1x64x32xbf16, #tpu.memory_space<vmem>>, vector<1x64x32xbf16>,
    } else {
    }
    return
  }
  func.func @transform_0(%arg0: i32, %arg1: i32, %arg2: i32) -> (i32, i32, i32, i32) {
    %c0_i32 = arith.constant 0 : i32
    %0 = arith.minsi %arg2, %c0_i32 : i32
    %c0_i32_0 = arith.constant 0 : i32
    %c0_i32_1 = arith.constant 0 : i32
    %c0_i32_2 = arith.constant 0 : i32
    return %arg0, %c0_i32_0, %c0_i32_1, %0 : i32, i32, i32, i32
  }
  func.func @transform_1(%arg0: i32, %arg1: i32, %arg2: i32) -> (i32, i32, i32) {
    %c0_i32 = arith.constant 0 : i32
    %0 = arith.minsi %arg2, %c0_i32 : i32
    %c0_i32_0 = arith.constant 0 : i32
    %c0_i32_1 = arith.constant 0 : i32
    return %arg0, %c0_i32_0, %0 : i32, i32, i32
  }
  func.func @transform_2(%arg0: i32, %arg1: i32, %arg2: i32) -> (i32, i32, i32) {
    %c0_i32 = arith.constant 0 : i32
    %0 = arith.minsi %arg2, %c0_i32 : i32
    %c0_i32_0 = arith.constant 0 : i32
    %c0_i32_1 = arith.constant 0 : i32
    return %arg0, %c0_i32_0, %0 : i32, i32, i32
  }
  func.func @transform_3(%arg0: i32, %arg1: i32, %arg2: i32) -> (i32, i32, i32, i32) {
    %c1_i32 = arith.constant 1 : i32
    %0 = arith.subi %arg2, %c1_i32 : i32
    %c0_i32 = arith.constant 0 : i32
    %1 = arith.maxsi %0, %c0_i32 : i32
    %c0_i32_0 = arith.constant 0 : i32
    %c0_i32_1 = arith.constant 0 : i32
    %c0_i32_2 = arith.constant 0 : i32
    return %arg0, %c0_i32_0, %c0_i32_1, %1 : i32, i32, i32, i32
  }
  func.func @transform_4(%arg0: i32, %arg1: i32, %arg2: i32) -> (i32, i32, i32) {
    %c1_i32 = arith.constant 1 : i32
    %0 = arith.subi %arg2, %c1_i32 : i32
    %c0_i32 = arith.constant 0 : i32
    %1 = arith.maxsi %0, %c0_i32 : i32
    %c0_i32_0 = arith.constant 0 : i32
    %c0_i32_1 = arith.constant 0 : i32
    return %arg0, %c0_i32_0, %1 : i32, i32, i32
  }
  func.func @transform_5(%arg0: i32, %arg1: i32, %arg2: i32) -> (i32, i32, i32) {
    %c1_i32 = arith.constant 1 : i32
    %0 = arith.subi %arg2, %c1_i32 : i32
    %c0_i32 = arith.constant 0 : i32
    %1 = arith.maxsi %0, %c0_i32 : i32
    %c0_i32_0 = arith.constant 0 : i32
    %c0_i32_1 = arith.constant 0 : i32
    return %arg0, %c0_i32_0, %1 : i32, i32, i32
  }
  func.func @transform_6(%arg0: i32, %arg1: i32, %arg2: i32) -> (i32, i32, i32, i32) {
    %c0_i32 = arith.constant 0 : i32
    %c0_i32_0 = arith.constant 0 : i32
    %c0_i32_1 = arith.constant 0 : i32
    return %c0_i32, %c0_i32_0, %arg2, %arg1 : i32, i32, i32, i32
  }
  func.func @transform_7(%arg0: i32, %arg1: i32, %arg2: i32) -> (i32, i32, i32) {
    %c0_i32 = arith.constant 0 : i32
    %c0_i32_0 = arith.constant 0 : i32
    return %arg0, %c0_i32, %arg1 : i32, i32, i32
  }
  func.func @transform_8(%arg0: i32, %arg1: i32, %arg2: i32) -> (i32, i32, i32) {
    %c0_i32 = arith.constant 0 : i32
    %c0_i32_0 = arith.constant 0 : i32
    return %arg0, %c0_i32, %arg1 : i32, i32, i32
  }
}

module attributes {stable_mosaic.version = 11 : i64} {
  func.func @_gn_stats_kernel(%arg0: i32, %arg1: i32, %arg2: memref<1x64x32xbf16, #tpu.memory_space<vmem>>, %arg3: memref<1x1x32xf32, #tpu.memory_space<vmem>>, %arg4: memref<1x1x32xf32, #tpu.memory_space<vmem>>) attributes {dimension_semantics = [#tpu.dimension_semantics<parallel>, #tpu.dimension_semantics<arbitrary>], iteration_bounds = array<i64: 2, 1>, scalar_prefetch = 0 : i64, scratch_operands = 0 : i64, tpu.core_type = #tpu.core_type<tc>, window_params = [{transform_indices = @transform_0, window_bounds = array<i64: 1, 64, 32>}, {transform_indices = @transform_1, window_bounds = array<i64: 1, 1, 32>}, {transform_indices = @transform_2, window_bounds = array<i64: 1, 1, 32>}]} {
    %c0_i32 = arith.constant 0 : i32
    %0 = arith.cmpi eq, %arg1, %c0_i32 : i32
    %1 = arith.extui %0 : i1 to i32
    %c0_i32_0 = arith.constant 0 : i32
    %2 = arith.cmpi ne, %1, %c0_i32_0 : i32
    scf.if %2 {
      %cst_16 = arith.constant 0.000000e+00 : f32
      %23 = vector.broadcast %cst_16 : f32 to vector<1x1x32xf32>
      %c0_17 = arith.constant 0 : index
      %c0_18 = arith.constant 0 : index
      %c0_19 = arith.constant 0 : index
      %24 = vector.load %arg3[%c0_17, %c0_18, %c0_19] : memref<1x1x32xf32, #tpu.memory_space<vmem>>, vector<1x1x32xf32>
      tpu.vector_store %arg3[%c0_17, %c0_18, %c0_19], %23 {strides = array<i32>} : memref<1x1x32xf32, #tpu.memory_space<vmem>>, vector<1x1x32xf32>,
      %cst_20 = arith.constant 0.000000e+00 : f32
      %25 = vector.broadcast %cst_20 : f32 to vector<1x1x32xf32>
      %c0_21 = arith.constant 0 : index
      %c0_22 = arith.constant 0 : index
      %c0_23 = arith.constant 0 : index
      %26 = vector.load %arg4[%c0_21, %c0_22, %c0_23] : memref<1x1x32xf32, #tpu.memory_space<vmem>>, vector<1x1x32xf32>
      tpu.vector_store %arg4[%c0_21, %c0_22, %c0_23], %25 {strides = array<i32>} : memref<1x1x32xf32, #tpu.memory_space<vmem>>, vector<1x1x32xf32>,
    } else {
    }
    %c0 = arith.constant 0 : index
    %c0_1 = arith.constant 0 : index
    %c0_2 = arith.constant 0 : index
    %3 = vector.load %arg2[%c0, %c0_1, %c0_2] : memref<1x64x32xbf16, #tpu.memory_space<vmem>>, vector<1x64x32xbf16>
    %4 = vector.shape_cast %3 : vector<1x64x32xbf16> to vector<64x32xbf16>
    %5 = arith.extf %4 : vector<64x32xbf16> to vector<64x32xf32>
    %c0_3 = arith.constant 0 : index
    %c0_4 = arith.constant 0 : index
    %c0_5 = arith.constant 0 : index
    %6 = vector.load %arg3[%c0_3, %c0_4, %c0_5] : memref<1x1x32xf32, #tpu.memory_space<vmem>>, vector<1x1x32xf32>
    %7 = vector.shape_cast %6 : vector<1x1x32xf32> to vector<1x32xf32>
    %cst = arith.constant dense<0.000000e+00> : vector<32xf32>
    %8 = vector.multi_reduction <add>, %5, %cst [0] : vector<64x32xf32> to vector<32xf32>
    %9 = vector.shape_cast %8 : vector<32xf32> to vector<1x32xf32>
    %10 = arith.addf %7, %9 : vector<1x32xf32>
    %c0_6 = arith.constant 0 : index
    %c0_7 = arith.constant 0 : index
    %c0_8 = arith.constant 0 : index
    %11 = vector.load %arg3[%c0_6, %c0_7, %c0_8] : memref<1x1x32xf32, #tpu.memory_space<vmem>>, vector<1x1x32xf32>
    %12 = vector.shape_cast %11 : vector<1x1x32xf32> to vector<1x32xf32>
    %13 = vector.shape_cast %10 : vector<1x32xf32> to vector<1x1x32xf32>
    tpu.vector_store %arg3[%c0_6, %c0_7, %c0_8], %13 {strides = array<i32>} : memref<1x1x32xf32, #tpu.memory_space<vmem>>, vector<1x1x32xf32>,
    %c0_9 = arith.constant 0 : index
    %c0_10 = arith.constant 0 : index
    %c0_11 = arith.constant 0 : index
    %14 = vector.load %arg4[%c0_9, %c0_10, %c0_11] : memref<1x1x32xf32, #tpu.memory_space<vmem>>, vector<1x1x32xf32>
    %15 = vector.shape_cast %14 : vector<1x1x32xf32> to vector<1x32xf32>
    %16 = arith.mulf %5, %5 : vector<64x32xf32>
    %cst_12 = arith.constant dense<0.000000e+00> : vector<32xf32>
    %17 = vector.multi_reduction <add>, %16, %cst_12 [0] : vector<64x32xf32> to vector<32xf32>
    %18 = vector.shape_cast %17 : vector<32xf32> to vector<1x32xf32>
    %19 = arith.addf %15, %18 : vector<1x32xf32>
    %c0_13 = arith.constant 0 : index
    %c0_14 = arith.constant 0 : index
    %c0_15 = arith.constant 0 : index
    %20 = vector.load %arg4[%c0_13, %c0_14, %c0_15] : memref<1x1x32xf32, #tpu.memory_space<vmem>>, vector<1x1x32xf32>
    %21 = vector.shape_cast %20 : vector<1x1x32xf32> to vector<1x32xf32>
    %22 = vector.shape_cast %19 : vector<1x32xf32> to vector<1x1x32xf32>
    tpu.vector_store %arg4[%c0_13, %c0_14, %c0_15], %22 {strides = array<i32>} : memref<1x1x32xf32, #tpu.memory_space<vmem>>, vector<1x1x32xf32>,
    return
  }
  func.func @transform_0(%arg0: i32, %arg1: i32) -> (i32, i32, i32) {
    %c0_i32 = arith.constant 0 : i32
    %c0_i32_0 = arith.constant 0 : i32
    return %arg0, %arg1, %c0_i32 : i32, i32, i32
  }
  func.func @transform_1(%arg0: i32, %arg1: i32) -> (i32, i32, i32) {
    %c0_i32 = arith.constant 0 : i32
    %c0_i32_0 = arith.constant 0 : i32
    %c0_i32_1 = arith.constant 0 : i32
    return %arg0, %c0_i32, %c0_i32_0 : i32, i32, i32
  }
  func.func @transform_2(%arg0: i32, %arg1: i32) -> (i32, i32, i32) {
    %c0_i32 = arith.constant 0 : i32
    %c0_i32_0 = arith.constant 0 : i32
    %c0_i32_1 = arith.constant 0 : i32
    return %arg0, %c0_i32, %c0_i32_0 : i32, i32, i32
  }
}

module attributes {stable_mosaic.version = 11 : i64} {
  func.func @kernel(%arg0: i32, %arg1: i32, %arg2: i32, %arg3: memref<1x8x8x32xbf16, #tpu.memory_space<vmem>>, %arg4: memref<1x1x32xf32, #tpu.memory_space<vmem>>, %arg5: memref<1x1x32xf32, #tpu.memory_space<vmem>>, %arg6: memref<3x3x32x32xbf16, #tpu.memory_space<vmem>>, %arg7: memref<1x1x32xf32, #tpu.memory_space<vmem>>, %arg8: memref<1x64x32xbf16, #tpu.memory_space<vmem>>, %arg9: memref<1x64x32xbf16, #tpu.memory_space<vmem>>, %arg10: memref<10x10x32xbf16, #tpu.memory_space<vmem>>, %arg11: memref<64x32xf32, #tpu.memory_space<vmem>>) attributes {dimension_semantics = [#tpu.dimension_semantics<parallel>, #tpu.dimension_semantics<parallel>, #tpu.dimension_semantics<arbitrary>], iteration_bounds = array<i64: 2, 1, 1>, scalar_prefetch = 0 : i64, scratch_operands = 2 : i64, tpu.core_type = #tpu.core_type<tc>, window_params = [{transform_indices = @transform_0, window_bounds = array<i64: 1, 8, 8, 32>}, {transform_indices = @transform_1, window_bounds = array<i64: 1, 1, 32>}, {transform_indices = @transform_2, window_bounds = array<i64: 1, 1, 32>}, {transform_indices = @transform_3, window_bounds = array<i64: 3, 3, 32, 32>}, {transform_indices = @transform_4, window_bounds = array<i64: 1, 1, 32>}, {transform_indices = @transform_5, window_bounds = array<i64: 1, 64, 32>}, {transform_indices = @transform_6, window_bounds = array<i64: 1, 64, 32>}]} {
    %c0_i32 = arith.constant 0 : i32
    %0 = arith.cmpi eq, %arg2, %c0_i32 : i32
    %1 = arith.extui %0 : i1 to i32
    %c0_i32_0 = arith.constant 0 : i32
    %2 = arith.cmpi ne, %1, %c0_i32_0 : i32
    scf.if %2 {
      %cst_51 = arith.constant 0.000000e+00 : bf16
      %65 = vector.broadcast %cst_51 : bf16 to vector<1x10x32xbf16>
      %c0_52 = arith.constant 0 : index
      %c0_53 = arith.constant 0 : index
      %c0_54 = arith.constant 0 : index
      %66 = vector.load %arg10[%c0_52, %c0_53, %c0_54] : memref<10x10x32xbf16, #tpu.memory_space<vmem>>, vector<1x10x32xbf16>
      tpu.vector_store %arg10[%c0_52, %c0_53, %c0_54], %65 {strides = array<i32>} : memref<10x10x32xbf16, #tpu.memory_space<vmem>>, vector<1x10x32xbf16>,
      %c9 = arith.constant 9 : index
      %c0_55 = arith.constant 0 : index
      %c0_56 = arith.constant 0 : index
      %67 = vector.load %arg10[%c9, %c0_55, %c0_56] : memref<10x10x32xbf16, #tpu.memory_space<vmem>>, vector<1x10x32xbf16>
      tpu.vector_store %arg10[%c9, %c0_55, %c0_56], %65 {strides = array<i32>} : memref<10x10x32xbf16, #tpu.memory_space<vmem>>, vector<1x10x32xbf16>,
      %cst_57 = arith.constant 0.000000e+00 : f32
      %68 = vector.broadcast %cst_57 : f32 to vector<64x32xf32>
      %c0_58 = arith.constant 0 : index
      %c0_59 = arith.constant 0 : index
      %69 = vector.load %arg11[%c0_58, %c0_59] : memref<64x32xf32, #tpu.memory_space<vmem>>, vector<64x32xf32>
      tpu.vector_store %arg11[%c0_58, %c0_59], %68 {strides = array<i32>} : memref<64x32xf32, #tpu.memory_space<vmem>>, vector<64x32xf32>,
    } else {
    }
    %c0 = arith.constant 0 : index
    %c0_1 = arith.constant 0 : index
    %c0_2 = arith.constant 0 : index
    %c0_3 = arith.constant 0 : index
    %3 = vector.load %arg3[%c0, %c0_1, %c0_2, %c0_3] : memref<1x8x8x32xbf16, #tpu.memory_space<vmem>>, vector<1x8x8x32xbf16>
    %4 = vector.shape_cast %3 : vector<1x8x8x32xbf16> to vector<8x8x32xbf16>
    %5 = arith.extf %4 : vector<8x8x32xbf16> to vector<8x8x32xf32>
    %c0_4 = arith.constant 0 : index
    %c0_5 = arith.constant 0 : index
    %c0_6 = arith.constant 0 : index
    %6 = vector.load %arg4[%c0_4, %c0_5, %c0_6] : memref<1x1x32xf32, #tpu.memory_space<vmem>>, vector<1x1x32xf32>
    %7 = vector.broadcast %6 : vector<1x1x32xf32> to vector<8x8x32xf32>
    %8 = arith.mulf %5, %7 : vector<8x8x32xf32>
    %c0_7 = arith.constant 0 : index
    %c0_8 = arith.constant 0 : index
    %c0_9 = arith.constant 0 : index
    %9 = vector.load %arg5[%c0_7, %c0_8, %c0_9] : memref<1x1x32xf32, #tpu.memory_space<vmem>>, vector<1x1x32xf32>
    %10 = vector.broadcast %9 : vector<1x1x32xf32> to vector<8x8x32xf32>
    %11 = arith.addf %8, %10 : vector<8x8x32xf32>
    %cst = arith.constant 0.000000e+00 : f32
    %12 = vector.broadcast %cst : f32 to vector<8x8x32xf32>
    %13 = arith.subf %12, %11 : vector<8x8x32xf32>
    %14 = math.exp %13 : vector<8x8x32xf32>
    %cst_10 = arith.constant 1.000000e+00 : f32
    %15 = vector.broadcast %cst_10 : f32 to vector<8x8x32xf32>
    %16 = arith.addf %15, %14 : vector<8x8x32xf32>
    %17 = tpu.reciprocal %16 {approx = true} : vector<8x8x32xf32> -> vector<8x8x32xf32>
    %18 = arith.mulf %11, %17 : vector<8x8x32xf32>
    %19 = arith.truncf %18 : vector<8x8x32xf32> to vector<8x8x32xbf16>
    %cst_11 = arith.constant 0.000000e+00 : bf16
    %20 = vector.broadcast %cst_11 : bf16 to vector<8x1x32xbf16>
    %21 = tpu.concatenate %20, %19, %20 in 1 : vector<8x1x32xbf16>, vector<8x8x32xbf16>, vector<8x1x32xbf16> -> vector<8x10x32xbf16>
    %c1 = arith.constant 1 : index
    %c0_12 = arith.constant 0 : index
    %c0_13 = arith.constant 0 : index
    %22 = vector.load %arg10[%c1, %c0_12, %c0_13] : memref<10x10x32xbf16, #tpu.memory_space<vmem>>, vector<8x10x32xbf16>
    tpu.vector_store %arg10[%c1, %c0_12, %c0_13], %21 {strides = array<i32>} : memref<10x10x32xbf16, #tpu.memory_space<vmem>>, vector<8x10x32xbf16>,
    %c0_14 = arith.constant 0 : index
    %c0_15 = arith.constant 0 : index
    %c0_16 = arith.constant 0 : index
    %23 = vector.load %arg10[%c0_14, %c0_15, %c0_16] : memref<10x10x32xbf16, #tpu.memory_space<vmem>>, vector<8x10x32xbf16>
    %24 = vector.extract_strided_slice %23 {offsets = [0, 0, 0], sizes = [8, 8, 32], strides = [1, 1, 1]} : vector<8x10x32xbf16> to vector<8x8x32xbf16>
    %25 = vector.extract_strided_slice %23 {offsets = [0, 1, 0], sizes = [8, 8, 32], strides = [1, 1, 1]} : vector<8x10x32xbf16> to vector<8x8x32xbf16>
    %26 = vector.extract_strided_slice %23 {offsets = [0, 2, 0], sizes = [8, 8, 32], strides = [1, 1, 1]} : vector<8x10x32xbf16> to vector<8x8x32xbf16>
    %27 = tpu.concatenate %24, %25, %26 in 2 : vector<8x8x32xbf16>, vector<8x8x32xbf16>, vector<8x8x32xbf16> -> vector<8x8x96xbf16>
    %28 = vector.shape_cast %27 : vector<8x8x96xbf16> to vector<64x96xbf16>
    %c0_17 = arith.constant 0 : index
    %c0_18 = arith.constant 0 : index
    %c0_19 = arith.constant 0 : index
    %c0_20 = arith.constant 0 : index
    %29 = vector.load %arg6[%c0_17, %c0_18, %c0_19, %c0_20] : memref<3x3x32x32xbf16, #tpu.memory_space<vmem>>, vector<1x3x32x32xbf16>
    %30 = vector.shape_cast %29 : vector<1x3x32x32xbf16> to vector<3x32x32xbf16>
    %31 = vector.shape_cast %30 : vector<3x32x32xbf16> to vector<96x32xbf16>
    %c0_21 = arith.constant 0 : index
    %c0_22 = arith.constant 0 : index
    %32 = vector.load %arg11[%c0_21, %c0_22] : memref<64x32xf32, #tpu.memory_space<vmem>>, vector<64x32xf32>
    %cst_23 = arith.constant dense<0.000000e+00> : vector<64x32xf32>
    %33 = tpu.matmul %28, %31, %cst_23 {dimension_numbers = #tpu.dot_dimension_numbers<[1], [0], [0], [1], [0, 0, 1, 1], [], []>} : vector<64x96xbf16>, vector<96x32xbf16>, vector<64x32xf32> -> vector<64x32xf32>
    %34 = arith.addf %32, %33 : vector<64x32xf32>
    %c0_24 = arith.constant 0 : index
    %c0_25 = arith.constant 0 : index
    %35 = vector.load %arg11[%c0_24, %c0_25] : memref<64x32xf32, #tpu.memory_space<vmem>>, vector<64x32xf32>
    tpu.vector_store %arg11[%c0_24, %c0_25], %34 {strides = array<i32>} : memref<64x32xf32, #tpu.memory_space<vmem>>, vector<64x32xf32>,
    %c1_26 = arith.constant 1 : index
    %c0_27 = arith.constant 0 : index
    %c0_28 = arith.constant 0 : index
    %36 = vector.load %arg10[%c1_26, %c0_27, %c0_28] : memref<10x10x32xbf16, #tpu.memory_space<vmem>>, vector<8x10x32xbf16>
    %37 = vector.extract_strided_slice %36 {offsets = [0, 0, 0], sizes = [8, 8, 32], strides = [1, 1, 1]} : vector<8x10x32xbf16> to vector<8x8x32xbf16>
    %38 = vector.extract_strided_slice %36 {offsets = [0, 1, 0], sizes = [8, 8, 32], strides = [1, 1, 1]} : vector<8x10x32xbf16> to vector<8x8x32xbf16>
    %39 = vector.extract_strided_slice %36 {offsets = [0, 2, 0], sizes = [8, 8, 32], strides = [1, 1, 1]} : vector<8x10x32xbf16> to vector<8x8x32xbf16>
    %40 = tpu.concatenate %37, %38, %39 in 2 : vector<8x8x32xbf16>, vector<8x8x32xbf16>, vector<8x8x32xbf16> -> vector<8x8x96xbf16>
    %41 = vector.shape_cast %40 : vector<8x8x96xbf16> to vector<64x96xbf16>
    %c1_29 = arith.constant 1 : index
    %c0_30 = arith.constant 0 : index
    %c0_31 = arith.constant 0 : index
    %c0_32 = arith.constant 0 : index
    %42 = vector.load %arg6[%c1_29, %c0_30, %c0_31, %c0_32] : memref<3x3x32x32xbf16, #tpu.memory_space<vmem>>, vector<1x3x32x32xbf16>
    %43 = vector.shape_cast %42 : vector<1x3x32x32xbf16> to vector<3x32x32xbf16>
    %44 = vector.shape_cast %43 : vector<3x32x32xbf16> to vector<96x32xbf16>
    %c0_33 = arith.constant 0 : index
    %c0_34 = arith.constant 0 : index
    %45 = vector.load %arg11[%c0_33, %c0_34] : memref<64x32xf32, #tpu.memory_space<vmem>>, vector<64x32xf32>
    %cst_35 = arith.constant dense<0.000000e+00> : vector<64x32xf32>
    %46 = tpu.matmul %41, %44, %cst_35 {dimension_numbers = #tpu.dot_dimension_numbers<[1], [0], [0], [1], [0, 0, 1, 1], [], []>} : vector<64x96xbf16>, vector<96x32xbf16>, vector<64x32xf32> -> vector<64x32xf32>
    %47 = arith.addf %45, %46 : vector<64x32xf32>
    %c0_36 = arith.constant 0 : index
    %c0_37 = arith.constant 0 : index
    %48 = vector.load %arg11[%c0_36, %c0_37] : memref<64x32xf32, #tpu.memory_space<vmem>>, vector<64x32xf32>
    tpu.vector_store %arg11[%c0_36, %c0_37], %47 {strides = array<i32>} : memref<64x32xf32, #tpu.memory_space<vmem>>, vector<64x32xf32>,
    %c2 = arith.constant 2 : index
    %c0_38 = arith.constant 0 : index
    %c0_39 = arith.constant 0 : index
    %49 = vector.load %arg10[%c2, %c0_38, %c0_39] : memref<10x10x32xbf16, #tpu.memory_space<vmem>>, vector<8x10x32xbf16>
    %50 = vector.extract_strided_slice %49 {offsets = [0, 0, 0], sizes = [8, 8, 32], strides = [1, 1, 1]} : vector<8x10x32xbf16> to vector<8x8x32xbf16>
    %51 = vector.extract_strided_slice %49 {offsets = [0, 1, 0], sizes = [8, 8, 32], strides = [1, 1, 1]} : vector<8x10x32xbf16> to vector<8x8x32xbf16>
    %52 = vector.extract_strided_slice %49 {offsets = [0, 2, 0], sizes = [8, 8, 32], strides = [1, 1, 1]} : vector<8x10x32xbf16> to vector<8x8x32xbf16>
    %53 = tpu.concatenate %50, %51, %52 in 2 : vector<8x8x32xbf16>, vector<8x8x32xbf16>, vector<8x8x32xbf16> -> vector<8x8x96xbf16>
    %54 = vector.shape_cast %53 : vector<8x8x96xbf16> to vector<64x96xbf16>
    %c2_40 = arith.constant 2 : index
    %c0_41 = arith.constant 0 : index
    %c0_42 = arith.constant 0 : index
    %c0_43 = arith.constant 0 : index
    %55 = vector.load %arg6[%c2_40, %c0_41, %c0_42, %c0_43] : memref<3x3x32x32xbf16, #tpu.memory_space<vmem>>, vector<1x3x32x32xbf16>
    %56 = vector.shape_cast %55 : vector<1x3x32x32xbf16> to vector<3x32x32xbf16>
    %57 = vector.shape_cast %56 : vector<3x32x32xbf16> to vector<96x32xbf16>
    %c0_44 = arith.constant 0 : index
    %c0_45 = arith.constant 0 : index
    %58 = vector.load %arg11[%c0_44, %c0_45] : memref<64x32xf32, #tpu.memory_space<vmem>>, vector<64x32xf32>
    %cst_46 = arith.constant dense<0.000000e+00> : vector<64x32xf32>
    %59 = tpu.matmul %54, %57, %cst_46 {dimension_numbers = #tpu.dot_dimension_numbers<[1], [0], [0], [1], [0, 0, 1, 1], [], []>} : vector<64x96xbf16>, vector<96x32xbf16>, vector<64x32xf32> -> vector<64x32xf32>
    %60 = arith.addf %58, %59 : vector<64x32xf32>
    %c0_47 = arith.constant 0 : index
    %c0_48 = arith.constant 0 : index
    %61 = vector.load %arg11[%c0_47, %c0_48] : memref<64x32xf32, #tpu.memory_space<vmem>>, vector<64x32xf32>
    tpu.vector_store %arg11[%c0_47, %c0_48], %60 {strides = array<i32>} : memref<64x32xf32, #tpu.memory_space<vmem>>, vector<64x32xf32>,
    %c0_i32_49 = arith.constant 0 : i32
    %62 = arith.cmpi eq, %arg2, %c0_i32_49 : i32
    %63 = arith.extui %62 : i1 to i32
    %c0_i32_50 = arith.constant 0 : i32
    %64 = arith.cmpi ne, %63, %c0_i32_50 : i32
    scf.if %64 {
      %c0_51 = arith.constant 0 : index
      %c0_52 = arith.constant 0 : index
      %65 = vector.load %arg11[%c0_51, %c0_52] : memref<64x32xf32, #tpu.memory_space<vmem>>, vector<64x32xf32>
      %c0_53 = arith.constant 0 : index
      %c0_54 = arith.constant 0 : index
      %c0_55 = arith.constant 0 : index
      %66 = vector.load %arg7[%c0_53, %c0_54, %c0_55] : memref<1x1x32xf32, #tpu.memory_space<vmem>>, vector<1x1x32xf32>
      %67 = vector.shape_cast %66 : vector<1x1x32xf32> to vector<1x32xf32>
      %68 = vector.broadcast %67 : vector<1x32xf32> to vector<64x32xf32>
      %69 = arith.addf %65, %68 : vector<64x32xf32>
      %c0_56 = arith.constant 0 : index
      %c0_57 = arith.constant 0 : index
      %c0_58 = arith.constant 0 : index
      %70 = vector.load %arg8[%c0_56, %c0_57, %c0_58] : memref<1x64x32xbf16, #tpu.memory_space<vmem>>, vector<1x64x32xbf16>
      %71 = vector.shape_cast %70 : vector<1x64x32xbf16> to vector<64x32xbf16>
      %72 = arith.extf %71 : vector<64x32xbf16> to vector<64x32xf32>
      %73 = arith.addf %69, %72 : vector<64x32xf32>
      %74 = arith.truncf %73 : vector<64x32xf32> to vector<64x32xbf16>
      %c0_59 = arith.constant 0 : index
      %c0_60 = arith.constant 0 : index
      %c0_61 = arith.constant 0 : index
      %75 = vector.load %arg9[%c0_59, %c0_60, %c0_61] : memref<1x64x32xbf16, #tpu.memory_space<vmem>>, vector<1x64x32xbf16>
      %76 = vector.shape_cast %75 : vector<1x64x32xbf16> to vector<64x32xbf16>
      %77 = vector.shape_cast %74 : vector<64x32xbf16> to vector<1x64x32xbf16>
      tpu.vector_store %arg9[%c0_59, %c0_60, %c0_61], %77 {strides = array<i32>} : memref<1x64x32xbf16, #tpu.memory_space<vmem>>, vector<1x64x32xbf16>,
    } else {
    }
    return
  }
  func.func @transform_0(%arg0: i32, %arg1: i32, %arg2: i32) -> (i32, i32, i32, i32) {
    %c0_i32 = arith.constant 0 : i32
    %c0_i32_0 = arith.constant 0 : i32
    %c0_i32_1 = arith.constant 0 : i32
    return %arg0, %c0_i32, %c0_i32_0, %arg2 : i32, i32, i32, i32
  }
  func.func @transform_1(%arg0: i32, %arg1: i32, %arg2: i32) -> (i32, i32, i32) {
    %c0_i32 = arith.constant 0 : i32
    %c0_i32_0 = arith.constant 0 : i32
    return %arg0, %c0_i32, %arg2 : i32, i32, i32
  }
  func.func @transform_2(%arg0: i32, %arg1: i32, %arg2: i32) -> (i32, i32, i32) {
    %c0_i32 = arith.constant 0 : i32
    %c0_i32_0 = arith.constant 0 : i32
    return %arg0, %c0_i32, %arg2 : i32, i32, i32
  }
  func.func @transform_3(%arg0: i32, %arg1: i32, %arg2: i32) -> (i32, i32, i32, i32) {
    %c0_i32 = arith.constant 0 : i32
    %c0_i32_0 = arith.constant 0 : i32
    %c0_i32_1 = arith.constant 0 : i32
    return %c0_i32, %c0_i32_0, %arg2, %arg1 : i32, i32, i32, i32
  }
  func.func @transform_4(%arg0: i32, %arg1: i32, %arg2: i32) -> (i32, i32, i32) {
    %c0_i32 = arith.constant 0 : i32
    %c0_i32_0 = arith.constant 0 : i32
    return %arg0, %c0_i32, %arg1 : i32, i32, i32
  }
  func.func @transform_5(%arg0: i32, %arg1: i32, %arg2: i32) -> (i32, i32, i32) {
    %c0_i32 = arith.constant 0 : i32
    %c0_i32_0 = arith.constant 0 : i32
    return %arg0, %c0_i32, %arg1 : i32, i32, i32
  }
  func.func @transform_6(%arg0: i32, %arg1: i32, %arg2: i32) -> (i32, i32, i32) {
    %c0_i32 = arith.constant 0 : i32
    %c0_i32_0 = arith.constant 0 : i32
    return %arg0, %c0_i32, %arg1 : i32, i32, i32
  }
}

module attributes {stable_mosaic.version = 11 : i64} {
  func.func @kernel(%arg0: i32, %arg1: i32, %arg2: i32, %arg3: i32, %arg4: memref<1x64x32xf32, #tpu.memory_space<vmem>>, %arg5: memref<1x64x32xf32, #tpu.memory_space<vmem>>, %arg6: memref<32x32xbf16, #tpu.memory_space<vmem>>, %arg7: memref<1x32xf32, #tpu.memory_space<vmem>>, %arg8: memref<1x64x32xbf16, #tpu.memory_space<vmem>>, %arg9: memref<64x32xf32, #tpu.memory_space<vmem>>) attributes {dimension_semantics = [#tpu.dimension_semantics<parallel>, #tpu.dimension_semantics<parallel>, #tpu.dimension_semantics<parallel>, #tpu.dimension_semantics<arbitrary>], iteration_bounds = array<i64: 2, 1, 1, 2>, scalar_prefetch = 0 : i64, scratch_operands = 1 : i64, tpu.core_type = #tpu.core_type<tc>, window_params = [{transform_indices = @transform_0, window_bounds = array<i64: 1, 64, 32>}, {transform_indices = @transform_1, window_bounds = array<i64: 1, 64, 32>}, {transform_indices = @transform_2, window_bounds = array<i64: 32, 32>}, {transform_indices = @transform_3, window_bounds = array<i64: 1, 32>}, {transform_indices = @transform_4, window_bounds = array<i64: 1, 64, 32>}]} {
    %c0_i32 = arith.constant 0 : i32
    %0 = arith.cmpi eq, %arg3, %c0_i32 : i32
    %1 = arith.extui %0 : i1 to i32
    %c0_i32_0 = arith.constant 0 : i32
    %2 = arith.cmpi ne, %1, %c0_i32_0 : i32
    scf.if %2 {
      %cst = arith.constant 0.000000e+00 : f32
      %12 = vector.broadcast %cst : f32 to vector<64x32xf32>
      %c0 = arith.constant 0 : index
      %c0_6 = arith.constant 0 : index
      %13 = vector.load %arg9[%c0, %c0_6] : memref<64x32xf32, #tpu.memory_space<vmem>>, vector<64x32xf32>
      tpu.vector_store %arg9[%c0, %c0_6], %12 {strides = array<i32>} : memref<64x32xf32, #tpu.memory_space<vmem>>, vector<64x32xf32>,
    } else {
    }
    %c1_i32 = arith.constant 1 : i32
    %3 = arith.cmpi slt, %arg3, %c1_i32 : i32
    %4 = arith.extui %3 : i1 to i32
    %c0_i32_1 = arith.constant 0 : i32
    %5 = arith.cmpi ne, %4, %c0_i32_1 : i32
    scf.if %5 {
      %c0 = arith.constant 0 : index
      %c0_6 = arith.constant 0 : index
      %12 = vector.load %arg9[%c0, %c0_6] : memref<64x32xf32, #tpu.memory_space<vmem>>, vector<64x32xf32>
      %c0_7 = arith.constant 0 : index
      %c0_8 = arith.constant 0 : index
      %c0_9 = arith.constant 0 : index
      %13 = vector.load %arg4[%c0_7, %c0_8, %c0_9] : memref<1x64x32xf32, #tpu.memory_space<vmem>>, vector<1x64x32xf32>
      %14 = vector.shape_cast %13 : vector<1x64x32xf32> to vector<64x32xf32>
      %15 = arith.truncf %14 : vector<64x32xf32> to vector<64x32xbf16>
      %c0_10 = arith.constant 0 : index
      %c0_11 = arith.constant 0 : index
      %16 = vector.load %arg6[%c0_10, %c0_11] : memref<32x32xbf16, #tpu.memory_space<vmem>>, vector<32x32xbf16>
      %cst = arith.constant dense<0.000000e+00> : vector<64x32xf32>
      %17 = tpu.matmul %15, %16, %cst {dimension_numbers = #tpu.dot_dimension_numbers<[1], [0], [0], [1], [0, 0, 1, 1], [], []>} : vector<64x32xbf16>, vector<32x32xbf16>, vector<64x32xf32> -> vector<64x32xf32>
      %18 = arith.addf %12, %17 : vector<64x32xf32>
      %c0_12 = arith.constant 0 : index
      %c0_13 = arith.constant 0 : index
      %19 = vector.load %arg9[%c0_12, %c0_13] : memref<64x32xf32, #tpu.memory_space<vmem>>, vector<64x32xf32>
      tpu.vector_store %arg9[%c0_12, %c0_13], %18 {strides = array<i32>} : memref<64x32xf32, #tpu.memory_space<vmem>>, vector<64x32xf32>,
    } else {
    }
    %c1_i32_2 = arith.constant 1 : i32
    %6 = arith.cmpi sge, %arg3, %c1_i32_2 : i32
    %7 = arith.extui %6 : i1 to i32
    %c0_i32_3 = arith.constant 0 : i32
    %8 = arith.cmpi ne, %7, %c0_i32_3 : i32
    scf.if %8 {
      %c0 = arith.constant 0 : index
      %c0_6 = arith.constant 0 : index
      %12 = vector.load %arg9[%c0, %c0_6] : memref<64x32xf32, #tpu.memory_space<vmem>>, vector<64x32xf32>
      %c0_7 = arith.constant 0 : index
      %c0_8 = arith.constant 0 : index
      %c0_9 = arith.constant 0 : index
      %13 = vector.load %arg5[%c0_7, %c0_8, %c0_9] : memref<1x64x32xf32, #tpu.memory_space<vmem>>, vector<1x64x32xf32>
      %14 = vector.shape_cast %13 : vector<1x64x32xf32> to vector<64x32xf32>
      %15 = arith.truncf %14 : vector<64x32xf32> to vector<64x32xbf16>
      %c0_10 = arith.constant 0 : index
      %c0_11 = arith.constant 0 : index
      %16 = vector.load %arg6[%c0_10, %c0_11] : memref<32x32xbf16, #tpu.memory_space<vmem>>, vector<32x32xbf16>
      %cst = arith.constant dense<0.000000e+00> : vector<64x32xf32>
      %17 = tpu.matmul %15, %16, %cst {dimension_numbers = #tpu.dot_dimension_numbers<[1], [0], [0], [1], [0, 0, 1, 1], [], []>} : vector<64x32xbf16>, vector<32x32xbf16>, vector<64x32xf32> -> vector<64x32xf32>
      %18 = arith.addf %12, %17 : vector<64x32xf32>
      %c0_12 = arith.constant 0 : index
      %c0_13 = arith.constant 0 : index
      %19 = vector.load %arg9[%c0_12, %c0_13] : memref<64x32xf32, #tpu.memory_space<vmem>>, vector<64x32xf32>
      tpu.vector_store %arg9[%c0_12, %c0_13], %18 {strides = array<i32>} : memref<64x32xf32, #tpu.memory_space<vmem>>, vector<64x32xf32>,
    } else {
    }
    %c1_i32_4 = arith.constant 1 : i32
    %9 = arith.cmpi eq, %arg3, %c1_i32_4 : i32
    %10 = arith.extui %9 : i1 to i32
    %c0_i32_5 = arith.constant 0 : i32
    %11 = arith.cmpi ne, %10, %c0_i32_5 : i32
    scf.if %11 {
      %c0 = arith.constant 0 : index
      %c0_6 = arith.constant 0 : index
      %12 = vector.load %arg9[%c0, %c0_6] : memref<64x32xf32, #tpu.memory_space<vmem>>, vector<64x32xf32>
      %c0_7 = arith.constant 0 : index
      %c0_8 = arith.constant 0 : index
      %13 = vector.load %arg7[%c0_7, %c0_8] : memref<1x32xf32, #tpu.memory_space<vmem>>, vector<1x32xf32>
      %14 = vector.broadcast %13 : vector<1x32xf32> to vector<64x32xf32>
      %15 = arith.addf %12, %14 : vector<64x32xf32>
      %16 = arith.truncf %15 : vector<64x32xf32> to vector<64x32xbf16>
      %c0_9 = arith.constant 0 : index
      %c0_10 = arith.constant 0 : index
      %c0_11 = arith.constant 0 : index
      %17 = vector.load %arg8[%c0_9, %c0_10, %c0_11] : memref<1x64x32xbf16, #tpu.memory_space<vmem>>, vector<1x64x32xbf16>
      %18 = vector.shape_cast %17 : vector<1x64x32xbf16> to vector<64x32xbf16>
      %19 = vector.shape_cast %16 : vector<64x32xbf16> to vector<1x64x32xbf16>
      tpu.vector_store %arg8[%c0_9, %c0_10, %c0_11], %19 {strides = array<i32>} : memref<1x64x32xbf16, #tpu.memory_space<vmem>>, vector<1x64x32xbf16>,
    } else {
    }
    return
  }
  func.func @transform_0(%arg0: i32, %arg1: i32, %arg2: i32, %arg3: i32) -> (i32, i32, i32) {
    %c0_i32 = arith.constant 0 : i32
    %0 = arith.minsi %arg3, %c0_i32 : i32
    %c0_i32_0 = arith.constant 0 : i32
    return %arg0, %arg1, %0 : i32, i32, i32
  }
  func.func @transform_1(%arg0: i32, %arg1: i32, %arg2: i32, %arg3: i32) -> (i32, i32, i32) {
    %c1_i32 = arith.constant 1 : i32
    %0 = arith.subi %arg3, %c1_i32 : i32
    %c0_i32 = arith.constant 0 : i32
    %1 = arith.maxsi %0, %c0_i32 : i32
    %c0_i32_0 = arith.constant 0 : i32
    return %arg0, %arg1, %1 : i32, i32, i32
  }
  func.func @transform_2(%arg0: i32, %arg1: i32, %arg2: i32, %arg3: i32) -> (i32, i32) {
    %c0_i32 = arith.constant 0 : i32
    return %arg3, %arg2 : i32, i32
  }
  func.func @transform_3(%arg0: i32, %arg1: i32, %arg2: i32, %arg3: i32) -> (i32, i32) {
    %c0_i32 = arith.constant 0 : i32
    %c0_i32_0 = arith.constant 0 : i32
    return %c0_i32, %arg2 : i32, i32
  }
  func.func @transform_4(%arg0: i32, %arg1: i32, %arg2: i32, %arg3: i32) -> (i32, i32, i32) {
    %c0_i32 = arith.constant 0 : i32
    return %arg0, %arg1, %arg2 : i32, i32, i32
  }
}

module attributes {stable_mosaic.version = 11 : i64} {
  func.func @kernel(%arg0: i32, %arg1: i32, %arg2: i32, %arg3: memref<1x8x8x32xbf16, #tpu.memory_space<vmem>>, %arg4: memref<1x1x32xf32, #tpu.memory_space<vmem>>, %arg5: memref<1x1x32xf32, #tpu.memory_space<vmem>>, %arg6: memref<1x8x8x32xf32, #tpu.memory_space<vmem>>, %arg7: memref<1x1x32xf32, #tpu.memory_space<vmem>>, %arg8: memref<1x1x32xf32, #tpu.memory_space<vmem>>, %arg9: memref<3x3x32x32xbf16, #tpu.memory_space<vmem>>, %arg10: memref<1x1x32xf32, #tpu.memory_space<vmem>>, %arg11: memref<1x64x32xbf16, #tpu.memory_space<vmem>>, %arg12: memref<10x10x32xbf16, #tpu.memory_space<vmem>>, %arg13: memref<64x32xf32, #tpu.memory_space<vmem>>) attributes {dimension_semantics = [#tpu.dimension_semantics<parallel>, #tpu.dimension_semantics<parallel>, #tpu.dimension_semantics<arbitrary>], iteration_bounds = array<i64: 2, 1, 2>, scalar_prefetch = 0 : i64, scratch_operands = 2 : i64, tpu.core_type = #tpu.core_type<tc>, window_params = [{transform_indices = @transform_0, window_bounds = array<i64: 1, 8, 8, 32>}, {transform_indices = @transform_1, window_bounds = array<i64: 1, 1, 32>}, {transform_indices = @transform_2, window_bounds = array<i64: 1, 1, 32>}, {transform_indices = @transform_3, window_bounds = array<i64: 1, 8, 8, 32>}, {transform_indices = @transform_4, window_bounds = array<i64: 1, 1, 32>}, {transform_indices = @transform_5, window_bounds = array<i64: 1, 1, 32>}, {transform_indices = @transform_6, window_bounds = array<i64: 3, 3, 32, 32>}, {transform_indices = @transform_7, window_bounds = array<i64: 1, 1, 32>}, {transform_indices = @transform_8, window_bounds = array<i64: 1, 64, 32>}]} {
    %c0_i32 = arith.constant 0 : i32
    %0 = arith.cmpi eq, %arg2, %c0_i32 : i32
    %1 = arith.extui %0 : i1 to i32
    %c0_i32_0 = arith.constant 0 : i32
    %2 = arith.cmpi ne, %1, %c0_i32_0 : i32
    scf.if %2 {
      %cst_38 = arith.constant 0.000000e+00 : bf16
      %51 = vector.broadcast %cst_38 : bf16 to vector<1x10x32xbf16>
      %c0_39 = arith.constant 0 : index
      %c0_40 = arith.constant 0 : index
      %c0_41 = arith.constant 0 : index
      %52 = vector.load %arg12[%c0_39, %c0_40, %c0_41] : memref<10x10x32xbf16, #tpu.memory_space<vmem>>, vector<1x10x32xbf16>
      tpu.vector_store %arg12[%c0_39, %c0_40, %c0_41], %51 {strides = array<i32>} : memref<10x10x32xbf16, #tpu.memory_space<vmem>>, vector<1x10x32xbf16>,
      %c9 = arith.constant 9 : index
      %c0_42 = arith.constant 0 : index
      %c0_43 = arith.constant 0 : index
      %53 = vector.load %arg12[%c9, %c0_42, %c0_43] : memref<10x10x32xbf16, #tpu.memory_space<vmem>>, vector<1x10x32xbf16>
      tpu.vector_store %arg12[%c9, %c0_42, %c0_43], %51 {strides = array<i32>} : memref<10x10x32xbf16, #tpu.memory_space<vmem>>, vector<1x10x32xbf16>,
      %cst_44 = arith.constant 0.000000e+00 : f32
      %54 = vector.broadcast %cst_44 : f32 to vector<64x32xf32>
      %c0_45 = arith.constant 0 : index
      %c0_46 = arith.constant 0 : index
      %55 = vector.load %arg13[%c0_45, %c0_46] : memref<64x32xf32, #tpu.memory_space<vmem>>, vector<64x32xf32>
      tpu.vector_store %arg13[%c0_45, %c0_46], %54 {strides = array<i32>} : memref<64x32xf32, #tpu.memory_space<vmem>>, vector<64x32xf32>,
    } else {
    }
    %c1_i32 = arith.constant 1 : i32
    %3 = arith.cmpi slt, %arg2, %c1_i32 : i32
    %4 = arith.extui %3 : i1 to i32
    %c0_i32_1 = arith.constant 0 : i32
    %5 = arith.cmpi ne, %4, %c0_i32_1 : i32
    scf.if %5 {
      %c0_38 = arith.constant 0 : index
      %c0_39 = arith.constant 0 : index
      %c0_40 = arith.constant 0 : index
      %c0_41 = arith.constant 0 : index
      %51 = vector.load %arg3[%c0_38, %c0_39, %c0_40, %c0_41] : memref<1x8x8x32xbf16, #tpu.memory_space<vmem>>, vector<1x8x8x32xbf16>
      %52 = vector.shape_cast %51 : vector<1x8x8x32xbf16> to vector<8x8x32xbf16>
      %53 = arith.extf %52 : vector<8x8x32xbf16> to vector<8x8x32xf32>
      %c0_42 = arith.constant 0 : index
      %c0_43 = arith.constant 0 : index
      %c0_44 = arith.constant 0 : index
      %54 = vector.load %arg4[%c0_42, %c0_43, %c0_44] : memref<1x1x32xf32, #tpu.memory_space<vmem>>, vector<1x1x32xf32>
      %55 = vector.broadcast %54 : vector<1x1x32xf32> to vector<8x8x32xf32>
      %56 = arith.mulf %53, %55 : vector<8x8x32xf32>
      %c0_45 = arith.constant 0 : index
      %c0_46 = arith.constant 0 : index
      %c0_47 = arith.constant 0 : index
      %57 = vector.load %arg5[%c0_45, %c0_46, %c0_47] : memref<1x1x32xf32, #tpu.memory_space<vmem>>, vector<1x1x32xf32>
      %58 = vector.broadcast %57 : vector<1x1x32xf32> to vector<8x8x32xf32>
      %59 = arith.addf %56, %58 : vector<8x8x32xf32>
      %cst_48 = arith.constant 0.000000e+00 : f32
      %60 = vector.broadcast %cst_48 : f32 to vector<8x8x32xf32>
      %61 = arith.subf %60, %59 : vector<8x8x32xf32>
      %62 = math.exp %61 : vector<8x8x32xf32>
      %cst_49 = arith.constant 1.000000e+00 : f32
      %63 = vector.broadcast %cst_49 : f32 to vector<8x8x32xf32>
      %64 = arith.addf %63, %62 : vector<8x8x32xf32>
      %65 = tpu.reciprocal %64 {approx = true} : vector<8x8x32xf32> -> vector<8x8x32xf32>
      %66 = arith.mulf %59, %65 : vector<8x8x32xf32>
      %67 = arith.truncf %66 : vector<8x8x32xf32> to vector<8x8x32xbf16>
      %cst_50 = arith.constant 0.000000e+00 : bf16
      %68 = vector.broadcast %cst_50 : bf16 to vector<8x1x32xbf16>
      %69 = tpu.concatenate %68, %67, %68 in 1 : vector<8x1x32xbf16>, vector<8x8x32xbf16>, vector<8x1x32xbf16> -> vector<8x10x32xbf16>
      %c1_51 = arith.constant 1 : index
      %c0_52 = arith.constant 0 : index
      %c0_53 = arith.constant 0 : index
      %70 = vector.load %arg12[%c1_51, %c0_52, %c0_53] : memref<10x10x32xbf16, #tpu.memory_space<vmem>>, vector<8x10x32xbf16>
      tpu.vector_store %arg12[%c1_51, %c0_52, %c0_53], %69 {strides = array<i32>} : memref<10x10x32xbf16, #tpu.memory_space<vmem>>, vector<8x10x32xbf16>,
    } else {
    }
    %c1_i32_2 = arith.constant 1 : i32
    %6 = arith.cmpi sge, %arg2, %c1_i32_2 : i32
    %7 = arith.extui %6 : i1 to i32
    %c0_i32_3 = arith.constant 0 : i32
    %8 = arith.cmpi ne, %7, %c0_i32_3 : i32
    scf.if %8 {
      %c0_38 = arith.constant 0 : index
      %c0_39 = arith.constant 0 : index
      %c0_40 = arith.constant 0 : index
      %c0_41 = arith.constant 0 : index
      %51 = vector.load %arg6[%c0_38, %c0_39, %c0_40, %c0_41] : memref<1x8x8x32xf32, #tpu.memory_space<vmem>>, vector<1x8x8x32xf32>
      %52 = vector.shape_cast %51 : vector<1x8x8x32xf32> to vector<8x8x32xf32>
      %c0_42 = arith.constant 0 : index
      %c0_43 = arith.constant 0 : index
      %c0_44 = arith.constant 0 : index
      %53 = vector.load %arg7[%c0_42, %c0_43, %c0_44] : memref<1x1x32xf32, #tpu.memory_space<vmem>>, vector<1x1x32xf32>
      %54 = vector.broadcast %53 : vector<1x1x32xf32> to vector<8x8x32xf32>
      %55 = arith.mulf %52, %54 : vector<8x8x32xf32>
      %c0_45 = arith.constant 0 : index
      %c0_46 = arith.constant 0 : index
      %c0_47 = arith.constant 0 : index
      %56 = vector.load %arg8[%c0_45, %c0_46, %c0_47] : memref<1x1x32xf32, #tpu.memory_space<vmem>>, vector<1x1x32xf32>
      %57 = vector.broadcast %56 : vector<1x1x32xf32> to vector<8x8x32xf32>
      %58 = arith.addf %55, %57 : vector<8x8x32xf32>
      %cst_48 = arith.constant 0.000000e+00 : f32
      %59 = vector.broadcast %cst_48 : f32 to vector<8x8x32xf32>
      %60 = arith.subf %59, %58 : vector<8x8x32xf32>
      %61 = math.exp %60 : vector<8x8x32xf32>
      %cst_49 = arith.constant 1.000000e+00 : f32
      %62 = vector.broadcast %cst_49 : f32 to vector<8x8x32xf32>
      %63 = arith.addf %62, %61 : vector<8x8x32xf32>
      %64 = tpu.reciprocal %63 {approx = true} : vector<8x8x32xf32> -> vector<8x8x32xf32>
      %65 = arith.mulf %58, %64 : vector<8x8x32xf32>
      %66 = arith.truncf %65 : vector<8x8x32xf32> to vector<8x8x32xbf16>
      %cst_50 = arith.constant 0.000000e+00 : bf16
      %67 = vector.broadcast %cst_50 : bf16 to vector<8x1x32xbf16>
      %68 = tpu.concatenate %67, %66, %67 in 1 : vector<8x1x32xbf16>, vector<8x8x32xbf16>, vector<8x1x32xbf16> -> vector<8x10x32xbf16>
      %c1_51 = arith.constant 1 : index
      %c0_52 = arith.constant 0 : index
      %c0_53 = arith.constant 0 : index
      %69 = vector.load %arg12[%c1_51, %c0_52, %c0_53] : memref<10x10x32xbf16, #tpu.memory_space<vmem>>, vector<8x10x32xbf16>
      tpu.vector_store %arg12[%c1_51, %c0_52, %c0_53], %68 {strides = array<i32>} : memref<10x10x32xbf16, #tpu.memory_space<vmem>>, vector<8x10x32xbf16>,
    } else {
    }
    %c0 = arith.constant 0 : index
    %c0_4 = arith.constant 0 : index
    %c0_5 = arith.constant 0 : index
    %9 = vector.load %arg12[%c0, %c0_4, %c0_5] : memref<10x10x32xbf16, #tpu.memory_space<vmem>>, vector<8x10x32xbf16>
    %10 = vector.extract_strided_slice %9 {offsets = [0, 0, 0], sizes = [8, 8, 32], strides = [1, 1, 1]} : vector<8x10x32xbf16> to vector<8x8x32xbf16>
    %11 = vector.extract_strided_slice %9 {offsets = [0, 1, 0], sizes = [8, 8, 32], strides = [1, 1, 1]} : vector<8x10x32xbf16> to vector<8x8x32xbf16>
    %12 = vector.extract_strided_slice %9 {offsets = [0, 2, 0], sizes = [8, 8, 32], strides = [1, 1, 1]} : vector<8x10x32xbf16> to vector<8x8x32xbf16>
    %13 = tpu.concatenate %10, %11, %12 in 2 : vector<8x8x32xbf16>, vector<8x8x32xbf16>, vector<8x8x32xbf16> -> vector<8x8x96xbf16>
    %14 = vector.shape_cast %13 : vector<8x8x96xbf16> to vector<64x96xbf16>
    %c0_6 = arith.constant 0 : index
    %c0_7 = arith.constant 0 : index
    %c0_8 = arith.constant 0 : index
    %c0_9 = arith.constant 0 : index
    %15 = vector.load %arg9[%c0_6, %c0_7, %c0_8, %c0_9] : memref<3x3x32x32xbf16, #tpu.memory_space<vmem>>, vector<1x3x32x32xbf16>
    %16 = vector.shape_cast %15 : vector<1x3x32x32xbf16> to vector<3x32x32xbf16>
    %17 = vector.shape_cast %16 : vector<3x32x32xbf16> to vector<96x32xbf16>
    %c0_10 = arith.constant 0 : index
    %c0_11 = arith.constant 0 : index
    %18 = vector.load %arg13[%c0_10, %c0_11] : memref<64x32xf32, #tpu.memory_space<vmem>>, vector<64x32xf32>
    %cst = arith.constant dense<0.000000e+00> : vector<64x32xf32>
    %19 = tpu.matmul %14, %17, %cst {dimension_numbers = #tpu.dot_dimension_numbers<[1], [0], [0], [1], [0, 0, 1, 1], [], []>} : vector<64x96xbf16>, vector<96x32xbf16>, vector<64x32xf32> -> vector<64x32xf32>
    %20 = arith.addf %18, %19 : vector<64x32xf32>
    %c0_12 = arith.constant 0 : index
    %c0_13 = arith.constant 0 : index
    %21 = vector.load %arg13[%c0_12, %c0_13] : memref<64x32xf32, #tpu.memory_space<vmem>>, vector<64x32xf32>
    tpu.vector_store %arg13[%c0_12, %c0_13], %20 {strides = array<i32>} : memref<64x32xf32, #tpu.memory_space<vmem>>, vector<64x32xf32>,
    %c1 = arith.constant 1 : index
    %c0_14 = arith.constant 0 : index
    %c0_15 = arith.constant 0 : index
    %22 = vector.load %arg12[%c1, %c0_14, %c0_15] : memref<10x10x32xbf16, #tpu.memory_space<vmem>>, vector<8x10x32xbf16>
    %23 = vector.extract_strided_slice %22 {offsets = [0, 0, 0], sizes = [8, 8, 32], strides = [1, 1, 1]} : vector<8x10x32xbf16> to vector<8x8x32xbf16>
    %24 = vector.extract_strided_slice %22 {offsets = [0, 1, 0], sizes = [8, 8, 32], strides = [1, 1, 1]} : vector<8x10x32xbf16> to vector<8x8x32xbf16>
    %25 = vector.extract_strided_slice %22 {offsets = [0, 2, 0], sizes = [8, 8, 32], strides = [1, 1, 1]} : vector<8x10x32xbf16> to vector<8x8x32xbf16>
    %26 = tpu.concatenate %23, %24, %25 in 2 : vector<8x8x32xbf16>, vector<8x8x32xbf16>, vector<8x8x32xbf16> -> vector<8x8x96xbf16>
    %27 = vector.shape_cast %26 : vector<8x8x96xbf16> to vector<64x96xbf16>
    %c1_16 = arith.constant 1 : index
    %c0_17 = arith.constant 0 : index
    %c0_18 = arith.constant 0 : index
    %c0_19 = arith.constant 0 : index
    %28 = vector.load %arg9[%c1_16, %c0_17, %c0_18, %c0_19] : memref<3x3x32x32xbf16, #tpu.memory_space<vmem>>, vector<1x3x32x32xbf16>
    %29 = vector.shape_cast %28 : vector<1x3x32x32xbf16> to vector<3x32x32xbf16>
    %30 = vector.shape_cast %29 : vector<3x32x32xbf16> to vector<96x32xbf16>
    %c0_20 = arith.constant 0 : index
    %c0_21 = arith.constant 0 : index
    %31 = vector.load %arg13[%c0_20, %c0_21] : memref<64x32xf32, #tpu.memory_space<vmem>>, vector<64x32xf32>
    %cst_22 = arith.constant dense<0.000000e+00> : vector<64x32xf32>
    %32 = tpu.matmul %27, %30, %cst_22 {dimension_numbers = #tpu.dot_dimension_numbers<[1], [0], [0], [1], [0, 0, 1, 1], [], []>} : vector<64x96xbf16>, vector<96x32xbf16>, vector<64x32xf32> -> vector<64x32xf32>
    %33 = arith.addf %31, %32 : vector<64x32xf32>
    %c0_23 = arith.constant 0 : index
    %c0_24 = arith.constant 0 : index
    %34 = vector.load %arg13[%c0_23, %c0_24] : memref<64x32xf32, #tpu.memory_space<vmem>>, vector<64x32xf32>
    tpu.vector_store %arg13[%c0_23, %c0_24], %33 {strides = array<i32>} : memref<64x32xf32, #tpu.memory_space<vmem>>, vector<64x32xf32>,
    %c2 = arith.constant 2 : index
    %c0_25 = arith.constant 0 : index
    %c0_26 = arith.constant 0 : index
    %35 = vector.load %arg12[%c2, %c0_25, %c0_26] : memref<10x10x32xbf16, #tpu.memory_space<vmem>>, vector<8x10x32xbf16>
    %36 = vector.extract_strided_slice %35 {offsets = [0, 0, 0], sizes = [8, 8, 32], strides = [1, 1, 1]} : vector<8x10x32xbf16> to vector<8x8x32xbf16>
    %37 = vector.extract_strided_slice %35 {offsets = [0, 1, 0], sizes = [8, 8, 32], strides = [1, 1, 1]} : vector<8x10x32xbf16> to vector<8x8x32xbf16>
    %38 = vector.extract_strided_slice %35 {offsets = [0, 2, 0], sizes = [8, 8, 32], strides = [1, 1, 1]} : vector<8x10x32xbf16> to vector<8x8x32xbf16>
    %39 = tpu.concatenate %36, %37, %38 in 2 : vector<8x8x32xbf16>, vector<8x8x32xbf16>, vector<8x8x32xbf16> -> vector<8x8x96xbf16>
    %40 = vector.shape_cast %39 : vector<8x8x96xbf16> to vector<64x96xbf16>
    %c2_27 = arith.constant 2 : index
    %c0_28 = arith.constant 0 : index
    %c0_29 = arith.constant 0 : index
    %c0_30 = arith.constant 0 : index
    %41 = vector.load %arg9[%c2_27, %c0_28, %c0_29, %c0_30] : memref<3x3x32x32xbf16, #tpu.memory_space<vmem>>, vector<1x3x32x32xbf16>
    %42 = vector.shape_cast %41 : vector<1x3x32x32xbf16> to vector<3x32x32xbf16>
    %43 = vector.shape_cast %42 : vector<3x32x32xbf16> to vector<96x32xbf16>
    %c0_31 = arith.constant 0 : index
    %c0_32 = arith.constant 0 : index
    %44 = vector.load %arg13[%c0_31, %c0_32] : memref<64x32xf32, #tpu.memory_space<vmem>>, vector<64x32xf32>
    %cst_33 = arith.constant dense<0.000000e+00> : vector<64x32xf32>
    %45 = tpu.matmul %40, %43, %cst_33 {dimension_numbers = #tpu.dot_dimension_numbers<[1], [0], [0], [1], [0, 0, 1, 1], [], []>} : vector<64x96xbf16>, vector<96x32xbf16>, vector<64x32xf32> -> vector<64x32xf32>
    %46 = arith.addf %44, %45 : vector<64x32xf32>
    %c0_34 = arith.constant 0 : index
    %c0_35 = arith.constant 0 : index
    %47 = vector.load %arg13[%c0_34, %c0_35] : memref<64x32xf32, #tpu.memory_space<vmem>>, vector<64x32xf32>
    tpu.vector_store %arg13[%c0_34, %c0_35], %46 {strides = array<i32>} : memref<64x32xf32, #tpu.memory_space<vmem>>, vector<64x32xf32>,
    %c1_i32_36 = arith.constant 1 : i32
    %48 = arith.cmpi eq, %arg2, %c1_i32_36 : i32
    %49 = arith.extui %48 : i1 to i32
    %c0_i32_37 = arith.constant 0 : i32
    %50 = arith.cmpi ne, %49, %c0_i32_37 : i32
    scf.if %50 {
      %c0_38 = arith.constant 0 : index
      %c0_39 = arith.constant 0 : index
      %51 = vector.load %arg13[%c0_38, %c0_39] : memref<64x32xf32, #tpu.memory_space<vmem>>, vector<64x32xf32>
      %c0_40 = arith.constant 0 : index
      %c0_41 = arith.constant 0 : index
      %c0_42 = arith.constant 0 : index
      %52 = vector.load %arg10[%c0_40, %c0_41, %c0_42] : memref<1x1x32xf32, #tpu.memory_space<vmem>>, vector<1x1x32xf32>
      %53 = vector.shape_cast %52 : vector<1x1x32xf32> to vector<1x32xf32>
      %54 = vector.broadcast %53 : vector<1x32xf32> to vector<64x32xf32>
      %55 = arith.addf %51, %54 : vector<64x32xf32>
      %56 = arith.truncf %55 : vector<64x32xf32> to vector<64x32xbf16>
      %c0_43 = arith.constant 0 : index
      %c0_44 = arith.constant 0 : index
      %c0_45 = arith.constant 0 : index
      %57 = vector.load %arg11[%c0_43, %c0_44, %c0_45] : memref<1x64x32xbf16, #tpu.memory_space<vmem>>, vector<1x64x32xbf16>
      %58 = vector.shape_cast %57 : vector<1x64x32xbf16> to vector<64x32xbf16>
      %59 = vector.shape_cast %56 : vector<64x32xbf16> to vector<1x64x32xbf16>
      tpu.vector_store %arg11[%c0_43, %c0_44, %c0_45], %59 {strides = array<i32>} : memref<1x64x32xbf16, #tpu.memory_space<vmem>>, vector<1x64x32xbf16>,
    } else {
    }
    return
  }
  func.func @transform_0(%arg0: i32, %arg1: i32, %arg2: i32) -> (i32, i32, i32, i32) {
    %c0_i32 = arith.constant 0 : i32
    %0 = arith.minsi %arg2, %c0_i32 : i32
    %c0_i32_0 = arith.constant 0 : i32
    %c0_i32_1 = arith.constant 0 : i32
    %c0_i32_2 = arith.constant 0 : i32
    return %arg0, %c0_i32_0, %c0_i32_1, %0 : i32, i32, i32, i32
  }
  func.func @transform_1(%arg0: i32, %arg1: i32, %arg2: i32) -> (i32, i32, i32) {
    %c0_i32 = arith.constant 0 : i32
    %0 = arith.minsi %arg2, %c0_i32 : i32
    %c0_i32_0 = arith.constant 0 : i32
    %c0_i32_1 = arith.constant 0 : i32
    return %arg0, %c0_i32_0, %0 : i32, i32, i32
  }
  func.func @transform_2(%arg0: i32, %arg1: i32, %arg2: i32) -> (i32, i32, i32) {
    %c0_i32 = arith.constant 0 : i32
    %0 = arith.minsi %arg2, %c0_i32 : i32
    %c0_i32_0 = arith.constant 0 : i32
    %c0_i32_1 = arith.constant 0 : i32
    return %arg0, %c0_i32_0, %0 : i32, i32, i32
  }
  func.func @transform_3(%arg0: i32, %arg1: i32, %arg2: i32) -> (i32, i32, i32, i32) {
    %c1_i32 = arith.constant 1 : i32
    %0 = arith.subi %arg2, %c1_i32 : i32
    %c0_i32 = arith.constant 0 : i32
    %1 = arith.maxsi %0, %c0_i32 : i32
    %c0_i32_0 = arith.constant 0 : i32
    %c0_i32_1 = arith.constant 0 : i32
    %c0_i32_2 = arith.constant 0 : i32
    return %arg0, %c0_i32_0, %c0_i32_1, %1 : i32, i32, i32, i32
  }
  func.func @transform_4(%arg0: i32, %arg1: i32, %arg2: i32) -> (i32, i32, i32) {
    %c1_i32 = arith.constant 1 : i32
    %0 = arith.subi %arg2, %c1_i32 : i32
    %c0_i32 = arith.constant 0 : i32
    %1 = arith.maxsi %0, %c0_i32 : i32
    %c0_i32_0 = arith.constant 0 : i32
    %c0_i32_1 = arith.constant 0 : i32
    return %arg0, %c0_i32_0, %1 : i32, i32, i32
  }
  func.func @transform_5(%arg0: i32, %arg1: i32, %arg2: i32) -> (i32, i32, i32) {
    %c1_i32 = arith.constant 1 : i32
    %0 = arith.subi %arg2, %c1_i32 : i32
    %c0_i32 = arith.constant 0 : i32
    %1 = arith.maxsi %0, %c0_i32 : i32
    %c0_i32_0 = arith.constant 0 : i32
    %c0_i32_1 = arith.constant 0 : i32
    return %arg0, %c0_i32_0, %1 : i32, i32, i32
  }
  func.func @transform_6(%arg0: i32, %arg1: i32, %arg2: i32) -> (i32, i32, i32, i32) {
    %c0_i32 = arith.constant 0 : i32
    %c0_i32_0 = arith.constant 0 : i32
    %c0_i32_1 = arith.constant 0 : i32
    return %c0_i32, %c0_i32_0, %arg2, %arg1 : i32, i32, i32, i32
  }
  func.func @transform_7(%arg0: i32, %arg1: i32, %arg2: i32) -> (i32, i32, i32) {
    %c0_i32 = arith.constant 0 : i32
    %c0_i32_0 = arith.constant 0 : i32
    return %arg0, %c0_i32, %arg1 : i32, i32, i32
  }
  func.func @transform_8(%arg0: i32, %arg1: i32, %arg2: i32) -> (i32, i32, i32) {
    %c0_i32 = arith.constant 0 : i32
    %c0_i32_0 = arith.constant 0 : i32
    return %arg0, %c0_i32, %arg1 : i32, i32, i32
  }
}

module attributes {stable_mosaic.version = 11 : i64} {
  func.func @kernel(%arg0: i32, %arg1: i32, %arg2: i32, %arg3: i32, %arg4: memref<1x64x32xbf16, #tpu.memory_space<vmem>>, %arg5: memref<1x64x32xf32, #tpu.memory_space<vmem>>, %arg6: memref<32x32xbf16, #tpu.memory_space<vmem>>, %arg7: memref<1x32xf32, #tpu.memory_space<vmem>>, %arg8: memref<1x64x32xbf16, #tpu.memory_space<vmem>>, %arg9: memref<64x32xf32, #tpu.memory_space<vmem>>) attributes {dimension_semantics = [#tpu.dimension_semantics<parallel>, #tpu.dimension_semantics<parallel>, #tpu.dimension_semantics<parallel>, #tpu.dimension_semantics<arbitrary>], iteration_bounds = array<i64: 2, 1, 1, 2>, scalar_prefetch = 0 : i64, scratch_operands = 1 : i64, tpu.core_type = #tpu.core_type<tc>, window_params = [{transform_indices = @transform_0, window_bounds = array<i64: 1, 64, 32>}, {transform_indices = @transform_1, window_bounds = array<i64: 1, 64, 32>}, {transform_indices = @transform_2, window_bounds = array<i64: 32, 32>}, {transform_indices = @transform_3, window_bounds = array<i64: 1, 32>}, {transform_indices = @transform_4, window_bounds = array<i64: 1, 64, 32>}]} {
    %c0_i32 = arith.constant 0 : i32
    %0 = arith.cmpi eq, %arg3, %c0_i32 : i32
    %1 = arith.extui %0 : i1 to i32
    %c0_i32_0 = arith.constant 0 : i32
    %2 = arith.cmpi ne, %1, %c0_i32_0 : i32
    scf.if %2 {
      %cst = arith.constant 0.000000e+00 : f32
      %12 = vector.broadcast %cst : f32 to vector<64x32xf32>
      %c0 = arith.constant 0 : index
      %c0_6 = arith.constant 0 : index
      %13 = vector.load %arg9[%c0, %c0_6] : memref<64x32xf32, #tpu.memory_space<vmem>>, vector<64x32xf32>
      tpu.vector_store %arg9[%c0, %c0_6], %12 {strides = array<i32>} : memref<64x32xf32, #tpu.memory_space<vmem>>, vector<64x32xf32>,
    } else {
    }
    %c1_i32 = arith.constant 1 : i32
    %3 = arith.cmpi slt, %arg3, %c1_i32 : i32
    %4 = arith.extui %3 : i1 to i32
    %c0_i32_1 = arith.constant 0 : i32
    %5 = arith.cmpi ne, %4, %c0_i32_1 : i32
    scf.if %5 {
      %c0 = arith.constant 0 : index
      %c0_6 = arith.constant 0 : index
      %12 = vector.load %arg9[%c0, %c0_6] : memref<64x32xf32, #tpu.memory_space<vmem>>, vector<64x32xf32>
      %c0_7 = arith.constant 0 : index
      %c0_8 = arith.constant 0 : index
      %c0_9 = arith.constant 0 : index
      %13 = vector.load %arg4[%c0_7, %c0_8, %c0_9] : memref<1x64x32xbf16, #tpu.memory_space<vmem>>, vector<1x64x32xbf16>
      %14 = vector.shape_cast %13 : vector<1x64x32xbf16> to vector<64x32xbf16>
      %c0_10 = arith.constant 0 : index
      %c0_11 = arith.constant 0 : index
      %15 = vector.load %arg6[%c0_10, %c0_11] : memref<32x32xbf16, #tpu.memory_space<vmem>>, vector<32x32xbf16>
      %cst = arith.constant dense<0.000000e+00> : vector<64x32xf32>
      %16 = tpu.matmul %14, %15, %cst {dimension_numbers = #tpu.dot_dimension_numbers<[1], [0], [0], [1], [0, 0, 1, 1], [], []>} : vector<64x32xbf16>, vector<32x32xbf16>, vector<64x32xf32> -> vector<64x32xf32>
      %17 = arith.addf %12, %16 : vector<64x32xf32>
      %c0_12 = arith.constant 0 : index
      %c0_13 = arith.constant 0 : index
      %18 = vector.load %arg9[%c0_12, %c0_13] : memref<64x32xf32, #tpu.memory_space<vmem>>, vector<64x32xf32>
      tpu.vector_store %arg9[%c0_12, %c0_13], %17 {strides = array<i32>} : memref<64x32xf32, #tpu.memory_space<vmem>>, vector<64x32xf32>,
    } else {
    }
    %c1_i32_2 = arith.constant 1 : i32
    %6 = arith.cmpi sge, %arg3, %c1_i32_2 : i32
    %7 = arith.extui %6 : i1 to i32
    %c0_i32_3 = arith.constant 0 : i32
    %8 = arith.cmpi ne, %7, %c0_i32_3 : i32
    scf.if %8 {
      %c0 = arith.constant 0 : index
      %c0_6 = arith.constant 0 : index
      %12 = vector.load %arg9[%c0, %c0_6] : memref<64x32xf32, #tpu.memory_space<vmem>>, vector<64x32xf32>
      %c0_7 = arith.constant 0 : index
      %c0_8 = arith.constant 0 : index
      %c0_9 = arith.constant 0 : index
      %13 = vector.load %arg5[%c0_7, %c0_8, %c0_9] : memref<1x64x32xf32, #tpu.memory_space<vmem>>, vector<1x64x32xf32>
      %14 = vector.shape_cast %13 : vector<1x64x32xf32> to vector<64x32xf32>
      %15 = arith.truncf %14 : vector<64x32xf32> to vector<64x32xbf16>
      %c0_10 = arith.constant 0 : index
      %c0_11 = arith.constant 0 : index
      %16 = vector.load %arg6[%c0_10, %c0_11] : memref<32x32xbf16, #tpu.memory_space<vmem>>, vector<32x32xbf16>
      %cst = arith.constant dense<0.000000e+00> : vector<64x32xf32>
      %17 = tpu.matmul %15, %16, %cst {dimension_numbers = #tpu.dot_dimension_numbers<[1], [0], [0], [1], [0, 0, 1, 1], [], []>} : vector<64x32xbf16>, vector<32x32xbf16>, vector<64x32xf32> -> vector<64x32xf32>
      %18 = arith.addf %12, %17 : vector<64x32xf32>
      %c0_12 = arith.constant 0 : index
      %c0_13 = arith.constant 0 : index
      %19 = vector.load %arg9[%c0_12, %c0_13] : memref<64x32xf32, #tpu.memory_space<vmem>>, vector<64x32xf32>
      tpu.vector_store %arg9[%c0_12, %c0_13], %18 {strides = array<i32>} : memref<64x32xf32, #tpu.memory_space<vmem>>, vector<64x32xf32>,
    } else {
    }
    %c1_i32_4 = arith.constant 1 : i32
    %9 = arith.cmpi eq, %arg3, %c1_i32_4 : i32
    %10 = arith.extui %9 : i1 to i32
    %c0_i32_5 = arith.constant 0 : i32
    %11 = arith.cmpi ne, %10, %c0_i32_5 : i32
    scf.if %11 {
      %c0 = arith.constant 0 : index
      %c0_6 = arith.constant 0 : index
      %12 = vector.load %arg9[%c0, %c0_6] : memref<64x32xf32, #tpu.memory_space<vmem>>, vector<64x32xf32>
      %c0_7 = arith.constant 0 : index
      %c0_8 = arith.constant 0 : index
      %13 = vector.load %arg7[%c0_7, %c0_8] : memref<1x32xf32, #tpu.memory_space<vmem>>, vector<1x32xf32>
      %14 = vector.broadcast %13 : vector<1x32xf32> to vector<64x32xf32>
      %15 = arith.addf %12, %14 : vector<64x32xf32>
      %16 = arith.truncf %15 : vector<64x32xf32> to vector<64x32xbf16>
      %c0_9 = arith.constant 0 : index
      %c0_10 = arith.constant 0 : index
      %c0_11 = arith.constant 0 : index
      %17 = vector.load %arg8[%c0_9, %c0_10, %c0_11] : memref<1x64x32xbf16, #tpu.memory_space<vmem>>, vector<1x64x32xbf16>
      %18 = vector.shape_cast %17 : vector<1x64x32xbf16> to vector<64x32xbf16>
      %19 = vector.shape_cast %16 : vector<64x32xbf16> to vector<1x64x32xbf16>
      tpu.vector_store %arg8[%c0_9, %c0_10, %c0_11], %19 {strides = array<i32>} : memref<1x64x32xbf16, #tpu.memory_space<vmem>>, vector<1x64x32xbf16>,
    } else {
    }
    return
  }
  func.func @transform_0(%arg0: i32, %arg1: i32, %arg2: i32, %arg3: i32) -> (i32, i32, i32) {
    %c0_i32 = arith.constant 0 : i32
    %0 = arith.minsi %arg3, %c0_i32 : i32
    %c0_i32_0 = arith.constant 0 : i32
    return %arg0, %arg1, %0 : i32, i32, i32
  }
  func.func @transform_1(%arg0: i32, %arg1: i32, %arg2: i32, %arg3: i32) -> (i32, i32, i32) {
    %c1_i32 = arith.constant 1 : i32
    %0 = arith.subi %arg3, %c1_i32 : i32
    %c0_i32 = arith.constant 0 : i32
    %1 = arith.maxsi %0, %c0_i32 : i32
    %c0_i32_0 = arith.constant 0 : i32
    return %arg0, %arg1, %1 : i32, i32, i32
  }
  func.func @transform_2(%arg0: i32, %arg1: i32, %arg2: i32, %arg3: i32) -> (i32, i32) {
    %c0_i32 = arith.constant 0 : i32
    return %arg3, %arg2 : i32, i32
  }
  func.func @transform_3(%arg0: i32, %arg1: i32, %arg2: i32, %arg3: i32) -> (i32, i32) {
    %c0_i32 = arith.constant 0 : i32
    %c0_i32_0 = arith.constant 0 : i32
    return %c0_i32, %arg2 : i32, i32
  }
  func.func @transform_4(%arg0: i32, %arg1: i32, %arg2: i32, %arg3: i32) -> (i32, i32, i32) {
    %c0_i32 = arith.constant 0 : i32
    return %arg0, %arg1, %arg2 : i32, i32, i32
  }
}

module attributes {stable_mosaic.version = 11 : i64} {
  func.func @kernel(%arg0: i32, %arg1: i32, %arg2: i32, %arg3: memref<1x8x8x32xbf16, #tpu.memory_space<vmem>>, %arg4: memref<1x1x32xf32, #tpu.memory_space<vmem>>, %arg5: memref<1x1x32xf32, #tpu.memory_space<vmem>>, %arg6: memref<3x3x32x32xbf16, #tpu.memory_space<vmem>>, %arg7: memref<1x1x32xf32, #tpu.memory_space<vmem>>, %arg8: memref<1x64x32xbf16, #tpu.memory_space<vmem>>, %arg9: memref<1x64x32xf32, #tpu.memory_space<vmem>>, %arg10: memref<10x10x32xbf16, #tpu.memory_space<vmem>>, %arg11: memref<64x32xf32, #tpu.memory_space<vmem>>) attributes {dimension_semantics = [#tpu.dimension_semantics<parallel>, #tpu.dimension_semantics<parallel>, #tpu.dimension_semantics<arbitrary>], iteration_bounds = array<i64: 2, 1, 1>, scalar_prefetch = 0 : i64, scratch_operands = 2 : i64, tpu.core_type = #tpu.core_type<tc>, window_params = [{transform_indices = @transform_0, window_bounds = array<i64: 1, 8, 8, 32>}, {transform_indices = @transform_1, window_bounds = array<i64: 1, 1, 32>}, {transform_indices = @transform_2, window_bounds = array<i64: 1, 1, 32>}, {transform_indices = @transform_3, window_bounds = array<i64: 3, 3, 32, 32>}, {transform_indices = @transform_4, window_bounds = array<i64: 1, 1, 32>}, {transform_indices = @transform_5, window_bounds = array<i64: 1, 64, 32>}, {transform_indices = @transform_6, window_bounds = array<i64: 1, 64, 32>}]} {
    %c0_i32 = arith.constant 0 : i32
    %0 = arith.cmpi eq, %arg2, %c0_i32 : i32
    %1 = arith.extui %0 : i1 to i32
    %c0_i32_0 = arith.constant 0 : i32
    %2 = arith.cmpi ne, %1, %c0_i32_0 : i32
    scf.if %2 {
      %cst_51 = arith.constant 0.000000e+00 : bf16
      %65 = vector.broadcast %cst_51 : bf16 to vector<1x10x32xbf16>
      %c0_52 = arith.constant 0 : index
      %c0_53 = arith.constant 0 : index
      %c0_54 = arith.constant 0 : index
      %66 = vector.load %arg10[%c0_52, %c0_53, %c0_54] : memref<10x10x32xbf16, #tpu.memory_space<vmem>>, vector<1x10x32xbf16>
      tpu.vector_store %arg10[%c0_52, %c0_53, %c0_54], %65 {strides = array<i32>} : memref<10x10x32xbf16, #tpu.memory_space<vmem>>, vector<1x10x32xbf16>,
      %c9 = arith.constant 9 : index
      %c0_55 = arith.constant 0 : index
      %c0_56 = arith.constant 0 : index
      %67 = vector.load %arg10[%c9, %c0_55, %c0_56] : memref<10x10x32xbf16, #tpu.memory_space<vmem>>, vector<1x10x32xbf16>
      tpu.vector_store %arg10[%c9, %c0_55, %c0_56], %65 {strides = array<i32>} : memref<10x10x32xbf16, #tpu.memory_space<vmem>>, vector<1x10x32xbf16>,
      %cst_57 = arith.constant 0.000000e+00 : f32
      %68 = vector.broadcast %cst_57 : f32 to vector<64x32xf32>
      %c0_58 = arith.constant 0 : index
      %c0_59 = arith.constant 0 : index
      %69 = vector.load %arg11[%c0_58, %c0_59] : memref<64x32xf32, #tpu.memory_space<vmem>>, vector<64x32xf32>
      tpu.vector_store %arg11[%c0_58, %c0_59], %68 {strides = array<i32>} : memref<64x32xf32, #tpu.memory_space<vmem>>, vector<64x32xf32>,
    } else {
    }
    %c0 = arith.constant 0 : index
    %c0_1 = arith.constant 0 : index
    %c0_2 = arith.constant 0 : index
    %c0_3 = arith.constant 0 : index
    %3 = vector.load %arg3[%c0, %c0_1, %c0_2, %c0_3] : memref<1x8x8x32xbf16, #tpu.memory_space<vmem>>, vector<1x8x8x32xbf16>
    %4 = vector.shape_cast %3 : vector<1x8x8x32xbf16> to vector<8x8x32xbf16>
    %5 = arith.extf %4 : vector<8x8x32xbf16> to vector<8x8x32xf32>
    %c0_4 = arith.constant 0 : index
    %c0_5 = arith.constant 0 : index
    %c0_6 = arith.constant 0 : index
    %6 = vector.load %arg4[%c0_4, %c0_5, %c0_6] : memref<1x1x32xf32, #tpu.memory_space<vmem>>, vector<1x1x32xf32>
    %7 = vector.broadcast %6 : vector<1x1x32xf32> to vector<8x8x32xf32>
    %8 = arith.mulf %5, %7 : vector<8x8x32xf32>
    %c0_7 = arith.constant 0 : index
    %c0_8 = arith.constant 0 : index
    %c0_9 = arith.constant 0 : index
    %9 = vector.load %arg5[%c0_7, %c0_8, %c0_9] : memref<1x1x32xf32, #tpu.memory_space<vmem>>, vector<1x1x32xf32>
    %10 = vector.broadcast %9 : vector<1x1x32xf32> to vector<8x8x32xf32>
    %11 = arith.addf %8, %10 : vector<8x8x32xf32>
    %cst = arith.constant 0.000000e+00 : f32
    %12 = vector.broadcast %cst : f32 to vector<8x8x32xf32>
    %13 = arith.subf %12, %11 : vector<8x8x32xf32>
    %14 = math.exp %13 : vector<8x8x32xf32>
    %cst_10 = arith.constant 1.000000e+00 : f32
    %15 = vector.broadcast %cst_10 : f32 to vector<8x8x32xf32>
    %16 = arith.addf %15, %14 : vector<8x8x32xf32>
    %17 = tpu.reciprocal %16 {approx = true} : vector<8x8x32xf32> -> vector<8x8x32xf32>
    %18 = arith.mulf %11, %17 : vector<8x8x32xf32>
    %19 = arith.truncf %18 : vector<8x8x32xf32> to vector<8x8x32xbf16>
    %cst_11 = arith.constant 0.000000e+00 : bf16
    %20 = vector.broadcast %cst_11 : bf16 to vector<8x1x32xbf16>
    %21 = tpu.concatenate %20, %19, %20 in 1 : vector<8x1x32xbf16>, vector<8x8x32xbf16>, vector<8x1x32xbf16> -> vector<8x10x32xbf16>
    %c1 = arith.constant 1 : index
    %c0_12 = arith.constant 0 : index
    %c0_13 = arith.constant 0 : index
    %22 = vector.load %arg10[%c1, %c0_12, %c0_13] : memref<10x10x32xbf16, #tpu.memory_space<vmem>>, vector<8x10x32xbf16>
    tpu.vector_store %arg10[%c1, %c0_12, %c0_13], %21 {strides = array<i32>} : memref<10x10x32xbf16, #tpu.memory_space<vmem>>, vector<8x10x32xbf16>,
    %c0_14 = arith.constant 0 : index
    %c0_15 = arith.constant 0 : index
    %c0_16 = arith.constant 0 : index
    %23 = vector.load %arg10[%c0_14, %c0_15, %c0_16] : memref<10x10x32xbf16, #tpu.memory_space<vmem>>, vector<8x10x32xbf16>
    %24 = vector.extract_strided_slice %23 {offsets = [0, 0, 0], sizes = [8, 8, 32], strides = [1, 1, 1]} : vector<8x10x32xbf16> to vector<8x8x32xbf16>
    %25 = vector.extract_strided_slice %23 {offsets = [0, 1, 0], sizes = [8, 8, 32], strides = [1, 1, 1]} : vector<8x10x32xbf16> to vector<8x8x32xbf16>
    %26 = vector.extract_strided_slice %23 {offsets = [0, 2, 0], sizes = [8, 8, 32], strides = [1, 1, 1]} : vector<8x10x32xbf16> to vector<8x8x32xbf16>
    %27 = tpu.concatenate %24, %25, %26 in 2 : vector<8x8x32xbf16>, vector<8x8x32xbf16>, vector<8x8x32xbf16> -> vector<8x8x96xbf16>
    %28 = vector.shape_cast %27 : vector<8x8x96xbf16> to vector<64x96xbf16>
    %c0_17 = arith.constant 0 : index
    %c0_18 = arith.constant 0 : index
    %c0_19 = arith.constant 0 : index
    %c0_20 = arith.constant 0 : index
    %29 = vector.load %arg6[%c0_17, %c0_18, %c0_19, %c0_20] : memref<3x3x32x32xbf16, #tpu.memory_space<vmem>>, vector<1x3x32x32xbf16>
    %30 = vector.shape_cast %29 : vector<1x3x32x32xbf16> to vector<3x32x32xbf16>
    %31 = vector.shape_cast %30 : vector<3x32x32xbf16> to vector<96x32xbf16>
    %c0_21 = arith.constant 0 : index
    %c0_22 = arith.constant 0 : index
    %32 = vector.load %arg11[%c0_21, %c0_22] : memref<64x32xf32, #tpu.memory_space<vmem>>, vector<64x32xf32>
    %cst_23 = arith.constant dense<0.000000e+00> : vector<64x32xf32>
    %33 = tpu.matmul %28, %31, %cst_23 {dimension_numbers = #tpu.dot_dimension_numbers<[1], [0], [0], [1], [0, 0, 1, 1], [], []>} : vector<64x96xbf16>, vector<96x32xbf16>, vector<64x32xf32> -> vector<64x32xf32>
    %34 = arith.addf %32, %33 : vector<64x32xf32>
    %c0_24 = arith.constant 0 : index
    %c0_25 = arith.constant 0 : index
    %35 = vector.load %arg11[%c0_24, %c0_25] : memref<64x32xf32, #tpu.memory_space<vmem>>, vector<64x32xf32>
    tpu.vector_store %arg11[%c0_24, %c0_25], %34 {strides = array<i32>} : memref<64x32xf32, #tpu.memory_space<vmem>>, vector<64x32xf32>,
    %c1_26 = arith.constant 1 : index
    %c0_27 = arith.constant 0 : index
    %c0_28 = arith.constant 0 : index
    %36 = vector.load %arg10[%c1_26, %c0_27, %c0_28] : memref<10x10x32xbf16, #tpu.memory_space<vmem>>, vector<8x10x32xbf16>
    %37 = vector.extract_strided_slice %36 {offsets = [0, 0, 0], sizes = [8, 8, 32], strides = [1, 1, 1]} : vector<8x10x32xbf16> to vector<8x8x32xbf16>
    %38 = vector.extract_strided_slice %36 {offsets = [0, 1, 0], sizes = [8, 8, 32], strides = [1, 1, 1]} : vector<8x10x32xbf16> to vector<8x8x32xbf16>
    %39 = vector.extract_strided_slice %36 {offsets = [0, 2, 0], sizes = [8, 8, 32], strides = [1, 1, 1]} : vector<8x10x32xbf16> to vector<8x8x32xbf16>
    %40 = tpu.concatenate %37, %38, %39 in 2 : vector<8x8x32xbf16>, vector<8x8x32xbf16>, vector<8x8x32xbf16> -> vector<8x8x96xbf16>
    %41 = vector.shape_cast %40 : vector<8x8x96xbf16> to vector<64x96xbf16>
    %c1_29 = arith.constant 1 : index
    %c0_30 = arith.constant 0 : index
    %c0_31 = arith.constant 0 : index
    %c0_32 = arith.constant 0 : index
    %42 = vector.load %arg6[%c1_29, %c0_30, %c0_31, %c0_32] : memref<3x3x32x32xbf16, #tpu.memory_space<vmem>>, vector<1x3x32x32xbf16>
    %43 = vector.shape_cast %42 : vector<1x3x32x32xbf16> to vector<3x32x32xbf16>
    %44 = vector.shape_cast %43 : vector<3x32x32xbf16> to vector<96x32xbf16>
    %c0_33 = arith.constant 0 : index
    %c0_34 = arith.constant 0 : index
    %45 = vector.load %arg11[%c0_33, %c0_34] : memref<64x32xf32, #tpu.memory_space<vmem>>, vector<64x32xf32>
    %cst_35 = arith.constant dense<0.000000e+00> : vector<64x32xf32>
    %46 = tpu.matmul %41, %44, %cst_35 {dimension_numbers = #tpu.dot_dimension_numbers<[1], [0], [0], [1], [0, 0, 1, 1], [], []>} : vector<64x96xbf16>, vector<96x32xbf16>, vector<64x32xf32> -> vector<64x32xf32>
    %47 = arith.addf %45, %46 : vector<64x32xf32>
    %c0_36 = arith.constant 0 : index
    %c0_37 = arith.constant 0 : index
    %48 = vector.load %arg11[%c0_36, %c0_37] : memref<64x32xf32, #tpu.memory_space<vmem>>, vector<64x32xf32>
    tpu.vector_store %arg11[%c0_36, %c0_37], %47 {strides = array<i32>} : memref<64x32xf32, #tpu.memory_space<vmem>>, vector<64x32xf32>,
    %c2 = arith.constant 2 : index
    %c0_38 = arith.constant 0 : index
    %c0_39 = arith.constant 0 : index
    %49 = vector.load %arg10[%c2, %c0_38, %c0_39] : memref<10x10x32xbf16, #tpu.memory_space<vmem>>, vector<8x10x32xbf16>
    %50 = vector.extract_strided_slice %49 {offsets = [0, 0, 0], sizes = [8, 8, 32], strides = [1, 1, 1]} : vector<8x10x32xbf16> to vector<8x8x32xbf16>
    %51 = vector.extract_strided_slice %49 {offsets = [0, 1, 0], sizes = [8, 8, 32], strides = [1, 1, 1]} : vector<8x10x32xbf16> to vector<8x8x32xbf16>
    %52 = vector.extract_strided_slice %49 {offsets = [0, 2, 0], sizes = [8, 8, 32], strides = [1, 1, 1]} : vector<8x10x32xbf16> to vector<8x8x32xbf16>
    %53 = tpu.concatenate %50, %51, %52 in 2 : vector<8x8x32xbf16>, vector<8x8x32xbf16>, vector<8x8x32xbf16> -> vector<8x8x96xbf16>
    %54 = vector.shape_cast %53 : vector<8x8x96xbf16> to vector<64x96xbf16>
    %c2_40 = arith.constant 2 : index
    %c0_41 = arith.constant 0 : index
    %c0_42 = arith.constant 0 : index
    %c0_43 = arith.constant 0 : index
    %55 = vector.load %arg6[%c2_40, %c0_41, %c0_42, %c0_43] : memref<3x3x32x32xbf16, #tpu.memory_space<vmem>>, vector<1x3x32x32xbf16>
    %56 = vector.shape_cast %55 : vector<1x3x32x32xbf16> to vector<3x32x32xbf16>
    %57 = vector.shape_cast %56 : vector<3x32x32xbf16> to vector<96x32xbf16>
    %c0_44 = arith.constant 0 : index
    %c0_45 = arith.constant 0 : index
    %58 = vector.load %arg11[%c0_44, %c0_45] : memref<64x32xf32, #tpu.memory_space<vmem>>, vector<64x32xf32>
    %cst_46 = arith.constant dense<0.000000e+00> : vector<64x32xf32>
    %59 = tpu.matmul %54, %57, %cst_46 {dimension_numbers = #tpu.dot_dimension_numbers<[1], [0], [0], [1], [0, 0, 1, 1], [], []>} : vector<64x96xbf16>, vector<96x32xbf16>, vector<64x32xf32> -> vector<64x32xf32>
    %60 = arith.addf %58, %59 : vector<64x32xf32>
    %c0_47 = arith.constant 0 : index
    %c0_48 = arith.constant 0 : index
    %61 = vector.load %arg11[%c0_47, %c0_48] : memref<64x32xf32, #tpu.memory_space<vmem>>, vector<64x32xf32>
    tpu.vector_store %arg11[%c0_47, %c0_48], %60 {strides = array<i32>} : memref<64x32xf32, #tpu.memory_space<vmem>>, vector<64x32xf32>,
    %c0_i32_49 = arith.constant 0 : i32
    %62 = arith.cmpi eq, %arg2, %c0_i32_49 : i32
    %63 = arith.extui %62 : i1 to i32
    %c0_i32_50 = arith.constant 0 : i32
    %64 = arith.cmpi ne, %63, %c0_i32_50 : i32
    scf.if %64 {
      %c0_51 = arith.constant 0 : index
      %c0_52 = arith.constant 0 : index
      %65 = vector.load %arg11[%c0_51, %c0_52] : memref<64x32xf32, #tpu.memory_space<vmem>>, vector<64x32xf32>
      %c0_53 = arith.constant 0 : index
      %c0_54 = arith.constant 0 : index
      %c0_55 = arith.constant 0 : index
      %66 = vector.load %arg7[%c0_53, %c0_54, %c0_55] : memref<1x1x32xf32, #tpu.memory_space<vmem>>, vector<1x1x32xf32>
      %67 = vector.shape_cast %66 : vector<1x1x32xf32> to vector<1x32xf32>
      %68 = vector.broadcast %67 : vector<1x32xf32> to vector<64x32xf32>
      %69 = arith.addf %65, %68 : vector<64x32xf32>
      %c0_56 = arith.constant 0 : index
      %c0_57 = arith.constant 0 : index
      %c0_58 = arith.constant 0 : index
      %70 = vector.load %arg8[%c0_56, %c0_57, %c0_58] : memref<1x64x32xbf16, #tpu.memory_space<vmem>>, vector<1x64x32xbf16>
      %71 = vector.shape_cast %70 : vector<1x64x32xbf16> to vector<64x32xbf16>
      %72 = arith.extf %71 : vector<64x32xbf16> to vector<64x32xf32>
      %73 = arith.addf %69, %72 : vector<64x32xf32>
      %c0_59 = arith.constant 0 : index
      %c0_60 = arith.constant 0 : index
      %c0_61 = arith.constant 0 : index
      %74 = vector.load %arg9[%c0_59, %c0_60, %c0_61] : memref<1x64x32xf32, #tpu.memory_space<vmem>>, vector<1x64x32xf32>
      %75 = vector.shape_cast %74 : vector<1x64x32xf32> to vector<64x32xf32>
      %76 = vector.shape_cast %73 : vector<64x32xf32> to vector<1x64x32xf32>
      tpu.vector_store %arg9[%c0_59, %c0_60, %c0_61], %76 {strides = array<i32>} : memref<1x64x32xf32, #tpu.memory_space<vmem>>, vector<1x64x32xf32>,
    } else {
    }
    return
  }
  func.func @transform_0(%arg0: i32, %arg1: i32, %arg2: i32) -> (i32, i32, i32, i32) {
    %c0_i32 = arith.constant 0 : i32
    %c0_i32_0 = arith.constant 0 : i32
    %c0_i32_1 = arith.constant 0 : i32
    return %arg0, %c0_i32, %c0_i32_0, %arg2 : i32, i32, i32, i32
  }
  func.func @transform_1(%arg0: i32, %arg1: i32, %arg2: i32) -> (i32, i32, i32) {
    %c0_i32 = arith.constant 0 : i32
    %c0_i32_0 = arith.constant 0 : i32
    return %arg0, %c0_i32, %arg2 : i32, i32, i32
  }
  func.func @transform_2(%arg0: i32, %arg1: i32, %arg2: i32) -> (i32, i32, i32) {
    %c0_i32 = arith.constant 0 : i32
    %c0_i32_0 = arith.constant 0 : i32
    return %arg0, %c0_i32, %arg2 : i32, i32, i32
  }
  func.func @transform_3(%arg0: i32, %arg1: i32, %arg2: i32) -> (i32, i32, i32, i32) {
    %c0_i32 = arith.constant 0 : i32
    %c0_i32_0 = arith.constant 0 : i32
    %c0_i32_1 = arith.constant 0 : i32
    return %c0_i32, %c0_i32_0, %arg2, %arg1 : i32, i32, i32, i32
  }
  func.func @transform_4(%arg0: i32, %arg1: i32, %arg2: i32) -> (i32, i32, i32) {
    %c0_i32 = arith.constant 0 : i32
    %c0_i32_0 = arith.constant 0 : i32
    return %arg0, %c0_i32, %arg1 : i32, i32, i32
  }
  func.func @transform_5(%arg0: i32, %arg1: i32, %arg2: i32) -> (i32, i32, i32) {
    %c0_i32 = arith.constant 0 : i32
    %c0_i32_0 = arith.constant 0 : i32
    return %arg0, %c0_i32, %arg1 : i32, i32, i32
  }
  func.func @transform_6(%arg0: i32, %arg1: i32, %arg2: i32) -> (i32, i32, i32) {
    %c0_i32 = arith.constant 0 : i32
    %c0_i32_0 = arith.constant 0 : i32
    return %arg0, %c0_i32, %arg1 : i32, i32, i32
  }
}

</mosaic_0001>

<bundles_post_ra>
// kernel: _lambda_.31
= control target key start
LH: loop header
LB: loop body
LE: loop exit
PB: predicated region body
PF: predicated region fallthrough
CT: control target
= control target key end

     0   :  { %s411_s9 = smov 0   ;;  %s413_s10 = smov 0   ;;  %s487_s0 = inlined_call_operand.vmem [shape: f32[2,64,32], index: 0, kind: input, shape index: {}]   ;;  %s488_s1 = inlined_call_operand.vmem [shape: f32[2,1,32], index: 1, kind: output, shape index: {0}]   ;;  %s489_s2 = inlined_call_operand.vmem [shape: f32[2,1,32], index: 2, kind: output, shape index: {1}]  }
   0x1   :  { %s415_s11 = smov 0  }
   0x2 LB: > { %s25_s12 = sadd.s32 1, %s389_s10  ;;  %p340_p0 = scmp.ge.s32.totalorder %s393_s11, 1  ;;  %s393_s11 = sphi %s415_s11, %s13_s11   ;;  %s389_s10 = sphi %s413_s10, %s491_s10   ;;  %s385_s9 = sphi %s411_s9, %s490_s9  }
   0x3   : > { %p27_p1 = scmp.ge.s32.totalorder %s25_s12, 2  ;;  %p134_p2 = scmp.lt.s32.totalorder %s393_s11, 3 }
   0x5   : > { %s493_s12 = smov (%p27_p1, %s25_s12), 0  ;;  %p135_p3 = pnand %p340_p0, %p134_p2 }
   0x6   : > { %p162_p4 = scmp.lt.s32.totalorder (!%p135_p3), %s385_s9, 1  ;;  %vm181_vm0 = vcmask (!%p135_p3), 253952   ;;  %vm193_vm1 = vcmask (!%p135_p3), 261120   ;;  %v395_v0 = vmov (!%p135_p3), 0.0  }
   0x7   : > { %138 = sbr.rel (%p135_p3) target bundleno = 51 (0x33), region = 24 }
   0xe   : > { %s495_s9 = smov (!%p162_p4, %s385_s9), 1 }
   0xf   : > { %s345_s13 = sshll.u32 %s495_s9, 6  ;;  %s432_s16 = scalar_lea.vmem %s488_s1, %s495_s9 }
  0x10   : > { %s437_s19 = scalar_lea.vmem %s487_s0, %s345_s13  ;;  %182 = vst.msk [vmem:[%s432_s16] sm:$0x1] %vm181_vm0, %v395_v0  ;;  %s444_s22 = scalar_lea.vmem %s489_s2, %s495_s9 }
  0x11   : > { %v184_v1 = vld [vmem:[%s437_s19] sm:$0xff]  ;;  %v185_v2 = vld [vmem:[%s437_s19 + $0x8] sm:$0xff]  ;;  %v186_v3 = vld [vmem:[%s437_s19 + $0x10] sm:$0xff]  ;;  %183 = vst.msk [vmem:[%s444_s22] sm:$0x1] %vm181_vm0, %v395_v0 }
  0x12   : > { %v187_v4 = vld [vmem:[%s437_s19 + $0x18] sm:$0xff]  ;;  %v194_v5 = vsel %vm193_vm1, %v184_v1, 0.0  ;;  %v195_v6 = vsel %vm193_vm1, %v185_v2, 0.0  ;;  %v197_v7 = vsel %vm193_vm1, %v186_v3, 0.0  ;;  %v219_v8 = vmul.f32 %v184_v1, %v184_v1  ;;  %v188_v9 = vld [vmem:[%s437_s19 + $0x20] sm:$0xff]  ;;  %v189_v14 = vld [vmem:[%s437_s19 + $0x28] sm:$0xff] }
  0x13   : > { %v196_v10 = vadd.f32 %v195_v6, %v194_v5  ;;  %v199_v11 = vsel %vm193_vm1, %v187_v4, 0.0  ;;  %v220_v12 = vmul.f32 %v185_v2, %v185_v2  ;;  %v221_v13 = vmul.f32 %v186_v3, %v186_v3  ;;  %v190_v21 = vld [vmem:[%s437_s19 + $0x30] sm:$0xff]  ;;  %v191_v28 = vld [vmem:[%s437_s19 + $0x38] sm:$0xff] }
  0x14   : > { %v222_v16 = vmul.f32 %v187_v4, %v187_v4  ;;  %v201_v17 = vsel %vm193_vm1, %v188_v9, 0.0  ;;  %v223_v18 = vmul.f32 %v188_v9, %v188_v9  ;;  %v227_v19 = vsel %vm193_vm1, %v219_v8, 0.0 }
  0x15   : > { %v198_v15 = vadd.f32 %v197_v7, %v196_v10  ;;  %v228_v20 = vsel %vm193_vm1, %v220_v12, 0.0  ;;  %v230_v24 = vsel %vm193_vm1, %v221_v13, 0.0  ;;  %v203_v25 = vsel %vm193_vm1, %v189_v14, 0.0 }
  0x16   : > { %v229_v23 = vadd.f32 %v228_v20, %v227_v19  ;;  %v224_v26 = vmul.f32 %v189_v14, %v189_v14  ;;  %v232_v27 = vsel %vm193_vm1, %v222_v16, 0.0  ;;  %v205_v31 = vsel %vm193_vm1, %v190_v21, 0.0 }
  0x17   : > { %v200_v22 = vadd.f32 %v199_v11, %v198_v15  ;;  %v225_v32 = vmul.f32 %v190_v21, %v190_v21  ;;  %v234_v33 = vsel %vm193_vm1, %v223_v18, 0.0  ;;  %v207_v36 = vsel %vm193_vm1, %v191_v28, 0.0  ;;  %v192_v55 = vld [vmem:[%s432_s16] sm:$0x1] }
  0x18   : > { %v231_v30 = vadd.f32 %v230_v24, %v229_v23  ;;  %v226_v37 = vmul.f32 %v191_v28, %v191_v28  ;;  %v236_v38 = vsel %vm193_vm1, %v224_v26, 0.0  ;;  %v218_v60 = vld [vmem:[%s444_s22] sm:$0x1] }
  0x19   : > { %v202_v29 = vadd.f32 %v201_v17, %v200_v22  ;;  %v238_v41 = vsel %vm193_vm1, %v225_v32, 0.0 }
  0x1a   : > { %v233_v35 = vadd.f32 %v232_v27, %v231_v30  ;;  %v240_v44 = vsel %vm193_vm1, %v226_v37, 0.0 }
  0x1b   : > { %v204_v34 = vadd.f32 %v203_v25, %v202_v29 }
  0x1c   : > { %v235_v40 = vadd.f32 %v234_v33, %v233_v35 }
  0x1d   : > { %v206_v39 = vadd.f32 %v205_v31, %v204_v34 }
  0x1e   : > { %v237_v43 = vadd.f32 %v236_v38, %v235_v40 }
  0x1f   : > { %v208_v42 = vadd.f32 %v207_v36, %v206_v39 }
  0x20   : > { %v239_v46 = vadd.f32 %v238_v41, %v237_v43 }
  0x21   : > { %v209_v45 = vrot.slane %v208_v42, 4 }
  0x22   : > { %v241_v48 = vadd.f32 %v240_v44, %v239_v46 }
  0x23   : > { %v210_v47 = vadd.f32 %v209_v45, %v208_v42 }
  0x24   : > { %v242_v50 = vrot.slane %v241_v48, 4 }
  0x25   : > { %v211_v49 = vrot.slane %v210_v47, 2 }
  0x26   : > { %v243_v52 = vadd.f32 %v242_v50, %v241_v48 }
  0x27   : > { %v212_v51 = vadd.f32 %v211_v49, %v210_v47 }
  0x28   : > { %v244_v54 = vrot.slane %v243_v52, 2 }
  0x29   : > { %v213_v53 = vrot.slane %v212_v51, 1 }
  0x2a   : > { %v245_v57 = vadd.f32 %v244_v54, %v243_v52 }
  0x2b   : > { %v214_v56 = vadd.f32 %v213_v53, %v212_v51 }
  0x2c   : > { %v246_v59 = vrot.slane %v245_v57, 1 }
  0x2d   : > { %v215_v58 = vadd.f32 %v214_v56, %v192_v55 }
  0x2e   : > { %v247_v61 = vadd.f32 %v246_v59, %v245_v57 }
  0x2f   : > { %217 = vst.msk [vmem:[%s432_s16] sm:$0x1] %vm181_vm0, %v215_v58 }
  0x30   : > { %v248_v62 = vadd.f32 %v247_v61, %v218_v60 }
  0x32   : > { %249 = vst.msk [vmem:[%s444_s22] sm:$0x1] %vm181_vm0, %v248_v62 }
  0x33 PF: > { %s13_s11 = sadd.s32 1, %s393_s11   ;;  %s490_s9 = smov %s389_s10 }
  0x34   : > { %p10_p5 = scmp.ge.s32.totalorder %s13_s11, 4   ;;  %s491_s10 = smov %s493_s12 }
  0x36   :  { %12 = sbr.rel (!%p10_p5) target bundleno = 2 (0x2), region = 70 }

// kernel: _lambda_.18
= control target key start
LH: loop header
LB: loop body
LE: loop exit
PB: predicated region body
PF: predicated region fallthrough
CT: control target
= control target key end

     0   :  { %8 = vsyncpa [#allocation3], 0  ;;  %s692_s0 = inlined_call_operand.hbm [shape: f32[2,64,32], index: 0, kind: input, shape index: {}]   ;;  %s693_s1 = inlined_call_operand.vmem [shape: f32[2,1,32], index: 1, kind: output, shape index: {0}]   ;;  %s694_s2 = inlined_call_operand.vmem [shape: f32[2,1,32], index: 2, kind: output, shape index: {1}]  }
   0x1   :  { %10 = vsyncpa [#allocation3 + $0x1], 0  ;;  %s525_s9 = smov 0   ;;  %s527_s10 = smov 0  }
   0x2   :  { %s529_s11 = smov 0   ;;  %s531_s12 = smov 0  }
   0x3   :  { %s533_s13 = smov 0   ;;  %s535_s14 = smov 0  }
   0x4 LB: > { %s354_s15 = sadd.s32 4294967295, %s504_s14   ;;  %s28_s16 = sadd.s32 1, %s500_s13  ;;  %s504_s14 = sphi %s535_s14, %s16_s14   ;;  %s500_s13 = sphi %s533_s13, %s702_s13   ;;  %s496_s12 = sphi %s531_s12, %s701_s12   ;;  %s492_s11 = sphi %s529_s11, %s700_s11   ;;  %s488_s10 = sphi %s527_s10, %s699_s10   ;;  %s484_s9 = sphi %s525_s9, %s698_s9  }
   0x5   : > { %p30_p0 = scmp.ge.s32.totalorder %s28_s16, 2  ;;  %s37_s17 = sadd.s32 1, %s492_s11 }
   0x6   : > { %p44_p1 = scmp.ne.s32.totalorder %s492_s11, %s488_s10  ;;  %p45_p2 = scmp.eq.s32.totalorder %s504_s14, 0 }
   0x7   : > { %s704_s16 = smov (%p30_p0, %s28_s16), 0  ;;  %p50_p4 = scmp.ne.s32.totalorder %s488_s10, %s484_s9 }
   0x8   : > { %p561_p3 = por %p45_p2, %p44_p1  ;;  %s32_s19 = ssub.s32 %s500_s13, %s704_s16 }
   0x9   : > { %p51_p5 = scmp.eq.s32.totalorder %s354_s15, 0  ;;  %p35_p6 = scmp.eq.s32.totalorder %s32_s19, 0 }
   0xa   : > { %p372_p8 = scmp.lt.s32.totalorder %s504_s14, 2  ;;  %s126_s22 = sand.u32 1, %s492_s11  }
   0xb   : > { %p568_p7 = por %p51_p5, %p50_p4  ;;  %s365_s23 = sshll.u32 %s500_s13, 10 }
   0xc   : > { %s574_s21 = scalar_select %p35_p6, %s492_s11, %s37_s17  }
   0xd   : > { %s358_s24 = sshll.u32 %s126_s22, 6  ;;  %s581_s27 = scalar_lea.hbm %s692_s0, %s365_s23 }
   0xe   : > { %s130_s28 = scalar_lea.vmem [#allocation2], %s358_s24  ;;  %p585_p9 = pnand %p372_p8, %p561_p3 }
   0xf   : > { %s139_s29 = sshll.u32 %s130_s28, 4  ;;  %s591_s3 = scalar_lea.sflag [#allocation3], %s126_s22  ;;  %s589_s29 = int_to_ptr.vmem [resolvable:$true] %s139_s29 }
  0x10   : > { %s424_s4 = scalar_lea.hbm %s581_s27, 1024  ;;  %p426_p11 = pneg %p585_p9 }
  0x11   : > { %p425_p10 = scmp.ne.s32.totalorder %s581_s27, %s424_s4  ;;  %s429_s7 = scalar_lea.hbm %s692_s0, 2048 }
  0x12   : > { %p430_p0 = scmp.lt.u32.totalorder %s581_s27, %s692_s0  ;;  %p431_p1 = scmp.lt.u32.totalorder %s429_s7, %s424_s4 }
  0x13   : > { %p427_p12 = pnand %p426_p11, %p425_p10  ;;  %p433_p3 = scmp.lt.u32.totalorder %s424_s4, %s581_s27 }
  0x14   : > { %p432_p2 = por %p431_p1, %p430_p0 }
  0x15   : > { %p428_p13 = pneg %p427_p12 }
  0x16   : > { %p434_p4 = por %p433_p3, %p432_p2 }
  0x18   : > { %p435_p5 = pnand %p434_p4, %p428_p13 }
  0x1a   : > { %438 = shalt.err (!%p435_p5)
}
  0x1b   : > { %s439_s15 = scalar_lea.vmem %s589_s29, 1024  ;;  %s506_s17 = smov [#allocation2]  }
  0x1c   : > { %p440_p6 = scmp.ne.s32.totalorder %s589_s29, %s439_s15  ;;  %s444_s18 = sshll.u32 %s506_s17, 4  ;;  %s445_s18 = int_to_ptr.vmem [resolvable:$false] %s444_s18 }
  0x1d   : > { %s446_s19 = scalar_lea.vmem %s445_s18, 2048  ;;  %p447_p12 = scmp.lt.s32.totalorder %s589_s29, %s445_s18 }
  0x1e   : > { %p442_p8 = pnand %p440_p6, %p426_p11  ;;  %p448_p0 = scmp.lt.s32.totalorder %s446_s19, %s439_s15 }
  0x20   : > { %p443_p10 = pneg %p442_p8  ;;  %p449_p1 = por %p448_p0, %p447_p12 }
  0x22   : > { %p450_p2 = pnand %p449_p1, %p443_p10 }
  0x24   : > { %453 = shalt.err (!%p450_p2)
}
  0x25   : > { %s507_s22 = smov 128   ;;  %s508_s23 = smov 8  }
  0x26   : > { %371 = dma.hbm_to_vmem [thread:$0]  (!%p585_p9), %s581_s27, 1024, %s589_s29, %s591_s3, %s507_s22, %s507_s22, %s508_s23  }
  0x27   : > { %p361_p11 = scmp.ge.s32.totalorder %s504_s14, 1  ;;  %p147_p13 = scmp.lt.s32.totalorder %s504_s14, 3 }
  0x29   : > { %p148_p3 = pnand %p361_p11, %p147_p13 }
  0x2a   : > { %s153_s24 = sand.u32 (!%p148_p3), 1, %s488_s10  }
  0x2b   : > { %151 = sbr.rel (%p148_p3) target bundleno = 85 (0x55), region = 24  ;;  %s362_s25 = sshll.u32 (!%p148_p3), %s153_s24, 6 }
  0x2c   : > { %s154_s26 = scalar_lea.sflag (!%p148_p3), [#allocation3], %s153_s24  ;;  %s622_s28 = scalar_lea.vmem (!%p148_p3), [#allocation2], %s362_s25 }
  0x32   : > { %479 = dma.done.wait (%p568_p7), %s154_s26, 1024  }
  0x33   : > { %481 = vsyncadd (%p568_p7), %s154_s26, 4294966272  ;;  %p180_p9 = scmp.lt.s32.totalorder %s496_s12, 1  ;;  %vm190_vm0 = vcmask 253952   ;;  %v509_v0 = vmov 0.0   ;;  %vm202_vm1 = vcmask 261120   ;;  %v193_v1 = vld [vmem:[%s622_s28] sm:$0xff] }
  0x34   : > { %v194_v2 = vld [vmem:[%s622_s28 + $0x8] sm:$0xff]  ;;  %v195_v3 = vld [vmem:[%s622_s28 + $0x10] sm:$0xff]  ;;  %v196_v4 = vld [vmem:[%s622_s28 + $0x18] sm:$0xff]  ;;  %v203_v5 = vsel %vm202_vm1, %v193_v1, 0.0  ;;  %v228_v8 = vmul.f32 %v193_v1, %v193_v1 }
  0x35   : > { %s706_s12 = smov (!%p180_p9, %s496_s12), 1  ;;  %v204_v6 = vsel %vm202_vm1, %v194_v2, 0.0  ;;  %v206_v7 = vsel %vm202_vm1, %v195_v3, 0.0  ;;  %v197_v9 = vld [vmem:[%s622_s28 + $0x20] sm:$0xff]  ;;  %v208_v11 = vsel %vm202_vm1, %v196_v4, 0.0  ;;  %v229_v12 = vmul.f32 %v194_v2, %v194_v2  ;;  %v198_v14 = vld [vmem:[%s622_s28 + $0x28] sm:$0xff] }
  0x36   : > { %s633_s30 = scalar_lea.vmem %s693_s1, %s706_s12  ;;  %s638_s20 = scalar_lea.vmem %s694_s2, %s706_s12  ;;  %v205_v10 = vadd.f32 %v204_v6, %v203_v5  ;;  %v230_v13 = vmul.f32 %v195_v3, %v195_v3  ;;  %v231_v16 = vmul.f32 %v196_v4, %v196_v4  ;;  %v210_v17 = vsel %vm202_vm1, %v197_v9, 0.0  ;;  %v199_v21 = vld [vmem:[%s622_s28 + $0x30] sm:$0xff]  ;;  %v200_v28 = vld [vmem:[%s622_s28 + $0x38] sm:$0xff] }
  0x37   : > { %191 = vst.msk [vmem:[%s633_s30] sm:$0x1] %vm190_vm0, %v509_v0  ;;  %192 = vst.msk [vmem:[%s638_s20] sm:$0x1] %vm190_vm0, %v509_v0  ;;  %v232_v18 = vmul.f32 %v197_v9, %v197_v9  ;;  %v236_v19 = vsel %vm202_vm1, %v228_v8, 0.0  ;;  %v237_v20 = vsel %vm202_vm1, %v229_v12, 0.0  ;;  %v233_v26 = vmul.f32 %v198_v14, %v198_v14 }
  0x38   : > { %v207_v15 = vadd.f32 %v206_v7, %v205_v10  ;;  %v238_v23 = vadd.f32 %v237_v20, %v236_v19  ;;  %v239_v24 = vsel %vm202_vm1, %v230_v13, 0.0  ;;  %v212_v25 = vsel %vm202_vm1, %v198_v14, 0.0 }
  0x39   : > { %v241_v27 = vsel %vm202_vm1, %v231_v16, 0.0  ;;  %v214_v31 = vsel %vm202_vm1, %v199_v21, 0.0  ;;  %v234_v32 = vmul.f32 %v199_v21, %v199_v21  ;;  %v243_v33 = vsel %vm202_vm1, %v232_v18, 0.0 }
  0x3a   : > { %v209_v22 = vadd.f32 %v208_v11, %v207_v15  ;;  %v240_v30 = vadd.f32 %v239_v24, %v238_v23  ;;  %v216_v36 = vsel %vm202_vm1, %v200_v28, 0.0  ;;  %v235_v37 = vmul.f32 %v200_v28, %v200_v28 }
  0x3b   : > { %v245_v38 = vsel %vm202_vm1, %v233_v26, 0.0  ;;  %v247_v41 = vsel %vm202_vm1, %v234_v32, 0.0 }
  0x3c   : > { %v211_v29 = vadd.f32 %v210_v17, %v209_v22  ;;  %v242_v35 = vadd.f32 %v241_v27, %v240_v30  ;;  %v249_v44 = vsel %vm202_vm1, %v235_v37, 0.0 }
  0x3e   : > { %v213_v34 = vadd.f32 %v212_v25, %v211_v29  ;;  %v244_v40 = vadd.f32 %v243_v33, %v242_v35  ;;  %v201_v55 = vld [vmem:[%s633_s30] sm:$0x1] }
  0x3f   : > { %v227_v60 = vld [vmem:[%s638_s20] sm:$0x1] }
  0x40   : > { %v215_v39 = vadd.f32 %v214_v31, %v213_v34  ;;  %v246_v43 = vadd.f32 %v245_v38, %v244_v40 }
  0x42   : > { %v217_v42 = vadd.f32 %v216_v36, %v215_v39  ;;  %v248_v46 = vadd.f32 %v247_v41, %v246_v43 }
  0x44   : > { %v218_v45 = vrot.slane %v217_v42, 4  ;;  %v250_v48 = vadd.f32 %v249_v44, %v248_v46 }
  0x46   : > { %v219_v47 = vadd.f32 %v218_v45, %v217_v42  ;;  %v251_v50 = vrot.slane %v250_v48, 4 }
  0x48   : > { %v220_v49 = vrot.slane %v219_v47, 2  ;;  %v252_v52 = vadd.f32 %v251_v50, %v250_v48 }
  0x4a   : > { %v221_v51 = vadd.f32 %v220_v49, %v219_v47  ;;  %v253_v54 = vrot.slane %v252_v52, 2 }
  0x4c   : > { %v222_v53 = vrot.slane %v221_v51, 1  ;;  %v254_v57 = vadd.f32 %v253_v54, %v252_v52 }
  0x4e   : > { %v223_v56 = vadd.f32 %v222_v53, %v221_v51  ;;  %v255_v59 = vrot.slane %v254_v57, 1 }
  0x50   : > { %v224_v58 = vadd.f32 %v223_v56, %v201_v55  ;;  %v256_v61 = vadd.f32 %v255_v59, %v254_v57 }
  0x52   : > { %226 = vst.msk [vmem:[%s633_s30] sm:$0x1] %vm190_vm0, %v224_v58  ;;  %v257_v62 = vadd.f32 %v256_v61, %v227_v60 }
  0x54   : > { %258 = vst.msk [vmem:[%s638_s20] sm:$0x1] %vm190_vm0, %v257_v62 }
  0x55 PF: > { %s16_s14 = sadd.s32 1, %s504_s14   ;;  %s698_s9 = smov %s488_s10 }
  0x56   : > { %p13_p7 = scmp.ge.s32.totalorder %s16_s14, 4   ;;  %s699_s10 = smov %s492_s11 }
  0x57   : > { %s700_s11 = smov %s574_s21  ;;  %s701_s12 = smov %s500_s13 }
  0x58   : > { %s702_s13 = smov %s704_s16  ;;  %15 = sbr.rel (!%p13_p7) target bundleno = 4 (0x4), region = 80 }
  0x5f   :  { %288 = vsyncpa [#allocation3], 1 }
  0x60   :  { %290 = vsyncpa [#allocation3 + $0x1], 1 }

// kernel: _lambda_.22
= control target key start
LH: loop header
LB: loop body
LE: loop exit
PB: predicated region body
PF: predicated region fallthrough
CT: control target
= control target key end

     0   :  { %s438_s9 = smov 0   ;;  %s440_s10 = smov 0   ;;  %s504_s0 = inlined_call_operand.vmem [shape: bf16[2,64,32], index: 0, kind: input, shape index: {}]   ;;  %s505_s1 = inlined_call_operand.vmem [shape: f32[2,1,32], index: 1, kind: output, shape index: {0}]   ;;  %s506_s2 = inlined_call_operand.vmem [shape: f32[2,1,32], index: 2, kind: output, shape index: {1}]  }
   0x1   :  { %s442_s11 = smov 0  }
   0x2 LB: > { %s25_s12 = sadd.s32 1, %s416_s10  ;;  %p348_p0 = scmp.ge.s32.totalorder %s420_s11, 1  ;;  %s420_s11 = sphi %s442_s11, %s13_s11   ;;  %s416_s10 = sphi %s440_s10, %s508_s10   ;;  %s412_s9 = sphi %s438_s9, %s507_s9  }
   0x3   : > { %p27_p1 = scmp.ge.s32.totalorder %s25_s12, 2  ;;  %p134_p2 = scmp.lt.s32.totalorder %s420_s11, 3 }
   0x5   : > { %s510_s12 = smov (%p27_p1, %s25_s12), 0  ;;  %p135_p3 = pnand %p348_p0, %p134_p2 }
   0x6   : > { %p162_p4 = scmp.lt.s32.totalorder (!%p135_p3), %s412_s9, 1  ;;  %vm181_vm0 = vcmask (!%p135_p3), 253952   ;;  %v422_v0 = vmov (!%p135_p3), 0.0   ;;  %vm201_vm1 = vcmask (!%p135_p3), 261120  }
   0x7   : > { %138 = sbr.rel (%p135_p3) target bundleno = 53 (0x35), region = 24 }
   0xe   : > { %s512_s9 = smov (!%p162_p4, %s412_s9), 1 }
   0xf   : > { %s353_s13 = sshll.u32 %s512_s9, 5  ;;  %s459_s16 = scalar_lea.vmem %s505_s1, %s512_s9 }
  0x10   : > { %s169_s19 = scalar_lea.vmem %s504_s0, %s353_s13  ;;  %182 = vst.msk [vmem:[%s459_s16] sm:$0x1] %vm181_vm0, %v422_v0  ;;  %s469_s22 = scalar_lea.vmem %s506_s2, %s512_s9 }
  0x11   : > { %v355_v1 = vld [vmem:[%s169_s19] sm:$0xff]   ;;  %v370_v2 = vld [vmem:[%s169_s19 + $0x8] sm:$0xff]   ;;  %v371_v3 = vld [vmem:[%s169_s19 + $0x10] sm:$0xff]   ;;  %183 = vst.msk [vmem:[%s469_s22] sm:$0x1] %vm181_vm0, %v422_v0 }
  0x12   : > { %v356_v4 = vunpack.c.l.bf16 %v355_v1  ;;  %v357_v5 = vunpack.c.h.bf16 %v355_v1  ;;  %v360_v6 = vunpack.c.l.bf16 %v370_v2  ;;  %v361_v7 = vunpack.c.h.bf16 %v370_v2  ;;  %v372_v9 = vld [vmem:[%s169_s19 + $0x18] sm:$0xff]  }
  0x13   : > { %v364_v8 = vunpack.c.l.bf16 %v371_v3  ;;  %v365_v13 = vunpack.c.h.bf16 %v371_v3  ;;  %v368_v19 = vunpack.c.l.bf16 %v372_v9  ;;  %v369_v29 = vunpack.c.h.bf16 %v372_v9 }
  0x14   : > { %v202_v10 = vsel %vm201_vm1, %v356_v4, 0.0  ;;  %v203_v11 = vsel %vm201_vm1, %v357_v5, 0.0  ;;  %v205_v12 = vsel %vm201_vm1, %v360_v6, 0.0  ;;  %v207_v15 = vsel %vm201_vm1, %v361_v7, 0.0 }
  0x15   : > { %v204_v14 = vadd.f32 %v203_v11, %v202_v10  ;;  %v227_v16 = vmul.f32 %v356_v4, %v356_v4  ;;  %v228_v17 = vmul.f32 %v357_v5, %v357_v5  ;;  %v229_v18 = vmul.f32 %v360_v6, %v360_v6 }
  0x16   : > { %v209_v21 = vsel %vm201_vm1, %v364_v8, 0.0  ;;  %v230_v22 = vmul.f32 %v361_v7, %v361_v7  ;;  %v231_v23 = vmul.f32 %v364_v8, %v364_v8  ;;  %v211_v30 = vsel %vm201_vm1, %v365_v13, 0.0 }
  0x17   : > { %v206_v20 = vadd.f32 %v205_v12, %v204_v14  ;;  %v235_v24 = vsel %vm201_vm1, %v227_v16, 0.0  ;;  %v236_v25 = vsel %vm201_vm1, %v228_v17, 0.0  ;;  %v238_v26 = vsel %vm201_vm1, %v229_v18, 0.0  ;;  %v200_v59 = vld [vmem:[%s459_s16] sm:$0x1] }
  0x18   : > { %v237_v28 = vadd.f32 %v236_v25, %v235_v24  ;;  %v232_v31 = vmul.f32 %v365_v13, %v365_v13  ;;  %v240_v32 = vsel %vm201_vm1, %v230_v22, 0.0  ;;  %v213_v35 = vsel %vm201_vm1, %v368_v19, 0.0  ;;  %v226_v0 = vld [vmem:[%s469_s22] sm:$0x1] }
  0x19   : > { %v208_v27 = vadd.f32 %v207_v15, %v206_v20  ;;  %v233_v36 = vmul.f32 %v368_v19, %v368_v19  ;;  %v242_v37 = vsel %vm201_vm1, %v231_v23, 0.0  ;;  %v215_v40 = vsel %vm201_vm1, %v369_v29, 0.0 }
  0x1a   : > { %v239_v34 = vadd.f32 %v238_v26, %v237_v28  ;;  %v234_v41 = vmul.f32 %v369_v29, %v369_v29  ;;  %v244_v42 = vsel %vm201_vm1, %v232_v31, 0.0 }
  0x1b   : > { %v210_v33 = vadd.f32 %v209_v21, %v208_v27  ;;  %v246_v45 = vsel %vm201_vm1, %v233_v36, 0.0 }
  0x1c   : > { %v241_v39 = vadd.f32 %v240_v32, %v239_v34  ;;  %v248_v48 = vsel %vm201_vm1, %v234_v41, 0.0 }
  0x1d   : > { %v212_v38 = vadd.f32 %v211_v30, %v210_v33 }
  0x1e   : > { %v243_v44 = vadd.f32 %v242_v37, %v241_v39 }
  0x1f   : > { %v214_v43 = vadd.f32 %v213_v35, %v212_v38 }
  0x20   : > { %v245_v47 = vadd.f32 %v244_v42, %v243_v44 }
  0x21   : > { %v216_v46 = vadd.f32 %v215_v40, %v214_v43 }
  0x22   : > { %v247_v50 = vadd.f32 %v246_v45, %v245_v47 }
  0x23   : > { %v217_v49 = vrot.slane %v216_v46, 4 }
  0x24   : > { %v249_v52 = vadd.f32 %v248_v48, %v247_v50 }
  0x25   : > { %v218_v51 = vadd.f32 %v217_v49, %v216_v46 }
  0x26   : > { %v250_v54 = vrot.slane %v249_v52, 4 }
  0x27   : > { %v219_v53 = vrot.slane %v218_v51, 2 }
  0x28   : > { %v251_v56 = vadd.f32 %v250_v54, %v249_v52 }
  0x29   : > { %v220_v55 = vadd.f32 %v219_v53, %v218_v51 }
  0x2a   : > { %v252_v58 = vrot.slane %v251_v56, 2 }
  0x2b   : > { %v221_v57 = vrot.slane %v220_v55, 1 }
  0x2c   : > { %v253_v61 = vadd.f32 %v252_v58, %v251_v56 }
  0x2d   : > { %v222_v60 = vadd.f32 %v221_v57, %v220_v55 }
  0x2e   : > { %v254_v63 = vrot.slane %v253_v61, 1 }
  0x2f   : > { %v223_v62 = vadd.f32 %v222_v60, %v200_v59 }
  0x30   : > { %v255_v1 = vadd.f32 %v254_v63, %v253_v61 }
  0x31   : > { %225 = vst.msk [vmem:[%s459_s16] sm:$0x1] %vm181_vm0, %v223_v62 }
  0x32   : > { %v256_v2 = vadd.f32 %v255_v1, %v226_v0 }
  0x34   : > { %257 = vst.msk [vmem:[%s469_s22] sm:$0x1] %vm181_vm0, %v256_v2 }
  0x35 PF: > { %s13_s11 = sadd.s32 1, %s420_s11   ;;  %s507_s9 = smov %s416_s10 }
  0x36   : > { %p10_p5 = scmp.ge.s32.totalorder %s13_s11, 4   ;;  %s508_s10 = smov %s510_s12 }
  0x38   :  { %12 = sbr.rel (!%p10_p5) target bundleno = 2 (0x2), region = 70 }

// kernel: _lambda_.21
= control target key start
LH: loop header
LB: loop body
LE: loop exit
PB: predicated region body
PF: predicated region fallthrough
CT: control target
= control target key end

     0   :  { %s1123_s15 = smov 0   ;;  %s1125_s16 = smov 0   ;;  %s1260_s0 = inlined_call_operand.vmem [shape: f32[2,64,32], index: 0, kind: input, shape index: {}]   ;;  %s1261_s1 = inlined_call_operand.vmem [shape: f32[2,64,32], index: 1, kind: input, shape index: {}]   ;;  %s1262_s2 = inlined_call_operand.vmem [shape: bf16[64,32], index: 2, kind: input, shape index: {}]   ;;  %s1263_s3 = inlined_call_operand.vmem [shape: f32[1,32], index: 3, kind: input, shape index: {}]   ;;  %s1264_s4 = inlined_call_operand.vmem [shape: bf16[2,64,32], index: 4, kind: output, shape index: {}]  }
   0x1   :  { %s1127_s17 = smov 0   ;;  %s1129_s18 = smov 0  }
   0x2   :  { %s1131_s19 = smov 0  }
   0x3 LB: > { %s29_s20 = sadd.s32 1, %s1087_s17  ;;  %s40_s21 = sadd.s32 1, %s1091_s18  ;;  %s1095_s19 = sphi %s1131_s19, %s14_s19   ;;  %s1091_s18 = sphi %s1129_s18, %s1268_s18   ;;  %s1087_s17 = sphi %s1127_s17, %s1267_s17   ;;  %s1083_s16 = sphi %s1125_s16, %s1266_s16   ;;  %s1079_s15 = sphi %s1123_s15, %s1265_s15  }
   0x4   : > { %p30_p0 = scmp.ge.s32.totalorder %s29_s20, 2  ;;  %p913_p1 = scmp.ge.s32.totalorder %s1095_s19, 1 }
   0x5   : > { %p270_p2 = scmp.lt.s32.totalorder %s1095_s19, 5 }
   0x6   : > { %s1270_s20 = smov (%p30_p0, %s29_s20), 0  ;;  %s1272_s21 = smov (!%p30_p0, %s40_s21), %s1091_s18 }
   0x7   : > { %p271_p3 = pnand %p913_p1, %p270_p2  ;;  %p42_p4 = scmp.ge.s32.totalorder %s1272_s21, 2 }
   0x8   : > { %p338_p5 = scmp.lt.s32.totalorder (!%p271_p3), %s1079_s15, 0  ;;  %p341_p6 = scmp.lt.s32.totalorder (!%p271_p3), %s1083_s16, 1 }
   0x9   : > { %s1274_s21 = smov (%p42_p4, %s1272_s21), 0  ;;  %274 = sbr.rel (%p271_p3) target bundleno = 499 (0x1f3), region = 36 }
   0xa   : > { %s927_s22 = sshll.u32 (!%p271_p3), %s1079_s15, 2  ;;  %p931_p8 = scmp.ne.s32.totalorder (!%p271_p3), %s1079_s15, 0 }
   0xb   : > { %p375_p7 = scmp.lt.s32.totalorder (!%p271_p3), %s927_s22, 7 }
  0x10   : > { %s339_s23 = scalar_select %p338_p5, %s1079_s15, 0 }
  0x11   : > { %s1276_s16 = smov (!%p341_p6, %s1083_s16), 1  ;;  %s1280_s22 = smov (!%p375_p7, %s927_s22), 7 }
  0x12   : > { %s1278_s23 = smov (!%p338_p5, %s339_s23), 0  ;;  %s917_s24 = sshll.u32 %s1276_s16, 3  ;;  %vm404_vm0 = vcmask (!%p931_p8), 261120   ;;  %v1097_v0 = vmov (!%p931_p8), 0.0  }
  0x13   : > { %s958_s25 = sshll.u32 %s1276_s16, 6  ;;  %s349_s26 = sadd.s32 %s917_s24, %s1278_s23  ;;  %405 = vst.msk [vmem:[#allocation2] sm:$0xff] (!%p931_p8), %vm404_vm0, %v1097_v0  ;;  %406 = vst.msk [vmem:[#allocation2 + $0x8] sm:$0xff] (!%p931_p8), %vm404_vm0, %v1097_v0 }
  0x14   : > { %s1161_s29 = scalar_lea.vmem %s1261_s1, %s958_s25  ;;  %s918_s30 = sshll.u32 %s349_s26, 3  ;;  %407 = vst.msk [vmem:[#allocation2 + $0x10] sm:$0xff] (!%p931_p8), %vm404_vm0, %v1097_v0  ;;  %408 = vst.msk [vmem:[#allocation2 + $0x18] sm:$0xff] (!%p931_p8), %vm404_vm0, %v1097_v0 }
  0x15   : > { %s1166_s7 = scalar_lea.vmem %s1260_s0, %s918_s30  ;;  %s959_s8 = sshll.u32 %s1276_s16, 5  ;;  %409 = vst.msk [vmem:[#allocation2 + $0x20] sm:$0xff] (!%p931_p8), %vm404_vm0, %v1097_v0  ;;  %410 = vst.msk [vmem:[#allocation2 + $0x28] sm:$0xff] (!%p931_p8), %vm404_vm0, %v1097_v0 }
  0x16   : > { %s1171_s11 = scalar_lea.vmem %s1264_s4, %s959_s8  ;;  %s928_s12 = sshll.u32 %s1280_s22, 2  ;;  %411 = vst.msk [vmem:[#allocation2 + $0x30] sm:$0xff] (!%p931_p8), %vm404_vm0, %v1097_v0  ;;  %412 = vst.msk [vmem:[#allocation2 + $0x38] sm:$0xff] (!%p931_p8), %vm404_vm0, %v1097_v0 }
  0x17   : > { %s1176_s23 = scalar_lea.vmem %s1262_s2, %s928_s12  ;;  %403 = sbr.rel (%p931_p8) target bundleno = 30 (0x1e), region = 40 }
  0x1e PF: > { %p932_p9 = scmp.ge.s32.totalorder %s1079_s15, 1 }
  0x1f   : > { %v1053_v1 = vld [vmem:[%s1176_s23] sm:$0xff] (!%p932_p9)   ;;  %v1054_v2 = vld [vmem:[%s1176_s23 + $0x8] sm:$0xff] (!%p932_p9)   ;;  %vm453_vm1 = vcmask (!%p932_p9), 261120   ;;  %v427_v8 = vld [vmem:[%s1166_s7 + $0x10] sm:$0xff] (!%p932_p9) }
  0x20   : > { %416 = sbr.rel (%p932_p9) target bundleno = 258 (0x102), region = 44  ;;  %980 = vmatprep.subr.bf16.mxu0 (!%p932_p9), %v1053_v1  ;;  %1004 = vmatprep.subr.bf16.mxu1 (!%p932_p9), %v1053_v1  ;;  %v425_v3 = vld [vmem:[%s1166_s7] sm:$0xff] (!%p932_p9)  ;;  %v426_v4 = vld [vmem:[%s1166_s7 + $0x8] sm:$0xff] (!%p932_p9)  ;;  %v428_v9 = vld [vmem:[%s1166_s7 + $0x18] sm:$0xff] (!%p932_p9) }
  0x21   : > { %v429_v5 = vld [vmem:[%s1166_s7 + $0x20] sm:$0xff] (!%p932_p9)  ;;  %981 = vmatpush3.bf16.msra.mxu0 (!%p932_p9), %v1053_v1  ;;  %1006 = vmatpush3.bf16.msra.mxu1 (!%p932_p9), %v1053_v1  ;;  %v433_v6 = vpack.c.bf16 (!%p932_p9), %v426_v4, %v425_v3  ;;  %v430_v7 = vld [vmem:[%s1166_s7 + $0x28] sm:$0xff] (!%p932_p9)  ;;  %v431_v11 = vld [vmem:[%s1166_s7 + $0x30] sm:$0xff] (!%p932_p9)  ;;  %v434_v13 = vpack.c.bf16 (!%p932_p9), %v428_v9, %v427_v8 }
  0x22   : > { %982 = vmatprep.subr.bf16.mxu0 (!%p932_p9), %v1054_v2  ;;  %1005 = vmatprep.subr.bf16.mxu1 (!%p932_p9), %v1054_v2  ;;  %v435_v10 = vpack.c.bf16 (!%p932_p9), %v430_v7, %v429_v5  ;;  %v432_v12 = vld [vmem:[%s1166_s7 + $0x38] sm:$0xff] (!%p932_p9)  ;;  %v419_v15 = vld [vmem:[#allocation2 + $0x10] sm:$0xff] (!%p932_p9)  ;;  %v417_v17 = vld [vmem:[#allocation2] sm:$0xff] (!%p932_p9) }
  0x23   : > { %984 = vmatprep.mubr.msk.bf16.mxu0 (!%p932_p9), %vm453_vm1, %v433_v6  ;;  %v436_v14 = vpack.c.bf16 (!%p932_p9), %v432_v12, %v431_v11  ;;  %v423_v16 = vld [vmem:[#allocation2 + $0x30] sm:$0xff] (!%p932_p9)  ;;  %v421_v18 = vld [vmem:[#allocation2 + $0x20] sm:$0xff] (!%p932_p9)  ;;  %v420_v21 = vld [vmem:[#allocation2 + $0x18] sm:$0xff] (!%p932_p9) }
  0x24   : > { %988 = vmatprep.mubr.msk.bf16.mxu1 (!%p932_p9), %vm453_vm1, %v435_v10  ;;  %v424_v22 = vld [vmem:[#allocation2 + $0x38] sm:$0xff] (!%p932_p9)  ;;  %v418_v27 = vld [vmem:[#allocation2 + $0x8] sm:$0xff] (!%p932_p9) }
  0x25   : > { %983 = vmatpush3.bf16.msra.mxu0 (!%p932_p9), %v1054_v2  ;;  %1007 = vmatpush3.bf16.msra.mxu1 (!%p932_p9), %v1054_v2  ;;  %v422_v28 = vld [vmem:[#allocation2 + $0x28] sm:$0xff] (!%p932_p9) }
  0x28   : > { %985 = vmatmul.mubr.msk.bf16.vlgmr.msra.gmra.mrb[0].mxu0 %vm453_vm1, %v434_v13  ;;  %989 = vmatmul.mubr.msk.bf16.vlgmr.msra.gmra.mrb[0].mxu1 %vm453_vm1, %v436_v14 }
  0xfb   : > { %v986_v19 = vpop.f32.mrb[0].mxu0  ;;  %v990_v20 = vpop.f32.mrb[0].mxu1 }
  0xfc   : > { %v533_v23 = vadd.f32 %v986_v19, %v419_v15  ;;  %v537_v24 = vadd.f32 %v990_v20, %v423_v16  ;;  %v500_v25 = vpop.f32.mrb[1].mxu0  ;;  %v516_v26 = vpop.f32.mrb[1].mxu1 }
  0xfd   : > { %v531_v29 = vadd.f32 %v500_v25, %v417_v17  ;;  %v535_v30 = vadd.f32 %v516_v26, %v421_v18  ;;  %v987_v31 = vpop.f32.mrb[2].mxu0  ;;  %v991_v32 = vpop.f32.mrb[2].mxu1 }
  0xfe   : > { %541 = vst.msk [vmem:[#allocation2 + $0x10] sm:$0xff] %vm453_vm1, %v533_v23  ;;  %545 = vst.msk [vmem:[#allocation2 + $0x30] sm:$0xff] %vm453_vm1, %v537_v24  ;;  %v534_v33 = vadd.f32 %v987_v31, %v420_v21  ;;  %v538_v34 = vadd.f32 %v991_v32, %v424_v22  ;;  %v503_v35 = vpop.f32.mrb[3].mxu0  ;;  %v519_v36 = vpop.f32.mrb[3].mxu1 }
  0xff   : > { %539 = vst.msk [vmem:[#allocation2] sm:$0xff] %vm453_vm1, %v531_v29  ;;  %543 = vst.msk [vmem:[#allocation2 + $0x20] sm:$0xff] %vm453_vm1, %v535_v30  ;;  %v532_v37 = vadd.f32 %v503_v35, %v418_v27  ;;  %v536_v38 = vadd.f32 %v519_v36, %v422_v28 }
 0x100   : > { %542 = vst.msk [vmem:[#allocation2 + $0x18] sm:$0xff] %vm453_vm1, %v534_v33  ;;  %546 = vst.msk [vmem:[#allocation2 + $0x38] sm:$0xff] %vm453_vm1, %v538_v34 }
 0x101   : > { %540 = vst.msk [vmem:[#allocation2 + $0x8] sm:$0xff] %vm453_vm1, %v532_v37  ;;  %544 = vst.msk [vmem:[#allocation2 + $0x28] sm:$0xff] %vm453_vm1, %v536_v38 }
 0x102 PF: > { %p939_p10 = scmp.lt.s32.totalorder %s1079_s15, 1 }
 0x103   : > { %v1055_v39 = vld [vmem:[%s1176_s23] sm:$0xff] (!%p939_p10)   ;;  %v1056_v40 = vld [vmem:[%s1176_s23 + $0x8] sm:$0xff] (!%p939_p10)   ;;  %vm587_vm2 = vcmask (!%p939_p10), 261120   ;;  %v561_v46 = vld [vmem:[%s1161_s29 + $0x10] sm:$0xff] (!%p939_p10) }
 0x104   : > { %550 = sbr.rel (%p939_p10) target bundleno = 486 (0x1e6), region = 48  ;;  %992 = vmatprep.subr.bf16.mxu0 (!%p939_p10), %v1055_v39  ;;  %1008 = vmatprep.subr.bf16.mxu1 (!%p939_p10), %v1055_v39  ;;  %v559_v41 = vld [vmem:[%s1161_s29] sm:$0xff] (!%p939_p10)  ;;  %v560_v42 = vld [vmem:[%s1161_s29 + $0x8] sm:$0xff] (!%p939_p10)  ;;  %v562_v47 = vld [vmem:[%s1161_s29 + $0x18] sm:$0xff] (!%p939_p10) }
 0x105   : > { %v563_v43 = vld [vmem:[%s1161_s29 + $0x20] sm:$0xff] (!%p939_p10)  ;;  %993 = vmatpush3.bf16.msra.mxu0 (!%p939_p10), %v1055_v39  ;;  %1010 = vmatpush3.bf16.msra.mxu1 (!%p939_p10), %v1055_v39  ;;  %v567_v44 = vpack.c.bf16 (!%p939_p10), %v560_v42, %v559_v41  ;;  %v564_v45 = vld [vmem:[%s1161_s29 + $0x28] sm:$0xff] (!%p939_p10)  ;;  %v565_v49 = vld [vmem:[%s1161_s29 + $0x30] sm:$0xff] (!%p939_p10)  ;;  %v568_v51 = vpack.c.bf16 (!%p939_p10), %v562_v47, %v561_v46 }
 0x106   : > { %994 = vmatprep.subr.bf16.mxu0 (!%p939_p10), %v1056_v40  ;;  %1009 = vmatprep.subr.bf16.mxu1 (!%p939_p10), %v1056_v40  ;;  %v569_v48 = vpack.c.bf16 (!%p939_p10), %v564_v45, %v563_v43  ;;  %v566_v50 = vld [vmem:[%s1161_s29 + $0x38] sm:$0xff] (!%p939_p10)  ;;  %v553_v53 = vld [vmem:[#allocation2 + $0x10] sm:$0xff] (!%p939_p10)  ;;  %v551_v55 = vld [vmem:[#allocation2] sm:$0xff] (!%p939_p10) }
 0x107   : > { %996 = vmatprep.mubr.msk.bf16.mxu0 (!%p939_p10), %vm587_vm2, %v567_v44  ;;  %v570_v52 = vpack.c.bf16 (!%p939_p10), %v566_v50, %v565_v49  ;;  %v557_v54 = vld [vmem:[#allocation2 + $0x30] sm:$0xff] (!%p939_p10)  ;;  %v555_v56 = vld [vmem:[#allocation2 + $0x20] sm:$0xff] (!%p939_p10)  ;;  %v554_v59 = vld [vmem:[#allocation2 + $0x18] sm:$0xff] (!%p939_p10) }
 0x108   : > { %1000 = vmatprep.mubr.msk.bf16.mxu1 (!%p939_p10), %vm587_vm2, %v569_v48  ;;  %v558_v60 = vld [vmem:[#allocation2 + $0x38] sm:$0xff] (!%p939_p10)  ;;  %v552_v1 = vld [vmem:[#allocation2 + $0x8] sm:$0xff] (!%p939_p10) }
 0x109   : > { %995 = vmatpush3.bf16.msra.mxu0 (!%p939_p10), %v1056_v40  ;;  %1011 = vmatpush3.bf16.msra.mxu1 (!%p939_p10), %v1056_v40  ;;  %v556_v2 = vld [vmem:[#allocation2 + $0x28] sm:$0xff] (!%p939_p10) }
 0x10c   : > { %997 = vmatmul.mubr.msk.bf16.vlgmr.msra.gmra.mrb[0].mxu0 %vm587_vm2, %v568_v51  ;;  %1001 = vmatmul.mubr.msk.bf16.vlgmr.msra.gmra.mrb[0].mxu1 %vm587_vm2, %v570_v52 }
 0x1df   : > { %v998_v57 = vpop.f32.mrb[0].mxu0  ;;  %v1002_v58 = vpop.f32.mrb[0].mxu1 }
 0x1e0   : > { %v667_v61 = vadd.f32 %v998_v57, %v553_v53  ;;  %v671_v62 = vadd.f32 %v1002_v58, %v557_v54  ;;  %v634_v63 = vpop.f32.mrb[1].mxu0  ;;  %v650_v0 = vpop.f32.mrb[1].mxu1 }
 0x1e1   : > { %v665_v3 = vadd.f32 %v634_v63, %v551_v55  ;;  %v669_v4 = vadd.f32 %v650_v0, %v555_v56  ;;  %v999_v5 = vpop.f32.mrb[2].mxu0  ;;  %v1003_v6 = vpop.f32.mrb[2].mxu1 }
 0x1e2   : > { %675 = vst.msk [vmem:[#allocation2 + $0x10] sm:$0xff] %vm587_vm2, %v667_v61  ;;  %679 = vst.msk [vmem:[#allocation2 + $0x30] sm:$0xff] %vm587_vm2, %v671_v62  ;;  %v668_v7 = vadd.f32 %v999_v5, %v554_v59  ;;  %v672_v8 = vadd.f32 %v1003_v6, %v558_v60  ;;  %v637_v9 = vpop.f32.mrb[3].mxu0  ;;  %v653_v10 = vpop.f32.mrb[3].mxu1 }
 0x1e3   : > { %673 = vst.msk [vmem:[#allocation2] sm:$0xff] %vm587_vm2, %v665_v3  ;;  %677 = vst.msk [vmem:[#allocation2 + $0x20] sm:$0xff] %vm587_vm2, %v669_v4  ;;  %v666_v11 = vadd.f32 %v637_v9, %v552_v1  ;;  %v670_v12 = vadd.f32 %v653_v10, %v556_v2 }
 0x1e4   : > { %676 = vst.msk [vmem:[#allocation2 + $0x18] sm:$0xff] %vm587_vm2, %v668_v7  ;;  %680 = vst.msk [vmem:[#allocation2 + $0x38] sm:$0xff] %vm587_vm2, %v672_v8 }
 0x1e5   : > { %674 = vst.msk [vmem:[#allocation2 + $0x8] sm:$0xff] %vm587_vm2, %v666_v11  ;;  %678 = vst.msk [vmem:[#allocation2 + $0x28] sm:$0xff] %vm587_vm2, %v670_v12 }
 0x1e6 PF: > { %p946_p11 = scmp.ne.s32.totalorder %s1079_s15, 1 }
 0x1e7   : > { %v947_v14 = vld [vmem:[%s1263_s3] ss:$0 sm:$0xff] (!%p946_p11)  ;;  %vm740_vm3 = vcmask (!%p946_p11), 257024  }
 0x1e8   : > { %684 = sbr.rel (%p946_p11) target bundleno = 499 (0x1f3), region = 52 }
 0x1e9   : > { %v687_v18 = vld [vmem:[#allocation2 + $0x10] sm:$0xff] (!%p946_p11) }
 0x1ea   : > { %v685_v13 = vld [vmem:[#allocation2] sm:$0xff] (!%p946_p11)  ;;  %v702_v21 = vadd.f32 (!%p946_p11), %v947_v14, %v687_v18  ;;  %v691_v25 = vld [vmem:[#allocation2 + $0x30] sm:$0xff] (!%p946_p11) }
 0x1eb   : > { %v700_v16 = vadd.f32 (!%p946_p11), %v947_v14, %v685_v13  ;;  %v688_v19 = vld [vmem:[#allocation2 + $0x18] sm:$0xff] (!%p946_p11)  ;;  %v689_v20 = vld [vmem:[#allocation2 + $0x20] sm:$0xff] (!%p946_p11)  ;;  %v706_v30 = vadd.f32 (!%p946_p11), %v947_v14, %v691_v25 }
 0x1ec   : > { %v686_v15 = vld [vmem:[#allocation2 + $0x8] sm:$0xff] (!%p946_p11)  ;;  %v703_v22 = vadd.f32 (!%p946_p11), %v947_v14, %v688_v19  ;;  %v704_v23 = vadd.f32 (!%p946_p11), %v947_v14, %v689_v20  ;;  %v692_v26 = vld [vmem:[#allocation2 + $0x38] sm:$0xff] (!%p946_p11)  ;;  %v962_v31 = vpack.c.bf16 (!%p946_p11), %v702_v21, %v702_v21 }
 0x1ed   : > { %v701_v17 = vadd.f32 (!%p946_p11), %v947_v14, %v686_v15  ;;  %v690_v24 = vld [vmem:[#allocation2 + $0x28] sm:$0xff] (!%p946_p11)  ;;  %v960_v27 = vpack.c.bf16 (!%p946_p11), %v700_v16, %v700_v16  ;;  %v707_v34 = vadd.f32 (!%p946_p11), %v947_v14, %v692_v26  ;;  %v966_v36 = vpack.c.bf16 (!%p946_p11), %v706_v30, %v706_v30 }
 0x1ee   : > { %v705_v29 = vadd.f32 (!%p946_p11), %v947_v14, %v690_v24  ;;  %v963_v32 = vpack.c.bf16 (!%p946_p11), %v703_v22, %v703_v22  ;;  %v964_v33 = vpack.c.bf16 (!%p946_p11), %v704_v23, %v704_v23  ;;  %743 = vst.msk [vmem:[%s1171_s11 + $0x8] sm:$0xf] (!%p946_p11), %vm740_vm3, %v962_v31 }
 0x1ef   : > { %v961_v28 = vpack.c.bf16 %v701_v17, %v701_v17  ;;  %741 = vst.msk [vmem:[%s1171_s11] sm:$0xf] %vm740_vm3, %v960_v27  ;;  %v967_v37 = vpack.c.bf16 %v707_v34, %v707_v34  ;;  %747 = vst.msk [vmem:[%s1171_s11 + $0x18] sm:$0xf] %vm740_vm3, %v966_v36 }
 0x1f0   : > { %v965_v35 = vpack.c.bf16 %v705_v29, %v705_v29  ;;  %744 = vst.msk [vmem:[%s1171_s11 + $0xc] sm:$0xf] %vm740_vm3, %v963_v32  ;;  %745 = vst.msk [vmem:[%s1171_s11 + $0x10] sm:$0xf] %vm740_vm3, %v964_v33 }
 0x1f1   : > { %742 = vst.msk [vmem:[%s1171_s11 + $0x4] sm:$0xf] %vm740_vm3, %v961_v28  ;;  %748 = vst.msk [vmem:[%s1171_s11 + $0x1c] sm:$0xf] %vm740_vm3, %v967_v37 }
 0x1f2   : > { %746 = vst.msk [vmem:[%s1171_s11 + $0x14] sm:$0xf] %vm740_vm3, %v965_v35 }
 0x1f3 PF: > { %s14_s19 = sadd.s32 1, %s1095_s19   ;;  %s1265_s15 = smov %s1087_s17 }
 0x1f4   : > { %p11_p12 = scmp.ge.s32.totalorder %s14_s19, 6   ;;  %s1266_s16 = smov %s1091_s18 }
 0x1f5   : > { %s1267_s17 = smov %s1270_s20  ;;  %s1268_s18 = smov %s1274_s21 }
 0x1f6   :  { %13 = sbr.rel (!%p11_p12) target bundleno = 3 (0x3), region = 91 }

// kernel: _lambda_.23
= control target key start
LH: loop header
LB: loop body
LE: loop exit
PB: predicated region body
PF: predicated region fallthrough
CT: control target
= control target key end

     0   :  { %s2499_s21 = smov 0   ;;  %s2501_s22 = smov 0   ;;  %s3085_s0 = inlined_call_operand.vmem [shape: bf16[2,8,8,32], index: 0, kind: input, shape index: {}]   ;;  %s3086_s1 = inlined_call_operand.vmem [shape: f32[2,1,32], index: 1, kind: input, shape index: {}]   ;;  %s3087_s2 = inlined_call_operand.vmem [shape: f32[2,1,32], index: 2, kind: input, shape index: {}]   ;;  %s3088_s3 = inlined_call_operand.vmem [shape: bf16[3,3,32,32], index: 3, kind: input, shape index: {}]   ;;  %s3089_s4 = inlined_call_operand.vmem [shape: f32[2,1,32], index: 4, kind: input, shape index: {}]   ;;  %s3090_s5 = inlined_call_operand.vmem [shape: bf16[2,64,32], index: 5, kind: input, shape index: {}]   ;;  %s3091_s6 = inlined_call_operand.vmem [shape: bf16[2,64,32], index: 6, kind: output, shape index: {}]  }
   0x1   :  { %s2503_s23 = smov 0  }
   0x2 LB: > { %s35_s24 = sadd.s32 1, %s2454_s22  ;;  %p2056_p0 = scmp.ge.s32.totalorder %s2458_s23, 1  ;;  %s2458_s23 = sphi %s2503_s23, %s16_s23   ;;  %s2454_s22 = sphi %s2501_s22, %s3097_s22   ;;  %s2450_s21 = sphi %s2499_s21, %s3096_s21  }
   0x3   : > { %p37_p1 = scmp.ge.s32.totalorder %s35_s24, 2  ;;  %p308_p2 = scmp.lt.s32.totalorder %s2458_s23, 3 }
   0x5   : > { %s3099_s24 = smov (%p37_p1, %s35_s24), 0  ;;  %p309_p3 = pnand %p2056_p0, %p308_p2 }
   0x6   : > { %vm434_vm0 = vcmask (!%p309_p3), 257024   ;;  %vm436_vm1 = vcmask (!%p309_p3), 253952   ;;  %v2460_v0 = vmov (!%p309_p3), 0   ;;  %p378_p4 = scmp.lt.s32.totalorder (!%p309_p3), %s2450_s21, 1  ;;  %s2461_s11 = smov (!%p309_p3), 64   ;;  %vm616_vm2 = vcmask (!%p309_p3), 1040384  }
   0x7   : > { %312 = sbr.rel (%p309_p3) target bundleno = 522 (0x20a), region = 44  ;;  %435 = vst.msk [vmem:[#allocation2] sm:$0xf] (!%p309_p3), %vm434_vm0, %v2460_v0  ;;  %439 = vst.msk [vmem:[#allocation2 + $0x48] sm:$0xf] (!%p309_p3), %vm434_vm0, %v2460_v0  ;;  %s2462_s12 = smov (!%p309_p3), 32  }
   0x8   : > { %437 = vst.msk [vmem:[#allocation2 + $0x4] sm:$0x1] (!%p309_p3), %vm436_vm1, %v2460_v0  ;;  %440 = vst.msk [vmem:[#allocation2 + $0x4c] sm:$0x1] (!%p309_p3), %vm436_vm1, %v2460_v0  ;;  %vm617_vm3 = vsmask.f32 (!%p309_p3), 256 }
   0x9   : > { %vm627_vm4 = vcmask (!%p309_p3), 1044480   ;;  %vm628_vm5 = vsmask.f32 (!%p309_p3), 4352  ;;  %vm2572_vm6 = vmand (!%p309_p3), %vm616_vm2, %vm617_vm3  ;;  %vm441_vm8 = vcmask (!%p309_p3), 261120   ;;  %vm890_vm9 = vcmask (!%p309_p3), 523264  }
   0xa   : > { %vm2578_vm7 = vmand (!%p309_p3), %vm627_vm4, %vm628_vm5  ;;  %vm983_vm10 = vcmask (!%p309_p3), 785408  }
   0xe   : > { %s3101_s21 = smov (!%p378_p4, %s2450_s21), 1  ;;  %v713_v4 = vld [vmem:[#allocation2] sm:$0xf] }
   0xf   : > { %s2524_s25 = sshll.u32 %s3101_s21, 5  ;;  %s391_s28 = scalar_lea.vmem %s3086_s1, %s3101_s21  ;;  %v714_v5 = vld [vmem:[#allocation2 + $0x4] sm:$0x1] }
  0x10   : > { %s385_s7 = scalar_lea.vmem %s3085_s0, %s2524_s25  ;;  %s397_s10 = scalar_lea.vmem %s3087_s2, %s3101_s21  ;;  %v2063_v2 = vld [vmem:[%s391_s28] ss:$0 sm:$0xff]  ;;  %v2081_v11 = vcombine.low %v713_v4, %v714_v5 }
  0x11   : > { %v2194_v1 = vld [vmem:[%s385_s7] sm:$0xff]   ;;  %v2225_v3 = vld [vmem:[%s385_s7 + $0x8] sm:$0xff]   ;;  %v2226_v10 = vld [vmem:[%s385_s7 + $0x10] sm:$0xff]   ;;  %s3036_s15 = scalar_lea.vmem %s3090_s5, %s2524_s25  ;;  %s412_s18 = scalar_lea.vmem %s3089_s4, %s3101_s21 }
  0x12   : > { %v2196_v6 = vunpack.c.h.bf16 %v2194_v1  ;;  %v2195_v7 = vunpack.c.l.bf16 %v2194_v1  ;;  %v2199_v8 = vunpack.c.l.bf16 %v2225_v3  ;;  %v2200_v9 = vunpack.c.h.bf16 %v2225_v3  ;;  %v2064_v12 = vld [vmem:[%s397_s10] ss:$0 sm:$0xff]  ;;  %v2227_v15 = vld [vmem:[%s385_s7 + $0x18] sm:$0xff]   ;;  %s3058_s20 = scalar_lea.vmem %s3091_s6, %s2524_s25 }
  0x13   : > { %v2204_v13 = vunpack.c.h.bf16 %v2226_v10  ;;  %v2203_v14 = vunpack.c.l.bf16 %v2226_v10  ;;  %v841_v20 = vrot.slane %v2081_v11, 1  ;;  %v770_v21 = vshrl.u32 %v2081_v11, 16 }
  0x14   : > { %v474_v16 = vmul.f32 %v2196_v6, %v2063_v2  ;;  %v473_v17 = vmul.f32 %v2195_v7, %v2063_v2  ;;  %v475_v18 = vmul.f32 %v2199_v8, %v2063_v2  ;;  %v476_v19 = vmul.f32 %v2200_v9, %v2063_v2 }
  0x15   : > { %v772_v22 = vshll.u32 %v2081_v11, 16  ;;  %v478_v23 = vmul.f32 %v2204_v13, %v2063_v2  ;;  %849 = vrot.lane.b32.xlu0 %v841_v20, %s2461_s11  ;;  %v477_v30 = vmul.f32 %v2203_v14, %v2063_v2  ;;  %v2207_v31 = vunpack.c.l.bf16 %v2227_v15 }
  0x16   : > { %v2538_v24 = vadd.f32 %v2064_v12, %v474_v16  ;;  %v2540_v25 = vadd.f32 %v2064_v12, %v473_v17  ;;  %v2542_v26 = vadd.f32 %v2064_v12, %v475_v18  ;;  %v2544_v27 = vadd.f32 %v2064_v12, %v476_v19 }
  0x17   : > { %v774_v28 = vrot.slane %v772_v22, 1  ;;  %v2547_v29 = vadd.f32 %v2064_v12, %v478_v23  ;;  %v2554_v38 = vadd.f32 %v2064_v12, %v477_v30  ;;  %v479_v39 = vmul.f32 %v2207_v31, %v2063_v2 }
  0x18   : > { %v497_v32 = vsub.f32 0.0, %v2538_v24  ;;  %v496_v33 = vsub.f32 0.0, %v2540_v25  ;;  %v498_v34 = vsub.f32 0.0, %v2542_v26  ;;  %v499_v35 = vsub.f32 0.0, %v2544_v27 }
  0x19   : > { %v775_v36 = vor.u32 %v774_v28, %v770_v21  ;;  %v501_v37 = vsub.f32 0.0, %v2547_v29  ;;  %v2208_v43 = vunpack.c.h.bf16 %v2227_v15  ;;  %v500_v46 = vsub.f32 0.0, %v2554_v38 }
  0x1a   : > { %v506_v40 = vmul.f32 1.442695, %v497_v32  ;;  %v504_v41 = vmul.f32 1.442695, %v496_v33  ;;  %v508_v42 = vmul.f32 1.442695, %v498_v34  ;;  %v2558_v47 = vadd.f32 %v2064_v12, %v479_v39 }
  0x1b   : > { %825 = vrot.lane.b32.xlu0 %v775_v36, %s2462_s12  ;;  %v510_v44 = vmul.f32 1.442695, %v499_v35  ;;  %v514_v45 = vmul.f32 1.442695, %v501_v37  ;;  %v480_v48 = vmul.f32 %v2208_v43, %v2063_v2  ;;  %v512_v49 = vmul.f32 1.442695, %v500_v46 }
  0x1c   : > { %2403 = vpow2.f32 %v506_v40  ;;  %v502_v50 = vsub.f32 0.0, %v2558_v47 }
  0x1d   : > { %2405 = vpow2.f32 %v504_v41  ;;  %v2561_v51 = vadd.f32 %v2064_v12, %v480_v48 }
  0x1e   : > { %2407 = vpow2.f32 %v508_v42  ;;  %v516_v52 = vmul.f32 1.442695, %v502_v50 }
  0x1f   : > { %2409 = vpow2.f32 %v510_v44  ;;  %v503_v53 = vsub.f32 0.0, %v2561_v51 }
  0x20   : > { %2411 = vpow2.f32 %v514_v45 }
  0x21   : > { %2413 = vpow2.f32 %v512_v49  ;;  %v518_v54 = vmul.f32 1.442695, %v503_v53 }
  0x22   : > { %2415 = vpow2.f32 %v516_v52 }
  0x23   : > { %2417 = vpow2.f32 %v518_v54 }
  0x26   : > { %v2404_v55 = vpop.eup %2403 }
  0x27   : > { %v2406_v56 = vpop.eup %2405  ;;  %v521_v57 = vadd.f32 1.0, %v2404_v55 }
  0x28   : > { %v2408_v58 = vpop.eup %2407  ;;  %v520_v59 = vadd.f32 1.0, %v2406_v56 }
  0x29   : > { %v2410_v60 = vpop.eup %2409  ;;  %2419 = vrcp.f32 %v521_v57  ;;  %v522_v61 = vadd.f32 1.0, %v2408_v58 }
  0x2a   : > { %v2412_v62 = vpop.eup %2411  ;;  %2421 = vrcp.f32 %v520_v59  ;;  %v523_v63 = vadd.f32 1.0, %v2410_v60 }
  0x2b   : > { %v2414_v0 = vpop.eup %2413  ;;  %2423 = vrcp.f32 %v522_v61  ;;  %v525_v1 = vadd.f32 1.0, %v2412_v62 }
  0x2c   : > { %v2416_v2 = vpop.eup %2415  ;;  %2425 = vrcp.f32 %v523_v63  ;;  %v524_v3 = vadd.f32 1.0, %v2414_v0 }
  0x2d   : > { %2427 = vrcp.f32 %v525_v1  ;;  %v526_v4 = vadd.f32 1.0, %v2416_v2  ;;  %v2418_v5 = vpop.eup %2417 }
  0x2e   : > { %2429 = vrcp.f32 %v524_v3  ;;  %v527_v7 = vadd.f32 1.0, %v2418_v5 }
  0x2f   : > { %2431 = vrcp.f32 %v526_v4 }
  0x30   : > { %2433 = vrcp.f32 %v527_v7 }
  0x33   : > { %v2420_v6 = vpop.eup %2419 }
  0x34   : > { %v2422_v8 = vpop.eup %2421  ;;  %v537_v9 = vmul.f32 %v2420_v6, %v2538_v24 }
  0x35   : > { %v2424_v10 = vpop.eup %2423  ;;  %v536_v11 = vmul.f32 %v2422_v8, %v2540_v25 }
  0x36   : > { %v2426_v12 = vpop.eup %2425  ;;  %v545_v13 = vpack.c.bf16 %v537_v9, %v537_v9  ;;  %v538_v14 = vmul.f32 %v2424_v10, %v2542_v26 }
  0x37   : > { %v2428_v15 = vpop.eup %2427  ;;  %v544_v16 = vpack.c.bf16 %v536_v11, %v536_v11  ;;  %v539_v17 = vmul.f32 %v2426_v12, %v2544_v27 }
  0x38   : > { %v2430_v18 = vpop.eup %2429  ;;  %v560_v19 = vshrl.u32 %v545_v13, 16  ;;  %v563_v20 = vshll.u32 %v545_v13, 16  ;;  %v546_v21 = vpack.c.bf16 %v538_v14, %v538_v14  ;;  %v541_v22 = vmul.f32 %v2428_v15, %v2547_v29 }
  0x39   : > { %v553_v23 = vshrl.u32 %v544_v16, 16  ;;  %v556_v24 = vshll.u32 %v544_v16, 16  ;;  %v547_v25 = vpack.c.bf16 %v539_v17, %v539_v17  ;;  %v540_v28 = vmul.f32 %v2430_v18, %v2554_v38  ;;  %v2432_v33 = vpop.eup %2431 }
  0x3a   : > { %v562_v30 = vrot.slane %v560_v19, 7  ;;  %v567_v31 = vshrl.u32 %v546_v21, 16  ;;  %v570_v26 = vshll.u32 %v546_v21, 16  ;;  %v549_v32 = vpack.c.bf16 %v541_v22, %v541_v22  ;;  %v2434_v60 = vpop.eup %2433 }
  0x3b   : > { %v555_v34 = vrot.slane %v553_v23, 7  ;;  %v574_v35 = vshrl.u32 %v547_v25, 16  ;;  %v577_v36 = vshll.u32 %v547_v25, 16  ;;  %v548_v29 = vpack.c.bf16 %v540_v28, %v540_v28 }
  0x3c   : > { %v565_v37 = vor.u32 %v563_v20, %v562_v30  ;;  %v569_v39 = vrot.slane %v567_v31, 7  ;;  %v588_v40 = vshrl.u32 %v549_v32, 16  ;;  %v591_v41 = vshll.u32 %v549_v32, 16 }
  0x3d   : > { %v558_v42 = vor.u32 %v556_v24, %v555_v34  ;;  %v576_v43 = vrot.slane %v574_v35, 7  ;;  %v581_v44 = vshrl.u32 %v548_v29, 16  ;;  %v584_v45 = vshll.u32 %v548_v29, 16 }
  0x3e   : > { %v620_v46 = vsel %vm2572_vm6, 0, %v565_v37  ;;  %v572_v48 = vor.u32 %v570_v26, %v569_v39  ;;  %v590_v49 = vrot.slane %v588_v40, 7  ;;  %v542_v50 = vmul.f32 %v2432_v33, %v2558_v47 }
  0x3f   : > { %v631_v52 = vsel %vm2578_vm7, %v620_v46, 0  ;;  %v619_v53 = vsel %vm2572_vm6, 0, %v558_v42  ;;  %v579_v54 = vor.u32 %v577_v36, %v576_v43  ;;  %v583_v55 = vrot.slane %v581_v44, 7 }
  0x40   : > { %v2067_v56 = vcombine.low %v631_v52, %v631_v52  ;;  %v2068_v57 = vcombine.high %v631_v52, %v631_v52  ;;  %v630_v58 = vsel %vm2578_vm7, %v619_v53, 0  ;;  %v621_v59 = vsel %vm2572_vm6, 0, %v572_v48 }
  0x41   : > { %v2065_v61 = vcombine.low %v630_v58, %v630_v58  ;;  %v2066_v62 = vcombine.high %v630_v58, %v630_v58  ;;  %v632_v47 = vsel %vm2578_vm7, %v621_v59, 0  ;;  %v622_v63 = vsel %vm2572_vm6, 0, %v579_v54 }
  0x42   : > { %699 = vst.msk [vmem:[#allocation2 + $0x10] sm:$0xf] %vm434_vm0, %v2067_v56  ;;  %v2069_v0 = vcombine.low %v632_v47, %v632_v47  ;;  %v2070_v1 = vcombine.high %v632_v47, %v632_v47  ;;  %v633_v2 = vsel %vm2578_vm7, %v622_v63, 0  ;;  %v593_v3 = vor.u32 %v591_v41, %v590_v49 }
  0x43   : > { %700 = vst.msk [vmem:[#allocation2 + $0x14] sm:$0x1] %vm436_vm1, %v2068_v57  ;;  %698 = vst.msk [vmem:[#allocation2 + $0xc] sm:$0x1] %vm436_vm1, %v2066_v62  ;;  %v2071_v4 = vcombine.low %v633_v2, %v633_v2  ;;  %v2072_v5 = vcombine.high %v633_v2, %v633_v2  ;;  %v586_v6 = vor.u32 %v584_v45, %v583_v55 }
  0x44   : > { %696 = vst.msk [vmem:[#allocation2 + $0x8] sm:$0xf] %vm434_vm0, %v2065_v61  ;;  %v550_v7 = vpack.c.bf16 %v542_v50, %v542_v50  ;;  %701 = vst.msk [vmem:[#allocation2 + $0x18] sm:$0xf] %vm434_vm0, %v2069_v0  ;;  %v624_v8 = vsel %vm2572_vm6, 0, %v593_v3  ;;  %v543_v9 = vmul.f32 %v2434_v60, %v2561_v51 }
  0x45   : > { %702 = vst.msk [vmem:[#allocation2 + $0x1c] sm:$0x1] %vm436_vm1, %v2070_v1  ;;  %704 = vst.msk [vmem:[#allocation2 + $0x24] sm:$0x1] %vm436_vm1, %v2072_v5  ;;  %v635_v10 = vsel %vm2578_vm7, %v624_v8, 0  ;;  %v623_v11 = vsel %vm2572_vm6, 0, %v586_v6 }
  0x46   : > { %703 = vst.msk [vmem:[#allocation2 + $0x20] sm:$0xf] %vm434_vm0, %v2071_v4  ;;  %v595_v12 = vshrl.u32 %v550_v7, 16  ;;  %v598_v13 = vshll.u32 %v550_v7, 16  ;;  %v2075_v14 = vcombine.low %v635_v10, %v635_v10  ;;  %v2076_v15 = vcombine.high %v635_v10, %v635_v10  ;;  %v2385_v1 = vld [vmem:[%s3088_s3] sm:$0xff]   ;;  %v2386_v5 = vld [vmem:[%s3088_s3 + $0x8] sm:$0xff]  }
  0x47   : > { %v634_v16 = vsel %vm2578_vm7, %v623_v11, 0  ;;  %v551_v17 = vpack.c.bf16 %v543_v9, %v543_v9  ;;  %2261 = vmatprep.subr.bf16.mxu0 %v2385_v1 }
  0x48   : > { %v2073_v18 = vcombine.low %v634_v16, %v634_v16  ;;  %v2074_v51 = vcombine.high %v634_v16, %v634_v16  ;;  %v597_v19 = vrot.slane %v595_v12, 7  ;;  %707 = vst.msk [vmem:[#allocation2 + $0x30] sm:$0xf] %vm434_vm0, %v2075_v14  ;;  %2262 = vmatpush3.bf16.msra.mxu0 %v2385_v1  ;;  %v2387_v16 = vld [vmem:[%s3088_s3 + $0x10] sm:$0xff]  }
  0x49   : > { %708 = vst.msk [vmem:[#allocation2 + $0x34] sm:$0x1] %vm436_vm1, %v2076_v15  ;;  %v2618_v20 = vld [vmem:[#allocation2 + $0x10] sm:$0xf]  ;;  %v602_v23 = vshrl.u32 %v551_v17, 16  ;;  %v605_v44 = vshll.u32 %v551_v17, 16  ;;  %2263 = vmatprep.subr.bf16.mxu0 %v2386_v5 }
  0x4a   : > { %v718_v21 = vld [vmem:[#allocation2 + $0x14] sm:$0x1]  ;;  %705 = vst.msk [vmem:[#allocation2 + $0x28] sm:$0xf] %vm434_vm0, %v2073_v18  ;;  %v600_v22 = vor.u32 %v598_v13, %v597_v19  ;;  %v716_v28 = vld [vmem:[#allocation2 + $0xc] sm:$0x1] }
  0x4b   : > { %706 = vst.msk [vmem:[#allocation2 + $0x2c] sm:$0x1] %vm436_vm1, %v2074_v51  ;;  %v2623_v24 = vcombine.low %v2618_v20, %v718_v21  ;;  %v2625_v25 = vld [vmem:[#allocation2 + $0x8] sm:$0xf]  ;;  %v2629_v31 = vld [vmem:[#allocation2 + $0x10] sm:$0xf] }
  0x4c   : > { %v2627_v30 = vld [vmem:[#allocation2 + $0x8] sm:$0xf]  ;;  %v2632_v26 = vcombine.low %v2625_v25, %v716_v28  ;;  %v1078_v32 = vld [vmem:[#allocation2 + $0xc] sm:$0x1]  ;;  %v2634_v33 = vld [vmem:[#allocation2 + $0x18] sm:$0xf]  ;;  %2264 = vmatpush3.bf16.msra.mxu0 %v2386_v5 }
  0x4d   : > { %v720_v34 = vld [vmem:[#allocation2 + $0x1c] sm:$0x1]  ;;  %v843_v35 = vrot.slane %v2623_v24, 1  ;;  %v2638_v36 = vcombine.low %v2627_v30, %v1078_v32  ;;  %v2643_v37 = vld [vmem:[#allocation2 + $0x18] sm:$0xf]  ;;  %v625_v40 = vsel %vm2572_vm6, 0, %v600_v22  ;;  %2265 = vmatprep.subr.bf16.mxu0 %v2387_v16 }
  0x4e   : > { %v2641_v29 = vcombine.low %v2634_v33, %v720_v34  ;;  %v1082_v39 = vld [vmem:[#allocation2 + $0x1c] sm:$0x1]  ;;  %v842_v41 = vrot.slane %v2632_v26, 1  ;;  %v1080_v42 = vld [vmem:[#allocation2 + $0x14] sm:$0x1]  ;;  %v636_v43 = vsel %vm2578_vm7, %v625_v40, 0 }
  0x4f   : > { %853 = vrot.lane.b32.xlu0 %v843_v35, %s2461_s11  ;;  %v1205_v45 = vrot.slane %v2638_v36, 1  ;;  %v2653_v46 = vcombine.low %v2643_v37, %v1082_v39  ;;  %v2077_v48 = vcombine.low %v636_v43, %v636_v43  ;;  %v2658_v50 = vcombine.low %v2629_v31, %v1080_v42  ;;  %v2660_v52 = vld [vmem:[#allocation2 + $0x20] sm:$0xf]  ;;  %v722_v53 = vld [vmem:[#allocation2 + $0x24] sm:$0x1]  ;;  %v2388_v21 = vld [vmem:[%s3088_s3 + $0x30] sm:$0xff]  }
  0x50   : > { %851 = vrot.lane.b32.xlu1 %v842_v41, %s2461_s11  ;;  %v844_v49 = vrot.slane %v2641_v29, 1  ;;  %v2078_v54 = vcombine.high %v636_v43, %v636_v43  ;;  %v604_v55 = vrot.slane %v602_v23, 7  ;;  %v2662_v56 = vld [vmem:[#allocation2 + $0x20] sm:$0xf]  ;;  %v1084_v57 = vld [vmem:[#allocation2 + $0x24] sm:$0x1]  ;;  %v2669_v60 = vcombine.low %v2660_v52, %v722_v53  ;;  %2281 = vmatprep.subr.bf16.mxu1 %v2388_v21 }
  0x51   : > { %709 = vst.msk [vmem:[#allocation2 + $0x38] sm:$0xf] %vm434_vm0, %v2077_v48  ;;  %v1207_v59 = vrot.slane %v2653_v46, 1  ;;  %v2671_v61 = vld [vmem:[#allocation2 + $0x30] sm:$0xf]  ;;  %v1206_v62 = vrot.slane %v2658_v50, 1  ;;  %v2676_v47 = vcombine.low %v2662_v56, %v1084_v57  ;;  %2266 = vmatpush3.bf16.msra.mxu0 %v2387_v16  ;;  %2282 = vmatpush3.bf16.msra.mxu1 %v2388_v21 }
  0x52   : > { %710 = vst.msk [vmem:[#allocation2 + $0x3c] sm:$0x1] %vm436_vm1, %v2078_v54  ;;  %v607_v58 = vor.u32 %v605_v44, %v604_v55  ;;  %v726_v63 = vld [vmem:[#allocation2 + $0x34] sm:$0x1]  ;;  %v2683_v2 = vld [vmem:[#allocation2 + $0x28] sm:$0xf] }
  0x53   : > { %1213 = vrot.lane.b32.xlu0 %v1205_v45, %s2461_s11  ;;  %v724_v3 = vld [vmem:[#allocation2 + $0x2c] sm:$0x1]  ;;  %v845_v27 = vrot.slane %v2669_v60, 1  ;;  %v2693_v8 = vcombine.low %v2671_v61, %v726_v63  ;;  %v1208_v38 = vrot.slane %v2676_v47, 1  ;;  %v2700_v10 = vld [vmem:[#allocation2 + $0x28] sm:$0xf] }
  0x54   : > { %855 = vrot.lane.b32.xlu1 %v844_v49, %s2461_s11  ;;  %v626_v0 = vsel %vm2572_vm6, 0, %v607_v58  ;;  %v2698_v9 = vcombine.low %v2683_v2, %v724_v3  ;;  %v1086_v11 = vld [vmem:[#allocation2 + $0x2c] sm:$0x1]  ;;  %v2724_v22 = vld [vmem:[#allocation2 + $0x30] sm:$0xf]  ;;  %v2389_v28 = vld [vmem:[%s3088_s3 + $0x18] sm:$0xff]  }
  0x55   : > { %v637_v4 = vsel %vm2578_vm7, %v626_v0, 0  ;;  %v847_v14 = vrot.slane %v2693_v8, 1  ;;  %v2709_v15 = vcombine.low %v2700_v10, %v1086_v11  ;;  %v1088_v23 = vld [vmem:[#allocation2 + $0x34] sm:$0x1]  ;;  %v779_v35 = vshll.u32 %v2632_v26, 16  ;;  %v2390_v41 = vld [vmem:[%s3088_s3 + $0x38] sm:$0xff]   ;;  %2267 = vmatprep.subr.bf16.mxu0 %v2389_v28 }
  0x56   : > { %v2079_v6 = vcombine.low %v637_v4, %v637_v4  ;;  %v2080_v7 = vcombine.high %v637_v4, %v637_v4  ;;  %v846_v17 = vrot.slane %v2698_v9, 1  ;;  %v2738_v40 = vcombine.low %v2724_v22, %v1088_v23  ;;  %2283 = vmatprep.subr.bf16.mxu1 %v2390_v41  ;;  %v2391_v44 = vld [vmem:[%s3088_s3 + $0x20] sm:$0xff]   ;;  %2268 = vmatpush3.bf16.msra.mxu0 %v2389_v28 }
  0x57   : > { %1217 = vrot.lane.b32.xlu0 %v1207_v59, %s2461_s11  ;;  %v1209_v32 = vrot.slane %v2709_v15, 1  ;;  %v777_v48 = vshrl.u32 %v2632_v26, 16  ;;  %v781_v49 = vrot.slane %v779_v35, 1  ;;  %v1136_v53 = vshll.u32 %v2638_v36, 16  ;;  %v2392_v54 = vld [vmem:[%s3088_s3 + $0x40] sm:$0xff]   ;;  %2284 = vmatpush3.bf16.msra.mxu1 %v2390_v41  ;;  %v2393_v26 = vld [vmem:[%s3088_s3 + $0x28] sm:$0xff]  }
  0x58   : > { %1215 = vrot.lane.b32.xlu1 %v1206_v62, %s2461_s11  ;;  %711 = vst.msk [vmem:[#allocation2 + $0x40] sm:$0xf] %vm434_vm0, %v2079_v6  ;;  %v2704_v12 = vld [vmem:[#allocation2 + $0x38] sm:$0xf]  ;;  %v1210_v55 = vrot.slane %v2738_v40, 1  ;;  %v786_v58 = vshll.u32 %v2623_v24, 16  ;;  %2269 = vmatprep.subr.bf16.mxu0 %v2391_v44 }
  0x59   : > { %712 = vst.msk [vmem:[#allocation2 + $0x44] sm:$0x1] %vm436_vm1, %v2080_v7  ;;  %v728_v13 = vld [vmem:[#allocation2 + $0x3c] sm:$0x1]  ;;  %v2719_v51 = vld [vmem:[#allocation2 + $0x38] sm:$0xf]  ;;  %2285 = vmatprep.subr.bf16.mxu1 %v2392_v54  ;;  %v782_v62 = vor.u32 %v781_v49, %v777_v48 }
  0x5a   : > { %v2717_v18 = vcombine.low %v2704_v12, %v728_v13  ;;  %v1090_v19 = vld [vmem:[#allocation2 + $0x3c] sm:$0x1]  ;;  %v2394_v59 = vld [vmem:[%s3088_s3 + $0x48] sm:$0xff]   ;;  %v1134_v63 = vshrl.u32 %v2638_v36, 16  ;;  %v1138_v0 = vrot.slane %v1136_v53, 1  ;;  %v1150_v1 = vshll.u32 %v2653_v46, 16  ;;  %2270 = vmatpush3.bf16.msra.mxu0 %v2391_v44 }
  0x5b   : > { %857 = vrot.lane.b32.xlu0 %v845_v27, %s2461_s11  ;;  %v2732_v34 = vcombine.low %v2719_v51, %v1090_v19  ;;  %v784_v4 = vshrl.u32 %v2623_v24, 16  ;;  %v788_v5 = vrot.slane %v786_v58, 1  ;;  %v793_v6 = vshll.u32 %v2641_v29, 16  ;;  %2286 = vmatpush3.bf16.msra.mxu1 %v2392_v54  ;;  %v2395_v36 = vld [vmem:[%s3088_s3 + $0x50] sm:$0xff]  }
  0x5c   : > { %1219 = vrot.lane.b32.xlu1 %v1208_v38, %s2461_s11  ;;  %v848_v39 = vrot.slane %v2717_v18, 1  ;;  %2271 = vmatprep.subr.bf16.mxu0 %v2393_v26  ;;  %v1139_v7 = vor.u32 %v1138_v0, %v1134_v63  ;;  %v1148_v27 = vshrl.u32 %v2653_v46, 16  ;;  %v1152_v38 = vrot.slane %v1150_v1, 1 }
  0x5d   : > { %v1211_v45 = vrot.slane %v2732_v34, 1  ;;  %2287 = vmatprep.subr.bf16.mxu1 %v2394_v59  ;;  %v800_v11 = vshll.u32 %v2669_v60, 16  ;;  %v789_v24 = vor.u32 %v788_v5, %v784_v4  ;;  %v791_v13 = vshrl.u32 %v2641_v29, 16  ;;  %v2814_v4 = vld [vmem:[#allocation2 + $0x18] sm:$0xf] }
  0x5e   : > { %2272 = vmatpush3.bf16.msra.mxu0 %v2393_v26  ;;  %v1143_v16 = vshll.u32 %v2658_v50, 16  ;;  %v1153_v46 = vor.u32 %v1152_v38, %v1148_v27  ;;  %v798_v19 = vshrl.u32 %v2669_v60, 16  ;;  %v814_v23 = vshll.u32 %v2693_v8, 16  ;;  %v1443_v5 = vld [vmem:[#allocation2 + $0x1c] sm:$0x1] }
  0x5f   : > { %861 = vrot.lane.b32.xlu0 %v847_v14, %s2461_s11  ;;  %v2743_v42 = vld [vmem:[#allocation2 + $0x40] sm:$0xf]  ;;  %v795_v14 = vrot.slane %v793_v6, 1  ;;  %2288 = vmatpush3.bf16.msra.mxu1 %v2394_v59  ;;  %v802_v21 = vrot.slane %v800_v11, 1  ;;  %v1141_v28 = vshrl.u32 %v2658_v50, 16  ;;  %v1157_v35 = vshll.u32 %v2676_v47, 16 }
  0x60   : > { %859 = vrot.lane.b32.xlu1 %v846_v17, %s2461_s11  ;;  %v1092_v43 = vld [vmem:[#allocation2 + $0x44] sm:$0x1]  ;;  %2289 = vmatprep.subr.bf16.mxu1 %v2395_v36  ;;  %v2396_v17 = vld [vmem:[%s3088_s3 + $0x58] sm:$0xff]   ;;  %v812_v60 = vshrl.u32 %v2693_v8, 16  ;;  %v1164_v44 = vshll.u32 %v2709_v15, 16  ;;  %v1155_v50 = vshrl.u32 %v2676_v47, 16 }
  0x61   : > { %v2758_v57 = vcombine.low %v2743_v42, %v1092_v43  ;;  %v796_v29 = vor.u32 %v795_v14, %v791_v13  ;;  %v803_v41 = vor.u32 %v802_v21, %v798_v19  ;;  %v816_v43 = vrot.slane %v814_v23, 1  ;;  %v2819_v27 = vld [vmem:[#allocation2 + $0x20] sm:$0xf]  ;;  %v1445_v13 = vld [vmem:[#allocation2 + $0x24] sm:$0x1] }
  0x62   : > { %v1159_v49 = vrot.slane %v1157_v35, 1  ;;  %v807_v53 = vshll.u32 %v2698_v9, 16  ;;  %v1162_v58 = vshrl.u32 %v2709_v15, 16  ;;  %v1166_v26 = vrot.slane %v1164_v44, 1  ;;  %v2833_v21 = vld [vmem:[#allocation2 + $0x40] sm:$0xf] }
  0x63   : > { %1221 = vrot.lane.b32.xlu0 %v1209_v32, %s2461_s11  ;;  %v1212_v3 = vrot.slane %v2758_v57, 1  ;;  %v1145_v32 = vrot.slane %v1143_v16, 1  ;;  %2290 = vmatpush3.bf16.msra.mxu1 %v2395_v36  ;;  %v817_v8 = vor.u32 %v816_v43, %v812_v60  ;;  %v1178_v59 = vshll.u32 %v2732_v34, 16  ;;  %v2838_v35 = vld [vmem:[#allocation2 + $0x38] sm:$0xf] }
  0x64   : > { %863 = vrot.lane.b32.xlu1 %v848_v39, %s2461_s11  ;;  %2291 = vmatprep.subr.bf16.mxu1 %v2396_v17  ;;  %v2792_v39 = vld [vmem:[#allocation2 + $0x10] sm:$0xf]  ;;  %v1160_v47 = vor.u32 %v1159_v49, %v1155_v50  ;;  %v805_v63 = vshrl.u32 %v2698_v9, 16  ;;  %v809_v0 = vrot.slane %v807_v53, 1  ;;  %v821_v1 = vshll.u32 %v2717_v18, 16 }
  0x65   : > { %v1146_v48 = vor.u32 %v1145_v32, %v1141_v28  ;;  %v1167_v15 = vor.u32 %v1166_v26, %v1162_v58  ;;  %v1176_v6 = vshrl.u32 %v2732_v34, 16  ;;  %v1180_v36 = vrot.slane %v1178_v59, 1  ;;  %v1453_v32 = vld [vmem:[#allocation2 + $0x44] sm:$0x1]  ;;  %v2855_v58 = vld [vmem:[#allocation2 + $0x28] sm:$0xf] }
  0x66   : > { %v810_v9 = vor.u32 %v809_v0, %v805_v63  ;;  %v819_v38 = vshrl.u32 %v2717_v18, 16  ;;  %v823_v11 = vrot.slane %v821_v1, 1  ;;  %v2826_v16 = vcombine.low %v2814_v4, %v1443_v5  ;;  %v1447_v26 = vld [vmem:[#allocation2 + $0x2c] sm:$0x1] }
  0x67   : > { %1225 = vrot.lane.b32.xlu0 %v1211_v45, %s2461_s11  ;;  %v1441_v45 = vld [vmem:[#allocation2 + $0x14] sm:$0x1]  ;;  %2292 = vmatpush3.bf16.msra.mxu1 %v2396_v17  ;;  %v1181_v34 = vor.u32 %v1180_v36, %v1176_v6  ;;  %v2831_v19 = vcombine.low %v2819_v27, %v1445_v13  ;;  %v1169_v23 = vshrl.u32 %v2738_v40, 16  ;;  %v1185_v28 = vshll.u32 %v2758_v57, 16  ;;  %v2865_v36 = vld [vmem:[#allocation2 + $0x48] sm:$0xf] }
  0x68   : > { %1223 = vrot.lane.b32.xlu1 %v1210_v55, %s2461_s11  ;;  %v2801_v54 = vcombine.low %v2792_v39, %v1441_v45  ;;  %v2803_v55 = vld [vmem:[#allocation2 + $0x30] sm:$0xf]  ;;  %v824_v18 = vor.u32 %v823_v11, %v819_v38  ;;  %v1183_v60 = vshrl.u32 %v2758_v57, 16  ;;  %v2143_v50 = vcombine.low %v2833_v21, %v1453_v32 }
  0x69   : > { %v1187_v53 = vrot.slane %v1185_v28, 1  ;;  %v1506_v57 = vshll.u32 %v2826_v16, 16  ;;  %v1504_v59 = vshrl.u32 %v2826_v16, 16  ;;  %v2140_v6 = vcombine.low %v2855_v58, %v1447_v26 }
  0x6a   : > { %v1497_v14 = vshrl.u32 %v2801_v54, 16  ;;  %v1541_v0 = vshll.u32 %v2143_v50, 16  ;;  %v1539_v38 = vshrl.u32 %v2143_v50, 16  ;;  %v1568_v32 = vrot.slane %v2801_v54, 1 }
  0x6b   : > { %827 = vrot.lane.b32.xlu0 %v782_v62, %s2462_s12  ;;  %v1449_v62 = vld [vmem:[#allocation2 + $0x34] sm:$0x1]  ;;  %v1188_v1 = vor.u32 %v1187_v53, %v1183_v60  ;;  %v1508_v5 = vrot.slane %v1506_v57, 1 }
  0x6c   : > { %1227 = vrot.lane.b32.xlu1 %v1212_v3, %s2461_s11  ;;  %v2812_v3 = vcombine.low %v2803_v55, %v1449_v62  ;;  %v1543_v11 = vrot.slane %v1541_v0, 1 }
  0x6d   : > { %v1509_v13 = vor.u32 %v1508_v5, %v1504_v59 }
  0x6e   : > { %v1525_v43 = vshrl.u32 %v2812_v3, 16 }
  0x6f   : > { %1189 = vrot.lane.b32.xlu0 %v1139_v7, %s2462_s12  ;;  %v1499_v7 = vshll.u32 %v2801_v54, 16  ;;  %v1569_v54 = vrot.slane %v2826_v16, 1  ;;  %v1571_v16 = vrot.slane %v2140_v6, 1 }
  0x70   : > { %829 = vrot.lane.b32.xlu1 %v789_v24, %s2462_s12  ;;  %v1171_v24 = vshll.u32 %v2738_v40, 16  ;;  %v2848_v40 = vld [vmem:[%s3088_s3 + $0x60] sm:$0xff]  }
  0x71   : > { %v1501_v17 = vrot.slane %v1499_v7, 1  ;;  %2301 = vmatprep.subr.bf16.mxu0 %v2848_v40  ;;  %2321 = vmatprep.subr.bf16.mxu1 %v2848_v40  ;;  %v1455_v7 = vld [vmem:[#allocation2 + $0x4c] sm:$0x1] }
  0x73   : > { %1193 = vrot.lane.b32.xlu0 %v1153_v46, %s2462_s12  ;;  %v1527_v46 = vshll.u32 %v2812_v3, 16  ;;  %v1502_v44 = vor.u32 %v1501_v17, %v1497_v14  ;;  %v1520_v17 = vshll.u32 %v2140_v6, 16 }
  0x74   : > { %831 = vrot.lane.b32.xlu1 %v796_v29, %s2462_s12  ;;  %v1173_v29 = vrot.slane %v1171_v24, 1  ;;  %v2144_v24 = vcombine.low %v2865_v36, %v1455_v7 }
  0x75   : > { %v1529_v45 = vrot.slane %v1527_v46, 1  ;;  %v1544_v46 = vor.u32 %v1543_v11, %v1539_v38  ;;  %v2435_v11 = vld [vmem:[#allocation2] sm:$0xf] }
  0x76   : > { %v1174_v49 = vor.u32 %v1173_v29, %v1169_v23  ;;  %v1518_v23 = vshrl.u32 %v2140_v6, 16  ;;  %v1522_v29 = vrot.slane %v1520_v17, 1  ;;  %v1548_v28 = vshll.u32 %v2144_v24, 16 }
  0x77   : > { %833 = vrot.lane.b32.xlu0 %v803_v41, %s2462_s12  ;;  %v1451_v41 = vld [vmem:[#allocation2 + $0x3c] sm:$0x1]  ;;  %v1530_v62 = vor.u32 %v1529_v45, %v1525_v43  ;;  %v1546_v60 = vshrl.u32 %v2144_v24, 16 }
  0x78   : > { %1191 = vrot.lane.b32.xlu1 %v1146_v48, %s2462_s12  ;;  %v1513_v48 = vshll.u32 %v2831_v19, 16  ;;  %v1550_v43 = vrot.slane %v1548_v28, 1 }
  0x7a   : > { %v1515_v63 = vrot.slane %v1513_v48, 1  ;;  %v1551_v45 = vor.u32 %v1550_v43, %v1546_v60  ;;  %v1570_v48 = vrot.slane %v2831_v19, 1 }
  0x7b   : > { %837 = vrot.lane.b32.xlu0 %v817_v8, %s2462_s12  ;;  %v2853_v8 = vcombine.low %v2838_v35, %v1451_v41  ;;  %v1523_v41 = vor.u32 %v1522_v29, %v1518_v23 }
  0x7c   : > { %1195 = vrot.lane.b32.xlu1 %v1160_v47, %s2462_s12  ;;  %v1511_v47 = vshrl.u32 %v2831_v19, 16  ;;  %v1575_v19 = vrot.slane %v2144_v24, 1 }
  0x7d   : > { %v1532_v14 = vshrl.u32 %v2853_v8, 16  ;;  %v1573_v53 = vrot.slane %v2853_v8, 1 }
  0x7f   : > { %1197 = vrot.lane.b32.xlu0 %v1167_v15, %s2462_s12  ;;  %v1534_v15 = vshll.u32 %v2853_v8, 16 }
  0x80   : > { %835 = vrot.lane.b32.xlu1 %v810_v9, %s2462_s12  ;;  %v1516_v9 = vor.u32 %v1515_v63, %v1511_v47 }
  0x83   : > { %1201 = vrot.lane.b32.xlu0 %v1181_v34, %s2462_s12  ;;  %v1536_v34 = vrot.slane %v1534_v15, 1 }
  0x84   : > { %839 = vrot.lane.b32.xlu1 %v824_v18, %s2462_s12 }
  0x85   : > { %v1537_v18 = vor.u32 %v1536_v34, %v1532_v14 }
  0x87   : > { %1552 = vrot.lane.b32.xlu0 %v1502_v44, %s2462_s12  ;;  %v1572_v44 = vrot.slane %v2812_v3, 1  ;;  %v2463_v3 = vmov 0.0  }
  0x88   : > { %1199 = vrot.lane.b32.xlu1 %v1174_v49, %s2462_s12  ;;  %v1574_v49 = vrot.slane %v2143_v50, 1  ;;  %444 = vst.msk [vmem:[#allocation3 + $0x10] sm:$0xff] %vm441_vm8, %v2463_v3  ;;  %442 = vst.msk [vmem:[#allocation3] sm:$0xff] %vm441_vm8, %v2463_v3  ;;  %v850_v50 = vpop.permute.xlu0 %849 }
  0x89   : > { %443 = vst.msk [vmem:[#allocation3 + $0x8] sm:$0xff] %vm441_vm8, %v2463_v3  ;;  %445 = vst.msk [vmem:[#allocation3 + $0x18] sm:$0xff] %vm441_vm8, %v2463_v3 }
  0x8a   : > { %446 = vst.msk [vmem:[#allocation3 + $0x20] sm:$0xff] %vm441_vm8, %v2463_v3  ;;  %447 = vst.msk [vmem:[#allocation3 + $0x28] sm:$0xff] %vm441_vm8, %v2463_v3 }
  0x8b   : > { %1560 = vrot.lane.b32.xlu0 %v1530_v62, %s2462_s12  ;;  %448 = vst.msk [vmem:[#allocation3 + $0x30] sm:$0xff] %vm441_vm8, %v2463_v3  ;;  %449 = vst.msk [vmem:[#allocation3 + $0x38] sm:$0xff] %vm441_vm8, %v2463_v3 }
  0x8c   : > { %1203 = vrot.lane.b32.xlu1 %v1188_v1, %s2462_s12 }
  0x8d   : > { %v826_v57 = vpop.permute.xlu0 %825 }
  0x8e   : > { %v868_v24 = vsel %vm441_vm8, %v2435_v11, %v826_v57 }
  0x8f   : > { %1556 = vrot.lane.b32.xlu0 %v1516_v9, %s2462_s12  ;;  %v892_v17 = vsel %vm890_vm9, %v868_v24, %v850_v50 }
  0x90   : > { %1554 = vrot.lane.b32.xlu1 %v1509_v13, %s2462_s12 }
  0x93   : > { %1564 = vrot.lane.b32.xlu0 %v1544_v46, %s2462_s12 }
  0x94   : > { %1562 = vrot.lane.b32.xlu1 %v1537_v18, %s2462_s12 }
  0x97   : > { %1576 = vrot.lane.b32.xlu0 %v1568_v32, %s2461_s11 }
  0x98   : > { %1558 = vrot.lane.b32.xlu1 %v1523_v41, %s2462_s12 }
  0x9b   : > { %1584 = vrot.lane.b32.xlu0 %v1572_v44, %s2461_s11 }
  0x9c   : > { %1566 = vrot.lane.b32.xlu1 %v1551_v45, %s2462_s12 }
  0x9f   : > { %1580 = vrot.lane.b32.xlu0 %v1570_v48, %s2461_s11 }
  0xa0   : > { %1578 = vrot.lane.b32.xlu1 %v1569_v54, %s2461_s11  ;;  %v2398_v54 = vld [vmem:[%s3088_s3 + $0x68] sm:$0xff]  }
  0xa3   : > { %1588 = vrot.lane.b32.xlu0 %v1574_v49, %s2461_s11 }
  0xa4   : > { %1586 = vrot.lane.b32.xlu1 %v1573_v53, %s2461_s11 }
  0xa8   : > { %1582 = vrot.lane.b32.xlu1 %v1571_v16, %s2461_s11 }
  0xac   : > { %1590 = vrot.lane.b32.xlu1 %v1575_v19, %s2461_s11  ;;  %v2399_v19 = vld [vmem:[%s3088_s3 + $0x70] sm:$0xff]  }
  0xc1   : > { %v854_v8 = vpop.permute.xlu0 %853 }
  0xc2   : > { %v852_v26 = vpop.permute.xlu1 %851 }
  0xc5   : > { %v1214_v59 = vpop.permute.xlu0 %1213 }
  0xc6   : > { %v856_v62 = vpop.permute.xlu1 %855 }
  0xc9   : > { %v1218_v47 = vpop.permute.xlu0 %1217 }
  0xca   : > { %v1216_v63 = vpop.permute.xlu1 %1215 }
  0xcd   : > { %v858_v0 = vpop.permute.xlu0 %857 }
  0xce   : > { %v1220_v1 = vpop.permute.xlu1 %1219 }
  0xd1   : > { %v2898_v5 = vpop.permute.xlu0 %861 }
  0xd2   : > { %v860_v15 = vpop.permute.xlu1 %859 }
  0xd5   : > { %v2900_v7 = vpop.permute.xlu0 %1221 }
  0xd6   : > { %v2902_v6 = vpop.permute.xlu1 %863 }
  0xd9   : > { %v2904_v9 = vpop.permute.xlu0 %1225 }
  0xda   : > { %v2906_v38 = vpop.permute.xlu1 %1223 }
  0xdd   : > { %v828_v13 = vpop.permute.xlu0 %827 }
  0xde   : > { %v2909_v14 = vpop.permute.xlu1 %1227  ;;  %v871_v34 = vsel %vm441_vm8, %v2625_v25, %v828_v13 }
  0xdf   : > { %v894_v46 = vsel %vm890_vm9, %v871_v34, %v852_v26 }
  0xe0   : > { %v2089_v18 = vcombine.low %v892_v17, %v894_v46 }
  0xe1   : > { %v1190_v23 = vpop.permute.xlu0 %1189 }
  0xe2   : > { %v830_v29 = vpop.permute.xlu1 %829  ;;  %2273 = vmatprep.mubr.msk.bf16.mxu0 %vm983_vm10, %v2089_v18  ;;  %v1231_v44 = vsel %vm441_vm8, %v2627_v30, %v1190_v23 }
  0xe3   : > { %v874_v28 = vsel %vm441_vm8, %v2618_v20, %v830_v29 }
  0xe4   : > { %v896_v25 = vsel %vm890_vm9, %v874_v28, %v854_v8 }
  0xe5   : > { %v1194_v32 = vpop.permute.xlu0 %1193 }
  0xe6   : > { %v832_v41 = vpop.permute.xlu1 %831  ;;  %v1237_v30 = vsel %vm441_vm8, %v2643_v37, %v1194_v32 }
  0xe7   : > { %v877_v60 = vsel %vm441_vm8, %v2634_v33, %v832_v41  ;;  %v1254_v33 = vsel %vm890_vm9, %v1231_v44, %v1214_v59  ;;  %v1258_v57 = vsel %vm890_vm9, %v1237_v30, %v1218_v47 }
  0xe8   : > { %v898_v43 = vsel %vm890_vm9, %v877_v60, %v856_v62  ;;  %v2400_v62 = vld [vmem:[%s3088_s3 + $0x78] sm:$0xff]  }
  0xe9   : > { %v2090_v45 = vcombine.low %v896_v25, %v898_v43  ;;  %v834_v48 = vpop.permute.xlu0 %833 }
  0xea   : > { %v1192_v49 = vpop.permute.xlu1 %1191  ;;  %v880_v37 = vsel %vm441_vm8, %v2660_v52, %v834_v48 }
  0xeb   : > { %v1234_v20 = vsel %vm441_vm8, %v2629_v31, %v1192_v49  ;;  %2274 = vmatmul.mubr.msk.bf16.vlgmr.msra.gmra.mrb[0].mxu0 %vm983_vm10, %v2090_v45  ;;  %v900_v47 = vsel %vm890_vm9, %v880_v37, %v858_v0 }
  0xec   : > { %v1256_v53 = vsel %vm890_vm9, %v1234_v20, %v1216_v63  ;;  %2302 = vmatpush3.bf16.msra.mxu0 %v2848_v40 }
  0xed   : > { %v838_v3 = vpop.permute.xlu0 %837  ;;  %v2123_v16 = vcombine.low %v1254_v33, %v1256_v53  ;;  %2303 = vmatprep.subr.bf16.mxu0 %v2398_v54 }
  0xee   : > { %v1196_v50 = vpop.permute.xlu1 %1195  ;;  %v886_v52 = vsel %vm441_vm8, %v2671_v61, %v838_v3 }
  0xef   : > { %v1240_v31 = vsel %vm441_vm8, %v2662_v56, %v1196_v50  ;;  %2293 = vmatprep.mubr.msk.bf16.mxu1 %vm983_vm10, %v2123_v16 }
  0xf0   : > { %v1260_v8 = vsel %vm890_vm9, %v1240_v31, %v1220_v1  ;;  %2304 = vmatpush3.bf16.msra.mxu0 %v2398_v54 }
  0xf1   : > { %v2124_v26 = vcombine.low %v1258_v57, %v1260_v8  ;;  %v1198_v59 = vpop.permute.xlu0 %1197  ;;  %2305 = vmatprep.subr.bf16.mxu0 %v2399_v19 }
  0xf2   : > { %v836_v63 = vpop.permute.xlu1 %835 }
  0xf3   : > { %v883_v56 = vsel %vm441_vm8, %v2683_v2, %v836_v63  ;;  %2294 = vmatmul.mubr.msk.bf16.vlgmr.msra.gmra.mrb[0].mxu1 %vm983_vm10, %v2124_v26  ;;  %v2401_v2 = vld [vmem:[%s3088_s3 + $0x80] sm:$0xff]  }
  0xf4   : > { %v902_v1 = vsel %vm890_vm9, %v883_v56, %v860_v15  ;;  %2327 = vmatpush3.bf16.msra.mxu1 %v2848_v40  ;;  %2306 = vmatpush3.bf16.msra.mxu0 %v2399_v19  ;;  %v904_v40 = vsel %vm890_vm9, %v886_v52, %v2898_v5  ;;  %v1243_v15 = vsel %vm441_vm8, %v2700_v10, %v1198_v59  ;;  %v921_v63 = vld [vmem:[#allocation3 + $0x10] sm:$0xff]  ;;  %v919_v56 = vld [vmem:[#allocation3] sm:$0xff] }
  0xf5   : > { %v2091_v11 = vcombine.low %v900_v47, %v902_v1  ;;  %v1202_v24 = vpop.permute.xlu0 %1201  ;;  %2322 = vmatprep.subr.bf16.mxu1 %v2398_v54  ;;  %2307 = vmatprep.subr.bf16.mxu0 %v2400_v62  ;;  %v922_v1 = vld [vmem:[#allocation3 + $0x18] sm:$0xff] }
  0xf6   : > { %v840_v13 = vpop.permute.xlu1 %839  ;;  %v1249_v18 = vsel %vm441_vm8, %v2719_v51, %v1202_v24 }
  0xf7   : > { %v889_v0 = vsel %vm441_vm8, %v2704_v12, %v840_v13  ;;  %2277 = vmatprep.mubr.msk.bf16.mxu0 %vm983_vm10, %v2091_v11  ;;  %v2402_v12 = vld [vmem:[%s3088_s3 + $0x88] sm:$0xff]  }
  0xf8   : > { %v906_v61 = vsel %vm890_vm9, %v889_v0, %v2902_v6  ;;  %2328 = vmatpush3.bf16.msra.mxu1 %v2398_v54  ;;  %2308 = vmatpush3.bf16.msra.mxu0 %v2400_v62  ;;  %v1262_v6 = vsel %vm890_vm9, %v1243_v15, %v2900_v7  ;;  %v1266_v7 = vsel %vm890_vm9, %v1249_v18, %v2904_v9 }
  0xf9   : > { %v2092_v34 = vcombine.low %v904_v40, %v906_v61  ;;  %v1553_v17 = vpop.permute.xlu0 %1552  ;;  %2323 = vmatprep.subr.bf16.mxu1 %v2399_v19  ;;  %2309 = vmatprep.subr.bf16.mxu0 %v2401_v2 }
  0xfa   : > { %v1200_v46 = vpop.permute.xlu1 %1199 }
  0xfb   : > { %v1246_v5 = vsel %vm441_vm8, %v2724_v22, %v1200_v46  ;;  %2278 = vmatmul.mubr.msk.bf16.gmra.mrb[4].mxu0 %vm983_vm10, %v2092_v34 }
  0xfc   : > { %v1264_v10 = vsel %vm890_vm9, %v1246_v5, %v2906_v38  ;;  %2329 = vmatpush3.bf16.msra.mxu1 %v2399_v19  ;;  %2310 = vmatpush3.bf16.msra.mxu0 %v2401_v2 }
  0xfd   : > { %v2125_v23 = vcombine.low %v1262_v6, %v1264_v10  ;;  %v1561_v29 = vpop.permute.xlu0 %1560  ;;  %2324 = vmatprep.subr.bf16.mxu1 %v2400_v62  ;;  %2311 = vmatprep.subr.bf16.mxu0 %v2402_v12 }
  0xfe   : > { %v1204_v28 = vpop.permute.xlu1 %1203  ;;  %v1606_v33 = vsel %vm441_vm8, %v2803_v55, %v1561_v29  ;;  %v925_v29 = vld [vmem:[#allocation3 + $0x30] sm:$0xff] }
  0xff   : > { %v1252_v22 = vsel %vm441_vm8, %v2743_v42, %v1204_v28  ;;  %2297 = vmatprep.mubr.msk.bf16.mxu1 %vm983_vm10, %v2125_v23  ;;  %v923_v28 = vld [vmem:[#allocation3 + $0x20] sm:$0xff] }
 0x100   : > { %v1268_v38 = vsel %vm890_vm9, %v1252_v22, %v2909_v14  ;;  %2330 = vmatpush3.bf16.msra.mxu1 %v2400_v62  ;;  %2312 = vmatpush3.bf16.msra.mxu0 %v2402_v12  ;;  %v1594_v14 = vsel %vm441_vm8, %v2792_v39, %v1553_v17 }
 0x101   : > { %v2126_v32 = vcombine.low %v1266_v7, %v1268_v38  ;;  %v1557_v51 = vpop.permute.xlu0 %1556  ;;  %2325 = vmatprep.subr.bf16.mxu1 %v2401_v2  ;;  %v926_v7 = vld [vmem:[#allocation3 + $0x38] sm:$0xff] }
 0x102   : > { %v1555_v41 = vpop.permute.xlu1 %1554  ;;  %v1600_v19 = vsel %vm441_vm8, %v2819_v27, %v1557_v51  ;;  %v924_v51 = vld [vmem:[#allocation3 + $0x28] sm:$0xff] }
 0x103   : > { %2298 = vmatmul.mubr.msk.bf16.gmra.mrb[4].mxu1 %vm983_vm10, %v2126_v32  ;;  %v1597_v45 = vsel %vm441_vm8, %v2814_v4, %v1555_v41 }
 0x104   : > { %2331 = vmatpush3.bf16.msra.mxu1 %v2401_v2 }
 0x105   : > { %v1565_v60 = vpop.permute.xlu0 %1564  ;;  %2326 = vmatprep.subr.bf16.mxu1 %v2402_v12 }
 0x106   : > { %v1563_v42 = vpop.permute.xlu1 %1562  ;;  %v1612_v37 = vsel %vm441_vm8, %v2833_v21, %v1565_v60  ;;  %v920_v21 = vld [vmem:[#allocation3 + $0x8] sm:$0xff] }
 0x107   : > { %v1609_v53 = vsel %vm441_vm8, %v2838_v35, %v1563_v42 }
 0x108   : > { %2332 = vmatpush3.bf16.msra.mxu1 %v2402_v12 }
 0x109   : > { %v1577_v43 = vpop.permute.xlu0 %1576 }
 0x10a   : > { %v1559_v25 = vpop.permute.xlu1 %1558  ;;  %v1617_v54 = vsel %vm890_vm9, %v1594_v14, %v1577_v43 }
 0x10b   : > { %v1603_v50 = vsel %vm441_vm8, %v2855_v58, %v1559_v25 }
 0x10d   : > { %v1585_v9 = vpop.permute.xlu0 %1584 }
 0x10e   : > { %v1567_v44 = vpop.permute.xlu1 %1566  ;;  %v1625_v39 = vsel %vm890_vm9, %v1606_v33, %v1585_v9 }
 0x10f   : > { %v1615_v26 = vsel %vm441_vm8, %v2865_v36, %v1567_v44 }
 0x111   : > { %v1581_v30 = vpop.permute.xlu0 %1580 }
 0x112   : > { %v1579_v48 = vpop.permute.xlu1 %1578  ;;  %v1621_v55 = vsel %vm890_vm9, %v1600_v19, %v1581_v30 }
 0x113   : > { %v1619_v49 = vsel %vm890_vm9, %v1597_v45, %v1579_v48 }
 0x114   : > { %v2157_v20 = vcombine.low %v1617_v54, %v1619_v49 }
 0x115   : > { %v1589_v57 = vpop.permute.xlu0 %1588 }
 0x116   : > { %v1587_v3 = vpop.permute.xlu1 %1586  ;;  %2313 = vmatprep.mubr.msk.bf16.mxu0 %vm983_vm10, %v2157_v20  ;;  %v1629_v27 = vsel %vm890_vm9, %v1612_v37, %v1589_v57 }
 0x117   : > { %v1627_v4 = vsel %vm890_vm9, %v1609_v53, %v1587_v3 }
 0x118   : > { %v2159_v16 = vcombine.low %v1625_v39, %v1627_v4 }
 0x11a   : > { %v1583_v31 = vpop.permute.xlu1 %1582  ;;  %2317 = vmatprep.mubr.msk.bf16.mxu1 %vm983_vm10, %v2159_v16 }
 0x11b   : > { %v1623_v35 = vsel %vm890_vm9, %v1603_v50, %v1583_v31 }
 0x11c   : > { %v2158_v8 = vcombine.low %v1621_v55, %v1623_v35 }
 0x11e   : > { %v1591_v59 = vpop.permute.xlu1 %1590  ;;  %2314 = vmatmul.mubr.msk.bf16.vlgmr.msra.gmra.mrb[8].mxu0 %vm983_vm10, %v2158_v8 }
 0x11f   : > { %v1631_v58 = vsel %vm890_vm9, %v1615_v26, %v1591_v59 }
 0x120   : > { %v2160_v62 = vcombine.low %v1629_v27, %v1631_v58 }
 0x122   : > { %2318 = vmatmul.mubr.msk.bf16.vlgmr.msra.gmra.mrb[8].mxu1 %vm983_vm10, %v2160_v62 }
 0x1be   : > { %v2275_v47 = vpop.f32.mrb[0].mxu0 }
 0x1bf   : > { %v1063_v52 = vadd.f32 %v2275_v47, %v921_v63  ;;  %v1030_v11 = vpop.f32.mrb[1].mxu0 }
 0x1c0   : > { %v1061_v24 = vadd.f32 %v1030_v11, %v919_v56  ;;  %v2276_v2 = vpop.f32.mrb[2].mxu0  ;;  %v2228_v56 = vld [vmem:[%s3036_s15 + $0x8] sm:$0xff]   ;;  %v2210_v11 = vld [vmem:[%s3036_s15] sm:$0xff]  }
 0x1c1   : > { %1071 = vst.msk [vmem:[#allocation3 + $0x10] sm:$0xff] %vm441_vm8, %v1063_v52  ;;  %v1064_v36 = vadd.f32 %v2276_v2, %v922_v1  ;;  %v1033_v13 = vpop.f32.mrb[3].mxu0 }
 0x1c2   : > { %1069 = vst.msk [vmem:[#allocation3] sm:$0xff] %vm441_vm8, %v1061_v24  ;;  %v1062_v0 = vadd.f32 %v1033_v13, %v920_v21 }
 0x1c3   : > { %1072 = vst.msk [vmem:[#allocation3 + $0x18] sm:$0xff] %vm441_vm8, %v1064_v36  ;;  %v2171_v36 = vld [vmem:[%s412_s18] ss:$0 sm:$0xff] }
 0x1c4   : > { %1070 = vst.msk [vmem:[#allocation3 + $0x8] sm:$0xff] %vm441_vm8, %v1062_v0  ;;  %v2215_v0 = vunpack.c.l.bf16 %v2228_v56 }
 0x1c6   : > { %v2295_v40 = vpop.f32.mrb[0].mxu1 }
 0x1c7   : > { %v1392_v61 = vpop.f32.mrb[1].mxu1 }
 0x1c8   : > { %v1284_v15 = vld [vmem:[#allocation3 + $0x10] sm:$0xff]  ;;  %v2296_v34 = vpop.f32.mrb[2].mxu1 }
 0x1c9   : > { %v1425_v17 = vadd.f32 %v2295_v40, %v1284_v15  ;;  %v1282_v12 = vld [vmem:[#allocation3] sm:$0xff]  ;;  %v1395_v46 = vpop.f32.mrb[3].mxu1  ;;  %v2230_v15 = vld [vmem:[%s3036_s15 + $0x18] sm:$0xff]  }
 0x1ca   : > { %v1423_v5 = vadd.f32 %v1392_v61, %v1282_v12  ;;  %v1285_v6 = vld [vmem:[#allocation3 + $0x18] sm:$0xff]  ;;  %v2211_v61 = vunpack.c.l.bf16 %v2210_v11  ;;  %v2216_v12 = vunpack.c.h.bf16 %v2228_v56 }
 0x1cb   : > { %1433 = vst.msk [vmem:[#allocation3 + $0x10] sm:$0xff] %vm441_vm8, %v1425_v17  ;;  %v1426_v10 = vadd.f32 %v2296_v34, %v1285_v6  ;;  %v1283_v18 = vld [vmem:[#allocation3 + $0x8] sm:$0xff] }
 0x1cc   : > { %1431 = vst.msk [vmem:[#allocation3] sm:$0xff] %vm441_vm8, %v1423_v5  ;;  %v1424_v23 = vadd.f32 %v1395_v46, %v1283_v18  ;;  %v2229_v46 = vld [vmem:[%s3036_s15 + $0x10] sm:$0xff]  }
 0x1cd   : > { %1434 = vst.msk [vmem:[#allocation3 + $0x18] sm:$0xff] %vm441_vm8, %v1426_v10  ;;  %v2212_v10 = vunpack.c.h.bf16 %v2210_v11 }
 0x1ce   : > { %1432 = vst.msk [vmem:[#allocation3 + $0x8] sm:$0xff] %vm441_vm8, %v1424_v23  ;;  %v2279_v22 = vpop.f32.mrb[4].mxu0 }
 0x1cf   : > { %v1067_v38 = vadd.f32 %v2279_v22, %v925_v29  ;;  %v1046_v32 = vpop.f32.mrb[5].mxu0 }
 0x1d0   : > { %v1065_v41 = vadd.f32 %v1046_v32, %v923_v28  ;;  %v2280_v60 = vpop.f32.mrb[6].mxu0  ;;  %v2223_v28 = vunpack.c.l.bf16 %v2230_v15  ;;  %v2219_v32 = vunpack.c.l.bf16 %v2229_v46 }
 0x1d1   : > { %1075 = vst.msk [vmem:[#allocation3 + $0x30] sm:$0xff] %vm441_vm8, %v1067_v38  ;;  %v1068_v42 = vadd.f32 %v2280_v60, %v926_v7  ;;  %v1049_v25 = vpop.f32.mrb[7].mxu0 }
 0x1d2   : > { %1073 = vst.msk [vmem:[#allocation3 + $0x20] sm:$0xff] %vm441_vm8, %v1065_v41  ;;  %v1066_v43 = vadd.f32 %v1049_v25, %v924_v51  ;;  %v1647_v39 = vld [vmem:[#allocation3 + $0x10] sm:$0xff]  ;;  %v2224_v25 = vunpack.c.h.bf16 %v2230_v15 }
 0x1d3   : > { %1076 = vst.msk [vmem:[#allocation3 + $0x38] sm:$0xff] %vm441_vm8, %v1068_v42  ;;  %v1645_v19 = vld [vmem:[#allocation3] sm:$0xff] }
 0x1d4   : > { %1074 = vst.msk [vmem:[#allocation3 + $0x28] sm:$0xff] %vm441_vm8, %v1066_v43  ;;  %v1648_v55 = vld [vmem:[#allocation3 + $0x18] sm:$0xff] }
 0x1d5   : > { %v1646_v8 = vld [vmem:[#allocation3 + $0x8] sm:$0xff] }
 0x1d6   : > { %v2299_v44 = vpop.f32.mrb[4].mxu1 }
 0x1d7   : > { %v1408_v9 = vpop.f32.mrb[5].mxu1 }
 0x1d8   : > { %v1288_v14 = vld [vmem:[#allocation3 + $0x30] sm:$0xff]  ;;  %v2300_v45 = vpop.f32.mrb[6].mxu1 }
 0x1d9   : > { %v1429_v48 = vadd.f32 %v2299_v44, %v1288_v14  ;;  %v1286_v54 = vld [vmem:[#allocation3 + $0x20] sm:$0xff]  ;;  %v1411_v49 = vpop.f32.mrb[7].mxu1 }
 0x1da   : > { %v1427_v20 = vadd.f32 %v1408_v9, %v1286_v54  ;;  %v1289_v33 = vld [vmem:[#allocation3 + $0x38] sm:$0xff] }
 0x1db   : > { %1437 = vst.msk [vmem:[#allocation3 + $0x30] sm:$0xff] %vm441_vm8, %v1429_v48  ;;  %v1430_v53 = vadd.f32 %v2300_v45, %v1289_v33  ;;  %v1287_v30 = vld [vmem:[#allocation3 + $0x28] sm:$0xff]  ;;  %v2220_v45 = vunpack.c.h.bf16 %v2229_v46 }
 0x1dc   : > { %1435 = vst.msk [vmem:[#allocation3 + $0x20] sm:$0xff] %vm441_vm8, %v1427_v20  ;;  %v1428_v3 = vadd.f32 %v1411_v49, %v1287_v30 }
 0x1dd   : > { %1438 = vst.msk [vmem:[#allocation3 + $0x38] sm:$0xff] %vm441_vm8, %v1430_v53 }
 0x1de   : > { %1436 = vst.msk [vmem:[#allocation3 + $0x28] sm:$0xff] %vm441_vm8, %v1428_v3 }
 0x1e2   : > { %v1651_v59 = vld [vmem:[#allocation3 + $0x30] sm:$0xff] }
 0x1e3   : > { %v1649_v62 = vld [vmem:[#allocation3 + $0x20] sm:$0xff] }
 0x1e4   : > { %v1652_v1 = vld [vmem:[#allocation3 + $0x38] sm:$0xff] }
 0x1e5   : > { %v1650_v24 = vld [vmem:[#allocation3 + $0x28] sm:$0xff] }
 0x1f1   : > { %v2315_v4 = vpop.f32.mrb[8].mxu0 }
 0x1f2   : > { %v1788_v16 = vadd.f32 %v2315_v4, %v1647_v39  ;;  %v1755_v50 = vpop.f32.mrb[9].mxu0 }
 0x1f3   : > { %v1786_v31 = vadd.f32 %v1755_v50, %v1645_v19  ;;  %v2316_v35 = vpop.f32.mrb[10].mxu0 }
 0x1f4   : > { %1796 = vst.msk [vmem:[#allocation3 + $0x10] sm:$0xff] %vm441_vm8, %v1788_v16  ;;  %v1789_v57 = vadd.f32 %v2316_v35, %v1648_v55  ;;  %v1758_v37 = vpop.f32.mrb[11].mxu0 }
 0x1f5   : > { %1794 = vst.msk [vmem:[#allocation3] sm:$0xff] %vm441_vm8, %v1786_v31  ;;  %v1787_v26 = vadd.f32 %v1758_v37, %v1646_v8  ;;  %v2319_v27 = vpop.f32.mrb[8].mxu1 }
 0x1f6   : > { %1797 = vst.msk [vmem:[#allocation3 + $0x18] sm:$0xff] %vm441_vm8, %v1789_v57  ;;  %v1792_v58 = vadd.f32 %v2319_v27, %v1651_v59  ;;  %v1771_v63 = vpop.f32.mrb[9].mxu1 }
 0x1f7   : > { %1795 = vst.msk [vmem:[#allocation3 + $0x8] sm:$0xff] %vm441_vm8, %v1787_v26  ;;  %v1790_v47 = vadd.f32 %v1771_v63, %v1649_v62  ;;  %v2320_v52 = vpop.f32.mrb[10].mxu1 }
 0x1f8   : > { %1800 = vst.msk [vmem:[#allocation3 + $0x30] sm:$0xff] %vm441_vm8, %v1792_v58  ;;  %v1793_v21 = vadd.f32 %v2320_v52, %v1652_v1  ;;  %v1774_v2 = vpop.f32.mrb[11].mxu1 }
 0x1f9   : > { %1798 = vst.msk [vmem:[#allocation3 + $0x20] sm:$0xff] %vm441_vm8, %v1790_v47  ;;  %v1791_v13 = vadd.f32 %v1774_v2, %v1650_v24 }
 0x1fa   : > { %1801 = vst.msk [vmem:[#allocation3 + $0x38] sm:$0xff] %vm441_vm8, %v1793_v21 }
 0x1fb   : > { %v1807_v40 = vld [vmem:[#allocation3 + $0x10] sm:$0xff]  ;;  %1799 = vst.msk [vmem:[#allocation3 + $0x28] sm:$0xff] %vm441_vm8, %v1791_v13 }
 0x1fc   : > { %v1822_v34 = vadd.f32 %v2171_v36, %v1807_v40  ;;  %v1805_v17 = vld [vmem:[#allocation3] sm:$0xff] }
 0x1fd   : > { %v1820_v5 = vadd.f32 %v2171_v36, %v1805_v17  ;;  %v1808_v6 = vld [vmem:[#allocation3 + $0x18] sm:$0xff] }
 0x1fe   : > { %v1846_v18 = vadd.f32 %v2215_v0, %v1822_v34  ;;  %v1823_v23 = vadd.f32 %v2171_v36, %v1808_v6  ;;  %v1806_v29 = vld [vmem:[#allocation3 + $0x8] sm:$0xff] }
 0x1ff   : > { %v1844_v22 = vadd.f32 %v2211_v61, %v1820_v5  ;;  %v1821_v7 = vadd.f32 %v2171_v36, %v1806_v29  ;;  %v1811_v38 = vld [vmem:[#allocation3 + $0x30] sm:$0xff] }
 0x200   : > { %v2187_v51 = vpack.c.bf16 %v1846_v18, %v1846_v18  ;;  %v1847_v41 = vadd.f32 %v2216_v12, %v1823_v23  ;;  %v1826_v60 = vadd.f32 %v2171_v36, %v1811_v38  ;;  %v1809_v42 = vld [vmem:[#allocation3 + $0x20] sm:$0xff] }
 0x201   : > { %v2185_v43 = vpack.c.bf16 %v1844_v22, %v1844_v22  ;;  %v1845_v44 = vadd.f32 %v2212_v10, %v1821_v7  ;;  %v1824_v9 = vadd.f32 %v2171_v36, %v1809_v42  ;;  %v1812_v14 = vld [vmem:[#allocation3 + $0x38] sm:$0xff] }
 0x202   : > { %1886 = vst.msk [vmem:[%s3058_s20 + $0x8] sm:$0xf] %vm434_vm0, %v2187_v51  ;;  %v2188_v48 = vpack.c.bf16 %v1847_v41, %v1847_v41  ;;  %v1850_v54 = vadd.f32 %v2223_v28, %v1826_v60  ;;  %v1827_v49 = vadd.f32 %v2171_v36, %v1812_v14  ;;  %v1810_v20 = vld [vmem:[#allocation3 + $0x28] sm:$0xff] }
 0x203   : > { %1884 = vst.msk [vmem:[%s3058_s20] sm:$0xf] %vm434_vm0, %v2185_v43  ;;  %v2186_v33 = vpack.c.bf16 %v1845_v44, %v1845_v44  ;;  %v1848_v53 = vadd.f32 %v2219_v32, %v1824_v9  ;;  %v1825_v30 = vadd.f32 %v2171_v36, %v1810_v20 }
 0x204   : > { %1887 = vst.msk [vmem:[%s3058_s20 + $0xc] sm:$0xf] %vm434_vm0, %v2188_v48  ;;  %v2191_v3 = vpack.c.bf16 %v1850_v54, %v1850_v54  ;;  %v1851_v39 = vadd.f32 %v2224_v25, %v1827_v49 }
 0x205   : > { %1885 = vst.msk [vmem:[%s3058_s20 + $0x4] sm:$0xf] %vm434_vm0, %v2186_v33  ;;  %v2189_v4 = vpack.c.bf16 %v1848_v53, %v1848_v53  ;;  %v1849_v16 = vadd.f32 %v2220_v45, %v1825_v30 }
 0x206   : > { %1890 = vst.msk [vmem:[%s3058_s20 + $0x18] sm:$0xf] %vm434_vm0, %v2191_v3  ;;  %v2192_v19 = vpack.c.bf16 %v1851_v39, %v1851_v39 }
 0x207   : > { %1888 = vst.msk [vmem:[%s3058_s20 + $0x10] sm:$0xf] %vm434_vm0, %v2189_v4  ;;  %v2190_v50 = vpack.c.bf16 %v1849_v16, %v1849_v16 }
 0x208   : > { %1891 = vst.msk [vmem:[%s3058_s20 + $0x1c] sm:$0xf] %vm434_vm0, %v2192_v19 }
 0x209   : > { %1889 = vst.msk [vmem:[%s3058_s20 + $0x14] sm:$0xf] %vm434_vm0, %v2190_v50 }
 0x20a PF: > { %s16_s23 = sadd.s32 1, %s2458_s23   ;;  %s3096_s21 = smov %s2454_s22 }
 0x20b   : > { %p13_p5 = scmp.ge.s32.totalorder %s16_s23, 4   ;;  %s3097_s22 = smov %s3099_s24 }
 0x20d   :  { %15 = sbr.rel (!%p13_p5) target bundleno = 2 (0x2), region = 102 }

// kernel: _lambda_.20
= control target key start
LH: loop header
LB: loop body
LE: loop exit
PB: predicated region body
PF: predicated region fallthrough
CT: control target
= control target key end

     0   :  { %s4000_s0 = inlined_call_operand.vmem [shape: f32[2,8,8,32], index: 0, kind: input, shape index: {}]   ;;  %s4001_s1 = inlined_call_operand.vmem [shape: f32[2,1,32], index: 1, kind: input, shape index: {}]   ;;  %s4002_s2 = inlined_call_operand.vmem [shape: f32[2,1,32], index: 2, kind: input, shape index: {}]   ;;  %s4003_s3 = inlined_call_operand.vmem [shape: f32[2,8,8,32], index: 3, kind: input, shape index: {}]   ;;  %s4004_s4 = inlined_call_operand.vmem [shape: f32[2,1,32], index: 4, kind: input, shape index: {}]   ;;  %s4005_s5 = inlined_call_operand.vmem [shape: f32[2,1,32], index: 5, kind: input, shape index: {}]   ;;  %s4006_s6 = inlined_call_operand.vmem [shape: bf16[3,3,64,32], index: 6, kind: input, shape index: {}]   ;;  %s4007_s7 = inlined_call_operand.vmem [shape: f32[2,1,32], index: 7, kind: input, shape index: {}]   ;;  %s4008_s8 = inlined_call_operand.vmem [shape: bf16[2,64,32], index: 8, kind: output, shape index: {}]  }
   0x1   :  { %4012 = sst [smem:[#allocation10_spill]] %s4000_s0 }
   0x2   :  { %4013 = sst [smem:[#allocation11_spill]] %s4006_s6 }
   0x3   :  { %s3268_s27 = smov 0   ;;  %s3270_s28 = smov 0  }
   0x4   :  { %s3272_s29 = smov 0   ;;  %s3274_s30 = smov 0  }
   0x5   :  { %s3276_s9 = smov 0   ;;  %s3278_s10 = smov 0  }
   0x6   :  { %s3280_s11 = smov 0  }
   0x7 LB: > { %4014 = sst [smem:[#allocation5_spill]] %s3209_s9  ;;  %s30_s12 = sadd.s32 1, %s3209_s9  ;;  %s3217_s11 = sphi %s3280_s11, %s18_s11   ;;  %s3213_s10 = sphi %s3278_s10, %s4035_s10   ;;  %s3209_s9 = sphi %s3276_s9, %s4034_s9   ;;  %s3205_s30 = sphi %s3274_s30, %s4039_s30   ;;  %s3201_s29 = sphi %s3272_s29, %s4038_s29   ;;  %s3197_s28 = sphi %s3270_s28, %s4037_s28   ;;  %s3193_s27 = sphi %s3268_s27, %s4036_s27  }
   0x8   : > { %4015 = sst [smem:[#allocation6_spill]] %s3213_s10  ;;  %s37_s13 = sadd.s32 1, %s3213_s10 }
   0x9   : > { %p31_p0 = scmp.ge.s32.totalorder %s30_s12, 2  ;;  %s244_s14 = sadd.s32 1, %s3197_s28 }
   0xa   : > { %p251_p1 = scmp.ne.s32.totalorder %s3197_s28, %s3193_s27  ;;  %p252_p2 = scmp.eq.s32.totalorder %s3217_s11, 0 }
   0xb   : > { %s4041_s12 = smov (%p31_p0, %s30_s12), 0  ;;  %s4043_s13 = smov (!%p31_p0, %s37_s13), %s3213_s10 }
   0xc   : > { %4016 = sst [smem:[#allocation7_spill]] %s4041_s12  ;;  %s239_s15 = ssub.s32 %s3209_s9, %s4041_s12 }
   0xd   : > { %p253_p3 = por %p252_p2, %p251_p1  ;;  %p39_p4 = scmp.ge.s32.totalorder %s4043_s13, 2 }
   0xe   : > { %p242_p5 = scmp.eq.s32.totalorder %s239_s15, 0  ;;  %p2704_p6 = scmp.ge.s32.totalorder %s3217_s11, 4 }
   0xf   : > { %s4045_s13 = smov (%p39_p4, %s4043_s13), 0 }
  0x10   : > { %4017 = sst [smem:[#allocation8_spill]] %s4045_s13  ;;  %333 = sbr.rel (%p2704_p6) target bundleno = 42 (0x2a), region = 16 }
  0x11   : > { %s3317_s16 = scalar_select %p242_p5, %s3197_s28, %s244_s14  }
  0x13   : > { %4018 = sst [smem:[#allocation9_spill]] %s3317_s16 }
  0x17   : > { %424 = sbr.rel (!%p253_p3) target bundleno = 42 (0x2a), region = 44  ;;  %s426_s17 = sand.u32 (%p253_p3), 1, %s3197_s28  }
  0x18   : > { %s2882_s18 = sshll.u32 (%p253_p3), %s3209_s9, 4  ;;  %s2995_s19 = smul.u32 (%p253_p3), 144, %s426_s17 }
  0x19   : > { %s4019_s6 = sld [smem:[#allocation11_spill]] (%p253_p3) }
  0x1a   : > { %s428_s23 = scalar_lea.vmem (%p253_p3), [#allocation4], %s2995_s19 }
  0x1f   : > { %s3325_s22 = scalar_lea.vmem %s4019_s6, %s2882_s18 }
  0x20   : > { %v448_v0 = vld [vmem:[%s3325_s22] sm:$0xff]   ;;  %v452_v1 = vld [vmem:[%s3325_s22 + $0x8] sm:$0xff]  }
  0x21   : > { %v456_v2 = vld [vmem:[%s3325_s22 + $0x20] sm:$0xff]   ;;  %v460_v3 = vld [vmem:[%s3325_s22 + $0x28] sm:$0xff]   ;;  %449 = vst [vmem:[%s428_s23] sm:$0xff] %v448_v0   ;;  %453 = vst [vmem:[%s428_s23 + $0x8] sm:$0xff] %v452_v1  }
  0x22   : > { %v464_v4 = vld [vmem:[%s3325_s22 + $0x40] sm:$0xff]   ;;  %v468_v5 = vld [vmem:[%s3325_s22 + $0x48] sm:$0xff]   ;;  %457 = vst [vmem:[%s428_s23 + $0x10] sm:$0xff] %v456_v2   ;;  %461 = vst [vmem:[%s428_s23 + $0x18] sm:$0xff] %v460_v3  }
  0x23   : > { %465 = vst [vmem:[%s428_s23 + $0x20] sm:$0xff] %v464_v4   ;;  %469 = vst [vmem:[%s428_s23 + $0x28] sm:$0xff] %v468_v5   ;;  %v472_v6 = vld [vmem:[%s3325_s22 + $0x60] sm:$0xff]   ;;  %v476_v7 = vld [vmem:[%s3325_s22 + $0x68] sm:$0xff]  }
  0x24   : > { %v480_v8 = vld [vmem:[%s3325_s22 + $0x80] sm:$0xff]   ;;  %473 = vst [vmem:[%s428_s23 + $0x30] sm:$0xff] %v472_v6   ;;  %477 = vst [vmem:[%s428_s23 + $0x38] sm:$0xff] %v476_v7   ;;  %v484_v9 = vld [vmem:[%s3325_s22 + $0x88] sm:$0xff]  }
  0x25   : > { %481 = vst [vmem:[%s428_s23 + $0x40] sm:$0xff] %v480_v8   ;;  %v488_v10 = vld [vmem:[%s3325_s22 + $0xa0] sm:$0xff]   ;;  %v492_v11 = vld [vmem:[%s3325_s22 + $0xa8] sm:$0xff]   ;;  %485 = vst [vmem:[%s428_s23 + $0x48] sm:$0xff] %v484_v9  }
  0x26   : > { %489 = vst [vmem:[%s428_s23 + $0x50] sm:$0xff] %v488_v10   ;;  %493 = vst [vmem:[%s428_s23 + $0x58] sm:$0xff] %v492_v11   ;;  %v496_v12 = vld [vmem:[%s3325_s22 + $0xc0] sm:$0xff]   ;;  %v500_v13 = vld [vmem:[%s3325_s22 + $0xc8] sm:$0xff]  }
  0x27   : > { %v504_v14 = vld [vmem:[%s3325_s22 + $0xe0] sm:$0xff]   ;;  %497 = vst [vmem:[%s428_s23 + $0x60] sm:$0xff] %v496_v12   ;;  %501 = vst [vmem:[%s428_s23 + $0x68] sm:$0xff] %v500_v13   ;;  %v508_v15 = vld [vmem:[%s3325_s22 + $0xe8] sm:$0xff]  }
  0x28   : > { %505 = vst [vmem:[%s428_s23 + $0x70] sm:$0xff] %v504_v14   ;;  %v512_v16 = vld [vmem:[%s3325_s22 + $0x100] sm:$0xff]   ;;  %v516_v17 = vld [vmem:[%s3325_s22 + $0x108] sm:$0xff]   ;;  %509 = vst [vmem:[%s428_s23 + $0x78] sm:$0xff] %v508_v15  }
  0x29   : > { %513 = vst [vmem:[%s428_s23 + $0x80] sm:$0xff] %v512_v16   ;;  %517 = vst [vmem:[%s428_s23 + $0x88] sm:$0xff] %v516_v17  }
  0x2a PF: > { %p2707_p7 = scmp.ge.s32.totalorder %s3217_s11, 1  ;;  %p622_p8 = scmp.lt.s32.totalorder %s3217_s11, 5 }
  0x2c   : > { %p623_p9 = pnand %p2707_p7, %p622_p8 }
  0x2d   : > { %s629_s24 = sand.u32 (!%p623_p9), 1, %s3193_s27   ;;  %p726_p10 = scmp.lt.s32.totalorder (!%p623_p9), %s3201_s29, 0 }
  0x2e   : > { %626 = sbr.rel (%p623_p9) target bundleno = 651 (0x28b), region = 89  ;;  %p728_p11 = scmp.lt.s32.totalorder (!%p623_p9), %s3205_s30, 1 }
  0x2f   : > { %s2996_s25 = smul.u32 (!%p623_p9), 144, %s629_s24  ;;  %s4020_s0 = sld [smem:[#allocation10_spill]] (!%p623_p9) }
  0x30   : > { %p2741_p12 = scmp.ne.s32.totalorder (!%p623_p9), %s3201_s29, 0 }
  0x31   : > { %s3395_s10 = scalar_lea.vmem (!%p623_p9), [#allocation4], %s2996_s25 }
  0x35   : > { %s727_s26 = scalar_select %p726_p10, %s3201_s29, 0 }
  0x36   : > { %s4047_s30 = smov (!%p728_p11, %s3205_s30), 1  ;;  %vm816_vm0 = vcmask (!%p2741_p12), 257024   ;;  %vm818_vm1 = vcmask (!%p2741_p12), 253952   ;;  %vm823_vm2 = vcmask (!%p2741_p12), 261120   ;;  %v3219_v18 = vmov (!%p2741_p12), 0  }
  0x37   : > { %s4049_s26 = smov (!%p726_p10, %s727_s26), 0  ;;  %s2711_s14 = sshll.u32 %s4047_s30, 3  ;;  %817 = vst.msk [vmem:[#allocation2] sm:$0xf] (!%p2741_p12), %vm816_vm0, %v3219_v18  ;;  %821 = vst.msk [vmem:[#allocation2 + $0x48] sm:$0xf] (!%p2741_p12), %vm816_vm0, %v3219_v18 }
  0x38   : > { %s2883_s15 = sshll.u32 %s4047_s30, 6  ;;  %s733_s17 = sadd.s32 %s2711_s14, %s4049_s26  ;;  %819 = vst.msk [vmem:[#allocation2 + $0x4] sm:$0x1] (!%p2741_p12), %vm818_vm1, %v3219_v18  ;;  %822 = vst.msk [vmem:[#allocation2 + $0x4c] sm:$0x1] (!%p2741_p12), %vm818_vm1, %v3219_v18  ;;  %v3220_v19 = vmov (!%p2741_p12), 0.0  }
  0x39   : > { %s3357_s18 = sadd.s32 %s4049_s26, %s4047_s30  ;;  %s2712_s27 = sshll.u32 %s733_s17, 3  ;;  %824 = vst.msk [vmem:[#allocation3] sm:$0xff] (!%p2741_p12), %vm823_vm2, %v3220_v19  ;;  %825 = vst.msk [vmem:[#allocation3 + $0x8] sm:$0xff] (!%p2741_p12), %vm823_vm2, %v3220_v19 }
  0x3a   : > { %s3366_s24 = scalar_lea.vmem %s4020_s0, %s2712_s27  ;;  %s3375_s26 = scalar_lea.vmem %s4003_s3, %s2883_s15  ;;  %826 = vst.msk [vmem:[#allocation3 + $0x10] sm:$0xff] (!%p2741_p12), %vm823_vm2, %v3220_v19  ;;  %827 = vst.msk [vmem:[#allocation3 + $0x18] sm:$0xff] (!%p2741_p12), %vm823_vm2, %v3220_v19 }
  0x3b   : > { %s780_s16 = scalar_lea.vmem %s4004_s4, %s4047_s30  ;;  %s792_s21 = scalar_lea.vmem %s4005_s5, %s4047_s30  ;;  %828 = vst.msk [vmem:[#allocation3 + $0x20] sm:$0xff] (!%p2741_p12), %vm823_vm2, %v3220_v19  ;;  %829 = vst.msk [vmem:[#allocation3 + $0x28] sm:$0xff] (!%p2741_p12), %vm823_vm2, %v3220_v19 }
  0x3c   : > { %s802_s23 = scalar_lea.vmem %s4007_s7, %s4047_s30  ;;  %s2884_s0 = sshll.u32 %s4047_s30, 5  ;;  %830 = vst.msk [vmem:[#allocation3 + $0x30] sm:$0xff] (!%p2741_p12), %vm823_vm2, %v3220_v19  ;;  %831 = vst.msk [vmem:[#allocation3 + $0x38] sm:$0xff] (!%p2741_p12), %vm823_vm2, %v3220_v19 }
  0x3d   : > { %s3393_s12 = scalar_lea.vmem %s4008_s8, %s2884_s0  ;;  %815 = sbr.rel (%p2741_p12) target bundleno = 68 (0x44), region = 97 }
  0x44 PF: > { %p2742_p13 = scmp.ge.s32.totalorder %s3201_s29, 1 }
  0x45   : > { %v836_v20 = vld [vmem:[%s3366_s24] sm:$0xff] (!%p2742_p13)  ;;  %s4021_s25 = scalar_lea.vmem (!%p2742_p13), %s4001_s1, %s3357_s18  ;;  %s4022_s17 = scalar_lea.vmem (!%p2742_p13), %s4002_s2, %s3357_s18  ;;  %v837_v24 = vld [vmem:[%s3366_s24 + $0x8] sm:$0xff] (!%p2742_p13)  ;;  %v838_v26 = vld [vmem:[%s3366_s24 + $0x10] sm:$0xff] (!%p2742_p13)  ;;  %vm994_vm3 = vcmask (!%p2742_p13), 1040384   ;;  %vm995_vm4 = vsmask.f32 (!%p2742_p13), 256 }
  0x46   : > { %835 = sbr.rel (%p2742_p13) target bundleno = 136 (0x88), region = 101  ;;  %v2743_v21 = vld [vmem:[%s4021_s25] ss:$0 sm:$0xff] (!%p2742_p13)  ;;  %v839_v27 = vld [vmem:[%s3366_s24 + $0x18] sm:$0xff] (!%p2742_p13)  ;;  %v841_v32 = vld [vmem:[%s3366_s24 + $0x28] sm:$0xff] (!%p2742_p13)  ;;  %vm1005_vm5 = vcmask (!%p2742_p13), 1044480  }
  0x47   : > { %v2744_v22 = vld [vmem:[%s4022_s17] ss:$0 sm:$0xff] (!%p2742_p13)  ;;  %v851_v23 = vmul.f32 (!%p2742_p13), %v2743_v21, %v836_v20  ;;  %v852_v25 = vmul.f32 (!%p2742_p13), %v2743_v21, %v837_v24  ;;  %v853_v29 = vmul.f32 (!%p2742_p13), %v2743_v21, %v838_v26  ;;  %v854_v30 = vmul.f32 (!%p2742_p13), %v2743_v21, %v839_v27  ;;  %v842_v36 = vld [vmem:[%s3366_s24 + $0x30] sm:$0xff] (!%p2742_p13)  ;;  %v843_v37 = vld [vmem:[%s3366_s24 + $0x38] sm:$0xff] (!%p2742_p13) }
  0x48   : > { %v840_v31 = vld [vmem:[%s3366_s24 + $0x20] sm:$0xff] (!%p2742_p13)  ;;  %v856_v35 = vmul.f32 (!%p2742_p13), %v2743_v21, %v841_v32  ;;  %v857_v41 = vmul.f32 (!%p2742_p13), %v2743_v21, %v842_v36  ;;  %v858_v45 = vmul.f32 (!%p2742_p13), %v2743_v21, %v843_v37  ;;  %vm1006_vm6 = vsmask.f32 (!%p2742_p13), 4352  ;;  %vm3449_vm9 = vmand (!%p2742_p13), %vm994_vm3, %vm995_vm4 }
  0x49   : > { %v3413_v28 = vadd.f32 (!%p2742_p13), %v2744_v22, %v851_v23  ;;  %v3417_v33 = vadd.f32 (!%p2742_p13), %v2744_v22, %v852_v25  ;;  %v855_v34 = vmul.f32 (!%p2742_p13), %v2743_v21, %v840_v31  ;;  %v3422_v39 = vadd.f32 (!%p2742_p13), %v2744_v22, %v853_v29  ;;  %vm3455_vm10 = vmand (!%p2742_p13), %vm1005_vm5, %vm1006_vm6 }
  0x4a   : > { %v3424_v40 = vadd.f32 (!%p2742_p13), %v2744_v22, %v854_v30  ;;  %v3429_v44 = vadd.f32 (!%p2742_p13), %v2744_v22, %v856_v35  ;;  %v3433_v49 = vadd.f32 (!%p2742_p13), %v2744_v22, %v857_v41  ;;  %v3437_v53 = vadd.f32 (!%p2742_p13), %v2744_v22, %v858_v45 }
  0x4b   : > { %v874_v38 = vsub.f32 (!%p2742_p13), 0.0, %v3413_v28  ;;  %v875_v42 = vsub.f32 (!%p2742_p13), 0.0, %v3417_v33  ;;  %v3427_v43 = vadd.f32 (!%p2742_p13), %v2744_v22, %v855_v34  ;;  %v876_v47 = vsub.f32 (!%p2742_p13), 0.0, %v3422_v39 }
  0x4c   : > { %v877_v48 = vsub.f32 (!%p2742_p13), 0.0, %v3424_v40  ;;  %v879_v52 = vsub.f32 (!%p2742_p13), 0.0, %v3429_v44  ;;  %v880_v56 = vsub.f32 (!%p2742_p13), 0.0, %v3433_v49  ;;  %v881_v60 = vsub.f32 (!%p2742_p13), 0.0, %v3437_v53 }
  0x4d   : > { %v882_v46 = vmul.f32 1.442695, %v874_v38  ;;  %v884_v50 = vmul.f32 1.442695, %v875_v42  ;;  %v878_v51 = vsub.f32 0.0, %v3427_v43  ;;  %vm1073_vm7 = vcmask 257024  }
  0x4e   : > { %v886_v54 = vmul.f32 1.442695, %v876_v47  ;;  %v888_v55 = vmul.f32 1.442695, %v877_v48  ;;  %v892_v58 = vmul.f32 1.442695, %v879_v52 }
  0x4f   : > { %3057 = vpow2.f32 %v882_v46  ;;  %v890_v57 = vmul.f32 1.442695, %v878_v51  ;;  %v894_v59 = vmul.f32 1.442695, %v880_v56  ;;  %v896_v61 = vmul.f32 1.442695, %v881_v60 }
  0x50   : > { %3059 = vpow2.f32 %v884_v50  ;;  %vm1075_vm8 = vcmask 253952  }
  0x51   : > { %3061 = vpow2.f32 %v886_v54 }
  0x52   : > { %3063 = vpow2.f32 %v888_v55 }
  0x53   : > { %3065 = vpow2.f32 %v890_v57 }
  0x54   : > { %3067 = vpow2.f32 %v892_v58 }
  0x55   : > { %3069 = vpow2.f32 %v894_v59 }
  0x56   : > { %3071 = vpow2.f32 %v896_v61 }
  0x59   : > { %v3058_v62 = vpop.eup %3057 }
  0x5a   : > { %v3060_v63 = vpop.eup %3059  ;;  %v898_v0 = vadd.f32 1.0, %v3058_v62 }
  0x5b   : > { %v3062_v1 = vpop.eup %3061  ;;  %v899_v2 = vadd.f32 1.0, %v3060_v63 }
  0x5c   : > { %v3064_v3 = vpop.eup %3063  ;;  %3073 = vrcp.f32 %v898_v0  ;;  %v900_v4 = vadd.f32 1.0, %v3062_v1 }
  0x5d   : > { %v3066_v5 = vpop.eup %3065  ;;  %3075 = vrcp.f32 %v899_v2  ;;  %v901_v6 = vadd.f32 1.0, %v3064_v3 }
  0x5e   : > { %v3068_v7 = vpop.eup %3067  ;;  %3077 = vrcp.f32 %v900_v4  ;;  %v902_v8 = vadd.f32 1.0, %v3066_v5 }
  0x5f   : > { %v3070_v9 = vpop.eup %3069  ;;  %3079 = vrcp.f32 %v901_v6  ;;  %v903_v10 = vadd.f32 1.0, %v3068_v7 }
  0x60   : > { %3081 = vrcp.f32 %v902_v8  ;;  %v904_v11 = vadd.f32 1.0, %v3070_v9  ;;  %v3072_v12 = vpop.eup %3071 }
  0x61   : > { %3083 = vrcp.f32 %v903_v10  ;;  %v905_v14 = vadd.f32 1.0, %v3072_v12 }
  0x62   : > { %3085 = vrcp.f32 %v904_v11 }
  0x63   : > { %3087 = vrcp.f32 %v905_v14 }
  0x66   : > { %v3074_v13 = vpop.eup %3073 }
  0x67   : > { %v3076_v15 = vpop.eup %3075  ;;  %v914_v16 = vmul.f32 %v3074_v13, %v3413_v28 }
  0x68   : > { %v3078_v17 = vpop.eup %3077  ;;  %v915_v18 = vmul.f32 %v3076_v15, %v3417_v33 }
  0x69   : > { %v3080_v19 = vpop.eup %3079  ;;  %v922_v20 = vpack.c.bf16 %v914_v16, %v914_v16  ;;  %v916_v21 = vmul.f32 %v3078_v17, %v3422_v39 }
  0x6a   : > { %v3082_v22 = vpop.eup %3081  ;;  %v923_v23 = vpack.c.bf16 %v915_v18, %v915_v18  ;;  %v917_v24 = vmul.f32 %v3080_v19, %v3424_v40 }
  0x6b   : > { %v3084_v25 = vpop.eup %3083  ;;  %v931_v26 = vshrl.u32 %v922_v20, 16  ;;  %v934_v27 = vshll.u32 %v922_v20, 16  ;;  %v924_v28 = vpack.c.bf16 %v916_v21, %v916_v21  ;;  %v918_v29 = vmul.f32 %v3082_v22, %v3427_v43 }
  0x6c   : > { %v938_v30 = vshrl.u32 %v923_v23, 16  ;;  %v941_v31 = vshll.u32 %v923_v23, 16  ;;  %v925_v32 = vpack.c.bf16 %v917_v24, %v917_v24  ;;  %v919_v33 = vmul.f32 %v3084_v25, %v3429_v44  ;;  %v3086_v38 = vpop.eup %3085 }
  0x6d   : > { %v933_v34 = vrot.slane %v931_v26, 7  ;;  %v945_v35 = vshrl.u32 %v924_v28, 16  ;;  %v948_v36 = vshll.u32 %v924_v28, 16  ;;  %v926_v37 = vpack.c.bf16 %v918_v29, %v918_v29  ;;  %v3088_v3 = vpop.eup %3087 }
  0x6e   : > { %v940_v40 = vrot.slane %v938_v30, 7  ;;  %v952_v41 = vshrl.u32 %v925_v32, 16  ;;  %v955_v42 = vshll.u32 %v925_v32, 16  ;;  %v927_v43 = vpack.c.bf16 %v919_v33, %v919_v33 }
  0x6f   : > { %v936_v45 = vor.u32 %v934_v27, %v933_v34  ;;  %v947_v46 = vrot.slane %v945_v35, 7  ;;  %v959_v47 = vshrl.u32 %v926_v37, 16  ;;  %v962_v48 = vshll.u32 %v926_v37, 16 }
  0x70   : > { %v943_v50 = vor.u32 %v941_v31, %v940_v40  ;;  %v954_v51 = vrot.slane %v952_v41, 7  ;;  %v966_v52 = vshrl.u32 %v927_v43, 16  ;;  %v969_v54 = vshll.u32 %v927_v43, 16 }
  0x71   : > { %v997_v55 = vsel %vm3449_vm9, 0, %v936_v45  ;;  %v950_v56 = vor.u32 %v948_v36, %v947_v46  ;;  %v961_v57 = vrot.slane %v959_v47, 7  ;;  %v920_v58 = vmul.f32 %v3086_v38, %v3433_v49 }
  0x72   : > { %v1008_v59 = vsel %vm3455_vm10, %v997_v55, 0  ;;  %v998_v60 = vsel %vm3449_vm9, 0, %v943_v50  ;;  %v957_v61 = vor.u32 %v955_v42, %v954_v51  ;;  %v968_v62 = vrot.slane %v966_v52, 7 }
  0x73   : > { %v2745_v63 = vcombine.low %v1008_v59, %v1008_v59  ;;  %v2746_v0 = vcombine.high %v1008_v59, %v1008_v59  ;;  %v1009_v1 = vsel %vm3455_vm10, %v998_v60, 0  ;;  %v999_v2 = vsel %vm3449_vm9, 0, %v950_v56 }
  0x74   : > { %v2747_v4 = vcombine.low %v1009_v1, %v1009_v1  ;;  %v2748_v5 = vcombine.high %v1009_v1, %v1009_v1  ;;  %v1010_v49 = vsel %vm3455_vm10, %v999_v2, 0  ;;  %v1000_v6 = vsel %vm3449_vm9, 0, %v957_v61 }
  0x75   : > { %1074 = vst.msk [vmem:[#allocation2 + $0x8] sm:$0xf] %vm1073_vm7, %v2745_v63  ;;  %v2749_v7 = vcombine.low %v1010_v49, %v1010_v49  ;;  %v2750_v8 = vcombine.high %v1010_v49, %v1010_v49  ;;  %v1011_v9 = vsel %vm3455_vm10, %v1000_v6, 0  ;;  %v964_v10 = vor.u32 %v962_v48, %v961_v57 }
  0x76   : > { %1076 = vst.msk [vmem:[#allocation2 + $0xc] sm:$0x1] %vm1075_vm8, %v2746_v0  ;;  %1078 = vst.msk [vmem:[#allocation2 + $0x14] sm:$0x1] %vm1075_vm8, %v2748_v5  ;;  %v2751_v11 = vcombine.low %v1011_v9, %v1011_v9  ;;  %v2752_v12 = vcombine.high %v1011_v9, %v1011_v9  ;;  %v971_v13 = vor.u32 %v969_v54, %v968_v62 }
  0x77   : > { %1077 = vst.msk [vmem:[#allocation2 + $0x10] sm:$0xf] %vm1073_vm7, %v2747_v4  ;;  %v928_v14 = vpack.c.bf16 %v920_v58, %v920_v58  ;;  %1079 = vst.msk [vmem:[#allocation2 + $0x18] sm:$0xf] %vm1073_vm7, %v2749_v7  ;;  %v1001_v15 = vsel %vm3449_vm9, 0, %v964_v10  ;;  %v921_v16 = vmul.f32 %v3088_v3, %v3437_v53 }
  0x78   : > { %1080 = vst.msk [vmem:[#allocation2 + $0x1c] sm:$0x1] %vm1075_vm8, %v2750_v8  ;;  %1082 = vst.msk [vmem:[#allocation2 + $0x24] sm:$0x1] %vm1075_vm8, %v2752_v12  ;;  %v1012_v17 = vsel %vm3455_vm10, %v1001_v15, 0  ;;  %v1002_v18 = vsel %vm3449_vm9, 0, %v971_v13 }
  0x79   : > { %1081 = vst.msk [vmem:[#allocation2 + $0x20] sm:$0xf] %vm1073_vm7, %v2751_v11  ;;  %v973_v19 = vshrl.u32 %v928_v14, 16  ;;  %v976_v20 = vshll.u32 %v928_v14, 16  ;;  %v2753_v21 = vcombine.low %v1012_v17, %v1012_v17  ;;  %v2754_v22 = vcombine.high %v1012_v17, %v1012_v17 }
  0x7a   : > { %v1013_v23 = vsel %vm3455_vm10, %v1002_v18, 0  ;;  %v929_v24 = vpack.c.bf16 %v921_v16, %v921_v16 }
  0x7b   : > { %v2755_v25 = vcombine.low %v1013_v23, %v1013_v23  ;;  %v2756_v53 = vcombine.high %v1013_v23, %v1013_v23  ;;  %v975_v26 = vrot.slane %v973_v19, 7  ;;  %1083 = vst.msk [vmem:[#allocation2 + $0x28] sm:$0xf] %vm1073_vm7, %v2753_v21 }
  0x7c   : > { %1084 = vst.msk [vmem:[#allocation2 + $0x2c] sm:$0x1] %vm1075_vm8, %v2754_v22  ;;  %v980_v27 = vshrl.u32 %v929_v24, 16  ;;  %v983_v28 = vshll.u32 %v929_v24, 16 }
  0x7d   : > { %1085 = vst.msk [vmem:[#allocation2 + $0x30] sm:$0xf] %vm1073_vm7, %v2755_v25  ;;  %v978_v29 = vor.u32 %v976_v20, %v975_v26 }
  0x7e   : > { %1086 = vst.msk [vmem:[#allocation2 + $0x34] sm:$0x1] %vm1075_vm8, %v2756_v53  ;;  %v982_v30 = vrot.slane %v980_v27, 7 }
  0x7f   : > { %v1003_v31 = vsel %vm3449_vm9, 0, %v978_v29 }
  0x80   : > { %v1014_v32 = vsel %vm3455_vm10, %v1003_v31, 0  ;;  %v985_v33 = vor.u32 %v983_v28, %v982_v30 }
  0x81   : > { %v2757_v34 = vcombine.low %v1014_v32, %v1014_v32  ;;  %v2758_v35 = vcombine.high %v1014_v32, %v1014_v32 }
  0x82   : > { %v1004_v36 = vsel %vm3449_vm9, 0, %v985_v33 }
  0x83   : > { %1087 = vst.msk [vmem:[#allocation2 + $0x38] sm:$0xf] %vm1073_vm7, %v2757_v34  ;;  %v1015_v37 = vsel %vm3455_vm10, %v1004_v36, 0 }
  0x84   : > { %1088 = vst.msk [vmem:[#allocation2 + $0x3c] sm:$0x1] %vm1075_vm8, %v2758_v35  ;;  %v2759_v38 = vcombine.low %v1015_v37, %v1015_v37  ;;  %v2760_v40 = vcombine.high %v1015_v37, %v1015_v37 }
  0x86   : > { %1089 = vst.msk [vmem:[#allocation2 + $0x40] sm:$0xf] %vm1073_vm7, %v2759_v38 }
  0x87   : > { %1090 = vst.msk [vmem:[#allocation2 + $0x44] sm:$0x1] %vm1075_vm8, %v2760_v40 }
  0x88 PF: > { %p2761_p0 = scmp.lt.s32.totalorder %s3201_s29, 1 }
  0x89   : > { %v1095_v39 = vld [vmem:[%s3375_s26] sm:$0xff] (!%p2761_p0)  ;;  %v1096_v45 = vld [vmem:[%s3375_s26 + $0x8] sm:$0xff] (!%p2761_p0)  ;;  %v1097_v46 = vld [vmem:[%s3375_s26 + $0x10] sm:$0xff] (!%p2761_p0)  ;;  %vm1253_vm11 = vcmask (!%p2761_p0), 1040384   ;;  %vm1254_vm12 = vsmask.f32 (!%p2761_p0), 256 }
  0x8a   : > { %1094 = sbr.rel (%p2761_p0) target bundleno = 204 (0xcc), region = 105  ;;  %v2762_v41 = vld [vmem:[%s780_s16] ss:$0 sm:$0xff] (!%p2761_p0)  ;;  %v1098_v47 = vld [vmem:[%s3375_s26 + $0x18] sm:$0xff] (!%p2761_p0)  ;;  %v1100_v54 = vld [vmem:[%s3375_s26 + $0x28] sm:$0xff] (!%p2761_p0)  ;;  %vm1264_vm13 = vcmask (!%p2761_p0), 1044480  }
  0x8b   : > { %v2763_v42 = vld [vmem:[%s792_s21] ss:$0 sm:$0xff] (!%p2761_p0)  ;;  %v1110_v43 = vmul.f32 (!%p2761_p0), %v2762_v41, %v1095_v39  ;;  %v1111_v44 = vmul.f32 (!%p2761_p0), %v2762_v41, %v1096_v45  ;;  %v1112_v50 = vmul.f32 (!%p2761_p0), %v2762_v41, %v1097_v46  ;;  %v1113_v51 = vmul.f32 (!%p2761_p0), %v2762_v41, %v1098_v47  ;;  %v1101_v58 = vld [vmem:[%s3375_s26 + $0x30] sm:$0xff] (!%p2761_p0)  ;;  %v1102_v59 = vld [vmem:[%s3375_s26 + $0x38] sm:$0xff] (!%p2761_p0) }
  0x8c   : > { %v1099_v52 = vld [vmem:[%s3375_s26 + $0x20] sm:$0xff] (!%p2761_p0)  ;;  %v1115_v57 = vmul.f32 (!%p2761_p0), %v2762_v41, %v1100_v54  ;;  %v1116_v63 = vmul.f32 (!%p2761_p0), %v2762_v41, %v1101_v58  ;;  %v1117_v3 = vmul.f32 (!%p2761_p0), %v2762_v41, %v1102_v59  ;;  %vm1265_vm14 = vsmask.f32 (!%p2761_p0), 4352  ;;  %vm3560_vm1 = vmand (!%p2761_p0), %vm1253_vm11, %vm1254_vm12 }
  0x8d   : > { %v3524_v48 = vadd.f32 (!%p2761_p0), %v2763_v42, %v1110_v43  ;;  %v3528_v55 = vadd.f32 (!%p2761_p0), %v2763_v42, %v1111_v44  ;;  %v1114_v56 = vmul.f32 (!%p2761_p0), %v2762_v41, %v1099_v52  ;;  %v3533_v61 = vadd.f32 (!%p2761_p0), %v2763_v42, %v1112_v50  ;;  %vm3566_vm2 = vmand (!%p2761_p0), %vm1264_vm13, %vm1265_vm14 }
  0x8e   : > { %v3535_v62 = vadd.f32 (!%p2761_p0), %v2763_v42, %v1113_v51  ;;  %v3540_v2 = vadd.f32 (!%p2761_p0), %v2763_v42, %v1115_v57  ;;  %v3544_v6 = vadd.f32 (!%p2761_p0), %v2763_v42, %v1116_v63  ;;  %v3548_v10 = vadd.f32 (!%p2761_p0), %v2763_v42, %v1117_v3 }
  0x8f   : > { %v1133_v60 = vsub.f32 (!%p2761_p0), 0.0, %v3524_v48  ;;  %v1134_v0 = vsub.f32 (!%p2761_p0), 0.0, %v3528_v55  ;;  %v3538_v1 = vadd.f32 (!%p2761_p0), %v2763_v42, %v1114_v56  ;;  %v1135_v5 = vsub.f32 (!%p2761_p0), 0.0, %v3533_v61 }
  0x90   : > { %v1136_v49 = vsub.f32 (!%p2761_p0), 0.0, %v3535_v62  ;;  %v1138_v9 = vsub.f32 (!%p2761_p0), 0.0, %v3540_v2  ;;  %v1139_v13 = vsub.f32 (!%p2761_p0), 0.0, %v3544_v6  ;;  %v1140_v17 = vsub.f32 (!%p2761_p0), 0.0, %v3548_v10 }
  0x91   : > { %v1141_v4 = vmul.f32 1.442695, %v1133_v60  ;;  %v1143_v7 = vmul.f32 1.442695, %v1134_v0  ;;  %v1137_v8 = vsub.f32 0.0, %v3538_v1  ;;  %vm1332_vm15 = vcmask 257024  }
  0x92   : > { %v1145_v11 = vmul.f32 1.442695, %v1135_v5  ;;  %v1147_v12 = vmul.f32 1.442695, %v1136_v49  ;;  %v1151_v15 = vmul.f32 1.442695, %v1138_v9 }
  0x93   : > { %3089 = vpow2.f32 %v1141_v4  ;;  %v1149_v14 = vmul.f32 1.442695, %v1137_v8  ;;  %v1153_v16 = vmul.f32 1.442695, %v1139_v13  ;;  %v1155_v18 = vmul.f32 1.442695, %v1140_v17 }
  0x94   : > { %3091 = vpow2.f32 %v1143_v7  ;;  %vm1334_vm0 = vcmask 253952  }
  0x95   : > { %3093 = vpow2.f32 %v1145_v11 }
  0x96   : > { %3095 = vpow2.f32 %v1147_v12 }
  0x97   : > { %3097 = vpow2.f32 %v1149_v14 }
  0x98   : > { %3099 = vpow2.f32 %v1151_v15 }
  0x99   : > { %3101 = vpow2.f32 %v1153_v16 }
  0x9a   : > { %3103 = vpow2.f32 %v1155_v18 }
  0x9d   : > { %v3090_v19 = vpop.eup %3089 }
  0x9e   : > { %v3092_v20 = vpop.eup %3091  ;;  %v1157_v21 = vadd.f32 1.0, %v3090_v19 }
  0x9f   : > { %v3094_v22 = vpop.eup %3093  ;;  %v1158_v23 = vadd.f32 1.0, %v3092_v20 }
  0xa0   : > { %v3096_v24 = vpop.eup %3095  ;;  %3105 = vrcp.f32 %v1157_v21  ;;  %v1159_v25 = vadd.f32 1.0, %v3094_v22 }
  0xa1   : > { %v3098_v53 = vpop.eup %3097  ;;  %3107 = vrcp.f32 %v1158_v23  ;;  %v1160_v26 = vadd.f32 1.0, %v3096_v24 }
  0xa2   : > { %v3100_v27 = vpop.eup %3099  ;;  %3109 = vrcp.f32 %v1159_v25  ;;  %v1161_v28 = vadd.f32 1.0, %v3098_v53 }
  0xa3   : > { %v3102_v29 = vpop.eup %3101  ;;  %3111 = vrcp.f32 %v1160_v26  ;;  %v1162_v30 = vadd.f32 1.0, %v3100_v27 }
  0xa4   : > { %3113 = vrcp.f32 %v1161_v28  ;;  %v1163_v31 = vadd.f32 1.0, %v3102_v29  ;;  %v3104_v32 = vpop.eup %3103 }
  0xa5   : > { %3115 = vrcp.f32 %v1162_v30  ;;  %v1164_v34 = vadd.f32 1.0, %v3104_v32 }
  0xa6   : > { %3117 = vrcp.f32 %v1163_v31 }
  0xa7   : > { %3119 = vrcp.f32 %v1164_v34 }
  0xaa   : > { %v3106_v33 = vpop.eup %3105 }
  0xab   : > { %v3108_v35 = vpop.eup %3107  ;;  %v1173_v36 = vmul.f32 %v3106_v33, %v3524_v48 }
  0xac   : > { %v3110_v37 = vpop.eup %3109  ;;  %v1174_v38 = vmul.f32 %v3108_v35, %v3528_v55 }
  0xad   : > { %v3112_v40 = vpop.eup %3111  ;;  %v1181_v39 = vpack.c.bf16 %v1173_v36, %v1173_v36  ;;  %v1175_v41 = vmul.f32 %v3110_v37, %v3533_v61 }
  0xae   : > { %v3114_v42 = vpop.eup %3113  ;;  %v1182_v43 = vpack.c.bf16 %v1174_v38, %v1174_v38  ;;  %v1176_v45 = vmul.f32 %v3112_v40, %v3535_v62 }
  0xaf   : > { %v3116_v44 = vpop.eup %3115  ;;  %v1190_v46 = vshrl.u32 %v1181_v39, 16  ;;  %v1193_v47 = vshll.u32 %v1181_v39, 16  ;;  %v1183_v48 = vpack.c.bf16 %v1175_v41, %v1175_v41  ;;  %v1177_v50 = vmul.f32 %v3114_v42, %v3538_v1 }
  0xb0   : > { %v1197_v51 = vshrl.u32 %v1182_v43, 16  ;;  %v1200_v52 = vshll.u32 %v1182_v43, 16  ;;  %v1184_v54 = vpack.c.bf16 %v1176_v45, %v1176_v45  ;;  %v1178_v55 = vmul.f32 %v3116_v44, %v3540_v2  ;;  %v3118_v60 = vpop.eup %3117 }
  0xb1   : > { %v1192_v56 = vrot.slane %v1190_v46, 7  ;;  %v1204_v57 = vshrl.u32 %v1183_v48, 16  ;;  %v1207_v58 = vshll.u32 %v1183_v48, 16  ;;  %v1185_v59 = vpack.c.bf16 %v1177_v50, %v1177_v50  ;;  %v3120_v24 = vpop.eup %3119 }
  0xb2   : > { %v1199_v62 = vrot.slane %v1197_v51, 7  ;;  %v1211_v63 = vshrl.u32 %v1184_v54, 16  ;;  %v1214_v0 = vshll.u32 %v1184_v54, 16  ;;  %v1186_v1 = vpack.c.bf16 %v1178_v55, %v1178_v55 }
  0xb3   : > { %v1195_v3 = vor.u32 %v1193_v47, %v1192_v56  ;;  %v1206_v4 = vrot.slane %v1204_v57, 7  ;;  %v1218_v5 = vshrl.u32 %v1185_v59, 16  ;;  %v1221_v49 = vshll.u32 %v1185_v59, 16 }
  0xb4   : > { %v1202_v7 = vor.u32 %v1200_v52, %v1199_v62  ;;  %v1213_v8 = vrot.slane %v1211_v63, 7  ;;  %v1225_v9 = vshrl.u32 %v1186_v1, 16  ;;  %v1228_v11 = vshll.u32 %v1186_v1, 16 }
  0xb5   : > { %v1256_v12 = vsel %vm3560_vm1, 0, %v1195_v3  ;;  %v1209_v13 = vor.u32 %v1207_v58, %v1206_v4  ;;  %v1220_v14 = vrot.slane %v1218_v5, 7  ;;  %v1179_v15 = vmul.f32 %v3118_v60, %v3544_v6 }
  0xb6   : > { %v1267_v16 = vsel %vm3566_vm2, %v1256_v12, 0  ;;  %v1257_v17 = vsel %vm3560_vm1, 0, %v1202_v7  ;;  %v1216_v18 = vor.u32 %v1214_v0, %v1213_v8  ;;  %v1227_v19 = vrot.slane %v1225_v9, 7 }
  0xb7   : > { %v2764_v20 = vcombine.low %v1267_v16, %v1267_v16  ;;  %v2765_v21 = vcombine.high %v1267_v16, %v1267_v16  ;;  %v1268_v22 = vsel %vm3566_vm2, %v1257_v17, 0  ;;  %v1258_v23 = vsel %vm3560_vm1, 0, %v1209_v13 }
  0xb8   : > { %v2766_v25 = vcombine.low %v1268_v22, %v1268_v22  ;;  %v2767_v53 = vcombine.high %v1268_v22, %v1268_v22  ;;  %v1269_v6 = vsel %vm3566_vm2, %v1258_v23, 0  ;;  %v1259_v26 = vsel %vm3560_vm1, 0, %v1216_v18 }
  0xb9   : > { %1333 = vst.msk [vmem:[#allocation2 + $0x8] sm:$0xf] %vm1332_vm15, %v2764_v20  ;;  %v2768_v27 = vcombine.low %v1269_v6, %v1269_v6  ;;  %v2769_v28 = vcombine.high %v1269_v6, %v1269_v6  ;;  %v1270_v29 = vsel %vm3566_vm2, %v1259_v26, 0  ;;  %v1223_v30 = vor.u32 %v1221_v49, %v1220_v14 }
  0xba   : > { %1335 = vst.msk [vmem:[#allocation2 + $0xc] sm:$0x1] %vm1334_vm0, %v2765_v21  ;;  %1337 = vst.msk [vmem:[#allocation2 + $0x14] sm:$0x1] %vm1334_vm0, %v2767_v53  ;;  %v2770_v31 = vcombine.low %v1270_v29, %v1270_v29  ;;  %v2771_v32 = vcombine.high %v1270_v29, %v1270_v29  ;;  %v1230_v33 = vor.u32 %v1228_v11, %v1227_v19 }
  0xbb   : > { %1336 = vst.msk [vmem:[#allocation2 + $0x10] sm:$0xf] %vm1332_vm15, %v2766_v25  ;;  %v1187_v34 = vpack.c.bf16 %v1179_v15, %v1179_v15  ;;  %1338 = vst.msk [vmem:[#allocation2 + $0x18] sm:$0xf] %vm1332_vm15, %v2768_v27  ;;  %v1260_v35 = vsel %vm3560_vm1, 0, %v1223_v30  ;;  %v1180_v36 = vmul.f32 %v3120_v24, %v3548_v10 }
  0xbc   : > { %1339 = vst.msk [vmem:[#allocation2 + $0x1c] sm:$0x1] %vm1334_vm0, %v2769_v28  ;;  %1341 = vst.msk [vmem:[#allocation2 + $0x24] sm:$0x1] %vm1334_vm0, %v2771_v32  ;;  %v1271_v37 = vsel %vm3566_vm2, %v1260_v35, 0  ;;  %v1261_v38 = vsel %vm3560_vm1, 0, %v1230_v33 }
  0xbd   : > { %1340 = vst.msk [vmem:[#allocation2 + $0x20] sm:$0xf] %vm1332_vm15, %v2770_v31  ;;  %v1232_v40 = vshrl.u32 %v1187_v34, 16  ;;  %v1235_v39 = vshll.u32 %v1187_v34, 16  ;;  %v2772_v41 = vcombine.low %v1271_v37, %v1271_v37  ;;  %v2773_v42 = vcombine.high %v1271_v37, %v1271_v37 }
  0xbe   : > { %v1272_v43 = vsel %vm3566_vm2, %v1261_v38, 0  ;;  %v1188_v45 = vpack.c.bf16 %v1180_v36, %v1180_v36 }
  0xbf   : > { %v2774_v44 = vcombine.low %v1272_v43, %v1272_v43  ;;  %v2775_v10 = vcombine.high %v1272_v43, %v1272_v43  ;;  %v1234_v46 = vrot.slane %v1232_v40, 7  ;;  %1342 = vst.msk [vmem:[#allocation2 + $0x28] sm:$0xf] %vm1332_vm15, %v2772_v41 }
  0xc0   : > { %1343 = vst.msk [vmem:[#allocation2 + $0x2c] sm:$0x1] %vm1334_vm0, %v2773_v42  ;;  %v1239_v47 = vshrl.u32 %v1188_v45, 16  ;;  %v1242_v48 = vshll.u32 %v1188_v45, 16 }
  0xc1   : > { %1344 = vst.msk [vmem:[#allocation2 + $0x30] sm:$0xf] %vm1332_vm15, %v2774_v44  ;;  %v1237_v50 = vor.u32 %v1235_v39, %v1234_v46 }
  0xc2   : > { %1345 = vst.msk [vmem:[#allocation2 + $0x34] sm:$0x1] %vm1334_vm0, %v2775_v10  ;;  %v1241_v51 = vrot.slane %v1239_v47, 7 }
  0xc3   : > { %v1262_v52 = vsel %vm3560_vm1, 0, %v1237_v50 }
  0xc4   : > { %v1273_v54 = vsel %vm3566_vm2, %v1262_v52, 0  ;;  %v1244_v55 = vor.u32 %v1242_v48, %v1241_v51 }
  0xc5   : > { %v2776_v56 = vcombine.low %v1273_v54, %v1273_v54  ;;  %v2777_v57 = vcombine.high %v1273_v54, %v1273_v54 }
  0xc6   : > { %v1263_v58 = vsel %vm3560_vm1, 0, %v1244_v55 }
  0xc7   : > { %1346 = vst.msk [vmem:[#allocation2 + $0x38] sm:$0xf] %vm1332_vm15, %v2776_v56  ;;  %v1274_v59 = vsel %vm3566_vm2, %v1263_v58, 0 }
  0xc8   : > { %1347 = vst.msk [vmem:[#allocation2 + $0x3c] sm:$0x1] %vm1334_vm0, %v2777_v57  ;;  %v2778_v60 = vcombine.low %v1274_v59, %v1274_v59  ;;  %v2779_v62 = vcombine.high %v1274_v59, %v1274_v59 }
  0xca   : > { %1348 = vst.msk [vmem:[#allocation2 + $0x40] sm:$0xf] %vm1332_vm15, %v2778_v60 }
  0xcb   : > { %1349 = vst.msk [vmem:[#allocation2 + $0x44] sm:$0x1] %vm1334_vm0, %v2779_v62 }
  0xcc PF: > { %v3620_v63 = vld [vmem:[#allocation2 + $0x8] sm:$0xf]  ;;  %v1353_v0 = vld [vmem:[#allocation2 + $0xc] sm:$0x1]  ;;  %v3623_v1 = vld [vmem:[#allocation2] sm:$0xf] }
  0xcd   : > { %v2781_v61 = vcombine.low %v3620_v63, %v1353_v0  ;;  %v1351_v3 = vld [vmem:[#allocation2 + $0x4] sm:$0x1]  ;;  %v3625_v4 = vld [vmem:[#allocation2 + $0x10] sm:$0xf]  ;;  %v1355_v5 = vld [vmem:[#allocation2 + $0x14] sm:$0x1] }
  0xce   : > { %v2780_v2 = vcombine.low %v3623_v1, %v1351_v3  ;;  %v3628_v49 = vld [vmem:[#allocation2 + $0x18] sm:$0xf]  ;;  %v1357_v7 = vld [vmem:[#allocation2 + $0x1c] sm:$0x1]  ;;  %v2782_v9 = vcombine.low %v3625_v4, %v1355_v5  ;;  %v3634_v12 = vld [vmem:[#allocation2 + $0x10] sm:$0xf] }
  0xcf   : > { %v1479_v8 = vrot.slane %v2781_v61, 1  ;;  %v3632_v11 = vcombine.low %v3628_v49, %v1357_v7  ;;  %v1718_v13 = vld [vmem:[#allocation2 + $0x14] sm:$0x1]  ;;  %v1416_v17 = vshll.u32 %v2781_v61, 16  ;;  %v3636_v18 = vld [vmem:[#allocation2 + $0x8] sm:$0xf] }
  0xd0   : > { %v1478_v14 = vrot.slane %v2780_v2, 1  ;;  %v1407_v15 = vshrl.u32 %v2780_v2, 16  ;;  %v1409_v16 = vshll.u32 %v2780_v2, 16  ;;  %s3221_s16 = smov 64   ;;  %v1421_v19 = vshrl.u32 %v2782_v9, 16  ;;  %s3222_s21 = smov 32  }
  0xd1   : > { %1488 = vrot.lane.b32.xlu1 %v1479_v8, %s3221_s16  ;;  %v1423_v20 = vshll.u32 %v2782_v9, 16  ;;  %v1430_v21 = vshll.u32 %v3632_v11, 16  ;;  %v1716_v22 = vld [vmem:[#allocation2 + $0xc] sm:$0x1]  ;;  %v1428_v24 = vshrl.u32 %v3632_v11, 16  ;;  %v1414_v25 = vshrl.u32 %v2781_v61, 16 }
  0xd2   : > { %1486 = vrot.lane.b32.xlu0 %v1478_v14, %s3221_s16  ;;  %v1411_v23 = vrot.slane %v1409_v16, 1  ;;  %v1418_v53 = vrot.slane %v1416_v17, 1  ;;  %v3643_v27 = vcombine.low %v3634_v12, %v1718_v13  ;;  %v3646_v28 = vcombine.low %v3636_v18, %v1716_v22  ;;  %v3648_v29 = vld [vmem:[#allocation2 + $0x20] sm:$0xf]  ;;  %v1722_v31 = vld [vmem:[#allocation2 + $0x24] sm:$0x1] }
  0xd3   : > { %v1425_v6 = vrot.slane %v1423_v20, 1  ;;  %v1432_v26 = vrot.slane %v1430_v21, 1  ;;  %v3650_v32 = vld [vmem:[#allocation2 + $0x18] sm:$0xf]  ;;  %v1720_v33 = vld [vmem:[#allocation2 + $0x1c] sm:$0x1]  ;;  %v3657_v40 = vcombine.low %v3648_v29, %v1722_v31 }
  0xd4   : > { %v1412_v30 = vor.u32 %v1411_v23, %v1407_v15  ;;  %v1419_v35 = vor.u32 %v1418_v53, %v1414_v25  ;;  %v1774_v36 = vshll.u32 %v3646_v28, 16  ;;  %v1781_v38 = vshll.u32 %v3643_v27, 16  ;;  %v3145_v41 = vld [vmem:[%s3395_s10] sm:$0xff]   ;;  %v3146_v42 = vld [vmem:[%s3395_s10 + $0x8] sm:$0xff]   ;;  %v3147_v51 = vld [vmem:[%s3395_s10 + $0x10] sm:$0xff]   ;;  %p2870_p1 = scmp.ne.s32.totalorder %s3201_s29, 1 }
  0xd5   : > { %v1426_v34 = vor.u32 %v1425_v6, %v1421_v19  ;;  %v1433_v37 = vor.u32 %v1432_v26, %v1428_v24  ;;  %v3660_v39 = vcombine.low %v3650_v32, %v1720_v33  ;;  %2923 = vmatprep.subr.bf16.mxu0 %v3145_v41  ;;  %v1480_v43 = vrot.slane %v2782_v9, 1  ;;  %v3672_v52 = vld [vmem:[#allocation2 + $0x28] sm:$0xf]  ;;  %v1361_v54 = vld [vmem:[#allocation2 + $0x2c] sm:$0x1]  ;;  %v3150_v59 = vld [vmem:[%s3395_s10 + $0x30] sm:$0xff]  }
  0xd6   : > { %1462 = vrot.lane.b32.xlu0 %v1412_v30, %s3222_s21  ;;  %v1772_v45 = vshrl.u32 %v3646_v28, 16  ;;  %v1776_v44 = vrot.slane %v1774_v36, 1  ;;  %2924 = vmatpush3.bf16.msra.mxu0 %v3145_v41  ;;  %v1481_v46 = vrot.slane %v3632_v11, 1  ;;  %v1779_v47 = vshrl.u32 %v3643_v27, 16  ;;  %v3676_v58 = vld [vmem:[#allocation2 + $0x20] sm:$0xf] }
  0xd7   : > { %1466 = vrot.lane.b32.xlu1 %v1426_v34, %s3222_s21  ;;  %v1788_v10 = vshll.u32 %v3660_v39, 16  ;;  %v1783_v48 = vrot.slane %v1781_v38, 1  ;;  %v1795_v50 = vshll.u32 %v3657_v40, 16  ;;  %2925 = vmatprep.subr.bf16.mxu0 %v3146_v42  ;;  %v1786_v56 = vshrl.u32 %v3660_v39, 16  ;;  %v1359_v61 = vld [vmem:[#allocation2 + $0x24] sm:$0x1] }
  0xd8   : > { %v1777_v55 = vor.u32 %v1776_v44, %v1772_v45  ;;  %v1793_v62 = vshrl.u32 %v3657_v40, 16  ;;  %v3148_v3 = vld [vmem:[%s3395_s10 + $0x18] sm:$0xff]   ;;  %2943 = vmatprep.subr.bf16.mxu1 %v3150_v59  ;;  %v3684_v5 = vcombine.low %v3672_v52, %v1361_v54  ;;  %v3687_v7 = vcombine.low %v3676_v58, %v1359_v61  ;;  %v3690_v9 = vld [vmem:[#allocation2 + $0x30] sm:$0xf]  ;;  %v1363_v11 = vld [vmem:[#allocation2 + $0x34] sm:$0x1] }
  0xd9   : > { %v1790_v57 = vrot.slane %v1788_v10, 1  ;;  %v1784_v60 = vor.u32 %v1783_v48, %v1779_v47  ;;  %v1797_v0 = vrot.slane %v1795_v50, 1  ;;  %2944 = vmatpush3.bf16.msra.mxu1 %v3150_v59  ;;  %v3149_v13 = vld [vmem:[%s3395_s10 + $0x20] sm:$0xff]   ;;  %v3693_v14 = vld [vmem:[#allocation2 + $0x38] sm:$0xf]  ;;  %v1843_v17 = vrot.slane %v3646_v28, 1 }
  0xda   : > { %1464 = vrot.lane.b32.xlu0 %v1419_v35, %s3222_s21  ;;  %2926 = vmatpush3.bf16.msra.mxu0 %v3146_v42  ;;  %v1365_v15 = vld [vmem:[#allocation2 + $0x3c] sm:$0x1]  ;;  %v1444_v19 = vshll.u32 %v3684_v5, 16  ;;  %v1437_v20 = vshll.u32 %v3687_v7, 16  ;;  %v3701_v21 = vcombine.low %v3690_v9, %v1363_v11  ;;  %v1844_v22 = vrot.slane %v3643_v27, 1  ;;  %v3153_v26 = vld [vmem:[%s3395_s10 + $0x40] sm:$0xff]  }
  0xdb   : > { %1468 = vrot.lane.b32.xlu1 %v1433_v37, %s3222_s21  ;;  %2927 = vmatprep.subr.bf16.mxu0 %v3147_v51  ;;  %v1791_v2 = vor.u32 %v1790_v57, %v1786_v56  ;;  %v1798_v8 = vor.u32 %v1797_v0, %v1793_v62  ;;  %v3152_v16 = vld [vmem:[%s3395_s10 + $0x38] sm:$0xff]   ;;  %v3706_v23 = vcombine.low %v3693_v14, %v1365_v15  ;;  %v3151_v24 = vld [vmem:[%s3395_s10 + $0x28] sm:$0xff]   ;;  %v1846_v25 = vrot.slane %v3657_v40, 1  ;;  %v3713_v28 = vld [vmem:[#allocation2 + $0x30] sm:$0xf] }
  0xdc   : > { %v1845_v53 = vrot.slane %v3660_v39, 1  ;;  %v1442_v6 = vshrl.u32 %v3684_v5, 16  ;;  %2945 = vmatprep.subr.bf16.mxu1 %v3152_v16  ;;  %v1726_v30 = vld [vmem:[#allocation2 + $0x34] sm:$0x1]  ;;  %v3715_v31 = vld [vmem:[#allocation2 + $0x28] sm:$0xf] }
  0xdd   : > { %v1724_v27 = vld [vmem:[#allocation2 + $0x2c] sm:$0x1]  ;;  %2946 = vmatpush3.bf16.msra.mxu1 %v3152_v16  ;;  %v1446_v33 = vrot.slane %v1444_v19, 1  ;;  %v1435_v34 = vshrl.u32 %v3687_v7, 16  ;;  %v1439_v35 = vrot.slane %v1437_v20, 1  ;;  %v1451_v36 = vshll.u32 %v3701_v21, 16 }
  0xde   : > { %1490 = vrot.lane.b32.xlu0 %v1480_v43, %s3221_s16  ;;  %2928 = vmatpush3.bf16.msra.mxu0 %v3147_v51  ;;  %v1458_v37 = vshll.u32 %v3706_v23, 16  ;;  %v3722_v38 = vld [vmem:[#allocation2 + $0x38] sm:$0xf]  ;;  %v1449_v39 = vshrl.u32 %v3701_v21, 16  ;;  %v3727_v41 = vcombine.low %v3715_v31, %v1724_v27  ;;  %v1728_v42 = vld [vmem:[#allocation2 + $0x3c] sm:$0x1]  ;;  %v3731_v44 = vcombine.low %v3713_v28, %v1726_v30 }
  0xdf   : > { %1492 = vrot.lane.b32.xlu1 %v1481_v46, %s3221_s16  ;;  %2929 = vmatprep.subr.bf16.mxu0 %v3148_v3  ;;  %v3154_v40 = vld [vmem:[%s3395_s10 + $0x48] sm:$0xff]   ;;  %v1440_v43 = vor.u32 %v1439_v35, %v1435_v34  ;;  %v1453_v45 = vrot.slane %v1451_v36, 1  ;;  %v3155_v10 = vld [vmem:[%s3395_s10 + $0x50] sm:$0xff]   ;;  %v1447_v46 = vor.u32 %v1446_v33, %v1442_v6  ;;  %v1456_v47 = vshrl.u32 %v3706_v23, 16  ;;  %v3156_v61 = vld [vmem:[%s3395_s10 + $0x58] sm:$0xff]  }
  0xe0   : > { %2947 = vmatprep.subr.bf16.mxu1 %v3153_v26  ;;  %v1460_v48 = vrot.slane %v1458_v37, 1  ;;  %v1802_v50 = vshll.u32 %v3727_v41, 16  ;;  %v3738_v51 = vcombine.low %v3722_v38, %v1728_v42  ;;  %v1483_v54 = vrot.slane %v3684_v5, 1  ;;  %v3746_v62 = vld [vmem:[#allocation2 + $0x40] sm:$0xf] }
  0xe1   : > { %2948 = vmatpush3.bf16.msra.mxu1 %v3153_v26  ;;  %v1454_v56 = vor.u32 %v1453_v45, %v1449_v39  ;;  %v1484_v57 = vrot.slane %v3701_v21, 1  ;;  %v1809_v59 = vshll.u32 %v3731_v44, 16  ;;  %v1730_v0 = vld [vmem:[#allocation2 + $0x44] sm:$0x1]  ;;  %v1807_v11 = vshrl.u32 %v3731_v44, 16 }
  0xe2   : > { %1827 = vrot.lane.b32.xlu0 %v1777_v55, %s3222_s21  ;;  %2930 = vmatpush3.bf16.msra.mxu0 %v3148_v3  ;;  %v1482_v55 = vrot.slane %v3687_v7, 1  ;;  %v1461_v3 = vor.u32 %v1460_v48, %v1456_v47  ;;  %v1816_v5 = vshll.u32 %v3738_v51, 16  ;;  %v3754_v7 = vcombine.low %v3746_v62, %v1730_v0  ;;  %v3777_v33 = vld [vmem:[#allocation2 + $0x30] sm:$0xf]  ;;  %v2087_v34 = vld [vmem:[#allocation2 + $0x34] sm:$0x1] }
  0xe3   : > { %1829 = vrot.lane.b32.xlu1 %v1784_v60, %s3222_s21  ;;  %2931 = vmatprep.subr.bf16.mxu0 %v3149_v13  ;;  %v1800_v60 = vshrl.u32 %v3727_v41, 16  ;;  %v3779_v35 = vld [vmem:[#allocation2 + $0x38] sm:$0xf]  ;;  %v2089_v36 = vld [vmem:[#allocation2 + $0x3c] sm:$0x1]  ;;  %v1847_v37 = vrot.slane %v3727_v41, 1  ;;  %v3785_v39 = vcombine.low %v3777_v33, %v2087_v34 }
  0xe4   : > { %2949 = vmatprep.subr.bf16.mxu1 %v3154_v40  ;;  %v1823_v15 = vshll.u32 %v3754_v7, 16  ;;  %v1818_v19 = vrot.slane %v1816_v5, 1  ;;  %v1821_v21 = vshrl.u32 %v3754_v7, 16  ;;  %v3788_v42 = vld [vmem:[%s3395_s10 + $0x60] sm:$0xff]   ;;  %v3798_v41 = vld [vmem:[#allocation2 + $0x28] sm:$0xf] }
  0xe5   : > { %2950 = vmatpush3.bf16.msra.mxu1 %v3154_v40  ;;  %v2083_v47 = vld [vmem:[#allocation2 + $0x24] sm:$0x1]  ;;  %v2085_v48 = vld [vmem:[#allocation2 + $0x2c] sm:$0x1]  ;;  %vm1502_vm3 = vcmask 261120   ;;  %vm1527_vm4 = vcmask 523264  }
  0xe6   : > { %1831 = vrot.lane.b32.xlu0 %v1791_v2, %s3222_s21  ;;  %2932 = vmatpush3.bf16.msra.mxu0 %v3149_v13  ;;  %v1804_v2 = vrot.slane %v1802_v50, 1  ;;  %v1811_v13 = vrot.slane %v1809_v59, 1  ;;  %v1850_v50 = vrot.slane %v3754_v7, 1  ;;  %v2093_v5 = vld [vmem:[#allocation2 + $0x4c] sm:$0x1]  ;;  %vm1620_vm5 = vcmask 785408  }
  0xe7   : > { %1833 = vrot.lane.b32.xlu1 %v1798_v8, %s3222_s21  ;;  %2933 = vmatprep.subr.bf16.mxu0 %v3151_v24  ;;  %v1485_v8 = vrot.slane %v3706_v23, 1  ;;  %v2079_v23 = vld [vmem:[#allocation2 + $0x14] sm:$0x1]  ;;  %vm2499_vm6 = vcmask (!%p2870_p1), 257024  }
  0xe8   : > { %2951 = vmatprep.subr.bf16.mxu1 %v3155_v10  ;;  %v1805_v16 = vor.u32 %v1804_v2, %v1800_v60  ;;  %v1812_v20 = vor.u32 %v1811_v13, %v1807_v11  ;;  %v3814_v2 = vld [vmem:[#allocation2 + $0x48] sm:$0xf] }
  0xe9   : > { %2952 = vmatpush3.bf16.msra.mxu1 %v3155_v10  ;;  %v3794_v10 = vcombine.low %v3779_v35, %v2089_v36 }
  0xea   : > { %1851 = vrot.lane.b32.xlu0 %v1843_v17, %s3221_s16  ;;  %2934 = vmatpush3.bf16.msra.mxu0 %v3151_v24  ;;  %v1814_v17 = vshrl.u32 %v3738_v51, 16  ;;  %v3765_v24 = vld [vmem:[#allocation2 + $0x10] sm:$0xf] }
  0xeb   : > { %1853 = vrot.lane.b32.xlu1 %v1844_v22, %s3221_s16  ;;  %2953 = vmatprep.subr.bf16.mxu1 %v3156_v61  ;;  %v1825_v22 = vrot.slane %v1823_v15, 1  ;;  %v3771_v26 = vcombine.low %v3765_v24, %v2079_v23  ;;  %v2172_v0 = vshll.u32 %v3794_v10, 16  ;;  %v2170_v7 = vshrl.u32 %v3794_v10, 16 }
  0xec   : > { %v1819_v6 = vor.u32 %v1818_v19, %v1814_v17  ;;  %2963 = vmatprep.subr.bf16.mxu0 %v3788_v42 }
  0xed   : > { %2954 = vmatpush3.bf16.msra.mxu1 %v3156_v61  ;;  %v1826_v30 = vor.u32 %v1825_v22, %v1821_v21  ;;  %v2137_v40 = vshll.u32 %v3771_v26, 16  ;;  %v2839_v61 = vcombine.low %v3798_v41, %v2085_v48  ;;  %v2174_v19 = vrot.slane %v2172_v0, 1 }
  0xee   : > { %1855 = vrot.lane.b32.xlu0 %v1845_v53, %s3221_s16  ;;  %v2081_v53 = vld [vmem:[#allocation2 + $0x1c] sm:$0x1]  ;;  %2983 = vmatprep.subr.bf16.mxu1 %v3788_v42  ;;  %v2843_v21 = vcombine.low %v3814_v2, %v2093_v5 }
  0xef   : > { %1857 = vrot.lane.b32.xlu1 %v1846_v25, %s3221_s16  ;;  %v3767_v25 = vld [vmem:[#allocation2 + $0x18] sm:$0xf]  ;;  %v2156_v34 = vshrl.u32 %v2839_v61, 16 }
  0xf0   : > { %v3775_v27 = vcombine.low %v3767_v25, %v2081_v53  ;;  %v2184_v48 = vshrl.u32 %v2843_v21, 16 }
  0xf2   : > { %1470 = vrot.lane.b32.xlu0 %v1440_v43, %s3222_s21  ;;  %v1848_v43 = vrot.slane %v3731_v44, 1  ;;  %v2144_v45 = vshll.u32 %v3775_v27, 16  ;;  %v2142_v44 = vshrl.u32 %v3775_v27, 16 }
  0xf3   : > { %1472 = vrot.lane.b32.xlu1 %v1447_v46, %s3222_s21  ;;  %v3796_v46 = vld [vmem:[#allocation2 + $0x20] sm:$0xf] }
  0xf4   : > { %v2838_v59 = vcombine.low %v3796_v46, %v2083_v47  ;;  %v2146_v60 = vrot.slane %v2144_v45, 1 }
  0xf6   : > { %1474 = vrot.lane.b32.xlu0 %v1454_v56, %s3222_s21  ;;  %v2139_v56 = vrot.slane %v2137_v40, 1  ;;  %v2151_v15 = vshll.u32 %v2838_v59, 16  ;;  %v2147_v17 = vor.u32 %v2146_v60, %v2142_v44  ;;  %v2149_v23 = vshrl.u32 %v2838_v59, 16 }
  0xf7   : > { %1476 = vrot.lane.b32.xlu1 %v1461_v3, %s3222_s21  ;;  %v3812_v3 = vld [vmem:[#allocation2 + $0x40] sm:$0xf]  ;;  %v2211_v60 = vrot.slane %v3794_v10, 1  ;;  %v2208_v0 = vrot.slane %v2838_v59, 1 }
  0xf8   : > { %v2153_v53 = vrot.slane %v2151_v15, 1 }
  0xfa   : > { %1494 = vrot.lane.b32.xlu0 %v1482_v55, %s3221_s16  ;;  %v2135_v55 = vshrl.u32 %v3771_v26, 16  ;;  %v2154_v40 = vor.u32 %v2153_v53, %v2149_v23  ;;  %v3158_v23 = vld [vmem:[%s3395_s10 + $0x68] sm:$0xff]  }
  0xfb   : > { %1496 = vrot.lane.b32.xlu1 %v1483_v54, %s3221_s16  ;;  %v1849_v54 = vrot.slane %v3738_v51, 1  ;;  %v2091_v51 = vld [vmem:[#allocation2 + $0x44] sm:$0x1] }
  0xfc   : > { %v2140_v11 = vor.u32 %v2139_v56, %v2135_v55  ;;  %v2206_v55 = vrot.slane %v3771_v26, 1  ;;  %v2207_v56 = vrot.slane %v3775_v27, 1  ;;  %v2213_v27 = vrot.slane %v2843_v21, 1 }
  0xfe   : > { %1498 = vrot.lane.b32.xlu0 %v1484_v57, %s3221_s16  ;;  %v2165_v57 = vshll.u32 %v3785_v39, 16 }
  0xff   : > { %1500 = vrot.lane.b32.xlu1 %v1485_v8, %s3221_s16  ;;  %v2163_v8 = vshrl.u32 %v3785_v39, 16 }
 0x100   : > { %v2167_v13 = vrot.slane %v2165_v57, 1  ;;  %v2210_v57 = vrot.slane %v3785_v39, 1 }
 0x102   : > { %1835 = vrot.lane.b32.xlu0 %v1805_v16, %s3222_s21  ;;  %v2842_v16 = vcombine.low %v3812_v3, %v2091_v51  ;;  %v2168_v22 = vor.u32 %v2167_v13, %v2163_v8  ;;  %v2209_v51 = vrot.slane %v2839_v61, 1 }
 0x103   : > { %1837 = vrot.lane.b32.xlu1 %v1812_v20, %s3222_s21  ;;  %v2158_v20 = vshll.u32 %v2839_v61, 16 }
 0x104   : > { %v2212_v26 = vrot.slane %v2842_v16, 1 }
 0x105   : > { %v2160_v36 = vrot.slane %v2158_v20, 1 }
 0x106   : > { %1839 = vrot.lane.b32.xlu0 %v1819_v6, %s3222_s21  ;;  %v2179_v6 = vshll.u32 %v2842_v16, 16 }
 0x107   : > { %1841 = vrot.lane.b32.xlu1 %v1826_v30, %s3222_s21  ;;  %v2175_v30 = vor.u32 %v2174_v19, %v2170_v7  ;;  %v2161_v47 = vor.u32 %v2160_v36, %v2156_v34  ;;  %v3160_v34 = vld [vmem:[%s3395_s10 + $0x78] sm:$0xff]  }
 0x108   : > { %v2181_v45 = vrot.slane %v2179_v6, 1 }
 0x10a   : > { %1859 = vrot.lane.b32.xlu0 %v1847_v37, %s3221_s16  ;;  %v2186_v37 = vshll.u32 %v2843_v21, 16 }
 0x10b   : > { %1861 = vrot.lane.b32.xlu1 %v1848_v43, %s3221_s16  ;;  %v2177_v43 = vshrl.u32 %v2842_v16, 16 }
 0x10e   : > { %1863 = vrot.lane.b32.xlu0 %v1849_v54, %s3221_s16  ;;  %v2182_v54 = vor.u32 %v2181_v45, %v2177_v43 }
 0x10f   : > { %1865 = vrot.lane.b32.xlu1 %v1850_v50, %s3221_s16  ;;  %v2188_v50 = vrot.slane %v2186_v37, 1 }
 0x111   : > { %v2189_v44 = vor.u32 %v2188_v50, %v2184_v48  ;;  %v3161_v50 = vld [vmem:[%s3395_s10 + $0x80] sm:$0xff]  }
 0x112   : > { %2190 = vrot.lane.b32.xlu0 %v2140_v11, %s3222_s21 }
 0x113   : > { %2192 = vrot.lane.b32.xlu1 %v2147_v17, %s3222_s21 }
 0x116   : > { %2198 = vrot.lane.b32.xlu0 %v2168_v22, %s3222_s21 }
 0x117   : > { %2200 = vrot.lane.b32.xlu1 %v2175_v30, %s3222_s21 }
 0x11a   : > { %2194 = vrot.lane.b32.xlu0 %v2154_v40, %s3222_s21 }
 0x11b   : > { %2196 = vrot.lane.b32.xlu1 %v2161_v47, %s3222_s21 }
 0x11e   : > { %2202 = vrot.lane.b32.xlu0 %v2182_v54, %s3222_s21 }
 0x11f   : > { %2204 = vrot.lane.b32.xlu1 %v2189_v44, %s3222_s21 }
 0x122   : > { %2214 = vrot.lane.b32.xlu0 %v2206_v55, %s3221_s16 }
 0x123   : > { %2216 = vrot.lane.b32.xlu1 %v2207_v56, %s3221_s16 }
 0x126   : > { %2222 = vrot.lane.b32.xlu0 %v2210_v57, %s3221_s16 }
 0x127   : > { %2224 = vrot.lane.b32.xlu1 %v2211_v60, %s3221_s16  ;;  %v3162_v60 = vld [vmem:[%s3395_s10 + $0x88] sm:$0xff]  }
 0x12a   : > { %2218 = vrot.lane.b32.xlu0 %v2208_v0, %s3221_s16 }
 0x12b   : > { %2220 = vrot.lane.b32.xlu1 %v2209_v51, %s3221_s16 }
 0x12e   : > { %2226 = vrot.lane.b32.xlu0 %v2212_v26, %s3221_s16 }
 0x12f   : > { %2228 = vrot.lane.b32.xlu1 %v2213_v27, %s3221_s16 }
 0x143   : > { %v1489_v39 = vpop.permute.xlu1 %1488 }
 0x144   : > { %v1487_v5 = vpop.permute.xlu0 %1486 }
 0x148   : > { %v1463_v10 = vpop.permute.xlu0 %1462 }
 0x149   : > { %v1467_v7 = vpop.permute.xlu1 %1466  ;;  %v1505_v59 = vsel %vm1502_vm3, %v3623_v1, %v1463_v10 }
 0x14a   : > { %v1529_v13 = vsel %vm1527_vm4, %v1505_v59, %v1487_v5  ;;  %v1511_v17 = vsel %vm1502_vm3, %v3625_v4, %v1467_v7  ;;  %v3159_v4 = vld [vmem:[%s3395_s10 + $0x70] sm:$0xff]  }
 0x14c   : > { %v1465_v61 = vpop.permute.xlu0 %1464 }
 0x14d   : > { %v1469_v8 = vpop.permute.xlu1 %1468  ;;  %v1508_v11 = vsel %vm1502_vm3, %v3620_v63, %v1465_v61 }
 0x14e   : > { %v1531_v15 = vsel %vm1527_vm4, %v1508_v11, %v1489_v39  ;;  %v1514_v1 = vsel %vm1502_vm3, %v3628_v49, %v1469_v8 }
 0x14f   : > { %v2788_v16 = vcombine.low %v1529_v13, %v1531_v15 }
 0x150   : > { %v1491_v19 = vpop.permute.xlu0 %1490 }
 0x151   : > { %v1493_v20 = vpop.permute.xlu1 %1492  ;;  %v1533_v21 = vsel %vm1527_vm4, %v1511_v17, %v1491_v19  ;;  %2935 = vmatprep.mubr.msk.bf16.mxu0 %vm1620_vm5, %v2788_v16 }
 0x152   : > { %v1535_v63 = vsel %vm1527_vm4, %v1514_v1, %v1493_v20 }
 0x153   : > { %v2789_v22 = vcombine.low %v1533_v21, %v1535_v63 }
 0x154   : > { %v1828_v53 = vpop.permute.xlu0 %1827 }
 0x155   : > { %v1830_v6 = vpop.permute.xlu1 %1829  ;;  %2936 = vmatmul.mubr.msk.bf16.vlgmr.msra.gmra.mrb[0].mxu0 %vm1620_vm5, %v2789_v22  ;;  %v1869_v36 = vsel %vm1502_vm3, %v3636_v18, %v1828_v53 }
 0x156   : > { %2964 = vmatpush3.bf16.msra.mxu0 %v3788_v42  ;;  %v1872_v40 = vsel %vm1502_vm3, %v3634_v12, %v1830_v6 }
 0x157   : > { %2965 = vmatprep.subr.bf16.mxu0 %v3158_v23 }
 0x158   : > { %v1832_v49 = vpop.permute.xlu0 %1831 }
 0x159   : > { %v1834_v30 = vpop.permute.xlu1 %1833  ;;  %v1875_v54 = vsel %vm1502_vm3, %v3650_v32, %v1832_v49 }
 0x15a   : > { %2966 = vmatpush3.bf16.msra.mxu0 %v3158_v23  ;;  %v1878_v18 = vsel %vm1502_vm3, %v3648_v29, %v1834_v30 }
 0x15b   : > { %2967 = vmatprep.subr.bf16.mxu0 %v3159_v4 }
 0x15c   : > { %v1852_v37 = vpop.permute.xlu0 %1851 }
 0x15d   : > { %v1854_v43 = vpop.permute.xlu1 %1853  ;;  %v1892_v45 = vsel %vm1527_vm4, %v1869_v36, %v1852_v37 }
 0x15e   : > { %v1894_v47 = vsel %vm1527_vm4, %v1872_v40, %v1854_v43  ;;  %2968 = vmatpush3.bf16.msra.mxu0 %v3159_v4 }
 0x15f   : > { %v2822_v48 = vcombine.low %v1892_v45, %v1894_v47  ;;  %2969 = vmatprep.subr.bf16.mxu0 %v3160_v34 }
 0x160   : > { %v1856_v44 = vpop.permute.xlu0 %1855 }
 0x161   : > { %v1858_v55 = vpop.permute.xlu1 %1857  ;;  %2955 = vmatprep.mubr.msk.bf16.mxu1 %vm1620_vm5, %v2822_v48  ;;  %v1896_v12 = vsel %vm1527_vm4, %v1875_v54, %v1856_v44 }
 0x162   : > { %v1898_v56 = vsel %vm1527_vm4, %v1878_v18, %v1858_v55  ;;  %2970 = vmatpush3.bf16.msra.mxu0 %v3160_v34 }
 0x163   : > { %v2823_v57 = vcombine.low %v1896_v12, %v1898_v56  ;;  %2971 = vmatprep.subr.bf16.mxu0 %v3161_v50 }
 0x164   : > { %v1471_v0 = vpop.permute.xlu0 %1470 }
 0x165   : > { %v1473_v51 = vpop.permute.xlu1 %1472  ;;  %2956 = vmatmul.mubr.msk.bf16.vlgmr.msra.gmra.mrb[0].mxu1 %vm1620_vm5, %v2823_v57  ;;  %v1517_v26 = vsel %vm1502_vm3, %v3676_v58, %v1471_v0 }
 0x166   : > { %2989 = vmatpush3.bf16.msra.mxu1 %v3788_v42  ;;  %2972 = vmatpush3.bf16.msra.mxu0 %v3161_v50  ;;  %v1520_v39 = vsel %vm1502_vm3, %v3672_v52, %v1473_v51 }
 0x167   : > { %2984 = vmatprep.subr.bf16.mxu1 %v3158_v23  ;;  %2973 = vmatprep.subr.bf16.mxu0 %v3162_v60 }
 0x168   : > { %v1475_v29 = vpop.permute.xlu0 %1474 }
 0x169   : > { %v1477_v32 = vpop.permute.xlu1 %1476  ;;  %v1523_v59 = vsel %vm1502_vm3, %v3690_v9, %v1475_v29 }
 0x16a   : > { %2990 = vmatpush3.bf16.msra.mxu1 %v3158_v23  ;;  %2974 = vmatpush3.bf16.msra.mxu0 %v3162_v60  ;;  %v1526_v8 = vsel %vm1502_vm3, %v3693_v14, %v1477_v32 }
 0x16b   : > { %2985 = vmatprep.subr.bf16.mxu1 %v3159_v4 }
 0x16c   : > { %v1495_v27 = vpop.permute.xlu0 %1494 }
 0x16d   : > { %v1497_v5 = vpop.permute.xlu1 %1496  ;;  %v1537_v10 = vsel %vm1527_vm4, %v1517_v26, %v1495_v27 }
 0x16e   : > { %v1539_v42 = vsel %vm1527_vm4, %v1520_v39, %v1497_v5  ;;  %2991 = vmatpush3.bf16.msra.mxu1 %v3159_v4 }
 0x16f   : > { %v2790_v7 = vcombine.low %v1537_v10, %v1539_v42  ;;  %2986 = vmatprep.subr.bf16.mxu1 %v3160_v34 }
 0x170   : > { %v1499_v61 = vpop.permute.xlu0 %1498 }
 0x171   : > { %v1501_v58 = vpop.permute.xlu1 %1500  ;;  %2939 = vmatprep.mubr.msk.bf16.mxu0 %vm1620_vm5, %v2790_v7  ;;  %v1541_v52 = vsel %vm1527_vm4, %v1523_v59, %v1499_v61  ;;  %v1558_v7 = vld [vmem:[#allocation3 + $0x10] sm:$0xff]  ;;  %v1556_v59 = vld [vmem:[#allocation3] sm:$0xff] }
 0x172   : > { %v1543_v11 = vsel %vm1527_vm4, %v1526_v8, %v1501_v58  ;;  %2992 = vmatpush3.bf16.msra.mxu1 %v3160_v34  ;;  %v1559_v8 = vld [vmem:[#allocation3 + $0x18] sm:$0xff] }
 0x173   : > { %v2791_v13 = vcombine.low %v1541_v52, %v1543_v11  ;;  %2987 = vmatprep.subr.bf16.mxu1 %v3161_v50  ;;  %v1557_v52 = vld [vmem:[#allocation3 + $0x8] sm:$0xff] }
 0x174   : > { %v1836_v15 = vpop.permute.xlu0 %1835 }
 0x175   : > { %v1838_v16 = vpop.permute.xlu1 %1837  ;;  %2940 = vmatmul.mubr.msk.bf16.gmra.mrb[4].mxu0 %vm1620_vm5, %v2791_v13  ;;  %v1881_v14 = vsel %vm1502_vm3, %v3715_v31, %v1836_v15 }
 0x176   : > { %2993 = vmatpush3.bf16.msra.mxu1 %v3161_v50  ;;  %v1884_v1 = vsel %vm1502_vm3, %v3713_v28, %v1838_v16 }
 0x177   : > { %2988 = vmatprep.subr.bf16.mxu1 %v3162_v60 }
 0x178   : > { %v1840_v9 = vpop.permute.xlu0 %1839 }
 0x179   : > { %v1842_v17 = vpop.permute.xlu1 %1841  ;;  %v1887_v23 = vsel %vm1502_vm3, %v3722_v38, %v1840_v9 }
 0x17a   : > { %2994 = vmatpush3.bf16.msra.mxu1 %v3162_v60  ;;  %v1890_v6 = vsel %vm1502_vm3, %v3746_v62, %v1842_v17 }
 0x17c   : > { %v1860_v19 = vpop.permute.xlu0 %1859 }
 0x17d   : > { %v1862_v20 = vpop.permute.xlu1 %1861  ;;  %v1900_v21 = vsel %vm1527_vm4, %v1881_v14, %v1860_v19 }
 0x17e   : > { %v1902_v63 = vsel %vm1527_vm4, %v1884_v1, %v1862_v20 }
 0x17f   : > { %v2824_v22 = vcombine.low %v1900_v21, %v1902_v63 }
 0x180   : > { %v1864_v53 = vpop.permute.xlu0 %1863 }
 0x181   : > { %v1866_v4 = vpop.permute.xlu1 %1865  ;;  %2959 = vmatprep.mubr.msk.bf16.mxu1 %vm1620_vm5, %v2824_v22  ;;  %v1904_v31 = vsel %vm1527_vm4, %v1887_v23, %v1864_v53 }
 0x182   : > { %v1906_v28 = vsel %vm1527_vm4, %v1890_v6, %v1866_v4  ;;  %v1562_v4 = vld [vmem:[#allocation3 + $0x30] sm:$0xff] }
 0x183   : > { %v2825_v49 = vcombine.low %v1904_v31, %v1906_v28  ;;  %v1560_v31 = vld [vmem:[#allocation3 + $0x20] sm:$0xff] }
 0x184   : > { %v2191_v30 = vpop.permute.xlu0 %2190 }
 0x185   : > { %v2193_v34 = vpop.permute.xlu1 %2192  ;;  %2960 = vmatmul.mubr.msk.bf16.gmra.mrb[4].mxu1 %vm1620_vm5, %v2825_v49  ;;  %v2232_v62 = vsel %vm1502_vm3, %v3765_v24, %v2191_v30  ;;  %v1563_v49 = vld [vmem:[#allocation3 + $0x38] sm:$0xff] }
 0x186   : > { %v2235_v48 = vsel %vm1502_vm3, %v3767_v25, %v2193_v34 }
 0x188   : > { %v2199_v36 = vpop.permute.xlu0 %2198 }
 0x189   : > { %v2201_v37 = vpop.permute.xlu1 %2200  ;;  %v2244_v55 = vsel %vm1502_vm3, %v3777_v33, %v2199_v36  ;;  %v1561_v36 = vld [vmem:[#allocation3 + $0x28] sm:$0xff] }
 0x18a   : > { %v2247_v56 = vsel %vm1502_vm3, %v3779_v35, %v2201_v37 }
 0x18c   : > { %v2195_v40 = vpop.permute.xlu0 %2194 }
 0x18d   : > { %v2197_v38 = vpop.permute.xlu1 %2196  ;;  %v2238_v0 = vsel %vm1502_vm3, %v3796_v46, %v2195_v40 }
 0x18e   : > { %v2241_v29 = vsel %vm1502_vm3, %v3798_v41, %v2197_v38 }
 0x190   : > { %v2203_v43 = vpop.permute.xlu0 %2202 }
 0x191   : > { %v2205_v45 = vpop.permute.xlu1 %2204  ;;  %v2250_v27 = vsel %vm1502_vm3, %v3812_v3, %v2203_v43 }
 0x192   : > { %v2253_v5 = vsel %vm1502_vm3, %v3814_v2, %v2205_v45 }
 0x194   : > { %v2215_v47 = vpop.permute.xlu0 %2214 }
 0x195   : > { %v2217_v50 = vpop.permute.xlu1 %2216  ;;  %v2255_v54 = vsel %vm1527_vm4, %v2232_v62, %v2215_v47 }
 0x196   : > { %v2257_v44 = vsel %vm1527_vm4, %v2235_v48, %v2217_v50 }
 0x197   : > { %v2856_v18 = vcombine.low %v2255_v54, %v2257_v44 }
 0x198   : > { %v2223_v12 = vpop.permute.xlu0 %2222 }
 0x199   : > { %v2225_v57 = vpop.permute.xlu1 %2224  ;;  %2975 = vmatprep.mubr.msk.bf16.mxu0 %vm1620_vm5, %v2856_v18  ;;  %v2263_v24 = vsel %vm1527_vm4, %v2244_v55, %v2223_v12 }
 0x19a   : > { %v2265_v25 = vsel %vm1527_vm4, %v2247_v56, %v2225_v57 }
 0x19b   : > { %v2858_v60 = vcombine.low %v2263_v24, %v2265_v25 }
 0x19c   : > { %v2219_v51 = vpop.permute.xlu0 %2218 }
 0x19d   : > { %v2221_v33 = vpop.permute.xlu1 %2220  ;;  %2979 = vmatprep.mubr.msk.bf16.mxu1 %vm1620_vm5, %v2858_v60  ;;  %v2259_v35 = vsel %vm1527_vm4, %v2238_v0, %v2219_v51 }
 0x19e   : > { %v2261_v32 = vsel %vm1527_vm4, %v2241_v29, %v2221_v33 }
 0x19f   : > { %v2857_v26 = vcombine.low %v2259_v35, %v2261_v32 }
 0x1a0   : > { %v2227_v39 = vpop.permute.xlu0 %2226 }
 0x1a1   : > { %v2229_v46 = vpop.permute.xlu1 %2228  ;;  %2976 = vmatmul.mubr.msk.bf16.vlgmr.msra.gmra.mrb[8].mxu0 %vm1620_vm5, %v2857_v26  ;;  %v2267_v41 = vsel %vm1527_vm4, %v2250_v27, %v2227_v39 }
 0x1a2   : > { %v2269_v10 = vsel %vm1527_vm4, %v2253_v5, %v2229_v46 }
 0x1a3   : > { %v2859_v42 = vcombine.low %v2267_v41, %v2269_v10 }
 0x1a5   : > { %2980 = vmatmul.mubr.msk.bf16.vlgmr.msra.gmra.mrb[8].mxu1 %vm1620_vm5, %v2859_v42 }
 0x228   : > { %v2937_v61 = vpop.f32.mrb[0].mxu0 }
 0x229   : > { %v1700_v58 = vadd.f32 %v2937_v61, %v1558_v7  ;;  %v1667_v3 = vpop.f32.mrb[1].mxu0 }
 0x22a   : > { %v1698_v11 = vadd.f32 %v1667_v3, %v1556_v59  ;;  %v2938_v13 = vpop.f32.mrb[2].mxu0 }
 0x22b   : > { %1708 = vst.msk [vmem:[#allocation3 + $0x10] sm:$0xff] %vm1502_vm3, %v1700_v58  ;;  %v1701_v2 = vadd.f32 %v2938_v13, %v1559_v8  ;;  %v1670_v15 = vpop.f32.mrb[3].mxu0 }
 0x22c   : > { %1706 = vst.msk [vmem:[#allocation3] sm:$0xff] %vm1502_vm3, %v1698_v11  ;;  %v1699_v16 = vadd.f32 %v1670_v15, %v1557_v52 }
 0x22d   : > { %1709 = vst.msk [vmem:[#allocation3 + $0x18] sm:$0xff] %vm1502_vm3, %v1701_v2  ;;  %v2871_v2 = vld [vmem:[%s802_s23] ss:$0 sm:$0xff] (!%p2870_p1) }
 0x22e   : > { %1707 = vst.msk [vmem:[#allocation3 + $0x8] sm:$0xff] %vm1502_vm3, %v1699_v16 }
 0x232   : > { %v1922_v9 = vld [vmem:[#allocation3 + $0x10] sm:$0xff] }
 0x233   : > { %v1920_v19 = vld [vmem:[#allocation3] sm:$0xff] }
 0x234   : > { %v1923_v21 = vld [vmem:[#allocation3 + $0x18] sm:$0xff] }
 0x235   : > { %v1921_v23 = vld [vmem:[#allocation3 + $0x8] sm:$0xff] }
 0x238   : > { %v2957_v17 = vpop.f32.mrb[0].mxu1 }
 0x239   : > { %v2063_v14 = vadd.f32 %v2957_v17, %v1922_v9  ;;  %v2030_v1 = vpop.f32.mrb[1].mxu1 }
 0x23a   : > { %v2061_v20 = vadd.f32 %v2030_v1, %v1920_v19  ;;  %v2958_v63 = vpop.f32.mrb[2].mxu1 }
 0x23b   : > { %2071 = vst.msk [vmem:[#allocation3 + $0x10] sm:$0xff] %vm1502_vm3, %v2063_v14  ;;  %v2064_v22 = vadd.f32 %v2958_v63, %v1923_v21  ;;  %v2033_v53 = vpop.f32.mrb[3].mxu1 }
 0x23c   : > { %2069 = vst.msk [vmem:[#allocation3] sm:$0xff] %vm1502_vm3, %v2061_v20  ;;  %v2062_v6 = vadd.f32 %v2033_v53, %v1921_v23 }
 0x23d   : > { %2072 = vst.msk [vmem:[#allocation3 + $0x18] sm:$0xff] %vm1502_vm3, %v2064_v22 }
 0x23e   : > { %2070 = vst.msk [vmem:[#allocation3 + $0x8] sm:$0xff] %vm1502_vm3, %v2062_v6 }
 0x242   : > { %v2285_v25 = vld [vmem:[#allocation3 + $0x10] sm:$0xff] }
 0x243   : > { %v2283_v51 = vld [vmem:[#allocation3] sm:$0xff] }
 0x244   : > { %v2286_v35 = vld [vmem:[#allocation3 + $0x18] sm:$0xff] }
 0x245   : > { %v2284_v27 = vld [vmem:[#allocation3 + $0x8] sm:$0xff] }
 0x248   : > { %v2941_v28 = vpop.f32.mrb[4].mxu0 }
 0x249   : > { %v1704_v30 = vadd.f32 %v2941_v28, %v1562_v4  ;;  %v1683_v34 = vpop.f32.mrb[5].mxu0 }
 0x24a   : > { %v1702_v37 = vadd.f32 %v1683_v34, %v1560_v31  ;;  %v2942_v40 = vpop.f32.mrb[6].mxu0 }
 0x24b   : > { %1712 = vst.msk [vmem:[#allocation3 + $0x30] sm:$0xff] %vm1502_vm3, %v1704_v30  ;;  %v1705_v38 = vadd.f32 %v2942_v40, %v1563_v49  ;;  %v1686_v43 = vpop.f32.mrb[7].mxu0 }
 0x24c   : > { %1710 = vst.msk [vmem:[#allocation3 + $0x20] sm:$0xff] %vm1502_vm3, %v1702_v37  ;;  %v1703_v45 = vadd.f32 %v1686_v43, %v1561_v36 }
 0x24d   : > { %1713 = vst.msk [vmem:[#allocation3 + $0x38] sm:$0xff] %vm1502_vm3, %v1705_v38 }
 0x24e   : > { %1711 = vst.msk [vmem:[#allocation3 + $0x28] sm:$0xff] %vm1502_vm3, %v1703_v45 }
 0x252   : > { %v1926_v62 = vld [vmem:[#allocation3 + $0x30] sm:$0xff] }
 0x253   : > { %v1924_v50 = vld [vmem:[#allocation3 + $0x20] sm:$0xff] }
 0x254   : > { %v1927_v18 = vld [vmem:[#allocation3 + $0x38] sm:$0xff] }
 0x255   : > { %v1925_v56 = vld [vmem:[#allocation3 + $0x28] sm:$0xff] }
 0x258   : > { %v2961_v47 = vpop.f32.mrb[4].mxu1 }
 0x259   : > { %v2067_v48 = vadd.f32 %v2961_v47, %v1926_v62  ;;  %v2046_v54 = vpop.f32.mrb[5].mxu1 }
 0x25a   : > { %v2065_v44 = vadd.f32 %v2046_v54, %v1924_v50  ;;  %v2962_v55 = vpop.f32.mrb[6].mxu1 }
 0x25b   : > { %2075 = vst.msk [vmem:[#allocation3 + $0x30] sm:$0xff] %vm1502_vm3, %v2067_v48  ;;  %v2068_v12 = vadd.f32 %v2962_v55, %v1927_v18  ;;  %v2049_v57 = vpop.f32.mrb[7].mxu1 }
 0x25c   : > { %2073 = vst.msk [vmem:[#allocation3 + $0x20] sm:$0xff] %vm1502_vm3, %v2065_v44  ;;  %v2066_v24 = vadd.f32 %v2049_v57, %v1925_v56 }
 0x25d   : > { %2076 = vst.msk [vmem:[#allocation3 + $0x38] sm:$0xff] %vm1502_vm3, %v2068_v12 }
 0x25e   : > { %2074 = vst.msk [vmem:[#allocation3 + $0x28] sm:$0xff] %vm1502_vm3, %v2066_v24 }
 0x262   : > { %v2289_v46 = vld [vmem:[#allocation3 + $0x30] sm:$0xff] }
 0x263   : > { %v2287_v42 = vld [vmem:[#allocation3 + $0x20] sm:$0xff] }
 0x264   : > { %v2290_v61 = vld [vmem:[#allocation3 + $0x38] sm:$0xff] }
 0x265   : > { %v2288_v3 = vld [vmem:[#allocation3 + $0x28] sm:$0xff] }
 0x274   : > { %v2977_v60 = vpop.f32.mrb[8].mxu0 }
 0x275   : > { %v2426_v0 = vadd.f32 %v2977_v60, %v2285_v25  ;;  %v2393_v29 = vpop.f32.mrb[9].mxu0 }
 0x276   : > { %v2424_v33 = vadd.f32 %v2393_v29, %v2283_v51  ;;  %v2978_v32 = vpop.f32.mrb[10].mxu0 }
 0x277   : > { %2434 = vst.msk [vmem:[#allocation3 + $0x10] sm:$0xff] %vm1502_vm3, %v2426_v0  ;;  %v2427_v26 = vadd.f32 %v2978_v32, %v2286_v35  ;;  %v2396_v39 = vpop.f32.mrb[11].mxu0 }
 0x278   : > { %2432 = vst.msk [vmem:[#allocation3] sm:$0xff] %vm1502_vm3, %v2424_v33  ;;  %v2425_v5 = vadd.f32 %v2396_v39, %v2284_v27  ;;  %v2981_v41 = vpop.f32.mrb[8].mxu1  ;;  %2443 = sbr.rel (%p2870_p1) target bundleno = 651 (0x28b), region = 109 }
 0x279   : > { %2435 = vst.msk [vmem:[#allocation3 + $0x18] sm:$0xff] %vm1502_vm3, %v2427_v26  ;;  %v2430_v10 = vadd.f32 %v2981_v41, %v2289_v46  ;;  %v2409_v7 = vpop.f32.mrb[9].mxu1 }
 0x27a   : > { %2433 = vst.msk [vmem:[#allocation3 + $0x8] sm:$0xff] %vm1502_vm3, %v2425_v5  ;;  %v2428_v59 = vadd.f32 %v2409_v7, %v2287_v42  ;;  %v2982_v8 = vpop.f32.mrb[10].mxu1 }
 0x27b   : > { %2438 = vst.msk [vmem:[#allocation3 + $0x30] sm:$0xff] %vm1502_vm3, %v2430_v10  ;;  %v2431_v58 = vadd.f32 %v2982_v8, %v2290_v61  ;;  %v2412_v52 = vpop.f32.mrb[11].mxu1 }
 0x27c   : > { %2436 = vst.msk [vmem:[#allocation3 + $0x20] sm:$0xff] %vm1502_vm3, %v2428_v59  ;;  %v2429_v11 = vadd.f32 %v2412_v52, %v2288_v3 }
 0x27d   : > { %2439 = vst.msk [vmem:[#allocation3 + $0x38] sm:$0xff] %vm1502_vm3, %v2431_v58 }
 0x27e   : > { %2437 = vst.msk [vmem:[#allocation3 + $0x28] sm:$0xff] %vm1502_vm3, %v2429_v11  ;;  %v2446_v17 = vld [vmem:[#allocation3 + $0x10] sm:$0xff] (!%p2870_p1) }
 0x27f   : > { %v2444_v13 = vld [vmem:[#allocation3] sm:$0xff]  ;;  %v2461_v1 = vadd.f32 %v2871_v2, %v2446_v17 }
 0x280   : > { %v2459_v16 = vadd.f32 %v2871_v2, %v2444_v13  ;;  %v2447_v14 = vld [vmem:[#allocation3 + $0x18] sm:$0xff] }
 0x281   : > { %v2445_v15 = vld [vmem:[#allocation3 + $0x8] sm:$0xff]  ;;  %v2462_v20 = vadd.f32 %v2871_v2, %v2447_v14  ;;  %v2887_v28 = vpack.c.bf16 %v2461_v1, %v2461_v1 }
 0x282   : > { %v2460_v9 = vadd.f32 %v2871_v2, %v2445_v15  ;;  %v2450_v22 = vld [vmem:[#allocation3 + $0x30] sm:$0xff]  ;;  %v2885_v53 = vpack.c.bf16 %v2459_v16, %v2459_v16 }
 0x283   : > { %v2448_v19 = vld [vmem:[#allocation3 + $0x20] sm:$0xff]  ;;  %v2465_v31 = vadd.f32 %v2871_v2, %v2450_v22  ;;  %v2888_v49 = vpack.c.bf16 %v2462_v20, %v2462_v20  ;;  %2502 = vst.msk [vmem:[%s3393_s12 + $0x8] sm:$0xf] %vm2499_vm6, %v2887_v28 }
 0x284   : > { %v2463_v21 = vadd.f32 %v2871_v2, %v2448_v19  ;;  %v2451_v23 = vld [vmem:[#allocation3 + $0x38] sm:$0xff]  ;;  %v2886_v6 = vpack.c.bf16 %v2460_v9, %v2460_v9  ;;  %2500 = vst.msk [vmem:[%s3393_s12] sm:$0xf] %vm2499_vm6, %v2885_v53 }
 0x285   : > { %v2449_v63 = vld [vmem:[#allocation3 + $0x28] sm:$0xff]  ;;  %v2466_v34 = vadd.f32 %v2871_v2, %v2451_v23  ;;  %v2891_v37 = vpack.c.bf16 %v2465_v31, %v2465_v31  ;;  %2503 = vst.msk [vmem:[%s3393_s12 + $0xc] sm:$0xf] %vm2499_vm6, %v2888_v49 }
 0x286   : > { %v2464_v4 = vadd.f32 %v2871_v2, %v2449_v63  ;;  %v2889_v30 = vpack.c.bf16 %v2463_v21, %v2463_v21  ;;  %2501 = vst.msk [vmem:[%s3393_s12 + $0x4] sm:$0xf] %vm2499_vm6, %v2886_v6 }
 0x287   : > { %v2892_v40 = vpack.c.bf16 %v2466_v34, %v2466_v34  ;;  %2506 = vst.msk [vmem:[%s3393_s12 + $0x18] sm:$0xf] %vm2499_vm6, %v2891_v37 }
 0x288   : > { %v2890_v36 = vpack.c.bf16 %v2464_v4, %v2464_v4  ;;  %2504 = vst.msk [vmem:[%s3393_s12 + $0x10] sm:$0xf] %vm2499_vm6, %v2889_v30 }
 0x289   : > { %2507 = vst.msk [vmem:[%s3393_s12 + $0x1c] sm:$0xf] %vm2499_vm6, %v2892_v40 }
 0x28a   : > { %2505 = vst.msk [vmem:[%s3393_s12 + $0x14] sm:$0xf] %vm2499_vm6, %v2890_v36 }
 0x28b PF: > { %s18_s11 = sadd.s32 1, %s3217_s11   ;;  %s4031_s29 = sld [smem:[#allocation9_spill]] }
 0x28c   : > { %p15_p2 = scmp.ge.s32.totalorder %s18_s11, 6   ;;  %s4032_s30 = sld [smem:[#allocation5_spill]] }
 0x28d   : > { %s4033_s23 = sld [smem:[#allocation6_spill]]  ;;  %s4034_s9 = sld [smem:[#allocation7_spill]] }
 0x28e   : > { %s4035_s10 = sld [smem:[#allocation8_spill]]  ;;  %s4036_s27 = smov %s3197_s28 }
 0x28f   :  { %17 = sbr.rel (!%p15_p2) target bundleno = 7 (0x7), region = 172 }
 0x291   : > { %s4037_s28 = smov %s4031_s29 }
 0x292   : > { %s4038_s29 = smov %s4032_s30 }
 0x293   : > { %s4039_s30 = smov %s4033_s23 }

// kernel: _lambda_.27
= control target key start
LH: loop header
LB: loop body
LE: loop exit
PB: predicated region body
PF: predicated region fallthrough
CT: control target
= control target key end

     0   :  { %s1147_s15 = smov 0   ;;  %s1149_s16 = smov 0   ;;  %s1280_s0 = inlined_call_operand.vmem [shape: bf16[2,64,32], index: 0, kind: input, shape index: {}]   ;;  %s1281_s1 = inlined_call_operand.vmem [shape: f32[2,64,32], index: 1, kind: input, shape index: {}]   ;;  %s1282_s2 = inlined_call_operand.vmem [shape: bf16[64,32], index: 2, kind: input, shape index: {}]   ;;  %s1283_s3 = inlined_call_operand.vmem [shape: f32[1,32], index: 3, kind: input, shape index: {}]   ;;  %s1284_s4 = inlined_call_operand.vmem [shape: bf16[2,64,32], index: 4, kind: output, shape index: {}]  }
   0x1   :  { %s1151_s17 = smov 0   ;;  %s1153_s18 = smov 0  }
   0x2   :  { %s1155_s19 = smov 0  }
   0x3 LB: > { %s29_s20 = sadd.s32 1, %s1111_s17  ;;  %s40_s21 = sadd.s32 1, %s1115_s18  ;;  %s1119_s19 = sphi %s1155_s19, %s14_s19   ;;  %s1115_s18 = sphi %s1153_s18, %s1288_s18   ;;  %s1111_s17 = sphi %s1151_s17, %s1287_s17   ;;  %s1107_s16 = sphi %s1149_s16, %s1286_s16   ;;  %s1103_s15 = sphi %s1147_s15, %s1285_s15  }
   0x4   : > { %p30_p0 = scmp.ge.s32.totalorder %s29_s20, 2  ;;  %p929_p1 = scmp.ge.s32.totalorder %s1119_s19, 1 }
   0x5   : > { %p270_p2 = scmp.lt.s32.totalorder %s1119_s19, 5 }
   0x6   : > { %s1290_s20 = smov (%p30_p0, %s29_s20), 0  ;;  %s1292_s21 = smov (!%p30_p0, %s40_s21), %s1115_s18 }
   0x7   : > { %p271_p3 = pnand %p929_p1, %p270_p2  ;;  %p42_p4 = scmp.ge.s32.totalorder %s1292_s21, 2 }
   0x8   : > { %p338_p5 = scmp.lt.s32.totalorder (!%p271_p3), %s1103_s15, 0  ;;  %p341_p6 = scmp.lt.s32.totalorder (!%p271_p3), %s1107_s16, 1 }
   0x9   : > { %s1294_s21 = smov (%p42_p4, %s1292_s21), 0  ;;  %274 = sbr.rel (%p271_p3) target bundleno = 499 (0x1f3), region = 36 }
   0xa   : > { %s943_s22 = sshll.u32 (!%p271_p3), %s1103_s15, 2  ;;  %p947_p8 = scmp.ne.s32.totalorder (!%p271_p3), %s1103_s15, 0 }
   0xb   : > { %p375_p7 = scmp.lt.s32.totalorder (!%p271_p3), %s943_s22, 7 }
  0x10   : > { %s339_s23 = scalar_select %p338_p5, %s1103_s15, 0 }
  0x11   : > { %s1296_s16 = smov (!%p341_p6, %s1107_s16), 1  ;;  %s1300_s22 = smov (!%p375_p7, %s943_s22), 7 }
  0x12   : > { %s1298_s23 = smov (!%p338_p5, %s339_s23), 0  ;;  %s933_s24 = sshll.u32 %s1296_s16, 3  ;;  %vm404_vm0 = vcmask (!%p947_p8), 261120   ;;  %v1121_v0 = vmov (!%p947_p8), 0.0  }
  0x13   : > { %s978_s25 = sshll.u32 %s1296_s16, 6  ;;  %s349_s26 = sadd.s32 %s933_s24, %s1298_s23  ;;  %405 = vst.msk [vmem:[#allocation2] sm:$0xff] (!%p947_p8), %vm404_vm0, %v1121_v0  ;;  %406 = vst.msk [vmem:[#allocation2 + $0x8] sm:$0xff] (!%p947_p8), %vm404_vm0, %v1121_v0 }
  0x14   : > { %s1185_s29 = scalar_lea.vmem %s1281_s1, %s978_s25  ;;  %s934_s30 = sshll.u32 %s349_s26, 2  ;;  %407 = vst.msk [vmem:[#allocation2 + $0x10] sm:$0xff] (!%p947_p8), %vm404_vm0, %v1121_v0  ;;  %408 = vst.msk [vmem:[#allocation2 + $0x18] sm:$0xff] (!%p947_p8), %vm404_vm0, %v1121_v0 }
  0x15   : > { %s1190_s7 = scalar_lea.vmem %s1280_s0, %s934_s30  ;;  %s979_s8 = sshll.u32 %s1296_s16, 5  ;;  %409 = vst.msk [vmem:[#allocation2 + $0x20] sm:$0xff] (!%p947_p8), %vm404_vm0, %v1121_v0  ;;  %410 = vst.msk [vmem:[#allocation2 + $0x28] sm:$0xff] (!%p947_p8), %vm404_vm0, %v1121_v0 }
  0x16   : > { %s1195_s11 = scalar_lea.vmem %s1284_s4, %s979_s8  ;;  %s944_s12 = sshll.u32 %s1300_s22, 2  ;;  %411 = vst.msk [vmem:[#allocation2 + $0x30] sm:$0xff] (!%p947_p8), %vm404_vm0, %v1121_v0  ;;  %412 = vst.msk [vmem:[#allocation2 + $0x38] sm:$0xff] (!%p947_p8), %vm404_vm0, %v1121_v0 }
  0x17   : > { %s1200_s23 = scalar_lea.vmem %s1282_s2, %s944_s12  ;;  %403 = sbr.rel (%p947_p8) target bundleno = 30 (0x1e), region = 40 }
  0x1e PF: > { %p948_p9 = scmp.ge.s32.totalorder %s1103_s15, 1 }
  0x1f   : > { %v1073_v1 = vld [vmem:[%s1200_s23] sm:$0xff] (!%p948_p9)   ;;  %v1074_v2 = vld [vmem:[%s1200_s23 + $0x8] sm:$0xff] (!%p948_p9)   ;;  %vm469_vm1 = vcmask (!%p948_p9), 261120   ;;  %v1076_v4 = vld [vmem:[%s1190_s7 + $0x10] sm:$0xff] (!%p948_p9)  }
  0x20   : > { %416 = sbr.rel (%p948_p9) target bundleno = 258 (0x102), region = 44  ;;  %1000 = vmatprep.subr.bf16.mxu0 (!%p948_p9), %v1073_v1  ;;  %1024 = vmatprep.subr.bf16.mxu1 (!%p948_p9), %v1073_v1  ;;  %v1075_v3 = vld [vmem:[%s1190_s7] sm:$0xff] (!%p948_p9)   ;;  %v1077_v5 = vld [vmem:[%s1190_s7 + $0x8] sm:$0xff] (!%p948_p9)   ;;  %v1078_v6 = vld [vmem:[%s1190_s7 + $0x18] sm:$0xff] (!%p948_p9)  }
  0x21   : > { %1001 = vmatpush3.bf16.msra.mxu0 (!%p948_p9), %v1073_v1  ;;  %1026 = vmatpush3.bf16.msra.mxu1 (!%p948_p9), %v1073_v1  ;;  %v419_v7 = vld [vmem:[#allocation2 + $0x10] sm:$0xff] (!%p948_p9)  ;;  %v417_v9 = vld [vmem:[#allocation2] sm:$0xff] (!%p948_p9)  ;;  %v420_v13 = vld [vmem:[#allocation2 + $0x18] sm:$0xff] (!%p948_p9) }
  0x22   : > { %1002 = vmatprep.subr.bf16.mxu0 (!%p948_p9), %v1074_v2  ;;  %1025 = vmatprep.subr.bf16.mxu1 (!%p948_p9), %v1074_v2  ;;  %v423_v8 = vld [vmem:[#allocation2 + $0x30] sm:$0xff] (!%p948_p9)  ;;  %v421_v10 = vld [vmem:[#allocation2 + $0x20] sm:$0xff] (!%p948_p9)  ;;  %v424_v14 = vld [vmem:[#allocation2 + $0x38] sm:$0xff] (!%p948_p9) }
  0x23   : > { %1004 = vmatprep.mubr.msk.bf16.mxu0 (!%p948_p9), %vm469_vm1, %v1075_v3  ;;  %1008 = vmatprep.mubr.msk.bf16.mxu1 (!%p948_p9), %vm469_vm1, %v1076_v4  ;;  %v418_v19 = vld [vmem:[#allocation2 + $0x8] sm:$0xff] (!%p948_p9) }
  0x24   : > { %v422_v20 = vld [vmem:[#allocation2 + $0x28] sm:$0xff] (!%p948_p9) }
  0x25   : > { %1003 = vmatpush3.bf16.msra.mxu0 (!%p948_p9), %v1074_v2  ;;  %1027 = vmatpush3.bf16.msra.mxu1 (!%p948_p9), %v1074_v2 }
  0x28   : > { %1005 = vmatmul.mubr.msk.bf16.vlgmr.msra.gmra.mrb[0].mxu0 %vm469_vm1, %v1077_v5  ;;  %1009 = vmatmul.mubr.msk.bf16.vlgmr.msra.gmra.mrb[0].mxu1 %vm469_vm1, %v1078_v6 }
  0xfb   : > { %v1006_v11 = vpop.f32.mrb[0].mxu0  ;;  %v1010_v12 = vpop.f32.mrb[0].mxu1 }
  0xfc   : > { %v549_v15 = vadd.f32 %v1006_v11, %v419_v7  ;;  %v553_v16 = vadd.f32 %v1010_v12, %v423_v8  ;;  %v516_v17 = vpop.f32.mrb[1].mxu0  ;;  %v532_v18 = vpop.f32.mrb[1].mxu1 }
  0xfd   : > { %v547_v21 = vadd.f32 %v516_v17, %v417_v9  ;;  %v551_v22 = vadd.f32 %v532_v18, %v421_v10  ;;  %v1007_v23 = vpop.f32.mrb[2].mxu0  ;;  %v1011_v24 = vpop.f32.mrb[2].mxu1 }
  0xfe   : > { %557 = vst.msk [vmem:[#allocation2 + $0x10] sm:$0xff] %vm469_vm1, %v549_v15  ;;  %561 = vst.msk [vmem:[#allocation2 + $0x30] sm:$0xff] %vm469_vm1, %v553_v16  ;;  %v550_v25 = vadd.f32 %v1007_v23, %v420_v13  ;;  %v554_v26 = vadd.f32 %v1011_v24, %v424_v14  ;;  %v519_v27 = vpop.f32.mrb[3].mxu0  ;;  %v535_v28 = vpop.f32.mrb[3].mxu1 }
  0xff   : > { %555 = vst.msk [vmem:[#allocation2] sm:$0xff] %vm469_vm1, %v547_v21  ;;  %559 = vst.msk [vmem:[#allocation2 + $0x20] sm:$0xff] %vm469_vm1, %v551_v22  ;;  %v548_v29 = vadd.f32 %v519_v27, %v418_v19  ;;  %v552_v30 = vadd.f32 %v535_v28, %v422_v20 }
 0x100   : > { %558 = vst.msk [vmem:[#allocation2 + $0x18] sm:$0xff] %vm469_vm1, %v550_v25  ;;  %562 = vst.msk [vmem:[#allocation2 + $0x38] sm:$0xff] %vm469_vm1, %v554_v26 }
 0x101   : > { %556 = vst.msk [vmem:[#allocation2 + $0x8] sm:$0xff] %vm469_vm1, %v548_v29  ;;  %560 = vst.msk [vmem:[#allocation2 + $0x28] sm:$0xff] %vm469_vm1, %v552_v30 }
 0x102 PF: > { %p959_p10 = scmp.lt.s32.totalorder %s1103_s15, 1 }
 0x103   : > { %v1079_v31 = vld [vmem:[%s1200_s23] sm:$0xff] (!%p959_p10)   ;;  %v1080_v32 = vld [vmem:[%s1200_s23 + $0x8] sm:$0xff] (!%p959_p10)   ;;  %vm603_vm2 = vcmask (!%p959_p10), 261120   ;;  %v577_v38 = vld [vmem:[%s1185_s29 + $0x10] sm:$0xff] (!%p959_p10) }
 0x104   : > { %566 = sbr.rel (%p959_p10) target bundleno = 486 (0x1e6), region = 48  ;;  %1012 = vmatprep.subr.bf16.mxu0 (!%p959_p10), %v1079_v31  ;;  %1028 = vmatprep.subr.bf16.mxu1 (!%p959_p10), %v1079_v31  ;;  %v575_v33 = vld [vmem:[%s1185_s29] sm:$0xff] (!%p959_p10)  ;;  %v576_v34 = vld [vmem:[%s1185_s29 + $0x8] sm:$0xff] (!%p959_p10)  ;;  %v578_v39 = vld [vmem:[%s1185_s29 + $0x18] sm:$0xff] (!%p959_p10) }
 0x105   : > { %v579_v35 = vld [vmem:[%s1185_s29 + $0x20] sm:$0xff] (!%p959_p10)  ;;  %1013 = vmatpush3.bf16.msra.mxu0 (!%p959_p10), %v1079_v31  ;;  %1030 = vmatpush3.bf16.msra.mxu1 (!%p959_p10), %v1079_v31  ;;  %v583_v36 = vpack.c.bf16 (!%p959_p10), %v576_v34, %v575_v33  ;;  %v580_v37 = vld [vmem:[%s1185_s29 + $0x28] sm:$0xff] (!%p959_p10)  ;;  %v581_v41 = vld [vmem:[%s1185_s29 + $0x30] sm:$0xff] (!%p959_p10)  ;;  %v584_v43 = vpack.c.bf16 (!%p959_p10), %v578_v39, %v577_v38 }
 0x106   : > { %1014 = vmatprep.subr.bf16.mxu0 (!%p959_p10), %v1080_v32  ;;  %1029 = vmatprep.subr.bf16.mxu1 (!%p959_p10), %v1080_v32  ;;  %v585_v40 = vpack.c.bf16 (!%p959_p10), %v580_v37, %v579_v35  ;;  %v582_v42 = vld [vmem:[%s1185_s29 + $0x38] sm:$0xff] (!%p959_p10)  ;;  %v569_v45 = vld [vmem:[#allocation2 + $0x10] sm:$0xff] (!%p959_p10)  ;;  %v567_v47 = vld [vmem:[#allocation2] sm:$0xff] (!%p959_p10) }
 0x107   : > { %1016 = vmatprep.mubr.msk.bf16.mxu0 (!%p959_p10), %vm603_vm2, %v583_v36  ;;  %v586_v44 = vpack.c.bf16 (!%p959_p10), %v582_v42, %v581_v41  ;;  %v573_v46 = vld [vmem:[#allocation2 + $0x30] sm:$0xff] (!%p959_p10)  ;;  %v571_v48 = vld [vmem:[#allocation2 + $0x20] sm:$0xff] (!%p959_p10)  ;;  %v570_v51 = vld [vmem:[#allocation2 + $0x18] sm:$0xff] (!%p959_p10) }
 0x108   : > { %1020 = vmatprep.mubr.msk.bf16.mxu1 (!%p959_p10), %vm603_vm2, %v585_v40  ;;  %v574_v52 = vld [vmem:[#allocation2 + $0x38] sm:$0xff] (!%p959_p10)  ;;  %v568_v57 = vld [vmem:[#allocation2 + $0x8] sm:$0xff] (!%p959_p10) }
 0x109   : > { %1015 = vmatpush3.bf16.msra.mxu0 (!%p959_p10), %v1080_v32  ;;  %1031 = vmatpush3.bf16.msra.mxu1 (!%p959_p10), %v1080_v32  ;;  %v572_v58 = vld [vmem:[#allocation2 + $0x28] sm:$0xff] (!%p959_p10) }
 0x10c   : > { %1017 = vmatmul.mubr.msk.bf16.vlgmr.msra.gmra.mrb[0].mxu0 %vm603_vm2, %v584_v43  ;;  %1021 = vmatmul.mubr.msk.bf16.vlgmr.msra.gmra.mrb[0].mxu1 %vm603_vm2, %v586_v44 }
 0x1df   : > { %v1018_v49 = vpop.f32.mrb[0].mxu0  ;;  %v1022_v50 = vpop.f32.mrb[0].mxu1 }
 0x1e0   : > { %v683_v53 = vadd.f32 %v1018_v49, %v569_v45  ;;  %v687_v54 = vadd.f32 %v1022_v50, %v573_v46  ;;  %v650_v55 = vpop.f32.mrb[1].mxu0  ;;  %v666_v56 = vpop.f32.mrb[1].mxu1 }
 0x1e1   : > { %v681_v59 = vadd.f32 %v650_v55, %v567_v47  ;;  %v685_v60 = vadd.f32 %v666_v56, %v571_v48  ;;  %v1019_v61 = vpop.f32.mrb[2].mxu0  ;;  %v1023_v62 = vpop.f32.mrb[2].mxu1 }
 0x1e2   : > { %691 = vst.msk [vmem:[#allocation2 + $0x10] sm:$0xff] %vm603_vm2, %v683_v53  ;;  %695 = vst.msk [vmem:[#allocation2 + $0x30] sm:$0xff] %vm603_vm2, %v687_v54  ;;  %v684_v63 = vadd.f32 %v1019_v61, %v570_v51  ;;  %v688_v0 = vadd.f32 %v1023_v62, %v574_v52  ;;  %v653_v1 = vpop.f32.mrb[3].mxu0  ;;  %v669_v2 = vpop.f32.mrb[3].mxu1 }
 0x1e3   : > { %689 = vst.msk [vmem:[#allocation2] sm:$0xff] %vm603_vm2, %v681_v59  ;;  %693 = vst.msk [vmem:[#allocation2 + $0x20] sm:$0xff] %vm603_vm2, %v685_v60  ;;  %v682_v3 = vadd.f32 %v653_v1, %v568_v57  ;;  %v686_v4 = vadd.f32 %v669_v2, %v572_v58 }
 0x1e4   : > { %692 = vst.msk [vmem:[#allocation2 + $0x18] sm:$0xff] %vm603_vm2, %v684_v63  ;;  %696 = vst.msk [vmem:[#allocation2 + $0x38] sm:$0xff] %vm603_vm2, %v688_v0 }
 0x1e5   : > { %690 = vst.msk [vmem:[#allocation2 + $0x8] sm:$0xff] %vm603_vm2, %v682_v3  ;;  %694 = vst.msk [vmem:[#allocation2 + $0x28] sm:$0xff] %vm603_vm2, %v686_v4 }
 0x1e6 PF: > { %p966_p11 = scmp.ne.s32.totalorder %s1103_s15, 1 }
 0x1e7   : > { %v967_v6 = vld [vmem:[%s1283_s3] ss:$0 sm:$0xff] (!%p966_p11)  ;;  %vm756_vm3 = vcmask (!%p966_p11), 257024  }
 0x1e8   : > { %700 = sbr.rel (%p966_p11) target bundleno = 499 (0x1f3), region = 52 }
 0x1e9   : > { %v703_v10 = vld [vmem:[#allocation2 + $0x10] sm:$0xff] (!%p966_p11) }
 0x1ea   : > { %v701_v5 = vld [vmem:[#allocation2] sm:$0xff] (!%p966_p11)  ;;  %v718_v13 = vadd.f32 (!%p966_p11), %v967_v6, %v703_v10  ;;  %v707_v17 = vld [vmem:[#allocation2 + $0x30] sm:$0xff] (!%p966_p11) }
 0x1eb   : > { %v716_v8 = vadd.f32 (!%p966_p11), %v967_v6, %v701_v5  ;;  %v704_v11 = vld [vmem:[#allocation2 + $0x18] sm:$0xff] (!%p966_p11)  ;;  %v705_v12 = vld [vmem:[#allocation2 + $0x20] sm:$0xff] (!%p966_p11)  ;;  %v722_v22 = vadd.f32 (!%p966_p11), %v967_v6, %v707_v17 }
 0x1ec   : > { %v702_v7 = vld [vmem:[#allocation2 + $0x8] sm:$0xff] (!%p966_p11)  ;;  %v719_v14 = vadd.f32 (!%p966_p11), %v967_v6, %v704_v11  ;;  %v720_v15 = vadd.f32 (!%p966_p11), %v967_v6, %v705_v12  ;;  %v708_v18 = vld [vmem:[#allocation2 + $0x38] sm:$0xff] (!%p966_p11)  ;;  %v982_v23 = vpack.c.bf16 (!%p966_p11), %v718_v13, %v718_v13 }
 0x1ed   : > { %v717_v9 = vadd.f32 (!%p966_p11), %v967_v6, %v702_v7  ;;  %v706_v16 = vld [vmem:[#allocation2 + $0x28] sm:$0xff] (!%p966_p11)  ;;  %v980_v19 = vpack.c.bf16 (!%p966_p11), %v716_v8, %v716_v8  ;;  %v723_v26 = vadd.f32 (!%p966_p11), %v967_v6, %v708_v18  ;;  %v986_v28 = vpack.c.bf16 (!%p966_p11), %v722_v22, %v722_v22 }
 0x1ee   : > { %v721_v21 = vadd.f32 (!%p966_p11), %v967_v6, %v706_v16  ;;  %v983_v24 = vpack.c.bf16 (!%p966_p11), %v719_v14, %v719_v14  ;;  %v984_v25 = vpack.c.bf16 (!%p966_p11), %v720_v15, %v720_v15  ;;  %759 = vst.msk [vmem:[%s1195_s11 + $0x8] sm:$0xf] (!%p966_p11), %vm756_vm3, %v982_v23 }
 0x1ef   : > { %v981_v20 = vpack.c.bf16 %v717_v9, %v717_v9  ;;  %757 = vst.msk [vmem:[%s1195_s11] sm:$0xf] %vm756_vm3, %v980_v19  ;;  %v987_v29 = vpack.c.bf16 %v723_v26, %v723_v26  ;;  %763 = vst.msk [vmem:[%s1195_s11 + $0x18] sm:$0xf] %vm756_vm3, %v986_v28 }
 0x1f0   : > { %v985_v27 = vpack.c.bf16 %v721_v21, %v721_v21  ;;  %760 = vst.msk [vmem:[%s1195_s11 + $0xc] sm:$0xf] %vm756_vm3, %v983_v24  ;;  %761 = vst.msk [vmem:[%s1195_s11 + $0x10] sm:$0xf] %vm756_vm3, %v984_v25 }
 0x1f1   : > { %758 = vst.msk [vmem:[%s1195_s11 + $0x4] sm:$0xf] %vm756_vm3, %v981_v20  ;;  %764 = vst.msk [vmem:[%s1195_s11 + $0x1c] sm:$0xf] %vm756_vm3, %v987_v29 }
 0x1f2   : > { %762 = vst.msk [vmem:[%s1195_s11 + $0x14] sm:$0xf] %vm756_vm3, %v985_v27 }
 0x1f3 PF: > { %s14_s19 = sadd.s32 1, %s1119_s19   ;;  %s1285_s15 = smov %s1111_s17 }
 0x1f4   : > { %p11_p12 = scmp.ge.s32.totalorder %s14_s19, 6   ;;  %s1286_s16 = smov %s1115_s18 }
 0x1f5   : > { %s1287_s17 = smov %s1290_s20  ;;  %s1288_s18 = smov %s1294_s21 }
 0x1f6   :  { %13 = sbr.rel (!%p11_p12) target bundleno = 3 (0x3), region = 91 }

// kernel: _lambda_.26
= control target key start
LH: loop header
LB: loop body
LE: loop exit
PB: predicated region body
PF: predicated region fallthrough
CT: control target
= control target key end

     0   :  { %s4015_s0 = inlined_call_operand.vmem [shape: bf16[2,8,8,32], index: 0, kind: input, shape index: {}]   ;;  %s4016_s1 = inlined_call_operand.vmem [shape: f32[2,1,32], index: 1, kind: input, shape index: {}]   ;;  %s4017_s2 = inlined_call_operand.vmem [shape: f32[2,1,32], index: 2, kind: input, shape index: {}]   ;;  %s4018_s3 = inlined_call_operand.vmem [shape: f32[2,8,8,32], index: 3, kind: input, shape index: {}]   ;;  %s4019_s4 = inlined_call_operand.vmem [shape: f32[2,1,32], index: 4, kind: input, shape index: {}]   ;;  %s4020_s5 = inlined_call_operand.vmem [shape: f32[2,1,32], index: 5, kind: input, shape index: {}]   ;;  %s4021_s6 = inlined_call_operand.vmem [shape: bf16[3,3,64,32], index: 6, kind: input, shape index: {}]   ;;  %s4022_s7 = inlined_call_operand.vmem [shape: f32[2,1,32], index: 7, kind: input, shape index: {}]   ;;  %s4023_s8 = inlined_call_operand.vmem [shape: bf16[2,64,32], index: 8, kind: output, shape index: {}]  }
   0x1   :  { %4027 = sst [smem:[#allocation10_spill]] %s4015_s0 }
   0x2   :  { %4028 = sst [smem:[#allocation11_spill]] %s4021_s6 }
   0x3   :  { %s3295_s27 = smov 0   ;;  %s3297_s28 = smov 0  }
   0x4   :  { %s3299_s29 = smov 0   ;;  %s3301_s30 = smov 0  }
   0x5   :  { %s3303_s9 = smov 0   ;;  %s3305_s10 = smov 0  }
   0x6   :  { %s3307_s11 = smov 0  }
   0x7 LB: > { %4029 = sst [smem:[#allocation5_spill]] %s3236_s9  ;;  %s30_s12 = sadd.s32 1, %s3236_s9  ;;  %s3244_s11 = sphi %s3307_s11, %s18_s11   ;;  %s3240_s10 = sphi %s3305_s10, %s4050_s10   ;;  %s3236_s9 = sphi %s3303_s9, %s4049_s9   ;;  %s3232_s30 = sphi %s3301_s30, %s4054_s30   ;;  %s3228_s29 = sphi %s3299_s29, %s4053_s29   ;;  %s3224_s28 = sphi %s3297_s28, %s4052_s28   ;;  %s3220_s27 = sphi %s3295_s27, %s4051_s27  }
   0x8   : > { %4030 = sst [smem:[#allocation6_spill]] %s3240_s10  ;;  %s37_s13 = sadd.s32 1, %s3240_s10 }
   0x9   : > { %p31_p0 = scmp.ge.s32.totalorder %s30_s12, 2  ;;  %s244_s14 = sadd.s32 1, %s3224_s28 }
   0xa   : > { %p251_p1 = scmp.ne.s32.totalorder %s3224_s28, %s3220_s27  ;;  %p252_p2 = scmp.eq.s32.totalorder %s3244_s11, 0 }
   0xb   : > { %s4056_s12 = smov (%p31_p0, %s30_s12), 0  ;;  %s4058_s13 = smov (!%p31_p0, %s37_s13), %s3240_s10 }
   0xc   : > { %4031 = sst [smem:[#allocation7_spill]] %s4056_s12  ;;  %s239_s15 = ssub.s32 %s3236_s9, %s4056_s12 }
   0xd   : > { %p253_p3 = por %p252_p2, %p251_p1  ;;  %p39_p4 = scmp.ge.s32.totalorder %s4058_s13, 2 }
   0xe   : > { %p242_p5 = scmp.eq.s32.totalorder %s239_s15, 0  ;;  %p2712_p6 = scmp.ge.s32.totalorder %s3244_s11, 4 }
   0xf   : > { %s4060_s13 = smov (%p39_p4, %s4058_s13), 0 }
  0x10   : > { %4032 = sst [smem:[#allocation8_spill]] %s4060_s13  ;;  %333 = sbr.rel (%p2712_p6) target bundleno = 42 (0x2a), region = 16 }
  0x11   : > { %s3344_s16 = scalar_select %p242_p5, %s3224_s28, %s244_s14  }
  0x13   : > { %4033 = sst [smem:[#allocation9_spill]] %s3344_s16 }
  0x17   : > { %424 = sbr.rel (!%p253_p3) target bundleno = 42 (0x2a), region = 44  ;;  %s426_s17 = sand.u32 (%p253_p3), 1, %s3224_s28  }
  0x18   : > { %s2890_s18 = sshll.u32 (%p253_p3), %s3236_s9, 4  ;;  %s3022_s19 = smul.u32 (%p253_p3), 144, %s426_s17 }
  0x19   : > { %s4034_s6 = sld [smem:[#allocation11_spill]] (%p253_p3) }
  0x1a   : > { %s428_s23 = scalar_lea.vmem (%p253_p3), [#allocation4], %s3022_s19 }
  0x1f   : > { %s3352_s22 = scalar_lea.vmem %s4034_s6, %s2890_s18 }
  0x20   : > { %v448_v0 = vld [vmem:[%s3352_s22] sm:$0xff]   ;;  %v452_v1 = vld [vmem:[%s3352_s22 + $0x8] sm:$0xff]  }
  0x21   : > { %v456_v2 = vld [vmem:[%s3352_s22 + $0x20] sm:$0xff]   ;;  %v460_v3 = vld [vmem:[%s3352_s22 + $0x28] sm:$0xff]   ;;  %449 = vst [vmem:[%s428_s23] sm:$0xff] %v448_v0   ;;  %453 = vst [vmem:[%s428_s23 + $0x8] sm:$0xff] %v452_v1  }
  0x22   : > { %v464_v4 = vld [vmem:[%s3352_s22 + $0x40] sm:$0xff]   ;;  %v468_v5 = vld [vmem:[%s3352_s22 + $0x48] sm:$0xff]   ;;  %457 = vst [vmem:[%s428_s23 + $0x10] sm:$0xff] %v456_v2   ;;  %461 = vst [vmem:[%s428_s23 + $0x18] sm:$0xff] %v460_v3  }
  0x23   : > { %465 = vst [vmem:[%s428_s23 + $0x20] sm:$0xff] %v464_v4   ;;  %469 = vst [vmem:[%s428_s23 + $0x28] sm:$0xff] %v468_v5   ;;  %v472_v6 = vld [vmem:[%s3352_s22 + $0x60] sm:$0xff]   ;;  %v476_v7 = vld [vmem:[%s3352_s22 + $0x68] sm:$0xff]  }
  0x24   : > { %v480_v8 = vld [vmem:[%s3352_s22 + $0x80] sm:$0xff]   ;;  %473 = vst [vmem:[%s428_s23 + $0x30] sm:$0xff] %v472_v6   ;;  %477 = vst [vmem:[%s428_s23 + $0x38] sm:$0xff] %v476_v7   ;;  %v484_v9 = vld [vmem:[%s3352_s22 + $0x88] sm:$0xff]  }
  0x25   : > { %481 = vst [vmem:[%s428_s23 + $0x40] sm:$0xff] %v480_v8   ;;  %v488_v10 = vld [vmem:[%s3352_s22 + $0xa0] sm:$0xff]   ;;  %v492_v11 = vld [vmem:[%s3352_s22 + $0xa8] sm:$0xff]   ;;  %485 = vst [vmem:[%s428_s23 + $0x48] sm:$0xff] %v484_v9  }
  0x26   : > { %489 = vst [vmem:[%s428_s23 + $0x50] sm:$0xff] %v488_v10   ;;  %493 = vst [vmem:[%s428_s23 + $0x58] sm:$0xff] %v492_v11   ;;  %v496_v12 = vld [vmem:[%s3352_s22 + $0xc0] sm:$0xff]   ;;  %v500_v13 = vld [vmem:[%s3352_s22 + $0xc8] sm:$0xff]  }
  0x27   : > { %v504_v14 = vld [vmem:[%s3352_s22 + $0xe0] sm:$0xff]   ;;  %497 = vst [vmem:[%s428_s23 + $0x60] sm:$0xff] %v496_v12   ;;  %501 = vst [vmem:[%s428_s23 + $0x68] sm:$0xff] %v500_v13   ;;  %v508_v15 = vld [vmem:[%s3352_s22 + $0xe8] sm:$0xff]  }
  0x28   : > { %505 = vst [vmem:[%s428_s23 + $0x70] sm:$0xff] %v504_v14   ;;  %v512_v16 = vld [vmem:[%s3352_s22 + $0x100] sm:$0xff]   ;;  %v516_v17 = vld [vmem:[%s3352_s22 + $0x108] sm:$0xff]   ;;  %509 = vst [vmem:[%s428_s23 + $0x78] sm:$0xff] %v508_v15  }
  0x29   : > { %513 = vst [vmem:[%s428_s23 + $0x80] sm:$0xff] %v512_v16   ;;  %517 = vst [vmem:[%s428_s23 + $0x88] sm:$0xff] %v516_v17  }
  0x2a PF: > { %p2715_p7 = scmp.ge.s32.totalorder %s3244_s11, 1  ;;  %p622_p8 = scmp.lt.s32.totalorder %s3244_s11, 5 }
  0x2c   : > { %p623_p9 = pnand %p2715_p7, %p622_p8 }
  0x2d   : > { %s629_s24 = sand.u32 (!%p623_p9), 1, %s3220_s27   ;;  %p726_p10 = scmp.lt.s32.totalorder (!%p623_p9), %s3228_s29, 0 }
  0x2e   : > { %626 = sbr.rel (%p623_p9) target bundleno = 652 (0x28c), region = 89  ;;  %p728_p11 = scmp.lt.s32.totalorder (!%p623_p9), %s3232_s30, 1 }
  0x2f   : > { %s3023_s25 = smul.u32 (!%p623_p9), 144, %s629_s24  ;;  %s4035_s0 = sld [smem:[#allocation10_spill]] (!%p623_p9) }
  0x30   : > { %p2749_p12 = scmp.ne.s32.totalorder (!%p623_p9), %s3228_s29, 0 }
  0x31   : > { %s3422_s10 = scalar_lea.vmem (!%p623_p9), [#allocation4], %s3023_s25 }
  0x35   : > { %s727_s26 = scalar_select %p726_p10, %s3228_s29, 0 }
  0x36   : > { %s4062_s30 = smov (!%p728_p11, %s3232_s30), 1  ;;  %vm816_vm0 = vcmask (!%p2749_p12), 257024   ;;  %vm818_vm1 = vcmask (!%p2749_p12), 253952   ;;  %vm823_vm2 = vcmask (!%p2749_p12), 261120   ;;  %v3246_v18 = vmov (!%p2749_p12), 0  }
  0x37   : > { %s4064_s26 = smov (!%p726_p10, %s727_s26), 0  ;;  %s2719_s14 = sshll.u32 %s4062_s30, 3  ;;  %817 = vst.msk [vmem:[#allocation2] sm:$0xf] (!%p2749_p12), %vm816_vm0, %v3246_v18  ;;  %821 = vst.msk [vmem:[#allocation2 + $0x48] sm:$0xf] (!%p2749_p12), %vm816_vm0, %v3246_v18 }
  0x38   : > { %s2891_s15 = sshll.u32 %s4062_s30, 6  ;;  %s733_s17 = sadd.s32 %s2719_s14, %s4064_s26  ;;  %819 = vst.msk [vmem:[#allocation2 + $0x4] sm:$0x1] (!%p2749_p12), %vm818_vm1, %v3246_v18  ;;  %822 = vst.msk [vmem:[#allocation2 + $0x4c] sm:$0x1] (!%p2749_p12), %vm818_vm1, %v3246_v18  ;;  %v3247_v19 = vmov (!%p2749_p12), 0.0  }
  0x39   : > { %s3384_s18 = sadd.s32 %s4064_s26, %s4062_s30  ;;  %s2720_s27 = sshll.u32 %s733_s17, 2  ;;  %824 = vst.msk [vmem:[#allocation3] sm:$0xff] (!%p2749_p12), %vm823_vm2, %v3247_v19  ;;  %825 = vst.msk [vmem:[#allocation3 + $0x8] sm:$0xff] (!%p2749_p12), %vm823_vm2, %v3247_v19 }
  0x3a   : > { %s3393_s24 = scalar_lea.vmem %s4035_s0, %s2720_s27  ;;  %s3402_s26 = scalar_lea.vmem %s4018_s3, %s2891_s15  ;;  %826 = vst.msk [vmem:[#allocation3 + $0x10] sm:$0xff] (!%p2749_p12), %vm823_vm2, %v3247_v19  ;;  %827 = vst.msk [vmem:[#allocation3 + $0x18] sm:$0xff] (!%p2749_p12), %vm823_vm2, %v3247_v19 }
  0x3b   : > { %s780_s16 = scalar_lea.vmem %s4019_s4, %s4062_s30  ;;  %s792_s21 = scalar_lea.vmem %s4020_s5, %s4062_s30  ;;  %828 = vst.msk [vmem:[#allocation3 + $0x20] sm:$0xff] (!%p2749_p12), %vm823_vm2, %v3247_v19  ;;  %829 = vst.msk [vmem:[#allocation3 + $0x28] sm:$0xff] (!%p2749_p12), %vm823_vm2, %v3247_v19 }
  0x3c   : > { %s802_s23 = scalar_lea.vmem %s4022_s7, %s4062_s30  ;;  %s2892_s0 = sshll.u32 %s4062_s30, 5  ;;  %830 = vst.msk [vmem:[#allocation3 + $0x30] sm:$0xff] (!%p2749_p12), %vm823_vm2, %v3247_v19  ;;  %831 = vst.msk [vmem:[#allocation3 + $0x38] sm:$0xff] (!%p2749_p12), %vm823_vm2, %v3247_v19 }
  0x3d   : > { %s3420_s12 = scalar_lea.vmem %s4023_s8, %s2892_s0  ;;  %815 = sbr.rel (%p2749_p12) target bundleno = 68 (0x44), region = 97 }
  0x44 PF: > { %p2750_p13 = scmp.ge.s32.totalorder %s3228_s29, 1 }
  0x45   : > { %v2902_v20 = vld [vmem:[%s3393_s24] sm:$0xff] (!%p2750_p13)   ;;  %s4036_s25 = scalar_lea.vmem (!%p2750_p13), %s4016_s1, %s3384_s18  ;;  %v2917_v23 = vld [vmem:[%s3393_s24 + $0x8] sm:$0xff] (!%p2750_p13)   ;;  %s4037_s17 = scalar_lea.vmem (!%p2750_p13), %s4017_s2, %s3384_s18  ;;  %v2918_v27 = vld [vmem:[%s3393_s24 + $0x10] sm:$0xff] (!%p2750_p13)   ;;  %vm1002_vm3 = vcmask (!%p2750_p13), 1040384   ;;  %vm1003_vm4 = vsmask.f32 (!%p2750_p13), 256 }
  0x46   : > { %835 = sbr.rel (%p2750_p13) target bundleno = 137 (0x89), region = 101  ;;  %v2751_v21 = vld [vmem:[%s4036_s25] ss:$0 sm:$0xff] (!%p2750_p13)  ;;  %v2903_v22 = vunpack.c.l.bf16 (!%p2750_p13), %v2902_v20  ;;  %v2904_v25 = vunpack.c.h.bf16 (!%p2750_p13), %v2902_v20  ;;  %v2907_v26 = vunpack.c.l.bf16 (!%p2750_p13), %v2917_v23  ;;  %v2919_v28 = vld [vmem:[%s3393_s24 + $0x18] sm:$0xff] (!%p2750_p13)   ;;  %v2908_v30 = vunpack.c.h.bf16 (!%p2750_p13), %v2917_v23  ;;  %vm3464_vm9 = vmand (!%p2750_p13), %vm1002_vm3, %vm1003_vm4 }
  0x47   : > { %v2752_v24 = vld [vmem:[%s4037_s17] ss:$0 sm:$0xff] (!%p2750_p13)  ;;  %v2911_v31 = vunpack.c.l.bf16 (!%p2750_p13), %v2918_v27  ;;  %v2912_v32 = vunpack.c.h.bf16 (!%p2750_p13), %v2918_v27  ;;  %v2915_v35 = vunpack.c.l.bf16 (!%p2750_p13), %v2919_v28  ;;  %v2916_v36 = vunpack.c.h.bf16 (!%p2750_p13), %v2919_v28 }
  0x48   : > { %v859_v29 = vmul.f32 (!%p2750_p13), %v2903_v22, %v2751_v21  ;;  %v860_v33 = vmul.f32 (!%p2750_p13), %v2904_v25, %v2751_v21  ;;  %v861_v34 = vmul.f32 (!%p2750_p13), %v2907_v26, %v2751_v21  ;;  %v862_v38 = vmul.f32 (!%p2750_p13), %v2908_v30, %v2751_v21 }
  0x49   : > { %v863_v39 = vmul.f32 (!%p2750_p13), %v2911_v31, %v2751_v21  ;;  %v864_v40 = vmul.f32 (!%p2750_p13), %v2912_v32, %v2751_v21  ;;  %v865_v43 = vmul.f32 (!%p2750_p13), %v2915_v35, %v2751_v21  ;;  %v866_v44 = vmul.f32 (!%p2750_p13), %v2916_v36, %v2751_v21 }
  0x4a   : > { %v874_v37 = vadd.f32 (!%p2750_p13), %v2752_v24, %v859_v29  ;;  %v875_v41 = vadd.f32 (!%p2750_p13), %v2752_v24, %v860_v33  ;;  %v3440_v42 = vadd.f32 (!%p2750_p13), %v2752_v24, %v861_v34  ;;  %v3442_v46 = vadd.f32 (!%p2750_p13), %v2752_v24, %v862_v38 }
  0x4b   : > { %v3444_v47 = vadd.f32 (!%p2750_p13), %v2752_v24, %v863_v39  ;;  %v3446_v48 = vadd.f32 (!%p2750_p13), %v2752_v24, %v864_v40  ;;  %v3449_v51 = vadd.f32 (!%p2750_p13), %v2752_v24, %v865_v43  ;;  %v3451_v52 = vadd.f32 (!%p2750_p13), %v2752_v24, %v866_v44 }
  0x4c   : > { %v882_v45 = vsub.f32 (!%p2750_p13), 0.0, %v874_v37  ;;  %v883_v49 = vsub.f32 (!%p2750_p13), 0.0, %v875_v41  ;;  %v884_v50 = vsub.f32 (!%p2750_p13), 0.0, %v3440_v42  ;;  %v885_v54 = vsub.f32 (!%p2750_p13), 0.0, %v3442_v46 }
  0x4d   : > { %v886_v55 = vsub.f32 0.0, %v3444_v47  ;;  %v887_v56 = vsub.f32 0.0, %v3446_v48  ;;  %v888_v59 = vsub.f32 0.0, %v3449_v51  ;;  %v889_v0 = vsub.f32 0.0, %v3451_v52 }
  0x4e   : > { %v890_v53 = vmul.f32 1.442695, %v882_v45  ;;  %v892_v57 = vmul.f32 1.442695, %v883_v49  ;;  %v894_v58 = vmul.f32 1.442695, %v884_v50 }
  0x4f   : > { %v896_v60 = vmul.f32 1.442695, %v885_v54  ;;  %v898_v61 = vmul.f32 1.442695, %v886_v55  ;;  %v900_v62 = vmul.f32 1.442695, %v887_v56 }
  0x50   : > { %3084 = vpow2.f32 %v890_v53  ;;  %v902_v63 = vmul.f32 1.442695, %v888_v59  ;;  %v904_v1 = vmul.f32 1.442695, %v889_v0  ;;  %vm1013_vm5 = vcmask 1044480  }
  0x51   : > { %3086 = vpow2.f32 %v892_v57  ;;  %vm1014_vm6 = vsmask.f32 4352  ;;  %vm1081_vm7 = vcmask 257024   ;;  %vm1083_vm8 = vcmask 253952  }
  0x52   : > { %3088 = vpow2.f32 %v894_v58  ;;  %vm3470_vm10 = vmand %vm1013_vm5, %vm1014_vm6 }
  0x53   : > { %3090 = vpow2.f32 %v896_v60 }
  0x54   : > { %3092 = vpow2.f32 %v898_v61 }
  0x55   : > { %3094 = vpow2.f32 %v900_v62 }
  0x56   : > { %3096 = vpow2.f32 %v902_v63 }
  0x57   : > { %3098 = vpow2.f32 %v904_v1 }
  0x5a   : > { %v3085_v2 = vpop.eup %3084 }
  0x5b   : > { %v3087_v3 = vpop.eup %3086  ;;  %v906_v4 = vadd.f32 1.0, %v3085_v2 }
  0x5c   : > { %v3089_v5 = vpop.eup %3088  ;;  %v907_v6 = vadd.f32 1.0, %v3087_v3 }
  0x5d   : > { %v3091_v7 = vpop.eup %3090  ;;  %3100 = vrcp.f32 %v906_v4  ;;  %v908_v8 = vadd.f32 1.0, %v3089_v5 }
  0x5e   : > { %v3093_v9 = vpop.eup %3092  ;;  %3102 = vrcp.f32 %v907_v6  ;;  %v909_v10 = vadd.f32 1.0, %v3091_v7 }
  0x5f   : > { %v3095_v11 = vpop.eup %3094  ;;  %3104 = vrcp.f32 %v908_v8  ;;  %v910_v12 = vadd.f32 1.0, %v3093_v9 }
  0x60   : > { %v3097_v13 = vpop.eup %3096  ;;  %3106 = vrcp.f32 %v909_v10  ;;  %v911_v14 = vadd.f32 1.0, %v3095_v11 }
  0x61   : > { %3108 = vrcp.f32 %v910_v12  ;;  %v912_v15 = vadd.f32 1.0, %v3097_v13  ;;  %v3099_v16 = vpop.eup %3098 }
  0x62   : > { %3110 = vrcp.f32 %v911_v14  ;;  %v913_v18 = vadd.f32 1.0, %v3099_v16 }
  0x63   : > { %3112 = vrcp.f32 %v912_v15 }
  0x64   : > { %3114 = vrcp.f32 %v913_v18 }
  0x67   : > { %v3101_v17 = vpop.eup %3100 }
  0x68   : > { %v3103_v19 = vpop.eup %3102  ;;  %v922_v20 = vmul.f32 %v3101_v17, %v874_v37 }
  0x69   : > { %v3105_v21 = vpop.eup %3104  ;;  %v923_v22 = vmul.f32 %v3103_v19, %v875_v41 }
  0x6a   : > { %v3107_v23 = vpop.eup %3106  ;;  %v930_v24 = vpack.c.bf16 %v922_v20, %v922_v20  ;;  %v924_v25 = vmul.f32 %v3105_v21, %v3440_v42 }
  0x6b   : > { %v3109_v26 = vpop.eup %3108  ;;  %v931_v27 = vpack.c.bf16 %v923_v22, %v923_v22  ;;  %v925_v28 = vmul.f32 %v3107_v23, %v3442_v46 }
  0x6c   : > { %v3111_v29 = vpop.eup %3110  ;;  %v939_v30 = vshrl.u32 %v930_v24, 16  ;;  %v942_v31 = vshll.u32 %v930_v24, 16  ;;  %v932_v32 = vpack.c.bf16 %v924_v25, %v924_v25  ;;  %v926_v33 = vmul.f32 %v3109_v26, %v3444_v47 }
  0x6d   : > { %v946_v34 = vshrl.u32 %v931_v27, 16  ;;  %v949_v35 = vshll.u32 %v931_v27, 16  ;;  %v933_v36 = vpack.c.bf16 %v925_v28, %v925_v28  ;;  %v927_v37 = vmul.f32 %v3111_v29, %v3446_v48  ;;  %v3113_v42 = vpop.eup %3112 }
  0x6e   : > { %v941_v38 = vrot.slane %v939_v30, 7  ;;  %v953_v39 = vshrl.u32 %v932_v32, 16  ;;  %v956_v40 = vshll.u32 %v932_v32, 16  ;;  %v934_v41 = vpack.c.bf16 %v926_v33, %v926_v33  ;;  %v3115_v7 = vpop.eup %3114 }
  0x6f   : > { %v948_v44 = vrot.slane %v946_v34, 7  ;;  %v960_v45 = vshrl.u32 %v933_v36, 16  ;;  %v963_v46 = vshll.u32 %v933_v36, 16  ;;  %v935_v47 = vpack.c.bf16 %v927_v37, %v927_v37 }
  0x70   : > { %v944_v49 = vor.u32 %v942_v31, %v941_v38  ;;  %v955_v50 = vrot.slane %v953_v39, 7  ;;  %v967_v53 = vshrl.u32 %v934_v41, 16  ;;  %v970_v54 = vshll.u32 %v934_v41, 16 }
  0x71   : > { %v951_v55 = vor.u32 %v949_v35, %v948_v44  ;;  %v962_v56 = vrot.slane %v960_v45, 7  ;;  %v974_v57 = vshrl.u32 %v935_v47, 16  ;;  %v977_v58 = vshll.u32 %v935_v47, 16 }
  0x72   : > { %v1005_v59 = vsel %vm3464_vm9, 0, %v944_v49  ;;  %v958_v60 = vor.u32 %v956_v40, %v955_v50  ;;  %v969_v61 = vrot.slane %v967_v53, 7  ;;  %v928_v62 = vmul.f32 %v3113_v42, %v3449_v51 }
  0x73   : > { %v1016_v63 = vsel %vm3470_vm10, %v1005_v59, 0  ;;  %v1006_v0 = vsel %vm3464_vm9, 0, %v951_v55  ;;  %v965_v1 = vor.u32 %v963_v46, %v962_v56  ;;  %v976_v2 = vrot.slane %v974_v57, 7 }
  0x74   : > { %v2753_v3 = vcombine.low %v1016_v63, %v1016_v63  ;;  %v2754_v4 = vcombine.high %v1016_v63, %v1016_v63  ;;  %v1017_v5 = vsel %vm3470_vm10, %v1006_v0, 0  ;;  %v1007_v6 = vsel %vm3464_vm9, 0, %v958_v60 }
  0x75   : > { %v2755_v8 = vcombine.low %v1017_v5, %v1017_v5  ;;  %v2756_v9 = vcombine.high %v1017_v5, %v1017_v5  ;;  %v1018_v51 = vsel %vm3470_vm10, %v1007_v6, 0  ;;  %v1008_v10 = vsel %vm3464_vm9, 0, %v965_v1 }
  0x76   : > { %1082 = vst.msk [vmem:[#allocation2 + $0x8] sm:$0xf] %vm1081_vm7, %v2753_v3  ;;  %v2757_v11 = vcombine.low %v1018_v51, %v1018_v51  ;;  %v2758_v12 = vcombine.high %v1018_v51, %v1018_v51  ;;  %v1019_v13 = vsel %vm3470_vm10, %v1008_v10, 0  ;;  %v972_v14 = vor.u32 %v970_v54, %v969_v61 }
  0x77   : > { %1084 = vst.msk [vmem:[#allocation2 + $0xc] sm:$0x1] %vm1083_vm8, %v2754_v4  ;;  %1086 = vst.msk [vmem:[#allocation2 + $0x14] sm:$0x1] %vm1083_vm8, %v2756_v9  ;;  %v2759_v15 = vcombine.low %v1019_v13, %v1019_v13  ;;  %v2760_v16 = vcombine.high %v1019_v13, %v1019_v13  ;;  %v979_v17 = vor.u32 %v977_v58, %v976_v2 }
  0x78   : > { %1085 = vst.msk [vmem:[#allocation2 + $0x10] sm:$0xf] %vm1081_vm7, %v2755_v8  ;;  %v936_v18 = vpack.c.bf16 %v928_v62, %v928_v62  ;;  %1087 = vst.msk [vmem:[#allocation2 + $0x18] sm:$0xf] %vm1081_vm7, %v2757_v11  ;;  %v1009_v19 = vsel %vm3464_vm9, 0, %v972_v14  ;;  %v929_v20 = vmul.f32 %v3115_v7, %v3451_v52 }
  0x79   : > { %1088 = vst.msk [vmem:[#allocation2 + $0x1c] sm:$0x1] %vm1083_vm8, %v2758_v12  ;;  %1090 = vst.msk [vmem:[#allocation2 + $0x24] sm:$0x1] %vm1083_vm8, %v2760_v16  ;;  %v1020_v21 = vsel %vm3470_vm10, %v1009_v19, 0  ;;  %v1010_v22 = vsel %vm3464_vm9, 0, %v979_v17 }
  0x7a   : > { %1089 = vst.msk [vmem:[#allocation2 + $0x20] sm:$0xf] %vm1081_vm7, %v2759_v15  ;;  %v981_v23 = vshrl.u32 %v936_v18, 16  ;;  %v984_v24 = vshll.u32 %v936_v18, 16  ;;  %v2761_v25 = vcombine.low %v1020_v21, %v1020_v21  ;;  %v2762_v26 = vcombine.high %v1020_v21, %v1020_v21 }
  0x7b   : > { %v1021_v27 = vsel %vm3470_vm10, %v1010_v22, 0  ;;  %v937_v28 = vpack.c.bf16 %v929_v20, %v929_v20 }
  0x7c   : > { %v2763_v29 = vcombine.low %v1021_v27, %v1021_v27  ;;  %v2764_v52 = vcombine.high %v1021_v27, %v1021_v27  ;;  %v983_v30 = vrot.slane %v981_v23, 7  ;;  %1091 = vst.msk [vmem:[#allocation2 + $0x28] sm:$0xf] %vm1081_vm7, %v2761_v25 }
  0x7d   : > { %1092 = vst.msk [vmem:[#allocation2 + $0x2c] sm:$0x1] %vm1083_vm8, %v2762_v26  ;;  %v988_v31 = vshrl.u32 %v937_v28, 16  ;;  %v991_v32 = vshll.u32 %v937_v28, 16 }
  0x7e   : > { %1093 = vst.msk [vmem:[#allocation2 + $0x30] sm:$0xf] %vm1081_vm7, %v2763_v29  ;;  %v986_v33 = vor.u32 %v984_v24, %v983_v30 }
  0x7f   : > { %1094 = vst.msk [vmem:[#allocation2 + $0x34] sm:$0x1] %vm1083_vm8, %v2764_v52  ;;  %v990_v34 = vrot.slane %v988_v31, 7 }
  0x80   : > { %v1011_v35 = vsel %vm3464_vm9, 0, %v986_v33 }
  0x81   : > { %v1022_v36 = vsel %vm3470_vm10, %v1011_v35, 0  ;;  %v993_v37 = vor.u32 %v991_v32, %v990_v34 }
  0x82   : > { %v2765_v38 = vcombine.low %v1022_v36, %v1022_v36  ;;  %v2766_v39 = vcombine.high %v1022_v36, %v1022_v36 }
  0x83   : > { %v1012_v40 = vsel %vm3464_vm9, 0, %v993_v37 }
  0x84   : > { %1095 = vst.msk [vmem:[#allocation2 + $0x38] sm:$0xf] %vm1081_vm7, %v2765_v38  ;;  %v1023_v41 = vsel %vm3470_vm10, %v1012_v40, 0 }
  0x85   : > { %1096 = vst.msk [vmem:[#allocation2 + $0x3c] sm:$0x1] %vm1083_vm8, %v2766_v39  ;;  %v2767_v42 = vcombine.low %v1023_v41, %v1023_v41  ;;  %v2768_v44 = vcombine.high %v1023_v41, %v1023_v41 }
  0x87   : > { %1097 = vst.msk [vmem:[#allocation2 + $0x40] sm:$0xf] %vm1081_vm7, %v2767_v42 }
  0x88   : > { %1098 = vst.msk [vmem:[#allocation2 + $0x44] sm:$0x1] %vm1083_vm8, %v2768_v44 }
  0x89 PF: > { %p2769_p0 = scmp.lt.s32.totalorder %s3228_s29, 1 }
  0x8a   : > { %v1103_v43 = vld [vmem:[%s3402_s26] sm:$0xff] (!%p2769_p0)  ;;  %v1104_v49 = vld [vmem:[%s3402_s26 + $0x8] sm:$0xff] (!%p2769_p0)  ;;  %v1105_v50 = vld [vmem:[%s3402_s26 + $0x10] sm:$0xff] (!%p2769_p0)  ;;  %vm1261_vm11 = vcmask (!%p2769_p0), 1040384   ;;  %vm1262_vm12 = vsmask.f32 (!%p2769_p0), 256 }
  0x8b   : > { %1102 = sbr.rel (%p2769_p0) target bundleno = 205 (0xcd), region = 105  ;;  %v2770_v45 = vld [vmem:[%s780_s16] ss:$0 sm:$0xff] (!%p2769_p0)  ;;  %v1106_v53 = vld [vmem:[%s3402_s26 + $0x18] sm:$0xff] (!%p2769_p0)  ;;  %v1108_v58 = vld [vmem:[%s3402_s26 + $0x28] sm:$0xff] (!%p2769_p0)  ;;  %vm1272_vm13 = vcmask (!%p2769_p0), 1044480  }
  0x8c   : > { %v2771_v46 = vld [vmem:[%s792_s21] ss:$0 sm:$0xff] (!%p2769_p0)  ;;  %v1118_v47 = vmul.f32 (!%p2769_p0), %v2770_v45, %v1103_v43  ;;  %v1119_v48 = vmul.f32 (!%p2769_p0), %v2770_v45, %v1104_v49  ;;  %v1120_v55 = vmul.f32 (!%p2769_p0), %v2770_v45, %v1105_v50  ;;  %v1121_v56 = vmul.f32 (!%p2769_p0), %v2770_v45, %v1106_v53  ;;  %v1109_v62 = vld [vmem:[%s3402_s26 + $0x30] sm:$0xff] (!%p2769_p0)  ;;  %v1110_v63 = vld [vmem:[%s3402_s26 + $0x38] sm:$0xff] (!%p2769_p0) }
  0x8d   : > { %v1107_v57 = vld [vmem:[%s3402_s26 + $0x20] sm:$0xff] (!%p2769_p0)  ;;  %v1123_v61 = vmul.f32 (!%p2769_p0), %v2770_v45, %v1108_v58  ;;  %v1124_v3 = vmul.f32 (!%p2769_p0), %v2770_v45, %v1109_v62  ;;  %v1125_v7 = vmul.f32 (!%p2769_p0), %v2770_v45, %v1110_v63  ;;  %vm1273_vm14 = vsmask.f32 (!%p2769_p0), 4352  ;;  %vm3575_vm1 = vmand (!%p2769_p0), %vm1261_vm11, %vm1262_vm12 }
  0x8e   : > { %v3539_v54 = vadd.f32 (!%p2769_p0), %v2771_v46, %v1118_v47  ;;  %v3543_v59 = vadd.f32 (!%p2769_p0), %v2771_v46, %v1119_v48  ;;  %v1122_v60 = vmul.f32 (!%p2769_p0), %v2770_v45, %v1107_v57  ;;  %v3548_v1 = vadd.f32 (!%p2769_p0), %v2771_v46, %v1120_v55  ;;  %vm3581_vm2 = vmand (!%p2769_p0), %vm1272_vm13, %vm1273_vm14 }
  0x8f   : > { %v3550_v2 = vadd.f32 (!%p2769_p0), %v2771_v46, %v1121_v56  ;;  %v3555_v6 = vadd.f32 (!%p2769_p0), %v2771_v46, %v1123_v61  ;;  %v3559_v10 = vadd.f32 (!%p2769_p0), %v2771_v46, %v1124_v3  ;;  %v3563_v14 = vadd.f32 (!%p2769_p0), %v2771_v46, %v1125_v7 }
  0x90   : > { %v1141_v0 = vsub.f32 (!%p2769_p0), 0.0, %v3539_v54  ;;  %v1142_v4 = vsub.f32 (!%p2769_p0), 0.0, %v3543_v59  ;;  %v3553_v5 = vadd.f32 (!%p2769_p0), %v2771_v46, %v1122_v60  ;;  %v1143_v9 = vsub.f32 (!%p2769_p0), 0.0, %v3548_v1 }
  0x91   : > { %v1144_v51 = vsub.f32 (!%p2769_p0), 0.0, %v3550_v2  ;;  %v1146_v13 = vsub.f32 (!%p2769_p0), 0.0, %v3555_v6  ;;  %v1147_v17 = vsub.f32 (!%p2769_p0), 0.0, %v3559_v10  ;;  %v1148_v21 = vsub.f32 (!%p2769_p0), 0.0, %v3563_v14 }
  0x92   : > { %v1149_v8 = vmul.f32 1.442695, %v1141_v0  ;;  %v1151_v11 = vmul.f32 1.442695, %v1142_v4  ;;  %v1145_v12 = vsub.f32 0.0, %v3553_v5  ;;  %vm1340_vm15 = vcmask 257024  }
  0x93   : > { %v1153_v15 = vmul.f32 1.442695, %v1143_v9  ;;  %v1155_v16 = vmul.f32 1.442695, %v1144_v51  ;;  %v1159_v19 = vmul.f32 1.442695, %v1146_v13 }
  0x94   : > { %3116 = vpow2.f32 %v1149_v8  ;;  %v1157_v18 = vmul.f32 1.442695, %v1145_v12  ;;  %v1161_v20 = vmul.f32 1.442695, %v1147_v17  ;;  %v1163_v22 = vmul.f32 1.442695, %v1148_v21 }
  0x95   : > { %3118 = vpow2.f32 %v1151_v11  ;;  %vm1342_vm0 = vcmask 253952  }
  0x96   : > { %3120 = vpow2.f32 %v1153_v15 }
  0x97   : > { %3122 = vpow2.f32 %v1155_v16 }
  0x98   : > { %3124 = vpow2.f32 %v1157_v18 }
  0x99   : > { %3126 = vpow2.f32 %v1159_v19 }
  0x9a   : > { %3128 = vpow2.f32 %v1161_v20 }
  0x9b   : > { %3130 = vpow2.f32 %v1163_v22 }
  0x9e   : > { %v3117_v23 = vpop.eup %3116 }
  0x9f   : > { %v3119_v24 = vpop.eup %3118  ;;  %v1165_v25 = vadd.f32 1.0, %v3117_v23 }
  0xa0   : > { %v3121_v26 = vpop.eup %3120  ;;  %v1166_v27 = vadd.f32 1.0, %v3119_v24 }
  0xa1   : > { %v3123_v28 = vpop.eup %3122  ;;  %3132 = vrcp.f32 %v1165_v25  ;;  %v1167_v29 = vadd.f32 1.0, %v3121_v26 }
  0xa2   : > { %v3125_v52 = vpop.eup %3124  ;;  %3134 = vrcp.f32 %v1166_v27  ;;  %v1168_v30 = vadd.f32 1.0, %v3123_v28 }
  0xa3   : > { %v3127_v31 = vpop.eup %3126  ;;  %3136 = vrcp.f32 %v1167_v29  ;;  %v1169_v32 = vadd.f32 1.0, %v3125_v52 }
  0xa4   : > { %v3129_v33 = vpop.eup %3128  ;;  %3138 = vrcp.f32 %v1168_v30  ;;  %v1170_v34 = vadd.f32 1.0, %v3127_v31 }
  0xa5   : > { %3140 = vrcp.f32 %v1169_v32  ;;  %v1171_v35 = vadd.f32 1.0, %v3129_v33  ;;  %v3131_v36 = vpop.eup %3130 }
  0xa6   : > { %3142 = vrcp.f32 %v1170_v34  ;;  %v1172_v38 = vadd.f32 1.0, %v3131_v36 }
  0xa7   : > { %3144 = vrcp.f32 %v1171_v35 }
  0xa8   : > { %3146 = vrcp.f32 %v1172_v38 }
  0xab   : > { %v3133_v37 = vpop.eup %3132 }
  0xac   : > { %v3135_v39 = vpop.eup %3134  ;;  %v1181_v40 = vmul.f32 %v3133_v37, %v3539_v54 }
  0xad   : > { %v3137_v41 = vpop.eup %3136  ;;  %v1182_v42 = vmul.f32 %v3135_v39, %v3543_v59 }
  0xae   : > { %v3139_v44 = vpop.eup %3138  ;;  %v1189_v43 = vpack.c.bf16 %v1181_v40, %v1181_v40  ;;  %v1183_v45 = vmul.f32 %v3137_v41, %v3548_v1 }
  0xaf   : > { %v3141_v46 = vpop.eup %3140  ;;  %v1190_v47 = vpack.c.bf16 %v1182_v42, %v1182_v42  ;;  %v1184_v49 = vmul.f32 %v3139_v44, %v3550_v2 }
  0xb0   : > { %v3143_v48 = vpop.eup %3142  ;;  %v1198_v50 = vshrl.u32 %v1189_v43, 16  ;;  %v1201_v53 = vshll.u32 %v1189_v43, 16  ;;  %v1191_v54 = vpack.c.bf16 %v1183_v45, %v1183_v45  ;;  %v1185_v55 = vmul.f32 %v3141_v46, %v3553_v5 }
  0xb1   : > { %v1205_v56 = vshrl.u32 %v1190_v47, 16  ;;  %v1208_v57 = vshll.u32 %v1190_v47, 16  ;;  %v1192_v58 = vpack.c.bf16 %v1184_v49, %v1184_v49  ;;  %v1186_v59 = vmul.f32 %v3143_v48, %v3555_v6  ;;  %v3145_v0 = vpop.eup %3144 }
  0xb2   : > { %v1200_v60 = vrot.slane %v1198_v50, 7  ;;  %v1212_v61 = vshrl.u32 %v1191_v54, 16  ;;  %v1215_v62 = vshll.u32 %v1191_v54, 16  ;;  %v1193_v63 = vpack.c.bf16 %v1185_v55, %v1185_v55  ;;  %v3147_v28 = vpop.eup %3146 }
  0xb3   : > { %v1207_v2 = vrot.slane %v1205_v56, 7  ;;  %v1219_v3 = vshrl.u32 %v1192_v58, 16  ;;  %v1222_v4 = vshll.u32 %v1192_v58, 16  ;;  %v1194_v5 = vpack.c.bf16 %v1186_v59, %v1186_v59 }
  0xb4   : > { %v1203_v7 = vor.u32 %v1201_v53, %v1200_v60  ;;  %v1214_v8 = vrot.slane %v1212_v61, 7  ;;  %v1226_v9 = vshrl.u32 %v1193_v63, 16  ;;  %v1229_v51 = vshll.u32 %v1193_v63, 16 }
  0xb5   : > { %v1210_v11 = vor.u32 %v1208_v57, %v1207_v2  ;;  %v1221_v12 = vrot.slane %v1219_v3, 7  ;;  %v1233_v13 = vshrl.u32 %v1194_v5, 16  ;;  %v1236_v15 = vshll.u32 %v1194_v5, 16 }
  0xb6   : > { %v1264_v16 = vsel %vm3575_vm1, 0, %v1203_v7  ;;  %v1217_v17 = vor.u32 %v1215_v62, %v1214_v8  ;;  %v1228_v18 = vrot.slane %v1226_v9, 7  ;;  %v1187_v19 = vmul.f32 %v3145_v0, %v3559_v10 }
  0xb7   : > { %v1275_v20 = vsel %vm3581_vm2, %v1264_v16, 0  ;;  %v1265_v21 = vsel %vm3575_vm1, 0, %v1210_v11  ;;  %v1224_v22 = vor.u32 %v1222_v4, %v1221_v12  ;;  %v1235_v23 = vrot.slane %v1233_v13, 7 }
  0xb8   : > { %v2772_v24 = vcombine.low %v1275_v20, %v1275_v20  ;;  %v2773_v25 = vcombine.high %v1275_v20, %v1275_v20  ;;  %v1276_v26 = vsel %vm3581_vm2, %v1265_v21, 0  ;;  %v1266_v27 = vsel %vm3575_vm1, 0, %v1217_v17 }
  0xb9   : > { %v2774_v29 = vcombine.low %v1276_v26, %v1276_v26  ;;  %v2775_v52 = vcombine.high %v1276_v26, %v1276_v26  ;;  %v1277_v10 = vsel %vm3581_vm2, %v1266_v27, 0  ;;  %v1267_v30 = vsel %vm3575_vm1, 0, %v1224_v22 }
  0xba   : > { %1341 = vst.msk [vmem:[#allocation2 + $0x8] sm:$0xf] %vm1340_vm15, %v2772_v24  ;;  %v2776_v31 = vcombine.low %v1277_v10, %v1277_v10  ;;  %v2777_v32 = vcombine.high %v1277_v10, %v1277_v10  ;;  %v1278_v33 = vsel %vm3581_vm2, %v1267_v30, 0  ;;  %v1231_v34 = vor.u32 %v1229_v51, %v1228_v18 }
  0xbb   : > { %1343 = vst.msk [vmem:[#allocation2 + $0xc] sm:$0x1] %vm1342_vm0, %v2773_v25  ;;  %1345 = vst.msk [vmem:[#allocation2 + $0x14] sm:$0x1] %vm1342_vm0, %v2775_v52  ;;  %v2778_v35 = vcombine.low %v1278_v33, %v1278_v33  ;;  %v2779_v36 = vcombine.high %v1278_v33, %v1278_v33  ;;  %v1238_v37 = vor.u32 %v1236_v15, %v1235_v23 }
  0xbc   : > { %1344 = vst.msk [vmem:[#allocation2 + $0x10] sm:$0xf] %vm1340_vm15, %v2774_v29  ;;  %v1195_v38 = vpack.c.bf16 %v1187_v19, %v1187_v19  ;;  %1346 = vst.msk [vmem:[#allocation2 + $0x18] sm:$0xf] %vm1340_vm15, %v2776_v31  ;;  %v1268_v39 = vsel %vm3575_vm1, 0, %v1231_v34  ;;  %v1188_v40 = vmul.f32 %v3147_v28, %v3563_v14 }
  0xbd   : > { %1347 = vst.msk [vmem:[#allocation2 + $0x1c] sm:$0x1] %vm1342_vm0, %v2777_v32  ;;  %1349 = vst.msk [vmem:[#allocation2 + $0x24] sm:$0x1] %vm1342_vm0, %v2779_v36  ;;  %v1279_v41 = vsel %vm3581_vm2, %v1268_v39, 0  ;;  %v1269_v42 = vsel %vm3575_vm1, 0, %v1238_v37 }
  0xbe   : > { %1348 = vst.msk [vmem:[#allocation2 + $0x20] sm:$0xf] %vm1340_vm15, %v2778_v35  ;;  %v1240_v44 = vshrl.u32 %v1195_v38, 16  ;;  %v1243_v43 = vshll.u32 %v1195_v38, 16  ;;  %v2780_v45 = vcombine.low %v1279_v41, %v1279_v41  ;;  %v2781_v46 = vcombine.high %v1279_v41, %v1279_v41 }
  0xbf   : > { %v1280_v47 = vsel %vm3581_vm2, %v1269_v42, 0  ;;  %v1196_v49 = vpack.c.bf16 %v1188_v40, %v1188_v40 }
  0xc0   : > { %v2782_v48 = vcombine.low %v1280_v47, %v1280_v47  ;;  %v2783_v14 = vcombine.high %v1280_v47, %v1280_v47  ;;  %v1242_v50 = vrot.slane %v1240_v44, 7  ;;  %1350 = vst.msk [vmem:[#allocation2 + $0x28] sm:$0xf] %vm1340_vm15, %v2780_v45 }
  0xc1   : > { %1351 = vst.msk [vmem:[#allocation2 + $0x2c] sm:$0x1] %vm1342_vm0, %v2781_v46  ;;  %v1247_v53 = vshrl.u32 %v1196_v49, 16  ;;  %v1250_v54 = vshll.u32 %v1196_v49, 16 }
  0xc2   : > { %1352 = vst.msk [vmem:[#allocation2 + $0x30] sm:$0xf] %vm1340_vm15, %v2782_v48  ;;  %v1245_v55 = vor.u32 %v1243_v43, %v1242_v50 }
  0xc3   : > { %1353 = vst.msk [vmem:[#allocation2 + $0x34] sm:$0x1] %vm1342_vm0, %v2783_v14  ;;  %v1249_v56 = vrot.slane %v1247_v53, 7 }
  0xc4   : > { %v1270_v57 = vsel %vm3575_vm1, 0, %v1245_v55 }
  0xc5   : > { %v1281_v58 = vsel %vm3581_vm2, %v1270_v57, 0  ;;  %v1252_v59 = vor.u32 %v1250_v54, %v1249_v56 }
  0xc6   : > { %v2784_v60 = vcombine.low %v1281_v58, %v1281_v58  ;;  %v2785_v61 = vcombine.high %v1281_v58, %v1281_v58 }
  0xc7   : > { %v1271_v62 = vsel %vm3575_vm1, 0, %v1252_v59 }
  0xc8   : > { %1354 = vst.msk [vmem:[#allocation2 + $0x38] sm:$0xf] %vm1340_vm15, %v2784_v60  ;;  %v1282_v63 = vsel %vm3581_vm2, %v1271_v62, 0 }
  0xc9   : > { %1355 = vst.msk [vmem:[#allocation2 + $0x3c] sm:$0x1] %vm1342_vm0, %v2785_v61  ;;  %v2786_v0 = vcombine.low %v1282_v63, %v1282_v63  ;;  %v2787_v2 = vcombine.high %v1282_v63, %v1282_v63 }
  0xcb   : > { %1356 = vst.msk [vmem:[#allocation2 + $0x40] sm:$0xf] %vm1340_vm15, %v2786_v0 }
  0xcc   : > { %1357 = vst.msk [vmem:[#allocation2 + $0x44] sm:$0x1] %vm1342_vm0, %v2787_v2 }
  0xcd PF: > { %v3635_v3 = vld [vmem:[#allocation2 + $0x8] sm:$0xf]  ;;  %v1361_v4 = vld [vmem:[#allocation2 + $0xc] sm:$0x1]  ;;  %v3638_v5 = vld [vmem:[#allocation2] sm:$0xf] }
  0xce   : > { %v2789_v1 = vcombine.low %v3635_v3, %v1361_v4  ;;  %v1359_v7 = vld [vmem:[#allocation2 + $0x4] sm:$0x1]  ;;  %v3640_v8 = vld [vmem:[#allocation2 + $0x10] sm:$0xf]  ;;  %v1363_v9 = vld [vmem:[#allocation2 + $0x14] sm:$0x1] }
  0xcf   : > { %v2788_v6 = vcombine.low %v3638_v5, %v1359_v7  ;;  %v3643_v51 = vld [vmem:[#allocation2 + $0x18] sm:$0xf]  ;;  %v1365_v11 = vld [vmem:[#allocation2 + $0x1c] sm:$0x1]  ;;  %v2790_v13 = vcombine.low %v3640_v8, %v1363_v9  ;;  %v3649_v16 = vld [vmem:[#allocation2 + $0x10] sm:$0xf] }
  0xd0   : > { %v1487_v12 = vrot.slane %v2789_v1, 1  ;;  %v3647_v15 = vcombine.low %v3643_v51, %v1365_v11  ;;  %v1726_v17 = vld [vmem:[#allocation2 + $0x14] sm:$0x1]  ;;  %v1424_v21 = vshll.u32 %v2789_v1, 16  ;;  %v3651_v22 = vld [vmem:[#allocation2 + $0x8] sm:$0xf] }
  0xd1   : > { %v1486_v18 = vrot.slane %v2788_v6, 1  ;;  %v1415_v19 = vshrl.u32 %v2788_v6, 16  ;;  %v1417_v20 = vshll.u32 %v2788_v6, 16  ;;  %s3248_s16 = smov 64   ;;  %v1429_v23 = vshrl.u32 %v2790_v13, 16  ;;  %s3249_s21 = smov 32  }
  0xd2   : > { %1496 = vrot.lane.b32.xlu1 %v1487_v12, %s3248_s16  ;;  %v1431_v24 = vshll.u32 %v2790_v13, 16  ;;  %v1438_v25 = vshll.u32 %v3647_v15, 16  ;;  %v1724_v26 = vld [vmem:[#allocation2 + $0xc] sm:$0x1]  ;;  %v1436_v28 = vshrl.u32 %v3647_v15, 16  ;;  %v1422_v29 = vshrl.u32 %v2789_v1, 16 }
  0xd3   : > { %1494 = vrot.lane.b32.xlu0 %v1486_v18, %s3248_s16  ;;  %v1419_v27 = vrot.slane %v1417_v20, 1  ;;  %v1426_v52 = vrot.slane %v1424_v21, 1  ;;  %v3658_v31 = vcombine.low %v3649_v16, %v1726_v17  ;;  %v3661_v32 = vcombine.low %v3651_v22, %v1724_v26  ;;  %v3663_v33 = vld [vmem:[#allocation2 + $0x20] sm:$0xf]  ;;  %v1730_v35 = vld [vmem:[#allocation2 + $0x24] sm:$0x1] }
  0xd4   : > { %v1433_v10 = vrot.slane %v1431_v24, 1  ;;  %v1440_v30 = vrot.slane %v1438_v25, 1  ;;  %v3665_v36 = vld [vmem:[#allocation2 + $0x18] sm:$0xf]  ;;  %v1728_v37 = vld [vmem:[#allocation2 + $0x1c] sm:$0x1]  ;;  %v3672_v44 = vcombine.low %v3663_v33, %v1730_v35 }
  0xd5   : > { %v1420_v34 = vor.u32 %v1419_v27, %v1415_v19  ;;  %v1427_v39 = vor.u32 %v1426_v52, %v1422_v29  ;;  %v1782_v40 = vshll.u32 %v3661_v32, 16  ;;  %v1789_v42 = vshll.u32 %v3658_v31, 16  ;;  %v3172_v45 = vld [vmem:[%s3422_s10] sm:$0xff]   ;;  %v3173_v46 = vld [vmem:[%s3422_s10 + $0x8] sm:$0xff]   ;;  %v3174_v56 = vld [vmem:[%s3422_s10 + $0x10] sm:$0xff]   ;;  %p2878_p1 = scmp.ne.s32.totalorder %s3228_s29, 1 }
  0xd6   : > { %v1434_v38 = vor.u32 %v1433_v10, %v1429_v23  ;;  %v1441_v41 = vor.u32 %v1440_v30, %v1436_v28  ;;  %v3675_v43 = vcombine.low %v3665_v36, %v1728_v37  ;;  %2950 = vmatprep.subr.bf16.mxu0 %v3172_v45  ;;  %v1488_v47 = vrot.slane %v2790_v13, 1  ;;  %v3687_v57 = vld [vmem:[#allocation2 + $0x28] sm:$0xf]  ;;  %v1369_v58 = vld [vmem:[#allocation2 + $0x2c] sm:$0x1]  ;;  %v3177_v63 = vld [vmem:[%s3422_s10 + $0x30] sm:$0xff]  }
  0xd7   : > { %1470 = vrot.lane.b32.xlu0 %v1420_v34, %s3249_s21  ;;  %v1780_v49 = vshrl.u32 %v3661_v32, 16  ;;  %v1784_v48 = vrot.slane %v1782_v40, 1  ;;  %2951 = vmatpush3.bf16.msra.mxu0 %v3172_v45  ;;  %v1489_v50 = vrot.slane %v3647_v15, 1  ;;  %v1787_v53 = vshrl.u32 %v3658_v31, 16  ;;  %v3691_v62 = vld [vmem:[#allocation2 + $0x20] sm:$0xf] }
  0xd8   : > { %1474 = vrot.lane.b32.xlu1 %v1434_v38, %s3249_s21  ;;  %v1796_v14 = vshll.u32 %v3675_v43, 16  ;;  %v1791_v54 = vrot.slane %v1789_v42, 1  ;;  %v1803_v55 = vshll.u32 %v3672_v44, 16  ;;  %2952 = vmatprep.subr.bf16.mxu0 %v3173_v46  ;;  %v1794_v60 = vshrl.u32 %v3675_v43, 16  ;;  %v1367_v1 = vld [vmem:[#allocation2 + $0x24] sm:$0x1] }
  0xd9   : > { %v1785_v59 = vor.u32 %v1784_v48, %v1780_v49  ;;  %v1801_v2 = vshrl.u32 %v3672_v44, 16  ;;  %v3175_v7 = vld [vmem:[%s3422_s10 + $0x18] sm:$0xff]   ;;  %2970 = vmatprep.subr.bf16.mxu1 %v3177_v63  ;;  %v3699_v9 = vcombine.low %v3687_v57, %v1369_v58  ;;  %v3702_v11 = vcombine.low %v3691_v62, %v1367_v1  ;;  %v3705_v13 = vld [vmem:[#allocation2 + $0x30] sm:$0xf]  ;;  %v1371_v15 = vld [vmem:[#allocation2 + $0x34] sm:$0x1] }
  0xda   : > { %v1798_v61 = vrot.slane %v1796_v14, 1  ;;  %v1792_v0 = vor.u32 %v1791_v54, %v1787_v53  ;;  %v1805_v4 = vrot.slane %v1803_v55, 1  ;;  %2971 = vmatpush3.bf16.msra.mxu1 %v3177_v63  ;;  %v3176_v17 = vld [vmem:[%s3422_s10 + $0x20] sm:$0xff]   ;;  %v3708_v18 = vld [vmem:[#allocation2 + $0x38] sm:$0xf]  ;;  %v1851_v21 = vrot.slane %v3661_v32, 1 }
  0xdb   : > { %1472 = vrot.lane.b32.xlu0 %v1427_v39, %s3249_s21  ;;  %2953 = vmatpush3.bf16.msra.mxu0 %v3173_v46  ;;  %v1373_v19 = vld [vmem:[#allocation2 + $0x3c] sm:$0x1]  ;;  %v1452_v23 = vshll.u32 %v3699_v9, 16  ;;  %v1445_v24 = vshll.u32 %v3702_v11, 16  ;;  %v3716_v25 = vcombine.low %v3705_v13, %v1371_v15  ;;  %v1852_v26 = vrot.slane %v3658_v31, 1  ;;  %v3180_v30 = vld [vmem:[%s3422_s10 + $0x40] sm:$0xff]  }
  0xdc   : > { %1476 = vrot.lane.b32.xlu1 %v1441_v41, %s3249_s21  ;;  %2954 = vmatprep.subr.bf16.mxu0 %v3174_v56  ;;  %v1799_v6 = vor.u32 %v1798_v61, %v1794_v60  ;;  %v1806_v12 = vor.u32 %v1805_v4, %v1801_v2  ;;  %v3179_v20 = vld [vmem:[%s3422_s10 + $0x38] sm:$0xff]   ;;  %v3721_v27 = vcombine.low %v3708_v18, %v1373_v19  ;;  %v3178_v28 = vld [vmem:[%s3422_s10 + $0x28] sm:$0xff]   ;;  %v1854_v29 = vrot.slane %v3672_v44, 1  ;;  %v3728_v32 = vld [vmem:[#allocation2 + $0x30] sm:$0xf] }
  0xdd   : > { %v1853_v52 = vrot.slane %v3675_v43, 1  ;;  %v1450_v10 = vshrl.u32 %v3699_v9, 16  ;;  %2972 = vmatprep.subr.bf16.mxu1 %v3179_v20  ;;  %v1734_v34 = vld [vmem:[#allocation2 + $0x34] sm:$0x1]  ;;  %v3730_v35 = vld [vmem:[#allocation2 + $0x28] sm:$0xf] }
  0xde   : > { %v1732_v31 = vld [vmem:[#allocation2 + $0x2c] sm:$0x1]  ;;  %2973 = vmatpush3.bf16.msra.mxu1 %v3179_v20  ;;  %v1454_v37 = vrot.slane %v1452_v23, 1  ;;  %v1443_v38 = vshrl.u32 %v3702_v11, 16  ;;  %v1447_v39 = vrot.slane %v1445_v24, 1  ;;  %v1459_v40 = vshll.u32 %v3716_v25, 16 }
  0xdf   : > { %1498 = vrot.lane.b32.xlu0 %v1488_v47, %s3248_s16  ;;  %2955 = vmatpush3.bf16.msra.mxu0 %v3174_v56  ;;  %v1466_v41 = vshll.u32 %v3721_v27, 16  ;;  %v3737_v42 = vld [vmem:[#allocation2 + $0x38] sm:$0xf]  ;;  %v1457_v43 = vshrl.u32 %v3716_v25, 16  ;;  %v3742_v45 = vcombine.low %v3730_v35, %v1732_v31  ;;  %v1736_v46 = vld [vmem:[#allocation2 + $0x3c] sm:$0x1]  ;;  %v3746_v48 = vcombine.low %v3728_v32, %v1734_v34 }
  0xe0   : > { %1500 = vrot.lane.b32.xlu1 %v1489_v50, %s3248_s16  ;;  %2956 = vmatprep.subr.bf16.mxu0 %v3175_v7  ;;  %v3181_v44 = vld [vmem:[%s3422_s10 + $0x48] sm:$0xff]   ;;  %v1448_v47 = vor.u32 %v1447_v39, %v1443_v38  ;;  %v1461_v49 = vrot.slane %v1459_v40, 1  ;;  %v3182_v14 = vld [vmem:[%s3422_s10 + $0x50] sm:$0xff]   ;;  %v1455_v50 = vor.u32 %v1454_v37, %v1450_v10  ;;  %v1464_v53 = vshrl.u32 %v3721_v27, 16  ;;  %v3183_v1 = vld [vmem:[%s3422_s10 + $0x58] sm:$0xff]  }
  0xe1   : > { %2974 = vmatprep.subr.bf16.mxu1 %v3180_v30  ;;  %v1468_v54 = vrot.slane %v1466_v41, 1  ;;  %v1810_v55 = vshll.u32 %v3742_v45, 16  ;;  %v3753_v56 = vcombine.low %v3737_v42, %v1736_v46  ;;  %v1491_v58 = vrot.slane %v3699_v9, 1  ;;  %v3761_v2 = vld [vmem:[#allocation2 + $0x40] sm:$0xf] }
  0xe2   : > { %2975 = vmatpush3.bf16.msra.mxu1 %v3180_v30  ;;  %v1462_v60 = vor.u32 %v1461_v49, %v1457_v43  ;;  %v1492_v61 = vrot.slane %v3716_v25, 1  ;;  %v1817_v63 = vshll.u32 %v3746_v48, 16  ;;  %v1738_v4 = vld [vmem:[#allocation2 + $0x44] sm:$0x1]  ;;  %v1815_v15 = vshrl.u32 %v3746_v48, 16 }
  0xe3   : > { %1835 = vrot.lane.b32.xlu0 %v1785_v59, %s3249_s21  ;;  %2957 = vmatpush3.bf16.msra.mxu0 %v3175_v7  ;;  %v1490_v59 = vrot.slane %v3702_v11, 1  ;;  %v1469_v7 = vor.u32 %v1468_v54, %v1464_v53  ;;  %v1824_v9 = vshll.u32 %v3753_v56, 16  ;;  %v3769_v11 = vcombine.low %v3761_v2, %v1738_v4  ;;  %v3792_v37 = vld [vmem:[#allocation2 + $0x30] sm:$0xf]  ;;  %v2095_v38 = vld [vmem:[#allocation2 + $0x34] sm:$0x1] }
  0xe4   : > { %1837 = vrot.lane.b32.xlu1 %v1792_v0, %s3249_s21  ;;  %2958 = vmatprep.subr.bf16.mxu0 %v3176_v17  ;;  %v1808_v0 = vshrl.u32 %v3742_v45, 16  ;;  %v3794_v39 = vld [vmem:[#allocation2 + $0x38] sm:$0xf]  ;;  %v2097_v40 = vld [vmem:[#allocation2 + $0x3c] sm:$0x1]  ;;  %v1855_v41 = vrot.slane %v3742_v45, 1  ;;  %v3800_v43 = vcombine.low %v3792_v37, %v2095_v38 }
  0xe5   : > { %2976 = vmatprep.subr.bf16.mxu1 %v3181_v44  ;;  %v1831_v19 = vshll.u32 %v3769_v11, 16  ;;  %v1826_v23 = vrot.slane %v1824_v9, 1  ;;  %v1829_v25 = vshrl.u32 %v3769_v11, 16  ;;  %v3803_v46 = vld [vmem:[%s3422_s10 + $0x60] sm:$0xff]   ;;  %v3813_v45 = vld [vmem:[#allocation2 + $0x28] sm:$0xf] }
  0xe6   : > { %2977 = vmatpush3.bf16.msra.mxu1 %v3181_v44  ;;  %v2091_v53 = vld [vmem:[#allocation2 + $0x24] sm:$0x1]  ;;  %v2093_v54 = vld [vmem:[#allocation2 + $0x2c] sm:$0x1]  ;;  %vm1510_vm3 = vcmask 261120   ;;  %vm1535_vm4 = vcmask 523264  }
  0xe7   : > { %1839 = vrot.lane.b32.xlu0 %v1799_v6, %s3249_s21  ;;  %2959 = vmatpush3.bf16.msra.mxu0 %v3176_v17  ;;  %v1812_v6 = vrot.slane %v1810_v55, 1  ;;  %v1819_v17 = vrot.slane %v1817_v63, 1  ;;  %v1858_v55 = vrot.slane %v3769_v11, 1  ;;  %v2101_v9 = vld [vmem:[#allocation2 + $0x4c] sm:$0x1]  ;;  %vm1628_vm5 = vcmask 785408  }
  0xe8   : > { %1841 = vrot.lane.b32.xlu1 %v1806_v12, %s3249_s21  ;;  %2960 = vmatprep.subr.bf16.mxu0 %v3178_v28  ;;  %v1493_v12 = vrot.slane %v3721_v27, 1  ;;  %v2087_v27 = vld [vmem:[#allocation2 + $0x14] sm:$0x1]  ;;  %vm2507_vm6 = vcmask (!%p2878_p1), 257024  }
  0xe9   : > { %2978 = vmatprep.subr.bf16.mxu1 %v3182_v14  ;;  %v1813_v20 = vor.u32 %v1812_v6, %v1808_v0  ;;  %v1820_v24 = vor.u32 %v1819_v17, %v1815_v15  ;;  %v3829_v6 = vld [vmem:[#allocation2 + $0x48] sm:$0xf] }
  0xea   : > { %2979 = vmatpush3.bf16.msra.mxu1 %v3182_v14  ;;  %v3809_v14 = vcombine.low %v3794_v39, %v2097_v40 }
  0xeb   : > { %1859 = vrot.lane.b32.xlu0 %v1851_v21, %s3248_s16  ;;  %2961 = vmatpush3.bf16.msra.mxu0 %v3178_v28  ;;  %v1822_v21 = vshrl.u32 %v3753_v56, 16  ;;  %v3780_v28 = vld [vmem:[#allocation2 + $0x10] sm:$0xf] }
  0xec   : > { %1861 = vrot.lane.b32.xlu1 %v1852_v26, %s3248_s16  ;;  %2980 = vmatprep.subr.bf16.mxu1 %v3183_v1  ;;  %v1833_v26 = vrot.slane %v1831_v19, 1  ;;  %v3786_v30 = vcombine.low %v3780_v28, %v2087_v27  ;;  %v2180_v4 = vshll.u32 %v3809_v14, 16  ;;  %v2178_v11 = vshrl.u32 %v3809_v14, 16 }
  0xed   : > { %v1827_v10 = vor.u32 %v1826_v23, %v1822_v21  ;;  %2990 = vmatprep.subr.bf16.mxu0 %v3803_v46 }
  0xee   : > { %2981 = vmatpush3.bf16.msra.mxu1 %v3183_v1  ;;  %v1834_v34 = vor.u32 %v1833_v26, %v1829_v25  ;;  %v2145_v44 = vshll.u32 %v3786_v30, 16  ;;  %v2847_v1 = vcombine.low %v3813_v45, %v2093_v54  ;;  %v2182_v23 = vrot.slane %v2180_v4, 1 }
  0xef   : > { %1863 = vrot.lane.b32.xlu0 %v1853_v52, %s3248_s16  ;;  %v2089_v52 = vld [vmem:[#allocation2 + $0x1c] sm:$0x1]  ;;  %3010 = vmatprep.subr.bf16.mxu1 %v3803_v46  ;;  %v2851_v25 = vcombine.low %v3829_v6, %v2101_v9 }
  0xf0   : > { %1865 = vrot.lane.b32.xlu1 %v1854_v29, %s3248_s16  ;;  %v3782_v29 = vld [vmem:[#allocation2 + $0x18] sm:$0xf]  ;;  %v2164_v38 = vshrl.u32 %v2847_v1, 16 }
  0xf1   : > { %v3790_v31 = vcombine.low %v3782_v29, %v2089_v52  ;;  %v2192_v54 = vshrl.u32 %v2851_v25, 16 }
  0xf3   : > { %1478 = vrot.lane.b32.xlu0 %v1448_v47, %s3249_s21  ;;  %v1856_v47 = vrot.slane %v3746_v48, 1  ;;  %v2152_v49 = vshll.u32 %v3790_v31, 16  ;;  %v2150_v48 = vshrl.u32 %v3790_v31, 16 }
  0xf4   : > { %1480 = vrot.lane.b32.xlu1 %v1455_v50, %s3249_s21  ;;  %v3811_v50 = vld [vmem:[#allocation2 + $0x20] sm:$0xf] }
  0xf5   : > { %v2846_v63 = vcombine.low %v3811_v50, %v2091_v53  ;;  %v2154_v0 = vrot.slane %v2152_v49, 1 }
  0xf7   : > { %1482 = vrot.lane.b32.xlu0 %v1462_v60, %s3249_s21  ;;  %v2147_v60 = vrot.slane %v2145_v44, 1  ;;  %v2159_v19 = vshll.u32 %v2846_v63, 16  ;;  %v2155_v21 = vor.u32 %v2154_v0, %v2150_v48  ;;  %v2157_v27 = vshrl.u32 %v2846_v63, 16 }
  0xf8   : > { %1484 = vrot.lane.b32.xlu1 %v1469_v7, %s3249_s21  ;;  %v3827_v7 = vld [vmem:[#allocation2 + $0x40] sm:$0xf]  ;;  %v2219_v0 = vrot.slane %v3809_v14, 1  ;;  %v2216_v4 = vrot.slane %v2846_v63, 1 }
  0xf9   : > { %v2161_v52 = vrot.slane %v2159_v19, 1 }
  0xfb   : > { %1502 = vrot.lane.b32.xlu0 %v1490_v59, %s3248_s16  ;;  %v2143_v59 = vshrl.u32 %v3786_v30, 16  ;;  %v2162_v44 = vor.u32 %v2161_v52, %v2157_v27  ;;  %v3185_v27 = vld [vmem:[%s3422_s10 + $0x68] sm:$0xff]  }
  0xfc   : > { %1504 = vrot.lane.b32.xlu1 %v1491_v58, %s3248_s16  ;;  %v1857_v58 = vrot.slane %v3753_v56, 1  ;;  %v2099_v56 = vld [vmem:[#allocation2 + $0x44] sm:$0x1] }
  0xfd   : > { %v2148_v15 = vor.u32 %v2147_v60, %v2143_v59  ;;  %v2214_v59 = vrot.slane %v3786_v30, 1  ;;  %v2215_v60 = vrot.slane %v3790_v31, 1  ;;  %v2221_v31 = vrot.slane %v2851_v25, 1 }
  0xff   : > { %1506 = vrot.lane.b32.xlu0 %v1492_v61, %s3248_s16  ;;  %v2173_v61 = vshll.u32 %v3800_v43, 16 }
 0x100   : > { %1508 = vrot.lane.b32.xlu1 %v1493_v12, %s3248_s16  ;;  %v2171_v12 = vshrl.u32 %v3800_v43, 16 }
 0x101   : > { %v2175_v17 = vrot.slane %v2173_v61, 1  ;;  %v2218_v61 = vrot.slane %v3800_v43, 1 }
 0x103   : > { %1843 = vrot.lane.b32.xlu0 %v1813_v20, %s3249_s21  ;;  %v2850_v20 = vcombine.low %v3827_v7, %v2099_v56  ;;  %v2176_v26 = vor.u32 %v2175_v17, %v2171_v12  ;;  %v2217_v56 = vrot.slane %v2847_v1, 1 }
 0x104   : > { %1845 = vrot.lane.b32.xlu1 %v1820_v24, %s3249_s21  ;;  %v2166_v24 = vshll.u32 %v2847_v1, 16 }
 0x105   : > { %v2220_v30 = vrot.slane %v2850_v20, 1 }
 0x106   : > { %v2168_v40 = vrot.slane %v2166_v24, 1 }
 0x107   : > { %1847 = vrot.lane.b32.xlu0 %v1827_v10, %s3249_s21  ;;  %v2187_v10 = vshll.u32 %v2850_v20, 16 }
 0x108   : > { %1849 = vrot.lane.b32.xlu1 %v1834_v34, %s3249_s21  ;;  %v2183_v34 = vor.u32 %v2182_v23, %v2178_v11  ;;  %v2169_v53 = vor.u32 %v2168_v40, %v2164_v38  ;;  %v3187_v38 = vld [vmem:[%s3422_s10 + $0x78] sm:$0xff]  }
 0x109   : > { %v2189_v49 = vrot.slane %v2187_v10, 1 }
 0x10b   : > { %1867 = vrot.lane.b32.xlu0 %v1855_v41, %s3248_s16  ;;  %v2194_v41 = vshll.u32 %v2851_v25, 16 }
 0x10c   : > { %1869 = vrot.lane.b32.xlu1 %v1856_v47, %s3248_s16  ;;  %v2185_v47 = vshrl.u32 %v2850_v20, 16 }
 0x10f   : > { %1871 = vrot.lane.b32.xlu0 %v1857_v58, %s3248_s16  ;;  %v2190_v58 = vor.u32 %v2189_v49, %v2185_v47 }
 0x110   : > { %1873 = vrot.lane.b32.xlu1 %v1858_v55, %s3248_s16  ;;  %v2196_v55 = vrot.slane %v2194_v41, 1 }
 0x112   : > { %v2197_v48 = vor.u32 %v2196_v55, %v2192_v54  ;;  %v3188_v55 = vld [vmem:[%s3422_s10 + $0x80] sm:$0xff]  }
 0x113   : > { %2198 = vrot.lane.b32.xlu0 %v2148_v15, %s3249_s21 }
 0x114   : > { %2200 = vrot.lane.b32.xlu1 %v2155_v21, %s3249_s21 }
 0x117   : > { %2206 = vrot.lane.b32.xlu0 %v2176_v26, %s3249_s21 }
 0x118   : > { %2208 = vrot.lane.b32.xlu1 %v2183_v34, %s3249_s21 }
 0x11b   : > { %2202 = vrot.lane.b32.xlu0 %v2162_v44, %s3249_s21 }
 0x11c   : > { %2204 = vrot.lane.b32.xlu1 %v2169_v53, %s3249_s21 }
 0x11f   : > { %2210 = vrot.lane.b32.xlu0 %v2190_v58, %s3249_s21 }
 0x120   : > { %2212 = vrot.lane.b32.xlu1 %v2197_v48, %s3249_s21 }
 0x123   : > { %2222 = vrot.lane.b32.xlu0 %v2214_v59, %s3248_s16 }
 0x124   : > { %2224 = vrot.lane.b32.xlu1 %v2215_v60, %s3248_s16 }
 0x127   : > { %2230 = vrot.lane.b32.xlu0 %v2218_v61, %s3248_s16 }
 0x128   : > { %2232 = vrot.lane.b32.xlu1 %v2219_v0, %s3248_s16  ;;  %v3189_v0 = vld [vmem:[%s3422_s10 + $0x88] sm:$0xff]  }
 0x12b   : > { %2226 = vrot.lane.b32.xlu0 %v2216_v4, %s3248_s16 }
 0x12c   : > { %2228 = vrot.lane.b32.xlu1 %v2217_v56, %s3248_s16 }
 0x12f   : > { %2234 = vrot.lane.b32.xlu0 %v2220_v30, %s3248_s16 }
 0x130   : > { %2236 = vrot.lane.b32.xlu1 %v2221_v31, %s3248_s16 }
 0x144   : > { %v1497_v43 = vpop.permute.xlu1 %1496 }
 0x145   : > { %v1495_v9 = vpop.permute.xlu0 %1494 }
 0x149   : > { %v1471_v14 = vpop.permute.xlu0 %1470 }
 0x14a   : > { %v1475_v11 = vpop.permute.xlu1 %1474  ;;  %v1513_v63 = vsel %vm1510_vm3, %v3638_v5, %v1471_v14 }
 0x14b   : > { %v1537_v17 = vsel %vm1535_vm4, %v1513_v63, %v1495_v9  ;;  %v1519_v21 = vsel %vm1510_vm3, %v3640_v8, %v1475_v11  ;;  %v3186_v8 = vld [vmem:[%s3422_s10 + $0x70] sm:$0xff]  }
 0x14d   : > { %v1473_v1 = vpop.permute.xlu0 %1472 }
 0x14e   : > { %v1477_v12 = vpop.permute.xlu1 %1476  ;;  %v1516_v15 = vsel %vm1510_vm3, %v3635_v3, %v1473_v1 }
 0x14f   : > { %v1539_v19 = vsel %vm1535_vm4, %v1516_v15, %v1497_v43  ;;  %v1522_v5 = vsel %vm1510_vm3, %v3643_v51, %v1477_v12 }
 0x150   : > { %v2796_v20 = vcombine.low %v1537_v17, %v1539_v19 }
 0x151   : > { %v1499_v23 = vpop.permute.xlu0 %1498 }
 0x152   : > { %v1501_v24 = vpop.permute.xlu1 %1500  ;;  %v1541_v25 = vsel %vm1535_vm4, %v1519_v21, %v1499_v23  ;;  %2962 = vmatprep.mubr.msk.bf16.mxu0 %vm1628_vm5, %v2796_v20 }
 0x153   : > { %v1543_v3 = vsel %vm1535_vm4, %v1522_v5, %v1501_v24 }
 0x154   : > { %v2797_v26 = vcombine.low %v1541_v25, %v1543_v3 }
 0x155   : > { %v1836_v52 = vpop.permute.xlu0 %1835 }
 0x156   : > { %v1838_v10 = vpop.permute.xlu1 %1837  ;;  %2963 = vmatmul.mubr.msk.bf16.vlgmr.msra.gmra.mrb[0].mxu0 %vm1628_vm5, %v2797_v26  ;;  %v1877_v40 = vsel %vm1510_vm3, %v3651_v22, %v1836_v52 }
 0x157   : > { %2991 = vmatpush3.bf16.msra.mxu0 %v3803_v46  ;;  %v1880_v44 = vsel %vm1510_vm3, %v3649_v16, %v1838_v10 }
 0x158   : > { %2992 = vmatprep.subr.bf16.mxu0 %v3185_v27 }
 0x159   : > { %v1840_v51 = vpop.permute.xlu0 %1839 }
 0x15a   : > { %v1842_v34 = vpop.permute.xlu1 %1841  ;;  %v1883_v58 = vsel %vm1510_vm3, %v3665_v36, %v1840_v51 }
 0x15b   : > { %2993 = vmatpush3.bf16.msra.mxu0 %v3185_v27  ;;  %v1886_v22 = vsel %vm1510_vm3, %v3663_v33, %v1842_v34 }
 0x15c   : > { %2994 = vmatprep.subr.bf16.mxu0 %v3186_v8 }
 0x15d   : > { %v1860_v41 = vpop.permute.xlu0 %1859 }
 0x15e   : > { %v1862_v47 = vpop.permute.xlu1 %1861  ;;  %v1900_v49 = vsel %vm1535_vm4, %v1877_v40, %v1860_v41 }
 0x15f   : > { %v1902_v53 = vsel %vm1535_vm4, %v1880_v44, %v1862_v47  ;;  %2995 = vmatpush3.bf16.msra.mxu0 %v3186_v8 }
 0x160   : > { %v2830_v54 = vcombine.low %v1900_v49, %v1902_v53  ;;  %2996 = vmatprep.subr.bf16.mxu0 %v3187_v38 }
 0x161   : > { %v1864_v48 = vpop.permute.xlu0 %1863 }
 0x162   : > { %v1866_v59 = vpop.permute.xlu1 %1865  ;;  %2982 = vmatprep.mubr.msk.bf16.mxu1 %vm1628_vm5, %v2830_v54  ;;  %v1904_v16 = vsel %vm1535_vm4, %v1883_v58, %v1864_v48 }
 0x163   : > { %v1906_v60 = vsel %vm1535_vm4, %v1886_v22, %v1866_v59  ;;  %2997 = vmatpush3.bf16.msra.mxu0 %v3187_v38 }
 0x164   : > { %v2831_v61 = vcombine.low %v1904_v16, %v1906_v60  ;;  %2998 = vmatprep.subr.bf16.mxu0 %v3188_v55 }
 0x165   : > { %v1479_v4 = vpop.permute.xlu0 %1478 }
 0x166   : > { %v1481_v56 = vpop.permute.xlu1 %1480  ;;  %2983 = vmatmul.mubr.msk.bf16.vlgmr.msra.gmra.mrb[0].mxu1 %vm1628_vm5, %v2831_v61  ;;  %v1525_v30 = vsel %vm1510_vm3, %v3691_v62, %v1479_v4 }
 0x167   : > { %3016 = vmatpush3.bf16.msra.mxu1 %v3803_v46  ;;  %2999 = vmatpush3.bf16.msra.mxu0 %v3188_v55  ;;  %v1528_v43 = vsel %vm1510_vm3, %v3687_v57, %v1481_v56 }
 0x168   : > { %3011 = vmatprep.subr.bf16.mxu1 %v3185_v27  ;;  %3000 = vmatprep.subr.bf16.mxu0 %v3189_v0 }
 0x169   : > { %v1483_v33 = vpop.permute.xlu0 %1482 }
 0x16a   : > { %v1485_v36 = vpop.permute.xlu1 %1484  ;;  %v1531_v63 = vsel %vm1510_vm3, %v3705_v13, %v1483_v33 }
 0x16b   : > { %3017 = vmatpush3.bf16.msra.mxu1 %v3185_v27  ;;  %3001 = vmatpush3.bf16.msra.mxu0 %v3189_v0  ;;  %v1534_v12 = vsel %vm1510_vm3, %v3708_v18, %v1485_v36 }
 0x16c   : > { %3012 = vmatprep.subr.bf16.mxu1 %v3186_v8 }
 0x16d   : > { %v1503_v31 = vpop.permute.xlu0 %1502 }
 0x16e   : > { %v1505_v9 = vpop.permute.xlu1 %1504  ;;  %v1545_v14 = vsel %vm1535_vm4, %v1525_v30, %v1503_v31 }
 0x16f   : > { %v1547_v46 = vsel %vm1535_vm4, %v1528_v43, %v1505_v9  ;;  %3018 = vmatpush3.bf16.msra.mxu1 %v3186_v8 }
 0x170   : > { %v2798_v11 = vcombine.low %v1545_v14, %v1547_v46  ;;  %3013 = vmatprep.subr.bf16.mxu1 %v3187_v38 }
 0x171   : > { %v1507_v1 = vpop.permute.xlu0 %1506 }
 0x172   : > { %v1509_v62 = vpop.permute.xlu1 %1508  ;;  %2966 = vmatprep.mubr.msk.bf16.mxu0 %vm1628_vm5, %v2798_v11  ;;  %v1549_v57 = vsel %vm1535_vm4, %v1531_v63, %v1507_v1  ;;  %v1566_v11 = vld [vmem:[#allocation3 + $0x10] sm:$0xff]  ;;  %v1564_v63 = vld [vmem:[#allocation3] sm:$0xff] }
 0x173   : > { %v1551_v15 = vsel %vm1535_vm4, %v1534_v12, %v1509_v62  ;;  %3019 = vmatpush3.bf16.msra.mxu1 %v3187_v38  ;;  %v1567_v12 = vld [vmem:[#allocation3 + $0x18] sm:$0xff] }
 0x174   : > { %v2799_v17 = vcombine.low %v1549_v57, %v1551_v15  ;;  %3014 = vmatprep.subr.bf16.mxu1 %v3188_v55  ;;  %v1565_v57 = vld [vmem:[#allocation3 + $0x8] sm:$0xff] }
 0x175   : > { %v1844_v19 = vpop.permute.xlu0 %1843 }
 0x176   : > { %v1846_v20 = vpop.permute.xlu1 %1845  ;;  %2967 = vmatmul.mubr.msk.bf16.gmra.mrb[4].mxu0 %vm1628_vm5, %v2799_v17  ;;  %v1889_v18 = vsel %vm1510_vm3, %v3730_v35, %v1844_v19 }
 0x177   : > { %3020 = vmatpush3.bf16.msra.mxu1 %v3188_v55  ;;  %v1892_v5 = vsel %vm1510_vm3, %v3728_v32, %v1846_v20 }
 0x178   : > { %3015 = vmatprep.subr.bf16.mxu1 %v3189_v0 }
 0x179   : > { %v1848_v13 = vpop.permute.xlu0 %1847 }
 0x17a   : > { %v1850_v21 = vpop.permute.xlu1 %1849  ;;  %v1895_v27 = vsel %vm1510_vm3, %v3737_v42, %v1848_v13 }
 0x17b   : > { %3021 = vmatpush3.bf16.msra.mxu1 %v3189_v0  ;;  %v1898_v10 = vsel %vm1510_vm3, %v3761_v2, %v1850_v21 }
 0x17d   : > { %v1868_v23 = vpop.permute.xlu0 %1867 }
 0x17e   : > { %v1870_v24 = vpop.permute.xlu1 %1869  ;;  %v1908_v25 = vsel %vm1535_vm4, %v1889_v18, %v1868_v23 }
 0x17f   : > { %v1910_v3 = vsel %vm1535_vm4, %v1892_v5, %v1870_v24 }
 0x180   : > { %v2832_v26 = vcombine.low %v1908_v25, %v1910_v3 }
 0x181   : > { %v1872_v52 = vpop.permute.xlu0 %1871 }
 0x182   : > { %v1874_v8 = vpop.permute.xlu1 %1873  ;;  %2986 = vmatprep.mubr.msk.bf16.mxu1 %vm1628_vm5, %v2832_v26  ;;  %v1912_v35 = vsel %vm1535_vm4, %v1895_v27, %v1872_v52 }
 0x183   : > { %v1914_v32 = vsel %vm1535_vm4, %v1898_v10, %v1874_v8  ;;  %v1570_v8 = vld [vmem:[#allocation3 + $0x30] sm:$0xff] }
 0x184   : > { %v2833_v51 = vcombine.low %v1912_v35, %v1914_v32  ;;  %v1568_v35 = vld [vmem:[#allocation3 + $0x20] sm:$0xff] }
 0x185   : > { %v2199_v34 = vpop.permute.xlu0 %2198 }
 0x186   : > { %v2201_v38 = vpop.permute.xlu1 %2200  ;;  %2987 = vmatmul.mubr.msk.bf16.gmra.mrb[4].mxu1 %vm1628_vm5, %v2833_v51  ;;  %v2240_v2 = vsel %vm1510_vm3, %v3780_v28, %v2199_v34  ;;  %v1571_v51 = vld [vmem:[#allocation3 + $0x38] sm:$0xff] }
 0x187   : > { %v2243_v54 = vsel %vm1510_vm3, %v3782_v29, %v2201_v38 }
 0x189   : > { %v2207_v40 = vpop.permute.xlu0 %2206 }
 0x18a   : > { %v2209_v41 = vpop.permute.xlu1 %2208  ;;  %v2252_v59 = vsel %vm1510_vm3, %v3792_v37, %v2207_v40  ;;  %v1569_v40 = vld [vmem:[#allocation3 + $0x28] sm:$0xff] }
 0x18b   : > { %v2255_v60 = vsel %vm1510_vm3, %v3794_v39, %v2209_v41 }
 0x18d   : > { %v2203_v44 = vpop.permute.xlu0 %2202 }
 0x18e   : > { %v2205_v42 = vpop.permute.xlu1 %2204  ;;  %v2246_v4 = vsel %vm1510_vm3, %v3811_v50, %v2203_v44 }
 0x18f   : > { %v2249_v33 = vsel %vm1510_vm3, %v3813_v45, %v2205_v42 }
 0x191   : > { %v2211_v47 = vpop.permute.xlu0 %2210 }
 0x192   : > { %v2213_v49 = vpop.permute.xlu1 %2212  ;;  %v2258_v31 = vsel %vm1510_vm3, %v3827_v7, %v2211_v47 }
 0x193   : > { %v2261_v9 = vsel %vm1510_vm3, %v3829_v6, %v2213_v49 }
 0x195   : > { %v2223_v53 = vpop.permute.xlu0 %2222 }
 0x196   : > { %v2225_v55 = vpop.permute.xlu1 %2224  ;;  %v2263_v58 = vsel %vm1535_vm4, %v2240_v2, %v2223_v53 }
 0x197   : > { %v2265_v48 = vsel %vm1535_vm4, %v2243_v54, %v2225_v55 }
 0x198   : > { %v2864_v22 = vcombine.low %v2263_v58, %v2265_v48 }
 0x199   : > { %v2231_v16 = vpop.permute.xlu0 %2230 }
 0x19a   : > { %v2233_v61 = vpop.permute.xlu1 %2232  ;;  %3002 = vmatprep.mubr.msk.bf16.mxu0 %vm1628_vm5, %v2864_v22  ;;  %v2271_v28 = vsel %vm1535_vm4, %v2252_v59, %v2231_v16 }
 0x19b   : > { %v2273_v29 = vsel %vm1535_vm4, %v2255_v60, %v2233_v61 }
 0x19c   : > { %v2866_v0 = vcombine.low %v2271_v28, %v2273_v29 }
 0x19d   : > { %v2227_v56 = vpop.permute.xlu0 %2226 }
 0x19e   : > { %v2229_v37 = vpop.permute.xlu1 %2228  ;;  %3006 = vmatprep.mubr.msk.bf16.mxu1 %vm1628_vm5, %v2866_v0  ;;  %v2267_v39 = vsel %vm1535_vm4, %v2246_v4, %v2227_v56 }
 0x19f   : > { %v2269_v36 = vsel %vm1535_vm4, %v2249_v33, %v2229_v37 }
 0x1a0   : > { %v2865_v30 = vcombine.low %v2267_v39, %v2269_v36 }
 0x1a1   : > { %v2235_v43 = vpop.permute.xlu0 %2234 }
 0x1a2   : > { %v2237_v50 = vpop.permute.xlu1 %2236  ;;  %3003 = vmatmul.mubr.msk.bf16.vlgmr.msra.gmra.mrb[8].mxu0 %vm1628_vm5, %v2865_v30  ;;  %v2275_v45 = vsel %vm1535_vm4, %v2258_v31, %v2235_v43 }
 0x1a3   : > { %v2277_v14 = vsel %vm1535_vm4, %v2261_v9, %v2237_v50 }
 0x1a4   : > { %v2867_v46 = vcombine.low %v2275_v45, %v2277_v14 }
 0x1a6   : > { %3007 = vmatmul.mubr.msk.bf16.vlgmr.msra.gmra.mrb[8].mxu1 %vm1628_vm5, %v2867_v46 }
 0x229   : > { %v2964_v1 = vpop.f32.mrb[0].mxu0 }
 0x22a   : > { %v1708_v62 = vadd.f32 %v2964_v1, %v1566_v11  ;;  %v1675_v7 = vpop.f32.mrb[1].mxu0 }
 0x22b   : > { %v1706_v15 = vadd.f32 %v1675_v7, %v1564_v63  ;;  %v2965_v17 = vpop.f32.mrb[2].mxu0 }
 0x22c   : > { %1716 = vst.msk [vmem:[#allocation3 + $0x10] sm:$0xff] %vm1510_vm3, %v1708_v62  ;;  %v1709_v6 = vadd.f32 %v2965_v17, %v1567_v12  ;;  %v1678_v19 = vpop.f32.mrb[3].mxu0 }
 0x22d   : > { %1714 = vst.msk [vmem:[#allocation3] sm:$0xff] %vm1510_vm3, %v1706_v15  ;;  %v1707_v20 = vadd.f32 %v1678_v19, %v1565_v57 }
 0x22e   : > { %1717 = vst.msk [vmem:[#allocation3 + $0x18] sm:$0xff] %vm1510_vm3, %v1709_v6  ;;  %v2879_v6 = vld [vmem:[%s802_s23] ss:$0 sm:$0xff] (!%p2878_p1) }
 0x22f   : > { %1715 = vst.msk [vmem:[#allocation3 + $0x8] sm:$0xff] %vm1510_vm3, %v1707_v20 }
 0x233   : > { %v1930_v13 = vld [vmem:[#allocation3 + $0x10] sm:$0xff] }
 0x234   : > { %v1928_v23 = vld [vmem:[#allocation3] sm:$0xff] }
 0x235   : > { %v1931_v25 = vld [vmem:[#allocation3 + $0x18] sm:$0xff] }
 0x236   : > { %v1929_v27 = vld [vmem:[#allocation3 + $0x8] sm:$0xff] }
 0x239   : > { %v2984_v21 = vpop.f32.mrb[0].mxu1 }
 0x23a   : > { %v2071_v18 = vadd.f32 %v2984_v21, %v1930_v13  ;;  %v2038_v5 = vpop.f32.mrb[1].mxu1 }
 0x23b   : > { %v2069_v24 = vadd.f32 %v2038_v5, %v1928_v23  ;;  %v2985_v3 = vpop.f32.mrb[2].mxu1 }
 0x23c   : > { %2079 = vst.msk [vmem:[#allocation3 + $0x10] sm:$0xff] %vm1510_vm3, %v2071_v18  ;;  %v2072_v26 = vadd.f32 %v2985_v3, %v1931_v25  ;;  %v2041_v52 = vpop.f32.mrb[3].mxu1 }
 0x23d   : > { %2077 = vst.msk [vmem:[#allocation3] sm:$0xff] %vm1510_vm3, %v2069_v24  ;;  %v2070_v10 = vadd.f32 %v2041_v52, %v1929_v27 }
 0x23e   : > { %2080 = vst.msk [vmem:[#allocation3 + $0x18] sm:$0xff] %vm1510_vm3, %v2072_v26 }
 0x23f   : > { %2078 = vst.msk [vmem:[#allocation3 + $0x8] sm:$0xff] %vm1510_vm3, %v2070_v10 }
 0x243   : > { %v2293_v29 = vld [vmem:[#allocation3 + $0x10] sm:$0xff] }
 0x244   : > { %v2291_v56 = vld [vmem:[#allocation3] sm:$0xff] }
 0x245   : > { %v2294_v39 = vld [vmem:[#allocation3 + $0x18] sm:$0xff] }
 0x246   : > { %v2292_v31 = vld [vmem:[#allocation3 + $0x8] sm:$0xff] }
 0x249   : > { %v2968_v32 = vpop.f32.mrb[4].mxu0 }
 0x24a   : > { %v1712_v34 = vadd.f32 %v2968_v32, %v1570_v8  ;;  %v1691_v38 = vpop.f32.mrb[5].mxu0 }
 0x24b   : > { %v1710_v41 = vadd.f32 %v1691_v38, %v1568_v35  ;;  %v2969_v44 = vpop.f32.mrb[6].mxu0 }
 0x24c   : > { %1720 = vst.msk [vmem:[#allocation3 + $0x30] sm:$0xff] %vm1510_vm3, %v1712_v34  ;;  %v1713_v42 = vadd.f32 %v2969_v44, %v1571_v51  ;;  %v1694_v47 = vpop.f32.mrb[7].mxu0 }
 0x24d   : > { %1718 = vst.msk [vmem:[#allocation3 + $0x20] sm:$0xff] %vm1510_vm3, %v1710_v41  ;;  %v1711_v49 = vadd.f32 %v1694_v47, %v1569_v40 }
 0x24e   : > { %1721 = vst.msk [vmem:[#allocation3 + $0x38] sm:$0xff] %vm1510_vm3, %v1713_v42 }
 0x24f   : > { %1719 = vst.msk [vmem:[#allocation3 + $0x28] sm:$0xff] %vm1510_vm3, %v1711_v49 }
 0x253   : > { %v1934_v2 = vld [vmem:[#allocation3 + $0x30] sm:$0xff] }
 0x254   : > { %v1932_v55 = vld [vmem:[#allocation3 + $0x20] sm:$0xff] }
 0x255   : > { %v1935_v22 = vld [vmem:[#allocation3 + $0x38] sm:$0xff] }
 0x256   : > { %v1933_v60 = vld [vmem:[#allocation3 + $0x28] sm:$0xff] }
 0x259   : > { %v2988_v53 = vpop.f32.mrb[4].mxu1 }
 0x25a   : > { %v2075_v54 = vadd.f32 %v2988_v53, %v1934_v2  ;;  %v2054_v58 = vpop.f32.mrb[5].mxu1 }
 0x25b   : > { %v2073_v48 = vadd.f32 %v2054_v58, %v1932_v55  ;;  %v2989_v59 = vpop.f32.mrb[6].mxu1 }
 0x25c   : > { %2083 = vst.msk [vmem:[#allocation3 + $0x30] sm:$0xff] %vm1510_vm3, %v2075_v54  ;;  %v2076_v16 = vadd.f32 %v2989_v59, %v1935_v22  ;;  %v2057_v61 = vpop.f32.mrb[7].mxu1 }
 0x25d   : > { %2081 = vst.msk [vmem:[#allocation3 + $0x20] sm:$0xff] %vm1510_vm3, %v2073_v48  ;;  %v2074_v28 = vadd.f32 %v2057_v61, %v1933_v60 }
 0x25e   : > { %2084 = vst.msk [vmem:[#allocation3 + $0x38] sm:$0xff] %vm1510_vm3, %v2076_v16 }
 0x25f   : > { %2082 = vst.msk [vmem:[#allocation3 + $0x28] sm:$0xff] %vm1510_vm3, %v2074_v28 }
 0x263   : > { %v2297_v50 = vld [vmem:[#allocation3 + $0x30] sm:$0xff] }
 0x264   : > { %v2295_v46 = vld [vmem:[#allocation3 + $0x20] sm:$0xff] }
 0x265   : > { %v2298_v1 = vld [vmem:[#allocation3 + $0x38] sm:$0xff] }
 0x266   : > { %v2296_v7 = vld [vmem:[#allocation3 + $0x28] sm:$0xff] }
 0x275   : > { %v3004_v0 = vpop.f32.mrb[8].mxu0 }
 0x276   : > { %v2434_v4 = vadd.f32 %v3004_v0, %v2293_v29  ;;  %v2401_v33 = vpop.f32.mrb[9].mxu0 }
 0x277   : > { %v2432_v37 = vadd.f32 %v2401_v33, %v2291_v56  ;;  %v3005_v36 = vpop.f32.mrb[10].mxu0 }
 0x278   : > { %2442 = vst.msk [vmem:[#allocation3 + $0x10] sm:$0xff] %vm1510_vm3, %v2434_v4  ;;  %v2435_v30 = vadd.f32 %v3005_v36, %v2294_v39  ;;  %v2404_v43 = vpop.f32.mrb[11].mxu0 }
 0x279   : > { %2440 = vst.msk [vmem:[#allocation3] sm:$0xff] %vm1510_vm3, %v2432_v37  ;;  %v2433_v9 = vadd.f32 %v2404_v43, %v2292_v31  ;;  %v3008_v45 = vpop.f32.mrb[8].mxu1  ;;  %2451 = sbr.rel (%p2878_p1) target bundleno = 652 (0x28c), region = 109 }
 0x27a   : > { %2443 = vst.msk [vmem:[#allocation3 + $0x18] sm:$0xff] %vm1510_vm3, %v2435_v30  ;;  %v2438_v14 = vadd.f32 %v3008_v45, %v2297_v50  ;;  %v2417_v11 = vpop.f32.mrb[9].mxu1 }
 0x27b   : > { %2441 = vst.msk [vmem:[#allocation3 + $0x8] sm:$0xff] %vm1510_vm3, %v2433_v9  ;;  %v2436_v63 = vadd.f32 %v2417_v11, %v2295_v46  ;;  %v3009_v12 = vpop.f32.mrb[10].mxu1 }
 0x27c   : > { %2446 = vst.msk [vmem:[#allocation3 + $0x30] sm:$0xff] %vm1510_vm3, %v2438_v14  ;;  %v2439_v62 = vadd.f32 %v3009_v12, %v2298_v1  ;;  %v2420_v57 = vpop.f32.mrb[11].mxu1 }
 0x27d   : > { %2444 = vst.msk [vmem:[#allocation3 + $0x20] sm:$0xff] %vm1510_vm3, %v2436_v63  ;;  %v2437_v15 = vadd.f32 %v2420_v57, %v2296_v7 }
 0x27e   : > { %2447 = vst.msk [vmem:[#allocation3 + $0x38] sm:$0xff] %vm1510_vm3, %v2439_v62 }
 0x27f   : > { %2445 = vst.msk [vmem:[#allocation3 + $0x28] sm:$0xff] %vm1510_vm3, %v2437_v15  ;;  %v2454_v21 = vld [vmem:[#allocation3 + $0x10] sm:$0xff] (!%p2878_p1) }
 0x280   : > { %v2452_v17 = vld [vmem:[#allocation3] sm:$0xff]  ;;  %v2469_v5 = vadd.f32 %v2879_v6, %v2454_v21 }
 0x281   : > { %v2467_v20 = vadd.f32 %v2879_v6, %v2452_v17  ;;  %v2455_v18 = vld [vmem:[#allocation3 + $0x18] sm:$0xff] }
 0x282   : > { %v2453_v19 = vld [vmem:[#allocation3 + $0x8] sm:$0xff]  ;;  %v2470_v24 = vadd.f32 %v2879_v6, %v2455_v18  ;;  %v2895_v32 = vpack.c.bf16 %v2469_v5, %v2469_v5 }
 0x283   : > { %v2468_v13 = vadd.f32 %v2879_v6, %v2453_v19  ;;  %v2458_v26 = vld [vmem:[#allocation3 + $0x30] sm:$0xff]  ;;  %v2893_v52 = vpack.c.bf16 %v2467_v20, %v2467_v20 }
 0x284   : > { %v2456_v23 = vld [vmem:[#allocation3 + $0x20] sm:$0xff]  ;;  %v2473_v35 = vadd.f32 %v2879_v6, %v2458_v26  ;;  %v2896_v51 = vpack.c.bf16 %v2470_v24, %v2470_v24  ;;  %2510 = vst.msk [vmem:[%s3420_s12 + $0x8] sm:$0xf] %vm2507_vm6, %v2895_v32 }
 0x285   : > { %v2471_v25 = vadd.f32 %v2879_v6, %v2456_v23  ;;  %v2459_v27 = vld [vmem:[#allocation3 + $0x38] sm:$0xff]  ;;  %v2894_v10 = vpack.c.bf16 %v2468_v13, %v2468_v13  ;;  %2508 = vst.msk [vmem:[%s3420_s12] sm:$0xf] %vm2507_vm6, %v2893_v52 }
 0x286   : > { %v2457_v3 = vld [vmem:[#allocation3 + $0x28] sm:$0xff]  ;;  %v2474_v38 = vadd.f32 %v2879_v6, %v2459_v27  ;;  %v2899_v41 = vpack.c.bf16 %v2473_v35, %v2473_v35  ;;  %2511 = vst.msk [vmem:[%s3420_s12 + $0xc] sm:$0xf] %vm2507_vm6, %v2896_v51 }
 0x287   : > { %v2472_v8 = vadd.f32 %v2879_v6, %v2457_v3  ;;  %v2897_v34 = vpack.c.bf16 %v2471_v25, %v2471_v25  ;;  %2509 = vst.msk [vmem:[%s3420_s12 + $0x4] sm:$0xf] %vm2507_vm6, %v2894_v10 }
 0x288   : > { %v2900_v44 = vpack.c.bf16 %v2474_v38, %v2474_v38  ;;  %2514 = vst.msk [vmem:[%s3420_s12 + $0x18] sm:$0xf] %vm2507_vm6, %v2899_v41 }
 0x289   : > { %v2898_v40 = vpack.c.bf16 %v2472_v8, %v2472_v8  ;;  %2512 = vst.msk [vmem:[%s3420_s12 + $0x10] sm:$0xf] %vm2507_vm6, %v2897_v34 }
 0x28a   : > { %2515 = vst.msk [vmem:[%s3420_s12 + $0x1c] sm:$0xf] %vm2507_vm6, %v2900_v44 }
 0x28b   : > { %2513 = vst.msk [vmem:[%s3420_s12 + $0x14] sm:$0xf] %vm2507_vm6, %v2898_v40 }
 0x28c PF: > { %s18_s11 = sadd.s32 1, %s3244_s11   ;;  %s4046_s29 = sld [smem:[#allocation9_spill]] }
 0x28d   : > { %p15_p2 = scmp.ge.s32.totalorder %s18_s11, 6   ;;  %s4047_s30 = sld [smem:[#allocation5_spill]] }
 0x28e   : > { %s4048_s23 = sld [smem:[#allocation6_spill]]  ;;  %s4049_s9 = sld [smem:[#allocation7_spill]] }
 0x28f   : > { %s4050_s10 = sld [smem:[#allocation8_spill]]  ;;  %s4051_s27 = smov %s3224_s28 }
 0x290   :  { %17 = sbr.rel (!%p15_p2) target bundleno = 7 (0x7), region = 172 }
 0x292   : > { %s4052_s28 = smov %s4046_s29 }
 0x293   : > { %s4053_s29 = smov %s4047_s30 }
 0x294   : > { %s4054_s30 = smov %s4048_s23 }

// kernel: _lambda_.35
= control target key start
LH: loop header
LB: loop body
LE: loop exit
PB: predicated region body
PF: predicated region fallthrough
CT: control target
= control target key end

     0   :  { %11 = vsyncpa [#allocation5], 0  ;;  %s3207_s0 = inlined_call_operand.vmem [shape: bf16[2,8,8,32], index: 0, kind: input, shape index: {}]   ;;  %s3208_s1 = inlined_call_operand.vmem [shape: f32[2,1,32], index: 1, kind: input, shape index: {}]   ;;  %s3209_s2 = inlined_call_operand.vmem [shape: f32[2,1,32], index: 2, kind: input, shape index: {}]   ;;  %s3210_s3 = inlined_call_operand.vmem [shape: bf16[3,3,32,32], index: 3, kind: input, shape index: {}]   ;;  %s3211_s4 = inlined_call_operand.vmem [shape: f32[2,1,32], index: 4, kind: input, shape index: {}]   ;;  %s3212_s5 = inlined_call_operand.vmem [shape: bf16[2,64,32], index: 5, kind: input, shape index: {}]   ;;  %s3213_s6 = inlined_call_operand.hbm [shape: f32[2,64,32], index: 6, kind: output, shape index: {}]  }
   0x1   :  { %13 = vsyncpa [#allocation5 + $0x1], 0  ;;  %s2546_s21 = smov 0   ;;  %s2548_s22 = smov 0  }
   0x2   :  { %s2550_s23 = smov 0   ;;  %s2552_s24 = smov 0  }
   0x3   :  { %s2554_s25 = smov 0   ;;  %s2556_s26 = smov 0  }
   0x4 LB: > { %s2020_s27 = sadd.s32 4294967295, %s2502_s26   ;;  %s2021_s28 = sadd.s32 4294967294, %s2502_s26   ;;  %s2502_s26 = sphi %s2556_s26, %s19_s26   ;;  %s2498_s25 = sphi %s2554_s25, %s3224_s25   ;;  %s2494_s24 = sphi %s2552_s24, %s3223_s24   ;;  %s2490_s23 = sphi %s2550_s23, %s3222_s23   ;;  %s2486_s22 = sphi %s2548_s22, %s3221_s22   ;;  %s2482_s21 = sphi %s2546_s21, %s3220_s21  }
   0x5   : > { %s38_s29 = sadd.s32 1, %s2498_s25  ;;  %s215_s30 = sadd.s32 1, %s2490_s23 }
   0x6   : > { %p40_p0 = scmp.ge.s32.totalorder %s38_s29, 2  ;;  %p225_p1 = scmp.ne.s32.totalorder %s2490_s23, %s2486_s22 }
   0x7   : > { %p226_p2 = scmp.eq.s32.totalorder %s2020_s27, 1  ;;  %p231_p3 = scmp.ne.s32.totalorder %s2486_s22, %s2482_s21 }
   0x8   : > { %s3226_s29 = smov (%p40_p0, %s38_s29), 0  ;;  %p232_p5 = scmp.eq.s32.totalorder %s2021_s28, 1 }
   0x9   : > { %p2586_p4 = por %p226_p2, %p225_p1  ;;  %s210_s8 = ssub.s32 %s2498_s25, %s3226_s29 }
   0xa   : > { %p2025_p6 = scmp.ge.s32.totalorder %s2502_s26, 1  ;;  %p213_p7 = scmp.eq.s32.totalorder %s210_s8, 0 }
   0xb   : > { %p2593_p8 = por %p232_p5, %p231_p3  ;;  %p311_p9 = scmp.lt.s32.totalorder %s2502_s26, 3 }
   0xc   : > { %s2599_s10 = scalar_select %p213_p7, %s2490_s23, %s215_s30  }
   0xd   : > { %p312_p10 = pnand %p2025_p6, %p311_p9 }
   0xe   : > { %vm426_vm0 = vcmask (!%p312_p10), 257024   ;;  %vm428_vm1 = vcmask (!%p312_p10), 253952   ;;  %v2504_v0 = vmov (!%p312_p10), 0   ;;  %p378_p11 = scmp.lt.s32.totalorder (!%p312_p10), %s2494_s24, 1  ;;  %s2505_s28 = smov (!%p312_p10), 64   ;;  %vm608_vm2 = vcmask (!%p312_p10), 1040384  }
   0xf   : > { %315 = sbr.rel (%p312_p10) target bundleno = 543 (0x21f), region = 44  ;;  %427 = vst.msk [vmem:[#allocation2] sm:$0xf] (!%p312_p10), %vm426_vm0, %v2504_v0  ;;  %431 = vst.msk [vmem:[#allocation2 + $0x48] sm:$0xf] (!%p312_p10), %vm426_vm0, %v2504_v0  ;;  %s2506_s30 = smov (!%p312_p10), 32  }
  0x10   : > { %429 = vst.msk [vmem:[#allocation2 + $0x4] sm:$0x1] (!%p312_p10), %vm428_vm1, %v2504_v0  ;;  %432 = vst.msk [vmem:[#allocation2 + $0x4c] sm:$0x1] (!%p312_p10), %vm428_vm1, %v2504_v0  ;;  %vm609_vm3 = vsmask.f32 (!%p312_p10), 256 }
  0x11   : > { %vm619_vm4 = vcmask (!%p312_p10), 1044480   ;;  %vm620_vm5 = vsmask.f32 (!%p312_p10), 4352  ;;  %vm2657_vm6 = vmand (!%p312_p10), %vm608_vm2, %vm609_vm3  ;;  %vm433_vm8 = vcmask (!%p312_p10), 261120   ;;  %vm882_vm9 = vcmask (!%p312_p10), 523264   ;;  %s2508_s17 = smov (!%p312_p10), [#allocation4]  }
  0x12   : > { %vm2663_vm7 = vmand (!%p312_p10), %vm619_vm4, %vm620_vm5  ;;  %vm975_vm10 = vcmask (!%p312_p10), 785408  }
  0x16   : > { %s2607_s11 = scalar_select %p378_p11, %s2494_s24, 1  ;;  %v705_v4 = vld [vmem:[#allocation2] sm:$0xf] }
  0x17   : > { %v706_v5 = vld [vmem:[#allocation2 + $0x4] sm:$0x1] }
  0x18   : > { %s2145_s12 = sshll.u32 %s2607_s11, 5  ;;  %s391_s15 = scalar_lea.vmem %s3208_s1, %s2607_s11  ;;  %v2049_v11 = vcombine.low %v705_v4, %v706_v5 }
  0x19   : > { %s385_s18 = scalar_lea.vmem %s3207_s0, %s2145_s12  ;;  %s397_s27 = scalar_lea.vmem %s3209_s2, %s2607_s11  ;;  %v2031_v2 = vld [vmem:[%s391_s15] ss:$0 sm:$0xff] }
  0x1a   : > { %v2149_v1 = vld [vmem:[%s385_s18] sm:$0xff]   ;;  %v2180_v3 = vld [vmem:[%s385_s18 + $0x8] sm:$0xff]   ;;  %v2181_v10 = vld [vmem:[%s385_s18 + $0x10] sm:$0xff]   ;;  %v833_v20 = vrot.slane %v2049_v11, 1  ;;  %v762_v21 = vshrl.u32 %v2049_v11, 16  ;;  %v764_v22 = vshll.u32 %v2049_v11, 16  ;;  %s412_s19 = scalar_lea.vmem %s3211_s4, %s2607_s11 }
  0x1b   : > { %v2151_v6 = vunpack.c.h.bf16 %v2149_v1  ;;  %v2150_v7 = vunpack.c.l.bf16 %v2149_v1  ;;  %v2154_v8 = vunpack.c.l.bf16 %v2180_v3  ;;  %v2155_v9 = vunpack.c.h.bf16 %v2180_v3  ;;  %v2032_v12 = vld [vmem:[%s397_s27] ss:$0 sm:$0xff]  ;;  %v2182_v15 = vld [vmem:[%s385_s18 + $0x18] sm:$0xff]   ;;  %s2147_s27 = sshll.u32 %s2494_s24, 10 }
  0x1c   : > { %v2159_v13 = vunpack.c.h.bf16 %v2181_v10  ;;  %v2158_v14 = vunpack.c.l.bf16 %v2181_v10  ;;  %841 = vrot.lane.b32.xlu0 %v833_v20, %s2505_s28  ;;  %v766_v28 = vrot.slane %v764_v22, 1  ;;  %v2162_v31 = vunpack.c.l.bf16 %v2182_v15  ;;  %s3152_s15 = scalar_lea.hbm %s3213_s6, %s2147_s27 }
  0x1d   : > { %v466_v16 = vmul.f32 %v2151_v6, %v2031_v2  ;;  %v465_v17 = vmul.f32 %v2150_v7, %v2031_v2  ;;  %v467_v18 = vmul.f32 %v2154_v8, %v2031_v2  ;;  %v468_v19 = vmul.f32 %v2155_v9, %v2031_v2 }
  0x1e   : > { %v470_v23 = vmul.f32 %v2159_v13, %v2031_v2  ;;  %v469_v30 = vmul.f32 %v2158_v14, %v2031_v2  ;;  %v767_v36 = vor.u32 %v766_v28, %v762_v21  ;;  %v471_v39 = vmul.f32 %v2162_v31, %v2031_v2 }
  0x1f   : > { %v2623_v24 = vadd.f32 %v2032_v12, %v466_v16  ;;  %v2625_v25 = vadd.f32 %v2032_v12, %v465_v17  ;;  %v2627_v26 = vadd.f32 %v2032_v12, %v467_v18  ;;  %v2629_v27 = vadd.f32 %v2032_v12, %v468_v19 }
  0x20   : > { %v2632_v29 = vadd.f32 %v2032_v12, %v470_v23  ;;  %v2639_v38 = vadd.f32 %v2032_v12, %v469_v30  ;;  %v2163_v43 = vunpack.c.h.bf16 %v2182_v15  ;;  %817 = vrot.lane.b32.xlu0 %v767_v36, %s2506_s30  ;;  %v2643_v47 = vadd.f32 %v2032_v12, %v471_v39 }
  0x21   : > { %v489_v32 = vsub.f32 0.0, %v2623_v24  ;;  %v488_v33 = vsub.f32 0.0, %v2625_v25  ;;  %v490_v34 = vsub.f32 0.0, %v2627_v26  ;;  %v491_v35 = vsub.f32 0.0, %v2629_v27 }
  0x22   : > { %v493_v37 = vsub.f32 0.0, %v2632_v29  ;;  %v492_v46 = vsub.f32 0.0, %v2639_v38  ;;  %v472_v48 = vmul.f32 %v2163_v43, %v2031_v2  ;;  %v494_v50 = vsub.f32 0.0, %v2643_v47 }
  0x23   : > { %v498_v40 = vmul.f32 1.442695, %v489_v32  ;;  %v496_v41 = vmul.f32 1.442695, %v488_v33  ;;  %v500_v42 = vmul.f32 1.442695, %v490_v34 }
  0x24   : > { %v502_v44 = vmul.f32 1.442695, %v491_v35  ;;  %v506_v45 = vmul.f32 1.442695, %v493_v37  ;;  %v504_v49 = vmul.f32 1.442695, %v492_v46  ;;  %v2646_v51 = vadd.f32 %v2032_v12, %v472_v48 }
  0x25   : > { %2391 = vpow2.f32 %v498_v40  ;;  %v508_v52 = vmul.f32 1.442695, %v494_v50 }
  0x26   : > { %2393 = vpow2.f32 %v496_v41  ;;  %v495_v53 = vsub.f32 0.0, %v2646_v51 }
  0x27   : > { %2395 = vpow2.f32 %v500_v42 }
  0x28   : > { %2397 = vpow2.f32 %v502_v44  ;;  %v510_v54 = vmul.f32 1.442695, %v495_v53 }
  0x29   : > { %2399 = vpow2.f32 %v506_v45 }
  0x2a   : > { %2401 = vpow2.f32 %v504_v49 }
  0x2b   : > { %2403 = vpow2.f32 %v508_v52 }
  0x2c   : > { %2405 = vpow2.f32 %v510_v54 }
  0x2f   : > { %v2392_v55 = vpop.eup %2391 }
  0x30   : > { %v2394_v56 = vpop.eup %2393  ;;  %v513_v57 = vadd.f32 1.0, %v2392_v55 }
  0x31   : > { %v2396_v58 = vpop.eup %2395  ;;  %v512_v59 = vadd.f32 1.0, %v2394_v56 }
  0x32   : > { %v2398_v60 = vpop.eup %2397  ;;  %2407 = vrcp.f32 %v513_v57  ;;  %v514_v61 = vadd.f32 1.0, %v2396_v58 }
  0x33   : > { %v2400_v62 = vpop.eup %2399  ;;  %2409 = vrcp.f32 %v512_v59  ;;  %v515_v63 = vadd.f32 1.0, %v2398_v60 }
  0x34   : > { %v2402_v0 = vpop.eup %2401  ;;  %2411 = vrcp.f32 %v514_v61  ;;  %v517_v1 = vadd.f32 1.0, %v2400_v62 }
  0x35   : > { %v2404_v2 = vpop.eup %2403  ;;  %2413 = vrcp.f32 %v515_v63  ;;  %v516_v3 = vadd.f32 1.0, %v2402_v0 }
  0x36   : > { %2415 = vrcp.f32 %v517_v1  ;;  %v518_v4 = vadd.f32 1.0, %v2404_v2  ;;  %v2406_v5 = vpop.eup %2405 }
  0x37   : > { %2417 = vrcp.f32 %v516_v3  ;;  %v519_v7 = vadd.f32 1.0, %v2406_v5 }
  0x38   : > { %2419 = vrcp.f32 %v518_v4 }
  0x39   : > { %2421 = vrcp.f32 %v519_v7 }
  0x3c   : > { %v2408_v6 = vpop.eup %2407 }
  0x3d   : > { %v2410_v8 = vpop.eup %2409  ;;  %v529_v9 = vmul.f32 %v2408_v6, %v2623_v24 }
  0x3e   : > { %v2412_v10 = vpop.eup %2411  ;;  %v528_v11 = vmul.f32 %v2410_v8, %v2625_v25 }
  0x3f   : > { %v2414_v12 = vpop.eup %2413  ;;  %v537_v13 = vpack.c.bf16 %v529_v9, %v529_v9  ;;  %v530_v14 = vmul.f32 %v2412_v10, %v2627_v26 }
  0x40   : > { %v2416_v15 = vpop.eup %2415  ;;  %v536_v16 = vpack.c.bf16 %v528_v11, %v528_v11  ;;  %v531_v17 = vmul.f32 %v2414_v12, %v2629_v27 }
  0x41   : > { %v2418_v18 = vpop.eup %2417  ;;  %v552_v19 = vshrl.u32 %v537_v13, 16  ;;  %v555_v20 = vshll.u32 %v537_v13, 16  ;;  %v538_v21 = vpack.c.bf16 %v530_v14, %v530_v14  ;;  %v533_v22 = vmul.f32 %v2416_v15, %v2632_v29 }
  0x42   : > { %v545_v23 = vshrl.u32 %v536_v16, 16  ;;  %v548_v24 = vshll.u32 %v536_v16, 16  ;;  %v539_v25 = vpack.c.bf16 %v531_v17, %v531_v17  ;;  %v532_v28 = vmul.f32 %v2418_v18, %v2639_v38  ;;  %v2420_v33 = vpop.eup %2419 }
  0x43   : > { %v554_v30 = vrot.slane %v552_v19, 7  ;;  %v559_v31 = vshrl.u32 %v538_v21, 16  ;;  %v562_v26 = vshll.u32 %v538_v21, 16  ;;  %v541_v32 = vpack.c.bf16 %v533_v22, %v533_v22  ;;  %v2422_v60 = vpop.eup %2421 }
  0x44   : > { %v547_v34 = vrot.slane %v545_v23, 7  ;;  %v566_v35 = vshrl.u32 %v539_v25, 16  ;;  %v569_v36 = vshll.u32 %v539_v25, 16  ;;  %v540_v29 = vpack.c.bf16 %v532_v28, %v532_v28 }
  0x45   : > { %v557_v37 = vor.u32 %v555_v20, %v554_v30  ;;  %v561_v39 = vrot.slane %v559_v31, 7  ;;  %v580_v40 = vshrl.u32 %v541_v32, 16  ;;  %v583_v41 = vshll.u32 %v541_v32, 16 }
  0x46   : > { %v550_v42 = vor.u32 %v548_v24, %v547_v34  ;;  %v568_v43 = vrot.slane %v566_v35, 7  ;;  %v573_v44 = vshrl.u32 %v540_v29, 16  ;;  %v576_v45 = vshll.u32 %v540_v29, 16 }
  0x47   : > { %v612_v46 = vsel %vm2657_vm6, 0, %v557_v37  ;;  %v564_v48 = vor.u32 %v562_v26, %v561_v39  ;;  %v582_v49 = vrot.slane %v580_v40, 7  ;;  %v534_v50 = vmul.f32 %v2420_v33, %v2643_v47 }
  0x48   : > { %v623_v52 = vsel %vm2663_vm7, %v612_v46, 0  ;;  %v611_v53 = vsel %vm2657_vm6, 0, %v550_v42  ;;  %v571_v54 = vor.u32 %v569_v36, %v568_v43  ;;  %v575_v55 = vrot.slane %v573_v44, 7 }
  0x49   : > { %v2035_v56 = vcombine.low %v623_v52, %v623_v52  ;;  %v2036_v57 = vcombine.high %v623_v52, %v623_v52  ;;  %v622_v58 = vsel %vm2663_vm7, %v611_v53, 0  ;;  %v613_v59 = vsel %vm2657_vm6, 0, %v564_v48 }
  0x4a   : > { %v2033_v61 = vcombine.low %v622_v58, %v622_v58  ;;  %v2034_v62 = vcombine.high %v622_v58, %v622_v58  ;;  %v624_v47 = vsel %vm2663_vm7, %v613_v59, 0  ;;  %v614_v63 = vsel %vm2657_vm6, 0, %v571_v54 }
  0x4b   : > { %691 = vst.msk [vmem:[#allocation2 + $0x10] sm:$0xf] %vm426_vm0, %v2035_v56  ;;  %v2037_v0 = vcombine.low %v624_v47, %v624_v47  ;;  %v2038_v1 = vcombine.high %v624_v47, %v624_v47  ;;  %v625_v2 = vsel %vm2663_vm7, %v614_v63, 0  ;;  %v585_v3 = vor.u32 %v583_v41, %v582_v49 }
  0x4c   : > { %692 = vst.msk [vmem:[#allocation2 + $0x14] sm:$0x1] %vm428_vm1, %v2036_v57  ;;  %690 = vst.msk [vmem:[#allocation2 + $0xc] sm:$0x1] %vm428_vm1, %v2034_v62  ;;  %v2039_v4 = vcombine.low %v625_v2, %v625_v2  ;;  %v2040_v5 = vcombine.high %v625_v2, %v625_v2  ;;  %v578_v6 = vor.u32 %v576_v45, %v575_v55 }
  0x4d   : > { %688 = vst.msk [vmem:[#allocation2 + $0x8] sm:$0xf] %vm426_vm0, %v2033_v61  ;;  %v542_v7 = vpack.c.bf16 %v534_v50, %v534_v50  ;;  %693 = vst.msk [vmem:[#allocation2 + $0x18] sm:$0xf] %vm426_vm0, %v2037_v0  ;;  %v616_v8 = vsel %vm2657_vm6, 0, %v585_v3  ;;  %v535_v9 = vmul.f32 %v2422_v60, %v2646_v51 }
  0x4e   : > { %694 = vst.msk [vmem:[#allocation2 + $0x1c] sm:$0x1] %vm428_vm1, %v2038_v1  ;;  %696 = vst.msk [vmem:[#allocation2 + $0x24] sm:$0x1] %vm428_vm1, %v2040_v5  ;;  %v627_v10 = vsel %vm2663_vm7, %v616_v8, 0  ;;  %v615_v11 = vsel %vm2657_vm6, 0, %v578_v6 }
  0x4f   : > { %695 = vst.msk [vmem:[#allocation2 + $0x20] sm:$0xf] %vm426_vm0, %v2039_v4  ;;  %v587_v12 = vshrl.u32 %v542_v7, 16  ;;  %v590_v13 = vshll.u32 %v542_v7, 16  ;;  %v2043_v14 = vcombine.low %v627_v10, %v627_v10  ;;  %v2044_v15 = vcombine.high %v627_v10, %v627_v10  ;;  %v2373_v1 = vld [vmem:[%s3210_s3] sm:$0xff]   ;;  %v2374_v5 = vld [vmem:[%s3210_s3 + $0x8] sm:$0xff]  }
  0x50   : > { %v626_v16 = vsel %vm2663_vm7, %v615_v11, 0  ;;  %v543_v17 = vpack.c.bf16 %v535_v9, %v535_v9  ;;  %2216 = vmatprep.subr.bf16.mxu0 %v2373_v1 }
  0x51   : > { %v2041_v18 = vcombine.low %v626_v16, %v626_v16  ;;  %v2042_v51 = vcombine.high %v626_v16, %v626_v16  ;;  %v589_v19 = vrot.slane %v587_v12, 7  ;;  %699 = vst.msk [vmem:[#allocation2 + $0x30] sm:$0xf] %vm426_vm0, %v2043_v14  ;;  %2217 = vmatpush3.bf16.msra.mxu0 %v2373_v1  ;;  %v2375_v16 = vld [vmem:[%s3210_s3 + $0x10] sm:$0xff]  }
  0x52   : > { %700 = vst.msk [vmem:[#allocation2 + $0x34] sm:$0x1] %vm428_vm1, %v2044_v15  ;;  %v2703_v20 = vld [vmem:[#allocation2 + $0x10] sm:$0xf]  ;;  %v594_v23 = vshrl.u32 %v543_v17, 16  ;;  %v597_v44 = vshll.u32 %v543_v17, 16  ;;  %2218 = vmatprep.subr.bf16.mxu0 %v2374_v5 }
  0x53   : > { %v710_v21 = vld [vmem:[#allocation2 + $0x14] sm:$0x1]  ;;  %697 = vst.msk [vmem:[#allocation2 + $0x28] sm:$0xf] %vm426_vm0, %v2041_v18  ;;  %v592_v22 = vor.u32 %v590_v13, %v589_v19  ;;  %v708_v28 = vld [vmem:[#allocation2 + $0xc] sm:$0x1] }
  0x54   : > { %698 = vst.msk [vmem:[#allocation2 + $0x2c] sm:$0x1] %vm428_vm1, %v2042_v51  ;;  %v2708_v24 = vcombine.low %v2703_v20, %v710_v21  ;;  %v2710_v25 = vld [vmem:[#allocation2 + $0x8] sm:$0xf]  ;;  %v2714_v31 = vld [vmem:[#allocation2 + $0x10] sm:$0xf] }
  0x55   : > { %v2712_v30 = vld [vmem:[#allocation2 + $0x8] sm:$0xf]  ;;  %v2717_v26 = vcombine.low %v2710_v25, %v708_v28  ;;  %v1070_v32 = vld [vmem:[#allocation2 + $0xc] sm:$0x1]  ;;  %v2719_v33 = vld [vmem:[#allocation2 + $0x18] sm:$0xf]  ;;  %2219 = vmatpush3.bf16.msra.mxu0 %v2374_v5 }
  0x56   : > { %v712_v34 = vld [vmem:[#allocation2 + $0x1c] sm:$0x1]  ;;  %v835_v35 = vrot.slane %v2708_v24, 1  ;;  %v2723_v36 = vcombine.low %v2712_v30, %v1070_v32  ;;  %v2728_v37 = vld [vmem:[#allocation2 + $0x18] sm:$0xf]  ;;  %v617_v40 = vsel %vm2657_vm6, 0, %v592_v22  ;;  %2220 = vmatprep.subr.bf16.mxu0 %v2375_v16 }
  0x57   : > { %v2726_v29 = vcombine.low %v2719_v33, %v712_v34  ;;  %v1074_v39 = vld [vmem:[#allocation2 + $0x1c] sm:$0x1]  ;;  %v834_v41 = vrot.slane %v2717_v26, 1  ;;  %v1072_v42 = vld [vmem:[#allocation2 + $0x14] sm:$0x1]  ;;  %v628_v43 = vsel %vm2663_vm7, %v617_v40, 0 }
  0x58   : > { %845 = vrot.lane.b32.xlu0 %v835_v35, %s2505_s28  ;;  %v1197_v45 = vrot.slane %v2723_v36, 1  ;;  %v2738_v46 = vcombine.low %v2728_v37, %v1074_v39  ;;  %v2045_v48 = vcombine.low %v628_v43, %v628_v43  ;;  %v2743_v50 = vcombine.low %v2714_v31, %v1072_v42  ;;  %v2745_v52 = vld [vmem:[#allocation2 + $0x20] sm:$0xf]  ;;  %v714_v53 = vld [vmem:[#allocation2 + $0x24] sm:$0x1]  ;;  %v2376_v21 = vld [vmem:[%s3210_s3 + $0x30] sm:$0xff]  }
  0x59   : > { %843 = vrot.lane.b32.xlu1 %v834_v41, %s2505_s28  ;;  %v836_v49 = vrot.slane %v2726_v29, 1  ;;  %v2046_v54 = vcombine.high %v628_v43, %v628_v43  ;;  %v596_v55 = vrot.slane %v594_v23, 7  ;;  %v2747_v56 = vld [vmem:[#allocation2 + $0x20] sm:$0xf]  ;;  %v1076_v57 = vld [vmem:[#allocation2 + $0x24] sm:$0x1]  ;;  %v2754_v60 = vcombine.low %v2745_v52, %v714_v53  ;;  %2236 = vmatprep.subr.bf16.mxu1 %v2376_v21 }
  0x5a   : > { %701 = vst.msk [vmem:[#allocation2 + $0x38] sm:$0xf] %vm426_vm0, %v2045_v48  ;;  %v1199_v59 = vrot.slane %v2738_v46, 1  ;;  %v2756_v61 = vld [vmem:[#allocation2 + $0x30] sm:$0xf]  ;;  %v1198_v62 = vrot.slane %v2743_v50, 1  ;;  %v2761_v47 = vcombine.low %v2747_v56, %v1076_v57  ;;  %2221 = vmatpush3.bf16.msra.mxu0 %v2375_v16  ;;  %2237 = vmatpush3.bf16.msra.mxu1 %v2376_v21 }
  0x5b   : > { %702 = vst.msk [vmem:[#allocation2 + $0x3c] sm:$0x1] %vm428_vm1, %v2046_v54  ;;  %v599_v58 = vor.u32 %v597_v44, %v596_v55  ;;  %v718_v63 = vld [vmem:[#allocation2 + $0x34] sm:$0x1]  ;;  %v2768_v2 = vld [vmem:[#allocation2 + $0x28] sm:$0xf] }
  0x5c   : > { %1205 = vrot.lane.b32.xlu0 %v1197_v45, %s2505_s28  ;;  %v716_v3 = vld [vmem:[#allocation2 + $0x2c] sm:$0x1]  ;;  %v837_v27 = vrot.slane %v2754_v60, 1  ;;  %v2778_v8 = vcombine.low %v2756_v61, %v718_v63  ;;  %v1200_v38 = vrot.slane %v2761_v47, 1  ;;  %v2785_v10 = vld [vmem:[#allocation2 + $0x28] sm:$0xf] }
  0x5d   : > { %847 = vrot.lane.b32.xlu1 %v836_v49, %s2505_s28  ;;  %v618_v0 = vsel %vm2657_vm6, 0, %v599_v58  ;;  %v2783_v9 = vcombine.low %v2768_v2, %v716_v3  ;;  %v1078_v11 = vld [vmem:[#allocation2 + $0x2c] sm:$0x1]  ;;  %v2809_v22 = vld [vmem:[#allocation2 + $0x30] sm:$0xf]  ;;  %v2377_v28 = vld [vmem:[%s3210_s3 + $0x18] sm:$0xff]  }
  0x5e   : > { %v629_v4 = vsel %vm2663_vm7, %v618_v0, 0  ;;  %v839_v14 = vrot.slane %v2778_v8, 1  ;;  %v2794_v15 = vcombine.low %v2785_v10, %v1078_v11  ;;  %v1080_v23 = vld [vmem:[#allocation2 + $0x34] sm:$0x1]  ;;  %v771_v35 = vshll.u32 %v2717_v26, 16  ;;  %v2378_v41 = vld [vmem:[%s3210_s3 + $0x38] sm:$0xff]   ;;  %2222 = vmatprep.subr.bf16.mxu0 %v2377_v28 }
  0x5f   : > { %v2047_v6 = vcombine.low %v629_v4, %v629_v4  ;;  %v2048_v7 = vcombine.high %v629_v4, %v629_v4  ;;  %v838_v17 = vrot.slane %v2783_v9, 1  ;;  %v2823_v40 = vcombine.low %v2809_v22, %v1080_v23  ;;  %2238 = vmatprep.subr.bf16.mxu1 %v2378_v41  ;;  %v2379_v44 = vld [vmem:[%s3210_s3 + $0x20] sm:$0xff]   ;;  %2223 = vmatpush3.bf16.msra.mxu0 %v2377_v28 }
  0x60   : > { %1209 = vrot.lane.b32.xlu0 %v1199_v59, %s2505_s28  ;;  %v1201_v32 = vrot.slane %v2794_v15, 1  ;;  %v769_v48 = vshrl.u32 %v2717_v26, 16  ;;  %v773_v49 = vrot.slane %v771_v35, 1  ;;  %v1128_v53 = vshll.u32 %v2723_v36, 16  ;;  %v2380_v54 = vld [vmem:[%s3210_s3 + $0x40] sm:$0xff]   ;;  %2239 = vmatpush3.bf16.msra.mxu1 %v2378_v41  ;;  %v2381_v26 = vld [vmem:[%s3210_s3 + $0x28] sm:$0xff]  }
  0x61   : > { %1207 = vrot.lane.b32.xlu1 %v1198_v62, %s2505_s28  ;;  %703 = vst.msk [vmem:[#allocation2 + $0x40] sm:$0xf] %vm426_vm0, %v2047_v6  ;;  %v2789_v12 = vld [vmem:[#allocation2 + $0x38] sm:$0xf]  ;;  %v1202_v55 = vrot.slane %v2823_v40, 1  ;;  %v778_v58 = vshll.u32 %v2708_v24, 16  ;;  %2224 = vmatprep.subr.bf16.mxu0 %v2379_v44 }
  0x62   : > { %704 = vst.msk [vmem:[#allocation2 + $0x44] sm:$0x1] %vm428_vm1, %v2048_v7  ;;  %v720_v13 = vld [vmem:[#allocation2 + $0x3c] sm:$0x1]  ;;  %v2804_v51 = vld [vmem:[#allocation2 + $0x38] sm:$0xf]  ;;  %2240 = vmatprep.subr.bf16.mxu1 %v2380_v54  ;;  %v774_v62 = vor.u32 %v773_v49, %v769_v48 }
  0x63   : > { %v2802_v18 = vcombine.low %v2789_v12, %v720_v13  ;;  %v1082_v19 = vld [vmem:[#allocation2 + $0x3c] sm:$0x1]  ;;  %v2382_v59 = vld [vmem:[%s3210_s3 + $0x48] sm:$0xff]   ;;  %v1126_v63 = vshrl.u32 %v2723_v36, 16  ;;  %v1130_v0 = vrot.slane %v1128_v53, 1  ;;  %v1142_v1 = vshll.u32 %v2738_v46, 16  ;;  %2225 = vmatpush3.bf16.msra.mxu0 %v2379_v44 }
  0x64   : > { %849 = vrot.lane.b32.xlu0 %v837_v27, %s2505_s28  ;;  %v2817_v34 = vcombine.low %v2804_v51, %v1082_v19  ;;  %v776_v4 = vshrl.u32 %v2708_v24, 16  ;;  %v780_v5 = vrot.slane %v778_v58, 1  ;;  %v785_v6 = vshll.u32 %v2726_v29, 16  ;;  %2241 = vmatpush3.bf16.msra.mxu1 %v2380_v54  ;;  %v2383_v36 = vld [vmem:[%s3210_s3 + $0x50] sm:$0xff]  }
  0x65   : > { %1211 = vrot.lane.b32.xlu1 %v1200_v38, %s2505_s28  ;;  %v840_v39 = vrot.slane %v2802_v18, 1  ;;  %2226 = vmatprep.subr.bf16.mxu0 %v2381_v26  ;;  %v1131_v7 = vor.u32 %v1130_v0, %v1126_v63  ;;  %v1140_v27 = vshrl.u32 %v2738_v46, 16  ;;  %v1144_v38 = vrot.slane %v1142_v1, 1 }
  0x66   : > { %v1203_v45 = vrot.slane %v2817_v34, 1  ;;  %2242 = vmatprep.subr.bf16.mxu1 %v2382_v59  ;;  %v792_v11 = vshll.u32 %v2754_v60, 16  ;;  %v781_v24 = vor.u32 %v780_v5, %v776_v4  ;;  %v783_v13 = vshrl.u32 %v2726_v29, 16  ;;  %v2899_v4 = vld [vmem:[#allocation2 + $0x18] sm:$0xf] }
  0x67   : > { %2227 = vmatpush3.bf16.msra.mxu0 %v2381_v26  ;;  %v1135_v16 = vshll.u32 %v2743_v50, 16  ;;  %v1145_v46 = vor.u32 %v1144_v38, %v1140_v27  ;;  %v790_v19 = vshrl.u32 %v2754_v60, 16  ;;  %v806_v23 = vshll.u32 %v2778_v8, 16  ;;  %v1435_v5 = vld [vmem:[#allocation2 + $0x1c] sm:$0x1] }
  0x68   : > { %853 = vrot.lane.b32.xlu0 %v839_v14, %s2505_s28  ;;  %v2828_v42 = vld [vmem:[#allocation2 + $0x40] sm:$0xf]  ;;  %v787_v14 = vrot.slane %v785_v6, 1  ;;  %2243 = vmatpush3.bf16.msra.mxu1 %v2382_v59  ;;  %v794_v21 = vrot.slane %v792_v11, 1  ;;  %v1133_v28 = vshrl.u32 %v2743_v50, 16  ;;  %v1149_v35 = vshll.u32 %v2761_v47, 16 }
  0x69   : > { %851 = vrot.lane.b32.xlu1 %v838_v17, %s2505_s28  ;;  %v1084_v43 = vld [vmem:[#allocation2 + $0x44] sm:$0x1]  ;;  %2244 = vmatprep.subr.bf16.mxu1 %v2383_v36  ;;  %v2384_v17 = vld [vmem:[%s3210_s3 + $0x58] sm:$0xff]   ;;  %v804_v60 = vshrl.u32 %v2778_v8, 16  ;;  %v1156_v44 = vshll.u32 %v2794_v15, 16  ;;  %v1147_v50 = vshrl.u32 %v2761_v47, 16 }
  0x6a   : > { %v2843_v57 = vcombine.low %v2828_v42, %v1084_v43  ;;  %v788_v29 = vor.u32 %v787_v14, %v783_v13  ;;  %v795_v41 = vor.u32 %v794_v21, %v790_v19  ;;  %v808_v43 = vrot.slane %v806_v23, 1  ;;  %v2904_v27 = vld [vmem:[#allocation2 + $0x20] sm:$0xf]  ;;  %v1437_v13 = vld [vmem:[#allocation2 + $0x24] sm:$0x1] }
  0x6b   : > { %v1151_v49 = vrot.slane %v1149_v35, 1  ;;  %v799_v53 = vshll.u32 %v2783_v9, 16  ;;  %v1154_v58 = vshrl.u32 %v2794_v15, 16  ;;  %v1158_v26 = vrot.slane %v1156_v44, 1  ;;  %v2918_v21 = vld [vmem:[#allocation2 + $0x40] sm:$0xf] }
  0x6c   : > { %1213 = vrot.lane.b32.xlu0 %v1201_v32, %s2505_s28  ;;  %v1204_v3 = vrot.slane %v2843_v57, 1  ;;  %v1137_v32 = vrot.slane %v1135_v16, 1  ;;  %2245 = vmatpush3.bf16.msra.mxu1 %v2383_v36  ;;  %v809_v8 = vor.u32 %v808_v43, %v804_v60  ;;  %v1170_v59 = vshll.u32 %v2817_v34, 16  ;;  %v2923_v35 = vld [vmem:[#allocation2 + $0x38] sm:$0xf] }
  0x6d   : > { %855 = vrot.lane.b32.xlu1 %v840_v39, %s2505_s28  ;;  %2246 = vmatprep.subr.bf16.mxu1 %v2384_v17  ;;  %v2877_v39 = vld [vmem:[#allocation2 + $0x10] sm:$0xf]  ;;  %v1152_v47 = vor.u32 %v1151_v49, %v1147_v50  ;;  %v797_v63 = vshrl.u32 %v2783_v9, 16  ;;  %v801_v0 = vrot.slane %v799_v53, 1  ;;  %v813_v1 = vshll.u32 %v2802_v18, 16 }
  0x6e   : > { %v1138_v48 = vor.u32 %v1137_v32, %v1133_v28  ;;  %v1159_v15 = vor.u32 %v1158_v26, %v1154_v58  ;;  %v1168_v6 = vshrl.u32 %v2817_v34, 16  ;;  %v1172_v36 = vrot.slane %v1170_v59, 1  ;;  %v1445_v32 = vld [vmem:[#allocation2 + $0x44] sm:$0x1]  ;;  %v2940_v58 = vld [vmem:[#allocation2 + $0x28] sm:$0xf] }
  0x6f   : > { %v802_v9 = vor.u32 %v801_v0, %v797_v63  ;;  %v811_v38 = vshrl.u32 %v2802_v18, 16  ;;  %v815_v11 = vrot.slane %v813_v1, 1  ;;  %v2911_v16 = vcombine.low %v2899_v4, %v1435_v5  ;;  %v1439_v26 = vld [vmem:[#allocation2 + $0x2c] sm:$0x1] }
  0x70   : > { %1217 = vrot.lane.b32.xlu0 %v1203_v45, %s2505_s28  ;;  %v1433_v45 = vld [vmem:[#allocation2 + $0x14] sm:$0x1]  ;;  %2247 = vmatpush3.bf16.msra.mxu1 %v2384_v17  ;;  %v1173_v34 = vor.u32 %v1172_v36, %v1168_v6  ;;  %v2916_v19 = vcombine.low %v2904_v27, %v1437_v13  ;;  %v1161_v23 = vshrl.u32 %v2823_v40, 16  ;;  %v1177_v28 = vshll.u32 %v2843_v57, 16  ;;  %v2950_v36 = vld [vmem:[#allocation2 + $0x48] sm:$0xf] }
  0x71   : > { %1215 = vrot.lane.b32.xlu1 %v1202_v55, %s2505_s28  ;;  %v2886_v54 = vcombine.low %v2877_v39, %v1433_v45  ;;  %v2888_v55 = vld [vmem:[#allocation2 + $0x30] sm:$0xf]  ;;  %v816_v18 = vor.u32 %v815_v11, %v811_v38  ;;  %v1175_v60 = vshrl.u32 %v2843_v57, 16  ;;  %v2111_v50 = vcombine.low %v2918_v21, %v1445_v32 }
  0x72   : > { %v1179_v53 = vrot.slane %v1177_v28, 1  ;;  %v1498_v57 = vshll.u32 %v2911_v16, 16  ;;  %v1496_v59 = vshrl.u32 %v2911_v16, 16  ;;  %v2108_v6 = vcombine.low %v2940_v58, %v1439_v26 }
  0x73   : > { %v1489_v14 = vshrl.u32 %v2886_v54, 16  ;;  %v1533_v0 = vshll.u32 %v2111_v50, 16  ;;  %v1531_v38 = vshrl.u32 %v2111_v50, 16  ;;  %v1560_v32 = vrot.slane %v2886_v54, 1 }
  0x74   : > { %819 = vrot.lane.b32.xlu0 %v774_v62, %s2506_s30  ;;  %v1441_v62 = vld [vmem:[#allocation2 + $0x34] sm:$0x1]  ;;  %v1180_v1 = vor.u32 %v1179_v53, %v1175_v60  ;;  %v1500_v5 = vrot.slane %v1498_v57, 1 }
  0x75   : > { %1219 = vrot.lane.b32.xlu1 %v1204_v3, %s2505_s28  ;;  %v2897_v3 = vcombine.low %v2888_v55, %v1441_v62  ;;  %v1535_v11 = vrot.slane %v1533_v0, 1 }
  0x76   : > { %v1501_v13 = vor.u32 %v1500_v5, %v1496_v59 }
  0x77   : > { %v1517_v43 = vshrl.u32 %v2897_v3, 16 }
  0x78   : > { %1181 = vrot.lane.b32.xlu0 %v1131_v7, %s2506_s30  ;;  %v1491_v7 = vshll.u32 %v2886_v54, 16  ;;  %v1561_v54 = vrot.slane %v2911_v16, 1  ;;  %v1563_v16 = vrot.slane %v2108_v6, 1 }
  0x79   : > { %821 = vrot.lane.b32.xlu1 %v781_v24, %s2506_s30  ;;  %v1163_v24 = vshll.u32 %v2823_v40, 16  ;;  %v2933_v40 = vld [vmem:[%s3210_s3 + $0x60] sm:$0xff]  }
  0x7a   : > { %v1493_v17 = vrot.slane %v1491_v7, 1  ;;  %2256 = vmatprep.subr.bf16.mxu0 %v2933_v40  ;;  %2276 = vmatprep.subr.bf16.mxu1 %v2933_v40  ;;  %v1447_v7 = vld [vmem:[#allocation2 + $0x4c] sm:$0x1] }
  0x7c   : > { %1185 = vrot.lane.b32.xlu0 %v1145_v46, %s2506_s30  ;;  %v1519_v46 = vshll.u32 %v2897_v3, 16  ;;  %v1494_v44 = vor.u32 %v1493_v17, %v1489_v14  ;;  %v1512_v17 = vshll.u32 %v2108_v6, 16 }
  0x7d   : > { %823 = vrot.lane.b32.xlu1 %v788_v29, %s2506_s30  ;;  %v1165_v29 = vrot.slane %v1163_v24, 1  ;;  %v2112_v24 = vcombine.low %v2950_v36, %v1447_v7 }
  0x7e   : > { %v1521_v45 = vrot.slane %v1519_v46, 1  ;;  %v1536_v46 = vor.u32 %v1535_v11, %v1531_v38  ;;  %v2423_v11 = vld [vmem:[#allocation2] sm:$0xf] }
  0x7f   : > { %v1166_v49 = vor.u32 %v1165_v29, %v1161_v23  ;;  %v1510_v23 = vshrl.u32 %v2108_v6, 16  ;;  %v1514_v29 = vrot.slane %v1512_v17, 1  ;;  %v1540_v28 = vshll.u32 %v2112_v24, 16 }
  0x80   : > { %825 = vrot.lane.b32.xlu0 %v795_v41, %s2506_s30  ;;  %v1443_v41 = vld [vmem:[#allocation2 + $0x3c] sm:$0x1]  ;;  %v1522_v62 = vor.u32 %v1521_v45, %v1517_v43  ;;  %v1538_v60 = vshrl.u32 %v2112_v24, 16 }
  0x81   : > { %1183 = vrot.lane.b32.xlu1 %v1138_v48, %s2506_s30  ;;  %v1505_v48 = vshll.u32 %v2916_v19, 16  ;;  %v1542_v43 = vrot.slane %v1540_v28, 1 }
  0x83   : > { %v1507_v63 = vrot.slane %v1505_v48, 1  ;;  %v1543_v45 = vor.u32 %v1542_v43, %v1538_v60  ;;  %v1562_v48 = vrot.slane %v2916_v19, 1 }
  0x84   : > { %829 = vrot.lane.b32.xlu0 %v809_v8, %s2506_s30  ;;  %v2938_v8 = vcombine.low %v2923_v35, %v1443_v41  ;;  %v1515_v41 = vor.u32 %v1514_v29, %v1510_v23 }
  0x85   : > { %1187 = vrot.lane.b32.xlu1 %v1152_v47, %s2506_s30  ;;  %v1503_v47 = vshrl.u32 %v2916_v19, 16  ;;  %v1567_v19 = vrot.slane %v2112_v24, 1 }
  0x86   : > { %v1524_v14 = vshrl.u32 %v2938_v8, 16  ;;  %v1565_v53 = vrot.slane %v2938_v8, 1 }
  0x88   : > { %1189 = vrot.lane.b32.xlu0 %v1159_v15, %s2506_s30  ;;  %v1526_v15 = vshll.u32 %v2938_v8, 16 }
  0x89   : > { %827 = vrot.lane.b32.xlu1 %v802_v9, %s2506_s30  ;;  %v1508_v9 = vor.u32 %v1507_v63, %v1503_v47 }
  0x8c   : > { %1193 = vrot.lane.b32.xlu0 %v1173_v34, %s2506_s30  ;;  %v1528_v34 = vrot.slane %v1526_v15, 1 }
  0x8d   : > { %831 = vrot.lane.b32.xlu1 %v816_v18, %s2506_s30 }
  0x8e   : > { %v1529_v18 = vor.u32 %v1528_v34, %v1524_v14 }
  0x90   : > { %1544 = vrot.lane.b32.xlu0 %v1494_v44, %s2506_s30  ;;  %v1564_v44 = vrot.slane %v2897_v3, 1  ;;  %v2507_v3 = vmov 0.0  }
  0x91   : > { %1191 = vrot.lane.b32.xlu1 %v1166_v49, %s2506_s30  ;;  %v1566_v49 = vrot.slane %v2111_v50, 1  ;;  %436 = vst.msk [vmem:[#allocation3 + $0x10] sm:$0xff] %vm433_vm8, %v2507_v3  ;;  %434 = vst.msk [vmem:[#allocation3] sm:$0xff] %vm433_vm8, %v2507_v3  ;;  %v842_v50 = vpop.permute.xlu0 %841 }
  0x92   : > { %435 = vst.msk [vmem:[#allocation3 + $0x8] sm:$0xff] %vm433_vm8, %v2507_v3  ;;  %437 = vst.msk [vmem:[#allocation3 + $0x18] sm:$0xff] %vm433_vm8, %v2507_v3 }
  0x93   : > { %438 = vst.msk [vmem:[#allocation3 + $0x20] sm:$0xff] %vm433_vm8, %v2507_v3  ;;  %439 = vst.msk [vmem:[#allocation3 + $0x28] sm:$0xff] %vm433_vm8, %v2507_v3 }
  0x94   : > { %1552 = vrot.lane.b32.xlu0 %v1522_v62, %s2506_s30  ;;  %440 = vst.msk [vmem:[#allocation3 + $0x30] sm:$0xff] %vm433_vm8, %v2507_v3  ;;  %441 = vst.msk [vmem:[#allocation3 + $0x38] sm:$0xff] %vm433_vm8, %v2507_v3 }
  0x95   : > { %1195 = vrot.lane.b32.xlu1 %v1180_v1, %s2506_s30  ;;  %v818_v57 = vpop.permute.xlu0 %817 }
  0x96   : > { %v860_v24 = vsel %vm433_vm8, %v2423_v11, %v818_v57 }
  0x97   : > { %v884_v17 = vsel %vm882_vm9, %v860_v24, %v842_v50 }
  0x98   : > { %1548 = vrot.lane.b32.xlu0 %v1508_v9, %s2506_s30 }
  0x99   : > { %1546 = vrot.lane.b32.xlu1 %v1501_v13, %s2506_s30 }
  0x9c   : > { %1556 = vrot.lane.b32.xlu0 %v1536_v46, %s2506_s30 }
  0x9d   : > { %1554 = vrot.lane.b32.xlu1 %v1529_v18, %s2506_s30 }
  0xa0   : > { %1568 = vrot.lane.b32.xlu0 %v1560_v32, %s2505_s28 }
  0xa1   : > { %1550 = vrot.lane.b32.xlu1 %v1515_v41, %s2506_s30 }
  0xa4   : > { %1576 = vrot.lane.b32.xlu0 %v1564_v44, %s2505_s28 }
  0xa5   : > { %1558 = vrot.lane.b32.xlu1 %v1543_v45, %s2506_s30 }
  0xa8   : > { %1572 = vrot.lane.b32.xlu0 %v1562_v48, %s2505_s28 }
  0xa9   : > { %1570 = vrot.lane.b32.xlu1 %v1561_v54, %s2505_s28  ;;  %v2386_v54 = vld [vmem:[%s3210_s3 + $0x68] sm:$0xff]  }
  0xac   : > { %1580 = vrot.lane.b32.xlu0 %v1566_v49, %s2505_s28 }
  0xad   : > { %1578 = vrot.lane.b32.xlu1 %v1565_v53, %s2505_s28 }
  0xb1   : > { %1574 = vrot.lane.b32.xlu1 %v1563_v16, %s2505_s28 }
  0xb5   : > { %1582 = vrot.lane.b32.xlu1 %v1567_v19, %s2505_s28  ;;  %v2387_v19 = vld [vmem:[%s3210_s3 + $0x70] sm:$0xff]   ;;  %s3122_s28 = scalar_lea.vmem %s3212_s5, %s2145_s12  ;;  %s375_s12 = sand.u32 1, %s2486_s22  }
  0xb6   : > { %s2026_s11 = sshll.u32 %s375_s12, 6  ;;  %s3161_s24 = scalar_lea.sflag [#allocation5], %s375_s12 }
  0xb7   : > { %s377_s20 = scalar_lea.vmem [#allocation4], %s2026_s11 }
  0xb8   : > { %s1867_s8 = sshll.u32 %s377_s20, 4  ;;  %s3154_s8 = int_to_ptr.vmem [resolvable:$true] %s1867_s8 }
  0xb9   : > { %s2424_s16 = scalar_lea.vmem %s3154_s8, 1024 }
  0xba   : > { %p2425_p12 = scmp.ne.s32.totalorder %s3154_s8, %s2424_s16 }
  0xbc   : > { %p2426_p13 = pnand %p2425_p12, %p2586_p4 }
  0xbe   : > { %p2427_p0 = pneg %p2426_p13 }
  0xca   : > { %v846_v8 = vpop.permute.xlu0 %845 }
  0xcb   : > { %v844_v26 = vpop.permute.xlu1 %843 }
  0xce   : > { %v1206_v59 = vpop.permute.xlu0 %1205 }
  0xcf   : > { %v848_v62 = vpop.permute.xlu1 %847 }
  0xd2   : > { %v1210_v47 = vpop.permute.xlu0 %1209 }
  0xd3   : > { %v1208_v63 = vpop.permute.xlu1 %1207 }
  0xd6   : > { %v850_v0 = vpop.permute.xlu0 %849 }
  0xd7   : > { %v1212_v1 = vpop.permute.xlu1 %1211 }
  0xda   : > { %v2983_v5 = vpop.permute.xlu0 %853 }
  0xdb   : > { %v852_v15 = vpop.permute.xlu1 %851 }
  0xde   : > { %v2985_v7 = vpop.permute.xlu0 %1213 }
  0xdf   : > { %v2987_v6 = vpop.permute.xlu1 %855 }
  0xe2   : > { %v2989_v9 = vpop.permute.xlu0 %1217 }
  0xe3   : > { %v2991_v38 = vpop.permute.xlu1 %1215 }
  0xe6   : > { %v820_v13 = vpop.permute.xlu0 %819 }
  0xe7   : > { %v2994_v14 = vpop.permute.xlu1 %1219  ;;  %v863_v34 = vsel %vm433_vm8, %v2710_v25, %v820_v13 }
  0xe8   : > { %v886_v46 = vsel %vm882_vm9, %v863_v34, %v844_v26 }
  0xe9   : > { %v2057_v18 = vcombine.low %v884_v17, %v886_v46 }
  0xea   : > { %v1182_v23 = vpop.permute.xlu0 %1181 }
  0xeb   : > { %v822_v29 = vpop.permute.xlu1 %821  ;;  %2228 = vmatprep.mubr.msk.bf16.mxu0 %vm975_vm10, %v2057_v18  ;;  %v1223_v44 = vsel %vm433_vm8, %v2712_v30, %v1182_v23 }
  0xec   : > { %v866_v28 = vsel %vm433_vm8, %v2703_v20, %v822_v29 }
  0xed   : > { %v888_v25 = vsel %vm882_vm9, %v866_v28, %v846_v8 }
  0xee   : > { %v1186_v32 = vpop.permute.xlu0 %1185 }
  0xef   : > { %v824_v41 = vpop.permute.xlu1 %823  ;;  %v1229_v30 = vsel %vm433_vm8, %v2728_v37, %v1186_v32 }
  0xf0   : > { %v869_v60 = vsel %vm433_vm8, %v2719_v33, %v824_v41  ;;  %v1246_v33 = vsel %vm882_vm9, %v1223_v44, %v1206_v59  ;;  %v1250_v57 = vsel %vm882_vm9, %v1229_v30, %v1210_v47 }
  0xf1   : > { %v890_v43 = vsel %vm882_vm9, %v869_v60, %v848_v62  ;;  %v2388_v62 = vld [vmem:[%s3210_s3 + $0x78] sm:$0xff]  }
  0xf2   : > { %v2058_v45 = vcombine.low %v888_v25, %v890_v43  ;;  %v826_v48 = vpop.permute.xlu0 %825 }
  0xf3   : > { %v1184_v49 = vpop.permute.xlu1 %1183  ;;  %v872_v37 = vsel %vm433_vm8, %v2745_v52, %v826_v48 }
  0xf4   : > { %v1226_v20 = vsel %vm433_vm8, %v2714_v31, %v1184_v49  ;;  %2229 = vmatmul.mubr.msk.bf16.vlgmr.msra.gmra.mrb[0].mxu0 %vm975_vm10, %v2058_v45  ;;  %v892_v47 = vsel %vm882_vm9, %v872_v37, %v850_v0 }
  0xf5   : > { %v1248_v53 = vsel %vm882_vm9, %v1226_v20, %v1208_v63  ;;  %2257 = vmatpush3.bf16.msra.mxu0 %v2933_v40 }
  0xf6   : > { %v830_v3 = vpop.permute.xlu0 %829  ;;  %v2091_v16 = vcombine.low %v1246_v33, %v1248_v53  ;;  %2258 = vmatprep.subr.bf16.mxu0 %v2386_v54 }
  0xf7   : > { %v1188_v50 = vpop.permute.xlu1 %1187  ;;  %v878_v52 = vsel %vm433_vm8, %v2756_v61, %v830_v3 }
  0xf8   : > { %v1232_v31 = vsel %vm433_vm8, %v2747_v56, %v1188_v50  ;;  %2248 = vmatprep.mubr.msk.bf16.mxu1 %vm975_vm10, %v2091_v16 }
  0xf9   : > { %v1252_v8 = vsel %vm882_vm9, %v1232_v31, %v1212_v1  ;;  %2259 = vmatpush3.bf16.msra.mxu0 %v2386_v54 }
  0xfa   : > { %v2092_v26 = vcombine.low %v1250_v57, %v1252_v8  ;;  %v1190_v59 = vpop.permute.xlu0 %1189  ;;  %2260 = vmatprep.subr.bf16.mxu0 %v2387_v19 }
  0xfb   : > { %v828_v63 = vpop.permute.xlu1 %827 }
  0xfc   : > { %v875_v56 = vsel %vm433_vm8, %v2768_v2, %v828_v63  ;;  %2249 = vmatmul.mubr.msk.bf16.vlgmr.msra.gmra.mrb[0].mxu1 %vm975_vm10, %v2092_v26  ;;  %v2389_v2 = vld [vmem:[%s3210_s3 + $0x80] sm:$0xff]  }
  0xfd   : > { %v894_v1 = vsel %vm882_vm9, %v875_v56, %v852_v15  ;;  %2282 = vmatpush3.bf16.msra.mxu1 %v2933_v40  ;;  %2261 = vmatpush3.bf16.msra.mxu0 %v2387_v19  ;;  %v896_v40 = vsel %vm882_vm9, %v878_v52, %v2983_v5  ;;  %v1235_v15 = vsel %vm433_vm8, %v2785_v10, %v1190_v59  ;;  %v913_v63 = vld [vmem:[#allocation3 + $0x10] sm:$0xff]  ;;  %v911_v56 = vld [vmem:[#allocation3] sm:$0xff] }
  0xfe   : > { %v2059_v11 = vcombine.low %v892_v47, %v894_v1  ;;  %v1194_v24 = vpop.permute.xlu0 %1193  ;;  %2277 = vmatprep.subr.bf16.mxu1 %v2386_v54  ;;  %2262 = vmatprep.subr.bf16.mxu0 %v2388_v62  ;;  %v914_v1 = vld [vmem:[#allocation3 + $0x18] sm:$0xff] }
  0xff   : > { %v832_v13 = vpop.permute.xlu1 %831  ;;  %v1241_v18 = vsel %vm433_vm8, %v2804_v51, %v1194_v24 }
 0x100   : > { %v881_v0 = vsel %vm433_vm8, %v2789_v12, %v832_v13  ;;  %2232 = vmatprep.mubr.msk.bf16.mxu0 %vm975_vm10, %v2059_v11  ;;  %v2390_v12 = vld [vmem:[%s3210_s3 + $0x88] sm:$0xff]  }
 0x101   : > { %v898_v61 = vsel %vm882_vm9, %v881_v0, %v2987_v6  ;;  %2283 = vmatpush3.bf16.msra.mxu1 %v2386_v54  ;;  %2263 = vmatpush3.bf16.msra.mxu0 %v2388_v62  ;;  %v1254_v6 = vsel %vm882_vm9, %v1235_v15, %v2985_v7  ;;  %v1258_v7 = vsel %vm882_vm9, %v1241_v18, %v2989_v9 }
 0x102   : > { %v2060_v34 = vcombine.low %v896_v40, %v898_v61  ;;  %v1545_v17 = vpop.permute.xlu0 %1544  ;;  %2278 = vmatprep.subr.bf16.mxu1 %v2387_v19  ;;  %2264 = vmatprep.subr.bf16.mxu0 %v2389_v2 }
 0x103   : > { %v1192_v46 = vpop.permute.xlu1 %1191 }
 0x104   : > { %v1238_v5 = vsel %vm433_vm8, %v2809_v22, %v1192_v46  ;;  %2233 = vmatmul.mubr.msk.bf16.gmra.mrb[4].mxu0 %vm975_vm10, %v2060_v34 }
 0x105   : > { %v1256_v10 = vsel %vm882_vm9, %v1238_v5, %v2991_v38  ;;  %2284 = vmatpush3.bf16.msra.mxu1 %v2387_v19  ;;  %2265 = vmatpush3.bf16.msra.mxu0 %v2389_v2 }
 0x106   : > { %v2093_v23 = vcombine.low %v1254_v6, %v1256_v10  ;;  %v1553_v29 = vpop.permute.xlu0 %1552  ;;  %2279 = vmatprep.subr.bf16.mxu1 %v2388_v62  ;;  %2266 = vmatprep.subr.bf16.mxu0 %v2390_v12 }
 0x107   : > { %v1196_v28 = vpop.permute.xlu1 %1195  ;;  %v1598_v33 = vsel %vm433_vm8, %v2888_v55, %v1553_v29  ;;  %v917_v29 = vld [vmem:[#allocation3 + $0x30] sm:$0xff] }
 0x108   : > { %v1244_v22 = vsel %vm433_vm8, %v2828_v42, %v1196_v28  ;;  %2252 = vmatprep.mubr.msk.bf16.mxu1 %vm975_vm10, %v2093_v23  ;;  %v915_v28 = vld [vmem:[#allocation3 + $0x20] sm:$0xff] }
 0x109   : > { %v1260_v38 = vsel %vm882_vm9, %v1244_v22, %v2994_v14  ;;  %2285 = vmatpush3.bf16.msra.mxu1 %v2388_v62  ;;  %2267 = vmatpush3.bf16.msra.mxu0 %v2390_v12  ;;  %v1586_v14 = vsel %vm433_vm8, %v2877_v39, %v1545_v17 }
 0x10a   : > { %v2094_v32 = vcombine.low %v1258_v7, %v1260_v38  ;;  %v1549_v51 = vpop.permute.xlu0 %1548  ;;  %2280 = vmatprep.subr.bf16.mxu1 %v2389_v2  ;;  %v918_v7 = vld [vmem:[#allocation3 + $0x38] sm:$0xff] }
 0x10b   : > { %v1547_v41 = vpop.permute.xlu1 %1546  ;;  %v1592_v19 = vsel %vm433_vm8, %v2904_v27, %v1549_v51  ;;  %v916_v51 = vld [vmem:[#allocation3 + $0x28] sm:$0xff] }
 0x10c   : > { %2253 = vmatmul.mubr.msk.bf16.gmra.mrb[4].mxu1 %vm975_vm10, %v2094_v32  ;;  %v1589_v45 = vsel %vm433_vm8, %v2899_v4, %v1547_v41 }
 0x10d   : > { %2286 = vmatpush3.bf16.msra.mxu1 %v2389_v2 }
 0x10e   : > { %v1557_v60 = vpop.permute.xlu0 %1556  ;;  %2281 = vmatprep.subr.bf16.mxu1 %v2390_v12 }
 0x10f   : > { %v1555_v42 = vpop.permute.xlu1 %1554  ;;  %v1604_v37 = vsel %vm433_vm8, %v2918_v21, %v1557_v60  ;;  %v912_v21 = vld [vmem:[#allocation3 + $0x8] sm:$0xff] }
 0x110   : > { %v1601_v53 = vsel %vm433_vm8, %v2923_v35, %v1555_v42 }
 0x111   : > { %2287 = vmatpush3.bf16.msra.mxu1 %v2390_v12 }
 0x112   : > { %v1569_v43 = vpop.permute.xlu0 %1568 }
 0x113   : > { %v1551_v25 = vpop.permute.xlu1 %1550  ;;  %v1609_v54 = vsel %vm882_vm9, %v1586_v14, %v1569_v43 }
 0x114   : > { %v1595_v50 = vsel %vm433_vm8, %v2940_v58, %v1551_v25 }
 0x116   : > { %v1577_v9 = vpop.permute.xlu0 %1576 }
 0x117   : > { %v1559_v44 = vpop.permute.xlu1 %1558  ;;  %v1617_v39 = vsel %vm882_vm9, %v1598_v33, %v1577_v9 }
 0x118   : > { %v1607_v26 = vsel %vm433_vm8, %v2950_v36, %v1559_v44 }
 0x11a   : > { %v1573_v30 = vpop.permute.xlu0 %1572 }
 0x11b   : > { %v1571_v48 = vpop.permute.xlu1 %1570  ;;  %v1613_v55 = vsel %vm882_vm9, %v1592_v19, %v1573_v30 }
 0x11c   : > { %v1611_v49 = vsel %vm882_vm9, %v1589_v45, %v1571_v48 }
 0x11d   : > { %v2125_v20 = vcombine.low %v1609_v54, %v1611_v49 }
 0x11e   : > { %v1581_v57 = vpop.permute.xlu0 %1580 }
 0x11f   : > { %v1579_v3 = vpop.permute.xlu1 %1578  ;;  %2268 = vmatprep.mubr.msk.bf16.mxu0 %vm975_vm10, %v2125_v20  ;;  %v1621_v27 = vsel %vm882_vm9, %v1604_v37, %v1581_v57 }
 0x120   : > { %v1619_v4 = vsel %vm882_vm9, %v1601_v53, %v1579_v3 }
 0x121   : > { %v2127_v16 = vcombine.low %v1617_v39, %v1619_v4 }
 0x123   : > { %v1575_v31 = vpop.permute.xlu1 %1574  ;;  %2272 = vmatprep.mubr.msk.bf16.mxu1 %vm975_vm10, %v2127_v16 }
 0x124   : > { %v1615_v35 = vsel %vm882_vm9, %v1595_v50, %v1575_v31 }
 0x125   : > { %v2126_v8 = vcombine.low %v1613_v55, %v1615_v35 }
 0x127   : > { %v1583_v59 = vpop.permute.xlu1 %1582  ;;  %2269 = vmatmul.mubr.msk.bf16.vlgmr.msra.gmra.mrb[8].mxu0 %vm975_vm10, %v2126_v8 }
 0x128   : > { %v1623_v58 = vsel %vm882_vm9, %v1607_v26, %v1583_v59 }
 0x129   : > { %v2128_v62 = vcombine.low %v1621_v27, %v1623_v58 }
 0x12b   : > { %2273 = vmatmul.mubr.msk.bf16.vlgmr.msra.gmra.mrb[8].mxu1 %vm975_vm10, %v2128_v62 }
 0x1c7   : > { %v2230_v47 = vpop.f32.mrb[0].mxu0 }
 0x1c8   : > { %v1055_v52 = vadd.f32 %v2230_v47, %v913_v63  ;;  %v1022_v11 = vpop.f32.mrb[1].mxu0 }
 0x1c9   : > { %v1053_v24 = vadd.f32 %v1022_v11, %v911_v56  ;;  %v2231_v2 = vpop.f32.mrb[2].mxu0  ;;  %v2183_v56 = vld [vmem:[%s3122_s28 + $0x8] sm:$0xff]   ;;  %v2165_v11 = vld [vmem:[%s3122_s28] sm:$0xff]  }
 0x1ca   : > { %1063 = vst.msk [vmem:[#allocation3 + $0x10] sm:$0xff] %vm433_vm8, %v1055_v52  ;;  %v1056_v36 = vadd.f32 %v2231_v2, %v914_v1  ;;  %v1025_v13 = vpop.f32.mrb[3].mxu0 }
 0x1cb   : > { %1061 = vst.msk [vmem:[#allocation3] sm:$0xff] %vm433_vm8, %v1053_v24  ;;  %v1054_v0 = vadd.f32 %v1025_v13, %v912_v21 }
 0x1cc   : > { %1064 = vst.msk [vmem:[#allocation3 + $0x18] sm:$0xff] %vm433_vm8, %v1056_v36  ;;  %v2139_v36 = vld [vmem:[%s412_s19] ss:$0 sm:$0xff] }
 0x1cd   : > { %1062 = vst.msk [vmem:[#allocation3 + $0x8] sm:$0xff] %vm433_vm8, %v1054_v0  ;;  %v2170_v0 = vunpack.c.l.bf16 %v2183_v56 }
 0x1cf   : > { %v2250_v40 = vpop.f32.mrb[0].mxu1 }
 0x1d0   : > { %v1384_v61 = vpop.f32.mrb[1].mxu1 }
 0x1d1   : > { %v1276_v15 = vld [vmem:[#allocation3 + $0x10] sm:$0xff]  ;;  %v2251_v34 = vpop.f32.mrb[2].mxu1 }
 0x1d2   : > { %v1417_v17 = vadd.f32 %v2250_v40, %v1276_v15  ;;  %v1274_v12 = vld [vmem:[#allocation3] sm:$0xff]  ;;  %v1387_v46 = vpop.f32.mrb[3].mxu1  ;;  %v2185_v15 = vld [vmem:[%s3122_s28 + $0x18] sm:$0xff]  }
 0x1d3   : > { %v1415_v5 = vadd.f32 %v1384_v61, %v1274_v12  ;;  %v1277_v6 = vld [vmem:[#allocation3 + $0x18] sm:$0xff]  ;;  %v2166_v61 = vunpack.c.l.bf16 %v2165_v11  ;;  %v2171_v12 = vunpack.c.h.bf16 %v2183_v56 }
 0x1d4   : > { %1425 = vst.msk [vmem:[#allocation3 + $0x10] sm:$0xff] %vm433_vm8, %v1417_v17  ;;  %v1418_v10 = vadd.f32 %v2251_v34, %v1277_v6  ;;  %v1275_v18 = vld [vmem:[#allocation3 + $0x8] sm:$0xff] }
 0x1d5   : > { %1423 = vst.msk [vmem:[#allocation3] sm:$0xff] %vm433_vm8, %v1415_v5  ;;  %v1416_v23 = vadd.f32 %v1387_v46, %v1275_v18  ;;  %v2184_v46 = vld [vmem:[%s3122_s28 + $0x10] sm:$0xff]   ;;  %s2428_s28 = sshll.u32 %s2508_s17, 4  ;;  %s2429_s28 = int_to_ptr.vmem [resolvable:$false] %s2428_s28 }
 0x1d6   : > { %1426 = vst.msk [vmem:[#allocation3 + $0x18] sm:$0xff] %vm433_vm8, %v1418_v10  ;;  %v2167_v10 = vunpack.c.h.bf16 %v2165_v11  ;;  %s2430_s30 = scalar_lea.vmem %s2429_s28, 2048  ;;  %p2431_p1 = scmp.lt.s32.totalorder %s3154_s8, %s2429_s28 }
 0x1d7   : > { %1424 = vst.msk [vmem:[#allocation3 + $0x8] sm:$0xff] %vm433_vm8, %v1416_v23  ;;  %v2234_v22 = vpop.f32.mrb[4].mxu0  ;;  %p2432_p2 = scmp.lt.s32.totalorder %s2430_s30, %s2424_s16 }
 0x1d8   : > { %v1059_v38 = vadd.f32 %v2234_v22, %v917_v29  ;;  %v1038_v32 = vpop.f32.mrb[5].mxu0 }
 0x1d9   : > { %v1057_v41 = vadd.f32 %v1038_v32, %v915_v28  ;;  %v2235_v60 = vpop.f32.mrb[6].mxu0  ;;  %v2178_v28 = vunpack.c.l.bf16 %v2185_v15  ;;  %v2174_v32 = vunpack.c.l.bf16 %v2184_v46  ;;  %p2433_p3 = por %p2432_p2, %p2431_p1 }
 0x1da   : > { %1067 = vst.msk [vmem:[#allocation3 + $0x30] sm:$0xff] %vm433_vm8, %v1059_v38  ;;  %v1060_v42 = vadd.f32 %v2235_v60, %v918_v7  ;;  %v1041_v25 = vpop.f32.mrb[7].mxu0 }
 0x1db   : > { %1065 = vst.msk [vmem:[#allocation3 + $0x20] sm:$0xff] %vm433_vm8, %v1057_v41  ;;  %v1058_v43 = vadd.f32 %v1041_v25, %v916_v51  ;;  %v1639_v39 = vld [vmem:[#allocation3 + $0x10] sm:$0xff]  ;;  %p2434_p5 = pnand %p2433_p3, %p2427_p0 }
 0x1dc   : > { %1068 = vst.msk [vmem:[#allocation3 + $0x38] sm:$0xff] %vm433_vm8, %v1060_v42  ;;  %v1637_v19 = vld [vmem:[#allocation3] sm:$0xff]  ;;  %v2179_v42 = vunpack.c.h.bf16 %v2185_v15 }
 0x1dd   : > { %1066 = vst.msk [vmem:[#allocation3 + $0x28] sm:$0xff] %vm433_vm8, %v1058_v43  ;;  %v1640_v55 = vld [vmem:[#allocation3 + $0x18] sm:$0xff] }
 0x1de   : > { %v1638_v8 = vld [vmem:[#allocation3 + $0x8] sm:$0xff] }
 0x1df   : > { %v2254_v44 = vpop.f32.mrb[4].mxu1 }
 0x1e0   : > { %v1400_v9 = vpop.f32.mrb[5].mxu1 }
 0x1e1   : > { %v1280_v14 = vld [vmem:[#allocation3 + $0x30] sm:$0xff]  ;;  %v2255_v45 = vpop.f32.mrb[6].mxu1 }
 0x1e2   : > { %v1421_v48 = vadd.f32 %v2254_v44, %v1280_v14  ;;  %v1278_v54 = vld [vmem:[#allocation3 + $0x20] sm:$0xff]  ;;  %v1403_v49 = vpop.f32.mrb[7].mxu1 }
 0x1e3   : > { %v1419_v20 = vadd.f32 %v1400_v9, %v1278_v54  ;;  %v1281_v33 = vld [vmem:[#allocation3 + $0x38] sm:$0xff]  ;;  %v2175_v9 = vunpack.c.h.bf16 %v2184_v46 }
 0x1e4   : > { %1429 = vst.msk [vmem:[#allocation3 + $0x30] sm:$0xff] %vm433_vm8, %v1421_v48  ;;  %v1422_v53 = vadd.f32 %v2255_v45, %v1281_v33  ;;  %v1279_v30 = vld [vmem:[#allocation3 + $0x28] sm:$0xff] }
 0x1e5   : > { %1427 = vst.msk [vmem:[#allocation3 + $0x20] sm:$0xff] %vm433_vm8, %v1419_v20  ;;  %v1420_v3 = vadd.f32 %v1403_v49, %v1279_v30 }
 0x1e6   : > { %1430 = vst.msk [vmem:[#allocation3 + $0x38] sm:$0xff] %vm433_vm8, %v1422_v53 }
 0x1e7   : > { %1428 = vst.msk [vmem:[#allocation3 + $0x28] sm:$0xff] %vm433_vm8, %v1420_v3 }
 0x1eb   : > { %v1643_v59 = vld [vmem:[#allocation3 + $0x30] sm:$0xff] }
 0x1ec   : > { %v1641_v62 = vld [vmem:[#allocation3 + $0x20] sm:$0xff] }
 0x1ed   : > { %v1644_v1 = vld [vmem:[#allocation3 + $0x38] sm:$0xff] }
 0x1ee   : > { %v1642_v24 = vld [vmem:[#allocation3 + $0x28] sm:$0xff] }
 0x1fa   : > { %v2270_v4 = vpop.f32.mrb[8].mxu0 }
 0x1fb   : > { %v1780_v16 = vadd.f32 %v2270_v4, %v1639_v39  ;;  %v1747_v50 = vpop.f32.mrb[9].mxu0 }
 0x1fc   : > { %v1778_v31 = vadd.f32 %v1747_v50, %v1637_v19  ;;  %v2271_v35 = vpop.f32.mrb[10].mxu0 }
 0x1fd   : > { %1788 = vst.msk [vmem:[#allocation3 + $0x10] sm:$0xff] %vm433_vm8, %v1780_v16  ;;  %v1781_v57 = vadd.f32 %v2271_v35, %v1640_v55  ;;  %v1750_v37 = vpop.f32.mrb[11].mxu0 }
 0x1fe   : > { %1786 = vst.msk [vmem:[#allocation3] sm:$0xff] %vm433_vm8, %v1778_v31  ;;  %v1779_v26 = vadd.f32 %v1750_v37, %v1638_v8  ;;  %v2274_v27 = vpop.f32.mrb[8].mxu1 }
 0x1ff   : > { %1789 = vst.msk [vmem:[#allocation3 + $0x18] sm:$0xff] %vm433_vm8, %v1781_v57  ;;  %v1784_v58 = vadd.f32 %v2274_v27, %v1643_v59  ;;  %v1763_v63 = vpop.f32.mrb[9].mxu1 }
 0x200   : > { %1787 = vst.msk [vmem:[#allocation3 + $0x8] sm:$0xff] %vm433_vm8, %v1779_v26  ;;  %v1782_v47 = vadd.f32 %v1763_v63, %v1641_v62  ;;  %v2275_v52 = vpop.f32.mrb[10].mxu1 }
 0x201   : > { %1792 = vst.msk [vmem:[#allocation3 + $0x30] sm:$0xff] %vm433_vm8, %v1784_v58  ;;  %v1785_v21 = vadd.f32 %v2275_v52, %v1644_v1  ;;  %v1766_v2 = vpop.f32.mrb[11].mxu1 }
 0x202   : > { %1790 = vst.msk [vmem:[#allocation3 + $0x20] sm:$0xff] %vm433_vm8, %v1782_v47  ;;  %v1783_v13 = vadd.f32 %v1766_v2, %v1642_v24 }
 0x203   : > { %1793 = vst.msk [vmem:[#allocation3 + $0x38] sm:$0xff] %vm433_vm8, %v1785_v21 }
 0x204   : > { %v1799_v40 = vld [vmem:[#allocation3 + $0x10] sm:$0xff]  ;;  %1791 = vst.msk [vmem:[#allocation3 + $0x28] sm:$0xff] %vm433_vm8, %v1783_v13 }
 0x205   : > { %v1814_v34 = vadd.f32 %v2139_v36, %v1799_v40  ;;  %v1797_v17 = vld [vmem:[#allocation3] sm:$0xff] }
 0x206   : > { %v1812_v5 = vadd.f32 %v2139_v36, %v1797_v17  ;;  %v1800_v6 = vld [vmem:[#allocation3 + $0x18] sm:$0xff] }
 0x207   : > { %v1838_v18 = vadd.f32 %v2170_v0, %v1814_v34  ;;  %v1815_v23 = vadd.f32 %v2139_v36, %v1800_v6  ;;  %v1798_v29 = vld [vmem:[#allocation3 + $0x8] sm:$0xff] }
 0x208   : > { %v1836_v22 = vadd.f32 %v2166_v61, %v1812_v5  ;;  %v1813_v7 = vadd.f32 %v2139_v36, %v1798_v29  ;;  %v1803_v38 = vld [vmem:[#allocation3 + $0x30] sm:$0xff] }
 0x209   : > { %v1839_v51 = vadd.f32 %v2171_v12, %v1815_v23  ;;  %v1818_v41 = vadd.f32 %v2139_v36, %v1803_v38  ;;  %v1801_v60 = vld [vmem:[#allocation3 + $0x20] sm:$0xff]  ;;  %1846 = vst.msk [vmem:[%s377_s20 + $0x10] sm:$0xff] %vm433_vm8, %v1838_v18 }
 0x20a   : > { %v1837_v25 = vadd.f32 %v2167_v10, %v1813_v7  ;;  %v1816_v43 = vadd.f32 %v2139_v36, %v1801_v60  ;;  %v1804_v44 = vld [vmem:[#allocation3 + $0x38] sm:$0xff]  ;;  %1844 = vst.msk [vmem:[%s377_s20] sm:$0xff] %vm433_vm8, %v1836_v22 }
 0x20b   : > { %v1842_v14 = vadd.f32 %v2178_v28, %v1818_v41  ;;  %v1819_v45 = vadd.f32 %v2139_v36, %v1804_v44  ;;  %v1802_v48 = vld [vmem:[#allocation3 + $0x28] sm:$0xff]  ;;  %1847 = vst.msk [vmem:[%s377_s20 + $0x18] sm:$0xff] %vm433_vm8, %v1839_v51 }
 0x20c   : > { %v1840_v54 = vadd.f32 %v2174_v32, %v1816_v43  ;;  %v1817_v49 = vadd.f32 %v2139_v36, %v1802_v48  ;;  %1845 = vst.msk [vmem:[%s377_s20 + $0x8] sm:$0xff] %vm433_vm8, %v1837_v25 }
 0x20d   : > { %v1843_v20 = vadd.f32 %v2179_v42, %v1819_v45  ;;  %1850 = vst.msk [vmem:[%s377_s20 + $0x30] sm:$0xff] %vm433_vm8, %v1842_v14 }
 0x20e   : > { %v1841_v33 = vadd.f32 %v2175_v9, %v1817_v49  ;;  %1848 = vst.msk [vmem:[%s377_s20 + $0x20] sm:$0xff] %vm433_vm8, %v1840_v54 }
 0x20f   : > { %1851 = vst.msk [vmem:[%s377_s20 + $0x38] sm:$0xff] %vm433_vm8, %v1843_v20 }
 0x210   : > { %1849 = vst.msk [vmem:[%s377_s20 + $0x28] sm:$0xff] %vm433_vm8, %v1841_v33 }
 0x211   : > { %2437 = shalt.err (!%p2434_p5)
}
 0x212   : > { %s2438_s18 = scalar_lea.hbm %s3152_s15, 1024  ;;  %s2442_s11 = scalar_lea.hbm %s3213_s6, 2048 }
 0x213   : > { %p2439_p6 = scmp.ne.s32.totalorder %s3152_s15, %s2438_s18  ;;  %p2443_p10 = scmp.lt.u32.totalorder %s3152_s15, %s3213_s6 }
 0x214   : > { %p2444_p11 = scmp.lt.u32.totalorder %s2442_s11, %s2438_s18  ;;  %p2446_p13 = scmp.lt.u32.totalorder %s2438_s18, %s3152_s15 }
 0x215   : > { %p2440_p7 = pnand %p2439_p6, %p2586_p4 }
 0x216   : > { %p2445_p12 = por %p2444_p11, %p2443_p10 }
 0x217   : > { %p2441_p9 = pneg %p2440_p7 }
 0x218   : > { %p2447_p0 = por %p2446_p13, %p2445_p12 }
 0x21a   : > { %p2448_p1 = pnand %p2447_p0, %p2441_p9 }
 0x21c   : > { %2451 = shalt.err (!%p2448_p1)
}
 0x21d   : > { %s2509_s13 = smov 128   ;;  %s2510_s14 = smov 8  }
 0x21e   : > { %2288 = dma.vmem_to_hbm [thread:$0]  (%p2586_p4), %s3154_s8, 1024, %s3152_s15, %s3161_s24, %s2509_s13, %s2509_s13, %s2510_s14  }
 0x21f PF: > { %p2294_p2 = scmp.ge.s32.totalorder %s2502_s26, 2  ;;  %s1882_s16 = sand.u32 1, %s2482_s21  }
 0x220   : > { %s1883_s17 = scalar_lea.sflag [#allocation5], %s1882_s16 }
 0x221   : > { %p2291_p3 = pnand %p2294_p2, %p2593_p8 }
 0x223   : > { %2477 = dma.done.wait (!%p2291_p3), %s1883_s17, 1024  }
 0x224   : > { %2479 = vsyncadd (!%p2291_p3), %s1883_s17, 4294966272  ;;  %s19_s26 = sadd.s32 1, %s2502_s26   ;;  %s3220_s21 = smov %s2486_s22 }
 0x225   : > { %p16_p5 = scmp.ge.s32.totalorder %s19_s26, 4   ;;  %s3221_s22 = smov %s2490_s23 }
 0x226   : > { %s3222_s23 = smov %s2599_s10  ;;  %s3223_s24 = smov %s2498_s25 }
 0x227   : > { %s3224_s25 = smov %s3226_s29  ;;  %18 = sbr.rel (!%p16_p5) target bundleno = 4 (0x4), region = 107 }
 0x22e   :  { %1888 = vsyncpa [#allocation5], 1 }
 0x22f   :  { %1890 = vsyncpa [#allocation5 + $0x1], 1 }

</bundles_post_ra>
